<compile_context>
chip_gen: v7x
topology: tpu7x:2x2x1
jax: 0.10.0
libtpu: 0.0.40
codegen_flags: <defaults>
</compile_context>

<pallas_src>
import jax
import jax.numpy as jnp
from jax.experimental import pallas as pl
from jax.experimental.pallas import tpu as pltpu


def _resblock_kernel(x_ref, w1_ref, w2_ref, bn_ref, o_ref, pad_ref, col_ref):
    # x_ref : (1, H, W, C)   one batch element per grid step (NHWC, C on lanes)
    # w*_ref: (9*C, C)       bf16 im2col weights, rows ordered (dh, dw, c_in)
    # bn_ref: (4, C)         f32 rows: [scale1, shift1, scale2, shift2]
    # pad_ref: VMEM (H+2, W+2, C) bf16  zero-bordered conv input (reused)
    # col_ref: VMEM (H*W, 9*C)    bf16  im2col slab (reused by both convs)
    _, H, W, C = x_ref.shape
    x = x_ref[0].astype(jnp.float32)                      # (H, W, C)

    # Zero only the 1-pixel border, and only once: the interior is fully
    # overwritten before each conv and the border stays zero for both convs.
    zrow = jnp.zeros((1, W + 2, C), pad_ref.dtype)
    zcol = jnp.zeros((H + 2, 1, C), pad_ref.dtype)
    pad_ref[0:1] = zrow
    pad_ref[H + 1:H + 2] = zrow
    pad_ref[:, 0:1, :] = zcol
    pad_ref[:, W + 1:W + 2, :] = zcol

    def conv3x3(t_bf16, w_ref):
        # t_bf16: (H, W, C) bf16 activation.  Returns (H*W, C) f32.
        pad_ref[1:H + 1, 1:W + 1, :] = t_bf16
        # Pack all 9 taps into one (H*W, 9C) slab -> single big-K MXU matmul.
        for dh in range(3):
            for dw in range(3):
                k = dh * 3 + dw
                col_ref[:, k * C:(k + 1) * C] = (
                    pad_ref[dh:dh + H, dw:dw + W, :].reshape(H * W, C))
        return jnp.dot(col_ref[...], w_ref[...],
                       preferred_element_type=jnp.float32)

    # bn1 + relu (f32 on the VPU), conv1 (bf16 on the MXU)
    t1 = jnp.maximum(x * bn_ref[0] + bn_ref[1], 0.0).astype(jnp.bfloat16)
    o1 = conv3x3(t1, w1_ref).reshape(H, W, C)
    # bn2 + relu, conv2
    t2 = jnp.maximum(o1 * bn_ref[2] + bn_ref[3], 0.0).astype(jnp.bfloat16)
    o2 = conv3x3(t2, w2_ref).reshape(H, W, C)
    # residual add (f32)
    o_ref[0] = (o2 + x).astype(o_ref.dtype)


def residual_block_pallas(x_nchw, w1_oihw, w2_oihw, bn1_params, bn2_params, eps=1e-5):
    """ResidualBlock(in_c, out_c, downsample=False) forward. Requires in_c == out_c."""
    N, C, H, W = x_nchw.shape
    Cout = w1_oihw.shape[0]
    assert C == Cout, "non-downsample residual block requires in_channels == out_channels"

    # Layout glue: NCHW -> NHWC activations; OIHW -> (9*Cin, Cout) bf16 im2col weights.
    x = jnp.transpose(x_nchw, (0, 2, 3, 1))

    def im2col_weight(w_oihw):
        # w_col[(dh*3+dw)*C + c_in, c_out] = w[c_out, c_in, dh, dw]
        return (jnp.transpose(w_oihw, (2, 3, 1, 0))
                .reshape(9 * C, Cout).astype(jnp.bfloat16))

    w1 = im2col_weight(w1_oihw)
    w2 = im2col_weight(w2_oihw)

    def fold(bn):
        gamma, beta, mean, var = bn
        scale = gamma / jnp.sqrt(var + eps)
        shift = beta - mean * scale
        return scale, shift

    s1, b1 = fold(bn1_params)
    s2, b2 = fold(bn2_params)
    bn = jnp.stack([s1, b1, s2, b2]).astype(jnp.float32)   # (4, C), one small input

    out_nhwc = pl.pallas_call(
        _resblock_kernel,
        out_shape=jax.ShapeDtypeStruct((N, H, W, C), x.dtype),
        grid_spec=pltpu.PrefetchScalarGridSpec(
            num_scalar_prefetch=0,
            grid=(N,),
            in_specs=[
                pl.BlockSpec((1, H, W, C), lambda n: (n, 0, 0, 0)),   # x (per-batch)
                pl.BlockSpec((9 * C, C), lambda n: (0, 0)),            # conv1 weights
                pl.BlockSpec((9 * C, C), lambda n: (0, 0)),            # conv2 weights
                pl.BlockSpec((4, C), lambda n: (0, 0)),                # folded BN params
            ],
            out_specs=pl.BlockSpec((1, H, W, C), lambda n: (n, 0, 0, 0)),
            scratch_shapes=[
                pltpu.VMEM((H + 2, W + 2, C), jnp.bfloat16),           # padded activation
                pltpu.VMEM((H * W, 9 * C), jnp.bfloat16),              # im2col slab
            ],
        ),
        compiler_params=pltpu.CompilerParams(
            dimension_semantics=("parallel",)),                        # shard batch on v7x
    )(x, w1, w2, bn)

    return jnp.transpose(out_nhwc, (0, 3, 1, 2))           # NHWC -> NCHW


def _reference(x, w1, w2, bn1, bn2, eps=1e-5):
    """Pure-JAX f32 reference mirroring the PyTorch forward (eval-mode BN), NCHW."""
    def bn(v, p):
        gamma, beta, mean, var = p
        c = v.shape[1]
        sc = (gamma / jnp.sqrt(var + eps)).reshape(1, c, 1, 1)
        sh = (beta - mean * gamma / jnp.sqrt(var + eps)).reshape(1, c, 1, 1)
        return v * sc + sh

    def conv(v, w):
        return jax.lax.conv_general_dilated(
            v, w, window_strides=(1, 1), padding=((1, 1), (1, 1)),
            dimension_numbers=("NCHW", "OIHW", "NCHW"))

    out = jnp.maximum(bn(x, bn1), 0.0)
    out = conv(out, w1)
    out = jnp.maximum(bn(out, bn2), 0.0)
    out = conv(out, w2)
    return out + x


if __name__ == "__main__":
    N, C, H, W = 2, 4, 16, 16
    key = jax.random.PRNGKey(0)
    kx, kw1, kw2, kg1, kb1, km1, kv1, kg2, kb2, km2, kv2 = jax.random.split(key, 11)

    x = jax.random.normal(kx, (N, C, H, W), jnp.float32)
    w1 = jax.random.normal(kw1, (C, C, 3, 3), jnp.float32) * 0.1   # conv1 (OIHW)
    w2 = jax.random.normal(kw2, (C, C, 3, 3), jnp.float32) * 0.1   # conv2 (OIHW)

    # deterministic BatchNorm params: gamma, beta, running_mean, running_var
    bn1 = (1.0 + 0.1 * jax.random.normal(kg1, (C,), jnp.float32),
           0.1 * jax.random.normal(kb1, (C,), jnp.float32),
           0.1 * jax.random.normal(km1, (C,), jnp.float32),
           1.0 + 0.1 * jax.random.uniform(kv1, (C,), jnp.float32))
    bn2 = (1.0 + 0.1 * jax.random.normal(kg2, (C,), jnp.float32),
           0.1 * jax.random.normal(kb2, (C,), jnp.float32),
           0.1 * jax.random.normal(km2, (C,), jnp.float32),
           1.0 + 0.1 * jax.random.uniform(kv2, (C,), jnp.float32))

    out = residual_block_pallas(x, w1, w2, bn1, bn2)
    out = jax.block_until_ready(out)

    ref = _reference(x, w1, w2, bn1, bn2)
    assert out.shape == (N, C, H, W)
    # Tolerance reflects bf16 matmul operands (f32 accumulation); structural bugs
    # would produce errors orders of magnitude larger.
    assert jnp.allclose(out, ref, atol=2e-2, rtol=2e-2), \
        f"max abs err {jnp.max(jnp.abs(out - ref))}"

    print("KERNEL_OK")
</pallas_src>

<mosaic_0001>
module attributes {stable_mosaic.version = 11 : i64} {
  func.func @_resblock_kernel(%arg0: i32, %arg1: memref<1x16x16x4xf32, #tpu.memory_space<vmem>>, %arg2: memref<36x4xbf16, #tpu.memory_space<vmem>>, %arg3: memref<36x4xbf16, #tpu.memory_space<vmem>>, %arg4: memref<4x4xf32, #tpu.memory_space<vmem>>, %arg5: memref<1x16x16x4xf32, #tpu.memory_space<vmem>>, %arg6: memref<18x18x4xbf16, #tpu.memory_space<vmem>>, %arg7: memref<256x36xbf16, #tpu.memory_space<vmem>>) attributes {dimension_semantics = [#tpu.dimension_semantics<parallel>], iteration_bounds = array<i64: 2>, scalar_prefetch = 0 : i64, scratch_operands = 2 : i64, tpu.core_type = #tpu.core_type<tc>, window_params = [{transform_indices = @transform_0, window_bounds = array<i64: 1, 16, 16, 4>}, {pipeline_mode = #tpu.pipeline_mode<synchronous>, transform_indices = @transform_1, window_bounds = array<i64: 36, 4>}, {pipeline_mode = #tpu.pipeline_mode<synchronous>, transform_indices = @transform_2, window_bounds = array<i64: 36, 4>}, {pipeline_mode = #tpu.pipeline_mode<synchronous>, transform_indices = @transform_3, window_bounds = array<i64: 4, 4>}, {transform_indices = @transform_4, window_bounds = array<i64: 1, 16, 16, 4>}]} {
    %c0 = arith.constant 0 : index
    %c0_0 = arith.constant 0 : index
    %c0_1 = arith.constant 0 : index
    %c0_2 = arith.constant 0 : index
    %0 = vector.load %arg1[%c0, %c0_0, %c0_1, %c0_2] : memref<1x16x16x4xf32, #tpu.memory_space<vmem>>, vector<1x16x16x4xf32>
    %1 = vector.shape_cast %0 : vector<1x16x16x4xf32> to vector<16x16x4xf32>
    %cst = arith.constant 0.000000e+00 : bf16
    %2 = vector.broadcast %cst : bf16 to vector<1x18x4xbf16>
    %cst_3 = arith.constant 0.000000e+00 : bf16
    %3 = vector.broadcast %cst_3 : bf16 to vector<18x1x4xbf16>
    %c0_4 = arith.constant 0 : index
    %c0_5 = arith.constant 0 : index
    %c0_6 = arith.constant 0 : index
    %4 = vector.load %arg6[%c0_4, %c0_5, %c0_6] : memref<18x18x4xbf16, #tpu.memory_space<vmem>>, vector<1x18x4xbf16>
    tpu.vector_store %arg6[%c0_4, %c0_5, %c0_6], %2 {strides = array<i32>} : memref<18x18x4xbf16, #tpu.memory_space<vmem>>, vector<1x18x4xbf16>,
    %c17 = arith.constant 17 : index
    %c0_7 = arith.constant 0 : index
    %c0_8 = arith.constant 0 : index
    %5 = vector.load %arg6[%c17, %c0_7, %c0_8] : memref<18x18x4xbf16, #tpu.memory_space<vmem>>, vector<1x18x4xbf16>
    tpu.vector_store %arg6[%c17, %c0_7, %c0_8], %2 {strides = array<i32>} : memref<18x18x4xbf16, #tpu.memory_space<vmem>>, vector<1x18x4xbf16>,
    %c0_9 = arith.constant 0 : index
    %c0_10 = arith.constant 0 : index
    %c0_11 = arith.constant 0 : index
    %6 = vector.load %arg6[%c0_9, %c0_10, %c0_11] : memref<18x18x4xbf16, #tpu.memory_space<vmem>>, vector<18x1x4xbf16>
    tpu.vector_store %arg6[%c0_9, %c0_10, %c0_11], %3 {strides = array<i32>} : memref<18x18x4xbf16, #tpu.memory_space<vmem>>, vector<18x1x4xbf16>,
    %c0_12 = arith.constant 0 : index
    %c17_13 = arith.constant 17 : index
    %c0_14 = arith.constant 0 : index
    %7 = vector.load %arg6[%c0_12, %c17_13, %c0_14] : memref<18x18x4xbf16, #tpu.memory_space<vmem>>, vector<18x1x4xbf16>
    tpu.vector_store %arg6[%c0_12, %c17_13, %c0_14], %3 {strides = array<i32>} : memref<18x18x4xbf16, #tpu.memory_space<vmem>>, vector<18x1x4xbf16>,
    %c0_15 = arith.constant 0 : index
    %c0_16 = arith.constant 0 : index
    %8 = vector.load %arg4[%c0_15, %c0_16] : memref<4x4xf32, #tpu.memory_space<vmem>>, vector<1x4xf32>
    %9 = vector.shape_cast %8 : vector<1x4xf32> to vector<4xf32>
    %10 = vector.shape_cast %9 : vector<4xf32> to vector<1x1x4xf32>
    %11 = vector.broadcast %10 : vector<1x1x4xf32> to vector<16x16x4xf32>
    %12 = arith.mulf %1, %11 : vector<16x16x4xf32>
    %c1 = arith.constant 1 : index
    %c0_17 = arith.constant 0 : index
    %13 = vector.load %arg4[%c1, %c0_17] : memref<4x4xf32, #tpu.memory_space<vmem>>, vector<1x4xf32>
    %14 = vector.shape_cast %13 : vector<1x4xf32> to vector<4xf32>
    %15 = vector.shape_cast %14 : vector<4xf32> to vector<1x1x4xf32>
    %16 = vector.broadcast %15 : vector<1x1x4xf32> to vector<16x16x4xf32>
    %17 = arith.addf %12, %16 : vector<16x16x4xf32>
    %cst_18 = arith.constant 0.000000e+00 : f32
    %18 = vector.broadcast %cst_18 : f32 to vector<16x16x4xf32>
    %19 = arith.maximumf %17, %18 : vector<16x16x4xf32>
    %20 = arith.truncf %19 : vector<16x16x4xf32> to vector<16x16x4xbf16>
    %c1_19 = arith.constant 1 : index
    %c1_20 = arith.constant 1 : index
    %c0_21 = arith.constant 0 : index
    %21 = vector.load %arg6[%c1_19, %c1_20, %c0_21] : memref<18x18x4xbf16, #tpu.memory_space<vmem>>, vector<16x16x4xbf16>
    tpu.vector_store %arg6[%c1_19, %c1_20, %c0_21], %20 {strides = array<i32>} : memref<18x18x4xbf16, #tpu.memory_space<vmem>>, vector<16x16x4xbf16>,
    %c0_22 = arith.constant 0 : index
    %c0_23 = arith.constant 0 : index
    %c0_24 = arith.constant 0 : index
    %22 = vector.load %arg6[%c0_22, %c0_23, %c0_24] : memref<18x18x4xbf16, #tpu.memory_space<vmem>>, vector<16x16x4xbf16>
    %23 = vector.shape_cast %22 : vector<16x16x4xbf16> to vector<256x4xbf16>
    %c0_25 = arith.constant 0 : index
    %c0_26 = arith.constant 0 : index
    %24 = vector.load %arg7[%c0_25, %c0_26] : memref<256x36xbf16, #tpu.memory_space<vmem>>, vector<256x4xbf16>
    tpu.vector_store %arg7[%c0_25, %c0_26], %23 {strides = array<i32>} : memref<256x36xbf16, #tpu.memory_space<vmem>>, vector<256x4xbf16>,
    %c0_27 = arith.constant 0 : index
    %c1_28 = arith.constant 1 : index
    %c0_29 = arith.constant 0 : index
    %25 = vector.load %arg6[%c0_27, %c1_28, %c0_29] : memref<18x18x4xbf16, #tpu.memory_space<vmem>>, vector<16x16x4xbf16>
    %26 = vector.shape_cast %25 : vector<16x16x4xbf16> to vector<256x4xbf16>
    %c0_30 = arith.constant 0 : index
    %c4 = arith.constant 4 : index
    %27 = vector.load %arg7[%c0_30, %c4] : memref<256x36xbf16, #tpu.memory_space<vmem>>, vector<256x4xbf16>
    tpu.vector_store %arg7[%c0_30, %c4], %26 {strides = array<i32>} : memref<256x36xbf16, #tpu.memory_space<vmem>>, vector<256x4xbf16>,
    %c0_31 = arith.constant 0 : index
    %c2 = arith.constant 2 : index
    %c0_32 = arith.constant 0 : index
    %28 = vector.load %arg6[%c0_31, %c2, %c0_32] : memref<18x18x4xbf16, #tpu.memory_space<vmem>>, vector<16x16x4xbf16>
    %29 = vector.shape_cast %28 : vector<16x16x4xbf16> to vector<256x4xbf16>
    %c0_33 = arith.constant 0 : index
    %c8 = arith.constant 8 : index
    %30 = vector.load %arg7[%c0_33, %c8] : memref<256x36xbf16, #tpu.memory_space<vmem>>, vector<256x4xbf16>
    tpu.vector_store %arg7[%c0_33, %c8], %29 {strides = array<i32>} : memref<256x36xbf16, #tpu.memory_space<vmem>>, vector<256x4xbf16>,
    %c1_34 = arith.constant 1 : index
    %c0_35 = arith.constant 0 : index
    %c0_36 = arith.constant 0 : index
    %31 = vector.load %arg6[%c1_34, %c0_35, %c0_36] : memref<18x18x4xbf16, #tpu.memory_space<vmem>>, vector<16x16x4xbf16>
    %32 = vector.shape_cast %31 : vector<16x16x4xbf16> to vector<256x4xbf16>
    %c0_37 = arith.constant 0 : index
    %c12 = arith.constant 12 : index
    %33 = vector.load %arg7[%c0_37, %c12] : memref<256x36xbf16, #tpu.memory_space<vmem>>, vector<256x4xbf16>
    tpu.vector_store %arg7[%c0_37, %c12], %32 {strides = array<i32>} : memref<256x36xbf16, #tpu.memory_space<vmem>>, vector<256x4xbf16>,
    %c1_38 = arith.constant 1 : index
    %c1_39 = arith.constant 1 : index
    %c0_40 = arith.constant 0 : index
    %34 = vector.load %arg6[%c1_38, %c1_39, %c0_40] : memref<18x18x4xbf16, #tpu.memory_space<vmem>>, vector<16x16x4xbf16>
    %35 = vector.shape_cast %34 : vector<16x16x4xbf16> to vector<256x4xbf16>
    %c0_41 = arith.constant 0 : index
    %c16 = arith.constant 16 : index
    %36 = vector.load %arg7[%c0_41, %c16] : memref<256x36xbf16, #tpu.memory_space<vmem>>, vector<256x4xbf16>
    tpu.vector_store %arg7[%c0_41, %c16], %35 {strides = array<i32>} : memref<256x36xbf16, #tpu.memory_space<vmem>>, vector<256x4xbf16>,
    %c1_42 = arith.constant 1 : index
    %c2_43 = arith.constant 2 : index
    %c0_44 = arith.constant 0 : index
    %37 = vector.load %arg6[%c1_42, %c2_43, %c0_44] : memref<18x18x4xbf16, #tpu.memory_space<vmem>>, vector<16x16x4xbf16>
    %38 = vector.shape_cast %37 : vector<16x16x4xbf16> to vector<256x4xbf16>
    %c0_45 = arith.constant 0 : index
    %c20 = arith.constant 20 : index
    %39 = vector.load %arg7[%c0_45, %c20] : memref<256x36xbf16, #tpu.memory_space<vmem>>, vector<256x4xbf16>
    tpu.vector_store %arg7[%c0_45, %c20], %38 {strides = array<i32>} : memref<256x36xbf16, #tpu.memory_space<vmem>>, vector<256x4xbf16>,
    %c2_46 = arith.constant 2 : index
    %c0_47 = arith.constant 0 : index
    %c0_48 = arith.constant 0 : index
    %40 = vector.load %arg6[%c2_46, %c0_47, %c0_48] : memref<18x18x4xbf16, #tpu.memory_space<vmem>>, vector<16x16x4xbf16>
    %41 = vector.shape_cast %40 : vector<16x16x4xbf16> to vector<256x4xbf16>
    %c0_49 = arith.constant 0 : index
    %c24 = arith.constant 24 : index
    %42 = vector.load %arg7[%c0_49, %c24] : memref<256x36xbf16, #tpu.memory_space<vmem>>, vector<256x4xbf16>
    tpu.vector_store %arg7[%c0_49, %c24], %41 {strides = array<i32>} : memref<256x36xbf16, #tpu.memory_space<vmem>>, vector<256x4xbf16>,
    %c2_50 = arith.constant 2 : index
    %c1_51 = arith.constant 1 : index
    %c0_52 = arith.constant 0 : index
    %43 = vector.load %arg6[%c2_50, %c1_51, %c0_52] : memref<18x18x4xbf16, #tpu.memory_space<vmem>>, vector<16x16x4xbf16>
    %44 = vector.shape_cast %43 : vector<16x16x4xbf16> to vector<256x4xbf16>
    %c0_53 = arith.constant 0 : index
    %c28 = arith.constant 28 : index
    %45 = vector.load %arg7[%c0_53, %c28] : memref<256x36xbf16, #tpu.memory_space<vmem>>, vector<256x4xbf16>
    tpu.vector_store %arg7[%c0_53, %c28], %44 {strides = array<i32>} : memref<256x36xbf16, #tpu.memory_space<vmem>>, vector<256x4xbf16>,
    %c2_54 = arith.constant 2 : index
    %c2_55 = arith.constant 2 : index
    %c0_56 = arith.constant 0 : index
    %46 = vector.load %arg6[%c2_54, %c2_55, %c0_56] : memref<18x18x4xbf16, #tpu.memory_space<vmem>>, vector<16x16x4xbf16>
    %47 = vector.shape_cast %46 : vector<16x16x4xbf16> to vector<256x4xbf16>
    %c0_57 = arith.constant 0 : index
    %c32 = arith.constant 32 : index
    %48 = vector.load %arg7[%c0_57, %c32] : memref<256x36xbf16, #tpu.memory_space<vmem>>, vector<256x4xbf16>
    tpu.vector_store %arg7[%c0_57, %c32], %47 {strides = array<i32>} : memref<256x36xbf16, #tpu.memory_space<vmem>>, vector<256x4xbf16>,
    %c0_58 = arith.constant 0 : index
    %c0_59 = arith.constant 0 : index
    %49 = vector.load %arg7[%c0_58, %c0_59] : memref<256x36xbf16, #tpu.memory_space<vmem>>, vector<256x36xbf16>
    %c0_60 = arith.constant 0 : index
    %c0_61 = arith.constant 0 : index
    %50 = vector.load %arg2[%c0_60, %c0_61] : memref<36x4xbf16, #tpu.memory_space<vmem>>, vector<36x4xbf16>
    %cst_62 = arith.constant dense<0.000000e+00> : vector<256x4xf32>
    %51 = tpu.matmul %49, %50, %cst_62 {dimension_numbers = #tpu.dot_dimension_numbers<[1], [0], [0], [1], [0, 0, 1, 1], [], []>} : vector<256x36xbf16>, vector<36x4xbf16>, vector<256x4xf32> -> vector<256x4xf32>
    %52 = vector.shape_cast %51 : vector<256x4xf32> to vector<16x16x4xf32>
    %c2_63 = arith.constant 2 : index
    %c0_64 = arith.constant 0 : index
    %53 = vector.load %arg4[%c2_63, %c0_64] : memref<4x4xf32, #tpu.memory_space<vmem>>, vector<1x4xf32>
    %54 = vector.shape_cast %53 : vector<1x4xf32> to vector<4xf32>
    %55 = vector.shape_cast %54 : vector<4xf32> to vector<1x1x4xf32>
    %56 = vector.broadcast %55 : vector<1x1x4xf32> to vector<16x16x4xf32>
    %57 = arith.mulf %52, %56 : vector<16x16x4xf32>
    %c3 = arith.constant 3 : index
    %c0_65 = arith.constant 0 : index
    %58 = vector.load %arg4[%c3, %c0_65] : memref<4x4xf32, #tpu.memory_space<vmem>>, vector<1x4xf32>
    %59 = vector.shape_cast %58 : vector<1x4xf32> to vector<4xf32>
    %60 = vector.shape_cast %59 : vector<4xf32> to vector<1x1x4xf32>
    %61 = vector.broadcast %60 : vector<1x1x4xf32> to vector<16x16x4xf32>
    %62 = arith.addf %57, %61 : vector<16x16x4xf32>
    %cst_66 = arith.constant 0.000000e+00 : f32
    %63 = vector.broadcast %cst_66 : f32 to vector<16x16x4xf32>
    %64 = arith.maximumf %62, %63 : vector<16x16x4xf32>
    %65 = arith.truncf %64 : vector<16x16x4xf32> to vector<16x16x4xbf16>
    %c1_67 = arith.constant 1 : index
    %c1_68 = arith.constant 1 : index
    %c0_69 = arith.constant 0 : index
    %66 = vector.load %arg6[%c1_67, %c1_68, %c0_69] : memref<18x18x4xbf16, #tpu.memory_space<vmem>>, vector<16x16x4xbf16>
    tpu.vector_store %arg6[%c1_67, %c1_68, %c0_69], %65 {strides = array<i32>} : memref<18x18x4xbf16, #tpu.memory_space<vmem>>, vector<16x16x4xbf16>,
    %c0_70 = arith.constant 0 : index
    %c0_71 = arith.constant 0 : index
    %c0_72 = arith.constant 0 : index
    %67 = vector.load %arg6[%c0_70, %c0_71, %c0_72] : memref<18x18x4xbf16, #tpu.memory_space<vmem>>, vector<16x16x4xbf16>
    %68 = vector.shape_cast %67 : vector<16x16x4xbf16> to vector<256x4xbf16>
    %c0_73 = arith.constant 0 : index
    %c0_74 = arith.constant 0 : index
    %69 = vector.load %arg7[%c0_73, %c0_74] : memref<256x36xbf16, #tpu.memory_space<vmem>>, vector<256x4xbf16>
    tpu.vector_store %arg7[%c0_73, %c0_74], %68 {strides = array<i32>} : memref<256x36xbf16, #tpu.memory_space<vmem>>, vector<256x4xbf16>,
    %c0_75 = arith.constant 0 : index
    %c1_76 = arith.constant 1 : index
    %c0_77 = arith.constant 0 : index
    %70 = vector.load %arg6[%c0_75, %c1_76, %c0_77] : memref<18x18x4xbf16, #tpu.memory_space<vmem>>, vector<16x16x4xbf16>
    %71 = vector.shape_cast %70 : vector<16x16x4xbf16> to vector<256x4xbf16>
    %c0_78 = arith.constant 0 : index
    %c4_79 = arith.constant 4 : index
    %72 = vector.load %arg7[%c0_78, %c4_79] : memref<256x36xbf16, #tpu.memory_space<vmem>>, vector<256x4xbf16>
    tpu.vector_store %arg7[%c0_78, %c4_79], %71 {strides = array<i32>} : memref<256x36xbf16, #tpu.memory_space<vmem>>, vector<256x4xbf16>,
    %c0_80 = arith.constant 0 : index
    %c2_81 = arith.constant 2 : index
    %c0_82 = arith.constant 0 : index
    %73 = vector.load %arg6[%c0_80, %c2_81, %c0_82] : memref<18x18x4xbf16, #tpu.memory_space<vmem>>, vector<16x16x4xbf16>
    %74 = vector.shape_cast %73 : vector<16x16x4xbf16> to vector<256x4xbf16>
    %c0_83 = arith.constant 0 : index
    %c8_84 = arith.constant 8 : index
    %75 = vector.load %arg7[%c0_83, %c8_84] : memref<256x36xbf16, #tpu.memory_space<vmem>>, vector<256x4xbf16>
    tpu.vector_store %arg7[%c0_83, %c8_84], %74 {strides = array<i32>} : memref<256x36xbf16, #tpu.memory_space<vmem>>, vector<256x4xbf16>,
    %c1_85 = arith.constant 1 : index
    %c0_86 = arith.constant 0 : index
    %c0_87 = arith.constant 0 : index
    %76 = vector.load %arg6[%c1_85, %c0_86, %c0_87] : memref<18x18x4xbf16, #tpu.memory_space<vmem>>, vector<16x16x4xbf16>
    %77 = vector.shape_cast %76 : vector<16x16x4xbf16> to vector<256x4xbf16>
    %c0_88 = arith.constant 0 : index
    %c12_89 = arith.constant 12 : index
    %78 = vector.load %arg7[%c0_88, %c12_89] : memref<256x36xbf16, #tpu.memory_space<vmem>>, vector<256x4xbf16>
    tpu.vector_store %arg7[%c0_88, %c12_89], %77 {strides = array<i32>} : memref<256x36xbf16, #tpu.memory_space<vmem>>, vector<256x4xbf16>,
    %c1_90 = arith.constant 1 : index
    %c1_91 = arith.constant 1 : index
    %c0_92 = arith.constant 0 : index
    %79 = vector.load %arg6[%c1_90, %c1_91, %c0_92] : memref<18x18x4xbf16, #tpu.memory_space<vmem>>, vector<16x16x4xbf16>
    %80 = vector.shape_cast %79 : vector<16x16x4xbf16> to vector<256x4xbf16>
    %c0_93 = arith.constant 0 : index
    %c16_94 = arith.constant 16 : index
    %81 = vector.load %arg7[%c0_93, %c16_94] : memref<256x36xbf16, #tpu.memory_space<vmem>>, vector<256x4xbf16>
    tpu.vector_store %arg7[%c0_93, %c16_94], %80 {strides = array<i32>} : memref<256x36xbf16, #tpu.memory_space<vmem>>, vector<256x4xbf16>,
    %c1_95 = arith.constant 1 : index
    %c2_96 = arith.constant 2 : index
    %c0_97 = arith.constant 0 : index
    %82 = vector.load %arg6[%c1_95, %c2_96, %c0_97] : memref<18x18x4xbf16, #tpu.memory_space<vmem>>, vector<16x16x4xbf16>
    %83 = vector.shape_cast %82 : vector<16x16x4xbf16> to vector<256x4xbf16>
    %c0_98 = arith.constant 0 : index
    %c20_99 = arith.constant 20 : index
    %84 = vector.load %arg7[%c0_98, %c20_99] : memref<256x36xbf16, #tpu.memory_space<vmem>>, vector<256x4xbf16>
    tpu.vector_store %arg7[%c0_98, %c20_99], %83 {strides = array<i32>} : memref<256x36xbf16, #tpu.memory_space<vmem>>, vector<256x4xbf16>,
    %c2_100 = arith.constant 2 : index
    %c0_101 = arith.constant 0 : index
    %c0_102 = arith.constant 0 : index
    %85 = vector.load %arg6[%c2_100, %c0_101, %c0_102] : memref<18x18x4xbf16, #tpu.memory_space<vmem>>, vector<16x16x4xbf16>
    %86 = vector.shape_cast %85 : vector<16x16x4xbf16> to vector<256x4xbf16>
    %c0_103 = arith.constant 0 : index
    %c24_104 = arith.constant 24 : index
    %87 = vector.load %arg7[%c0_103, %c24_104] : memref<256x36xbf16, #tpu.memory_space<vmem>>, vector<256x4xbf16>
    tpu.vector_store %arg7[%c0_103, %c24_104], %86 {strides = array<i32>} : memref<256x36xbf16, #tpu.memory_space<vmem>>, vector<256x4xbf16>,
    %c2_105 = arith.constant 2 : index
    %c1_106 = arith.constant 1 : index
    %c0_107 = arith.constant 0 : index
    %88 = vector.load %arg6[%c2_105, %c1_106, %c0_107] : memref<18x18x4xbf16, #tpu.memory_space<vmem>>, vector<16x16x4xbf16>
    %89 = vector.shape_cast %88 : vector<16x16x4xbf16> to vector<256x4xbf16>
    %c0_108 = arith.constant 0 : index
    %c28_109 = arith.constant 28 : index
    %90 = vector.load %arg7[%c0_108, %c28_109] : memref<256x36xbf16, #tpu.memory_space<vmem>>, vector<256x4xbf16>
    tpu.vector_store %arg7[%c0_108, %c28_109], %89 {strides = array<i32>} : memref<256x36xbf16, #tpu.memory_space<vmem>>, vector<256x4xbf16>,
    %c2_110 = arith.constant 2 : index
    %c2_111 = arith.constant 2 : index
    %c0_112 = arith.constant 0 : index
    %91 = vector.load %arg6[%c2_110, %c2_111, %c0_112] : memref<18x18x4xbf16, #tpu.memory_space<vmem>>, vector<16x16x4xbf16>
    %92 = vector.shape_cast %91 : vector<16x16x4xbf16> to vector<256x4xbf16>
    %c0_113 = arith.constant 0 : index
    %c32_114 = arith.constant 32 : index
    %93 = vector.load %arg7[%c0_113, %c32_114] : memref<256x36xbf16, #tpu.memory_space<vmem>>, vector<256x4xbf16>
    tpu.vector_store %arg7[%c0_113, %c32_114], %92 {strides = array<i32>} : memref<256x36xbf16, #tpu.memory_space<vmem>>, vector<256x4xbf16>,
    %c0_115 = arith.constant 0 : index
    %c0_116 = arith.constant 0 : index
    %94 = vector.load %arg7[%c0_115, %c0_116] : memref<256x36xbf16, #tpu.memory_space<vmem>>, vector<256x36xbf16>
    %c0_117 = arith.constant 0 : index
    %c0_118 = arith.constant 0 : index
    %95 = vector.load %arg3[%c0_117, %c0_118] : memref<36x4xbf16, #tpu.memory_space<vmem>>, vector<36x4xbf16>
    %cst_119 = arith.constant dense<0.000000e+00> : vector<256x4xf32>
    %96 = tpu.matmul %94, %95, %cst_119 {dimension_numbers = #tpu.dot_dimension_numbers<[1], [0], [0], [1], [0, 0, 1, 1], [], []>} : vector<256x36xbf16>, vector<36x4xbf16>, vector<256x4xf32> -> vector<256x4xf32>
    %97 = vector.shape_cast %96 : vector<256x4xf32> to vector<16x16x4xf32>
    %98 = arith.addf %97, %1 : vector<16x16x4xf32>
    %c0_120 = arith.constant 0 : index
    %c0_121 = arith.constant 0 : index
    %c0_122 = arith.constant 0 : index
    %c0_123 = arith.constant 0 : index
    %99 = vector.load %arg5[%c0_120, %c0_121, %c0_122, %c0_123] : memref<1x16x16x4xf32, #tpu.memory_space<vmem>>, vector<1x16x16x4xf32>
    %100 = vector.shape_cast %99 : vector<1x16x16x4xf32> to vector<16x16x4xf32>
    %101 = vector.shape_cast %98 : vector<16x16x4xf32> to vector<1x16x16x4xf32>
    tpu.vector_store %arg5[%c0_120, %c0_121, %c0_122, %c0_123], %101 {strides = array<i32>} : memref<1x16x16x4xf32, #tpu.memory_space<vmem>>, vector<1x16x16x4xf32>,
    return
  }
  func.func @transform_0(%arg0: i32) -> (i32, i32, i32, i32) {
    %c0_i32 = arith.constant 0 : i32
    %c0_i32_0 = arith.constant 0 : i32
    %c0_i32_1 = arith.constant 0 : i32
    %c0_i32_2 = arith.constant 0 : i32
    return %arg0, %c0_i32, %c0_i32_0, %c0_i32_1 : i32, i32, i32, i32
  }
  func.func @transform_1(%arg0: i32) -> (i32, i32) {
    %c0_i32 = arith.constant 0 : i32
    %c0_i32_0 = arith.constant 0 : i32
    %c0_i32_1 = arith.constant 0 : i32
    return %c0_i32, %c0_i32_0 : i32, i32
  }
  func.func @transform_2(%arg0: i32) -> (i32, i32) {
    %c0_i32 = arith.constant 0 : i32
    %c0_i32_0 = arith.constant 0 : i32
    %c0_i32_1 = arith.constant 0 : i32
    return %c0_i32, %c0_i32_0 : i32, i32
  }
  func.func @transform_3(%arg0: i32) -> (i32, i32) {
    %c0_i32 = arith.constant 0 : i32
    %c0_i32_0 = arith.constant 0 : i32
    %c0_i32_1 = arith.constant 0 : i32
    return %c0_i32, %c0_i32_0 : i32, i32
  }
  func.func @transform_4(%arg0: i32) -> (i32, i32, i32, i32) {
    %c0_i32 = arith.constant 0 : i32
    %c0_i32_0 = arith.constant 0 : i32
    %c0_i32_1 = arith.constant 0 : i32
    %c0_i32_2 = arith.constant 0 : i32
    return %arg0, %c0_i32, %c0_i32_0, %c0_i32_1 : i32, i32, i32, i32
  }
}

</mosaic_0001>

<bundles_post_ra>
// kernel: tpu_custom_call.1
= control target key start
LH: loop header
LB: loop body
LE: loop exit
PB: predicated region body
PF: predicated region fallthrough
CT: control target
= control target key end

     0   :  { %s9323_s15 = smov 0   ;;  %s11983_s0 = inlined_call_operand.vmem [shape: f32[2,16,16,4], index: 0, kind: input, shape index: {}]   ;;  %s11984_s1 = inlined_call_operand.vmem [shape: bf16[36,4], index: 1, kind: input, shape index: {}]   ;;  %s11985_s2 = inlined_call_operand.vmem [shape: bf16[36,4], index: 2, kind: input, shape index: {}]   ;;  %s11986_s3 = inlined_call_operand.vmem [shape: f32[4,4], index: 3, kind: input, shape index: {}]   ;;  %s11987_s4 = inlined_call_operand.vmem [shape: f32[2,16,16,4], index: 4, kind: output, shape index: {}]  }
   0x1 LB: > { %s8435_s16 = sadd.s32 4294967295, %s9287_s15   ;;  %p8439_p0 = scmp.ge.s32.totalorder %s9287_s15, 1  ;;  %s9287_s15 = sphi %s9323_s15, %s14_s15  }
   0x2   : > { %p162_p1 = scmp.lt.s32.totalorder %s9287_s15, 3 }
   0x4   : > { %p163_p2 = pnand %p8439_p0, %p162_p1 }
   0x5   : > { %vm231_vm0 = vcmask (!%p163_p2), 27648   ;;  %vm234_vm1 = vcmask (!%p163_p2), 24576   ;;  %vm241_vm2 = vsmask.f32 (!%p163_p2), 256  ;;  %v9289_v0 = vmov (!%p163_p2), 0   ;;  %p188_p3 = scmp.lt.s32.totalorder (!%p163_p2), %s8435_s16, 1 }
   0x6   : > { %166 = sbr.rel (%p163_p2) target bundleno = 1214 (0x4be), region = 36  ;;  %232 = vst.msk [vmem:[#allocation2] sm:$0xf] (!%p163_p2), %vm231_vm0, %v9289_v0  ;;  %233 = vst.msk [vmem:[#allocation2 + $0x4] sm:$0xf] (!%p163_p2), %vm231_vm0, %v9289_v0  ;;  %vm1781_vm5 = vcmask (!%p163_p2), 1042432  }
   0x7   : > { %235 = vst.msk [vmem:[#allocation2 + $0x8] sm:$0x1] (!%p163_p2), %vm234_vm1, %v9289_v0  ;;  %239 = vst.msk [vmem:[#allocation2 + $0xd4] sm:$0x1] (!%p163_p2), %vm234_vm1, %v9289_v0  ;;  %v249_v2 = vld [vmem:[#allocation2 + $0x18] sm:$0x1] (!%p163_p2) }
   0x8   : > { %237 = vst.msk [vmem:[#allocation2 + $0xcc] sm:$0xf] (!%p163_p2), %vm231_vm0, %v9289_v0  ;;  %238 = vst.msk [vmem:[#allocation2 + $0xd0] sm:$0xf] (!%p163_p2), %vm231_vm0, %v9289_v0  ;;  %vm297_vm4 = vsmask.f32 (!%p163_p2), 7938 }
   0x9   : > { %vm9339_vm3 = vmand (!%p163_p2), %vm234_vm1, %vm241_vm2  ;;  %vm1782_vm6 = vcmask (!%p163_p2), 1046532   ;;  %v246_v4 = vld [vmem:[#allocation2 + $0xc] sm:$0x1] (!%p163_p2)  ;;  %v9350_v5 = vld [vmem:[%s11986_s3] ss:$0 sm:$0xff] (!%p163_p2)  ;;  %s9290_s25 = smov (!%p163_p2), 8  }
   0xa   : > { %v250_v3 = vsel (!%p163_p2), %vm9339_vm3, 0, %v249_v2  ;;  %v247_v6 = vsel (!%p163_p2), %vm9339_vm3, 0, %v246_v4  ;;  %v252_v7 = vld [vmem:[#allocation2 + $0x24] sm:$0x1] (!%p163_p2)  ;;  %v255_v8 = vld [vmem:[#allocation2 + $0x30] sm:$0x1] (!%p163_p2)  ;;  %vm9356_vm7 = vmand (!%p163_p2), %vm234_vm1, %vm297_vm4 }
   0xb   : > { %251 = vst [vmem:[#allocation2 + $0x18] sm:$0x1] (!%p163_p2), %v250_v3  ;;  %248 = vst [vmem:[#allocation2 + $0xc] sm:$0x1] (!%p163_p2), %v247_v6  ;;  %v253_v10 = vsel (!%p163_p2), %vm9339_vm3, 0, %v252_v7  ;;  %v256_v11 = vsel (!%p163_p2), %vm9339_vm3, 0, %v255_v8 }
   0xc   : > { %v302_v12 = vld [vmem:[#allocation2 + $0x14] sm:$0x1] (!%p163_p2)  ;;  %vm9366_vm8 = vmor (!%p163_p2), %vm1781_vm5, %vm1782_vm6  ;;  %v9380_v14 = vld [vmem:[%s11986_s3 + $0x1] ss:$0 sm:$0xff] (!%p163_p2)  ;;  %254 = vst [vmem:[#allocation2 + $0x24] sm:$0x1] (!%p163_p2), %v253_v10 }
   0xd   : > { %s12109_s16 = smov (!%p188_p3, %s8435_s16), 1  ;;  %257 = vst [vmem:[#allocation2 + $0x30] sm:$0x1] %v256_v11  ;;  %v303_v15 = vsel %vm9356_vm7, 0, %v302_v12  ;;  %v305_v16 = vld [vmem:[#allocation2 + $0x20] sm:$0x1]  ;;  %vm9432_vm13 = vmand %vm231_vm0, %vm297_vm4 }
   0xe   : > { %s8936_s19 = sshll.u32 %s12109_s16, 8  ;;  %v299_v17 = vld [vmem:[#allocation2 + $0x8] sm:$0x1]  ;;  %v1685_v18 = vld [vmem:[#allocation2] sm:$0xe]  ;;  %v306_v30 = vsel %vm9356_vm7, 0, %v305_v16 }
   0xf   : > { %s9375_s22 = scalar_lea.vmem %s11983_s0, %s8936_s19  ;;  %v1686_v19 = vld [vmem:[#allocation2 + $0x4] sm:$0xf]  ;;  %vm1185_vm9 = vsmask.f32 3328  ;;  %vm1186_vm10 = vsmask.f32 7440 }
  0x10   : > { %304 = vst [vmem:[#allocation2 + $0x14] sm:$0x1] %v303_v15  ;;  %v300_v20 = vsel %vm9356_vm7, 0, %v299_v17  ;;  %v8510_v21 = vrot.slane %v1685_v18, 9  ;;  %v1786_v22 = vrot.slane %v1686_v19, 5  ;;  %v201_v24 = vld [vmem:[%s9375_s22 + $0x10] sm:$0xff]  ;;  %vm9424_vm12 = vmor %vm1185_vm9, %vm1186_vm10 }
  0x11   : > { %v243_v23 = vld [vmem:[#allocation2] sm:$0x1]  ;;  %301 = vst [vmem:[#allocation2 + $0x8] sm:$0x1] %v300_v20  ;;  %v1138_v26 = vld [vmem:[#allocation2 + $0x4] sm:$0xf]  ;;  %v360_v28 = vmul.f32 %v9350_v5, %v201_v24 }
  0x12   : > { %v244_v25 = vsel %vm9339_vm3, 0, %v243_v23  ;;  %v202_v27 = vld [vmem:[%s9375_s22 + $0x18] sm:$0xff]  ;;  %v199_v29 = vld [vmem:[%s9375_s22] sm:$0xff]  ;;  %v9396_v31 = vsel %vm9366_vm8, %v8510_v21, %v1786_v22  ;;  %v1788_v32 = vrot.slane %v1786_v22, 4  ;;  %v1198_v33 = vshll.u32 %v1138_v26, 16  ;;  %v200_v35 = vld [vmem:[%s9375_s22 + $0x8] sm:$0xff] }
  0x13   : > { %245 = vst [vmem:[#allocation2] sm:$0x1] %v244_v25  ;;  %v1202_v34 = vshrl.u32 %v1138_v26, 16  ;;  %307 = vst [vmem:[#allocation2 + $0x20] sm:$0x1] %v306_v30  ;;  %v361_v36 = vmul.f32 %v9350_v5, %v202_v27  ;;  %v397_v37 = vadd.f32 %v9380_v14, %v360_v28  ;;  %v358_v38 = vmul.f32 %v9350_v5, %v199_v29  ;;  %v203_v40 = vld [vmem:[%s9375_s22 + $0x20] sm:$0xff] }
  0x14   : > { %vm555_vm11 = vsmask.f32 4368  ;;  %v359_v39 = vmul.f32 %v9350_v5, %v200_v35  ;;  %v204_v41 = vld [vmem:[%s9375_s22 + $0x28] sm:$0xff]  ;;  %v205_v42 = vld [vmem:[%s9375_s22 + $0x30] sm:$0xff]  ;;  %v9406_v43 = vrot.slane %v1198_v33, 5  ;;  %v362_v45 = vmul.f32 %v9350_v5, %v203_v40  ;;  %v206_v51 = vld [vmem:[%s9375_s22 + $0x38] sm:$0xff] }
  0x15   : > { %v1204_v44 = vrot.slane %v1202_v34, 4  ;;  %v363_v46 = vmul.f32 %v9350_v5, %v204_v41  ;;  %v398_v47 = vadd.f32 %v9380_v14, %v361_v36  ;;  %v429_v48 = vmax.f32 %v397_v37, 0.0  ;;  %v887_v26 = vld [vmem:[#allocation2 + $0x18] sm:$0xf]  ;;  %vm9442_vm14 = vmor %vm241_vm2, %vm555_vm11  ;;  %s9291_s26 = smov 4   ;;  %s9292_s27 = smov 12  }
  0x16   : > { %v395_v49 = vadd.f32 %v9380_v14, %v358_v38  ;;  %v396_v50 = vadd.f32 %v9380_v14, %v359_v39  ;;  %v399_v53 = vadd.f32 %v9380_v14, %v362_v45  ;;  %v364_v55 = vmul.f32 %v9350_v5, %v205_v42  ;;  %v880_v39 = vld [vmem:[#allocation2 + $0xc] sm:$0xf]  ;;  %s9293_s28 = smov 24   ;;  %s9294_s29 = smov 20  }
  0x17   : > { %v1205_v52 = vor.u32 %v1204_v44, %v9406_v43  ;;  %v400_v54 = vadd.f32 %v9380_v14, %v363_v46  ;;  %v430_v56 = vmax.f32 %v398_v47, 0.0  ;;  %v8940_v57 = vpack.c.bf16 %v429_v48, %v429_v48  ;;  %s9295_s30 = smov 32   ;;  %s9296_s5 = smov 16  }
  0x18   : > { %v427_v58 = vmax.f32 %v395_v49, 0.0  ;;  %v428_v59 = vmax.f32 %v396_v50, 0.0  ;;  %v1687_v60 = vld [vmem:[#allocation2 + $0x8] sm:$0x1]  ;;  %v431_v63 = vmax.f32 %v399_v53, 0.0  ;;  %v365_v0 = vmul.f32 %v9350_v5, %v206_v51  ;;  %s9297_s6 = smov 28  }
  0x19   : > { %v1139_v61 = vld [vmem:[#allocation2 + $0x8] sm:$0x1]  ;;  %v1206_v62 = vrot.slane %v1205_v52, 4  ;;  %v9420_v2 = vadd.f32 %v9380_v14, %v364_v55  ;;  %v1789_v3 = vrot.slane %v1687_v60, 5  ;;  %v8941_v7 = vpack.c.bf16 %v430_v56, %v430_v56  ;;  %v884_v50 = vld [vmem:[#allocation2 + $0x14] sm:$0x1] }
  0x1a   : > { %v1137_v4 = vld [vmem:[#allocation2] sm:$0xf]  ;;  %v1208_v6 = vshll.u32 %v1139_v61, 16  ;;  %v575_v8 = vshrl.u32 %v8940_v57, 16  ;;  %v578_v15 = vshll.u32 %v8940_v57, 16  ;;  %v8938_v16 = vpack.c.bf16 %v427_v58, %v427_v58 }
  0x1b   : > { %v1189_v11 = vshrl.u32 %v1137_v4, 16  ;;  %v1192_v12 = vshll.u32 %v1137_v4, 16  ;;  %v1790_v17 = vsel %vm9366_vm8, %v1788_v32, %v1789_v3  ;;  %v583_v20 = vshrl.u32 %v8941_v7, 16  ;;  %v891_v51 = vld [vmem:[#allocation2 + $0x20] sm:$0x1] }
  0x1c   : > { %v1210_v18 = vrot.slane %v1208_v6, 5  ;;  %v577_v19 = vrot.slane %v575_v8, 7  ;;  %v8526_v22 = vcombine.low %v9396_v31, %v1790_v17  ;;  %v586_v25 = vshll.u32 %v8941_v7, 16  ;;  %v308_v52 = vld [vmem:[#allocation2 + $0x2c] sm:$0x1] }
  0x1d   : > { %v1191_v23 = vrot.slane %v1189_v11, 4  ;;  %v1194_v24 = vrot.slane %v1192_v12, 5  ;;  %v585_v30 = vrot.slane %v583_v20, 7  ;;  %v8939_v31 = vpack.c.bf16 %v428_v59, %v428_v59  ;;  %v894_v3 = vld [vmem:[#allocation2 + $0x24] sm:$0xf]  ;;  %v208_v20 = vld [vmem:[%s9375_s22 + $0x48] sm:$0xff] }
  0x1e   : > { %v1211_v27 = vsel %vm9424_vm12, %v1206_v62, %v1210_v18  ;;  %v580_v28 = vor.u32 %v578_v15, %v577_v19  ;;  %v581_v29 = vrot.slane %v577_v19, 4  ;;  %1944 = vrot.lane.b32.xlu1 %v8526_v22, %s9290_s25  ;;  %v558_v34 = vshrl.u32 %v8938_v16, 16  ;;  %v207_v19 = vld [vmem:[%s9375_s22 + $0x40] sm:$0xff] }
  0x1f   : > { %v1195_v32 = vor.u32 %v1194_v24, %v1191_v23  ;;  %v561_v35 = vshll.u32 %v8938_v16, 16  ;;  %v588_v36 = vor.u32 %v586_v25, %v585_v30  ;;  %v590_v37 = vrot.slane %v585_v30, 4 }
  0x20   : > { %v888_v38 = vsel %vm9432_vm13, %v580_v28, %v887_v26  ;;  %v432_v40 = vmax.f32 %v400_v54, 0.0  ;;  %v560_v42 = vrot.slane %v558_v34, 7  ;;  %v566_v44 = vshrl.u32 %v8939_v31, 16 }
  0x21   : > { %v1196_v41 = vrot.slane %v1195_v32, 4  ;;  %889 = vst [vmem:[#allocation2 + $0x18] sm:$0xf] %v888_v38  ;;  %v569_v45 = vshll.u32 %v8939_v31, 16  ;;  %v589_v46 = vsel %vm9442_vm14, %v581_v29, %v588_v36  ;;  %v8942_v47 = vpack.c.bf16 %v431_v63, %v431_v63  ;;  %v209_v36 = vld [vmem:[%s9375_s22 + $0x50] sm:$0xff] }
  0x22   : > { %v8943_v48 = vpack.c.bf16 %v432_v40, %v432_v40  ;;  %v402_v49 = vadd.f32 %v9380_v14, %v365_v0  ;;  %890 = vst.msk [vmem:[#allocation2 + $0x1c] sm:$0xf] %vm231_vm0, %v589_v46  ;;  %v563_v54 = vor.u32 %v561_v35, %v560_v42  ;;  %v564_v55 = vrot.slane %v560_v42, 4 }
  0x23   : > { %v1201_v53 = vsel %vm9424_vm12, %v1196_v41, %v9406_v43  ;;  %v568_v56 = vrot.slane %v566_v44, 7  ;;  %v592_v58 = vshrl.u32 %v8942_v47, 16  ;;  %v595_v59 = vshll.u32 %v8942_v47, 16 }
  0x24   : > { %v8494_v57 = vcombine.low %v1201_v53, %v1211_v27  ;;  %v600_v60 = vshrl.u32 %v8943_v48, 16  ;;  %v881_v63 = vsel %vm9432_vm13, %v563_v54, %v880_v39  ;;  %v603_v0 = vshll.u32 %v8943_v48, 16 }
  0x25   : > { %v571_v61 = vor.u32 %v569_v45, %v568_v56  ;;  %v573_v62 = vrot.slane %v568_v56, 4  ;;  %882 = vst [vmem:[#allocation2 + $0xc] sm:$0xf] %v881_v63  ;;  %v594_v43 = vrot.slane %v592_v58, 7  ;;  %v433_v6 = vmax.f32 %v9420_v2, 0.0 }
  0x26   : > { %1620 = vrot.lane.b32.xlu0 %v8494_v57, %s9291_s26  ;;  %v9458_v4 = vrot.slane %v600_v60, 7  ;;  %v434_v7 = vmax.f32 %v402_v49, 0.0  ;;  %v892_v12 = vsel %vm9339_vm3, %v590_v37, %v891_v51  ;;  %v309_v15 = vsel %vm9356_vm7, 0, %v308_v52  ;;  %v901_v37 = vld [vmem:[#allocation2 + $0x30] sm:$0xf] }
  0x27   : > { %v572_v8 = vsel %vm9442_vm14, %v564_v55, %v571_v61  ;;  %v885_v11 = vsel %vm9339_vm3, %v573_v62, %v884_v50  ;;  %v597_v16 = vor.u32 %v595_v59, %v594_v43  ;;  %v598_v17 = vrot.slane %v594_v43, 4  ;;  %893 = vst [vmem:[#allocation2 + $0x20] sm:$0x1] %v892_v12  ;;  %310 = vst [vmem:[#allocation2 + $0x2c] sm:$0x1] %v309_v15  ;;  %v210_v62 = vld [vmem:[%s9375_s22 + $0x58] sm:$0xff] }
  0x28   : > { %883 = vst.msk [vmem:[#allocation2 + $0x10] sm:$0xf] %vm231_vm0, %v572_v8  ;;  %v605_v18 = vor.u32 %v603_v0, %v9458_v4  ;;  %v607_v2 = vrot.slane %v9458_v4, 4  ;;  %886 = vst [vmem:[#allocation2 + $0x14] sm:$0x1] %v885_v11  ;;  %v8944_v22 = vpack.c.bf16 %v433_v6, %v433_v6  ;;  %v8945_v23 = vpack.c.bf16 %v434_v7, %v434_v7 }
  0x29   : > { %v9474_v24 = vld [vmem:[#allocation2 + $0x18] sm:$0xe]  ;;  %v895_v29 = vsel %vm9432_vm13, %v597_v16, %v894_v3  ;;  %v2735_v38 = vld [vmem:[#allocation2 + $0x1c] sm:$0xf]  ;;  %v366_v46 = vmul.f32 %v9350_v5, %v207_v19  ;;  %v367_v47 = vmul.f32 %v9350_v5, %v208_v20  ;;  %v368_v63 = vmul.f32 %v9350_v5, %v209_v36  ;;  %v211_v19 = vld [vmem:[%s9375_s22 + $0x60] sm:$0xff] }
  0x2a   : > { %v9476_v25 = vld [vmem:[#allocation2 + $0x18] sm:$0xe]  ;;  %v606_v28 = vsel %vm9442_vm14, %v598_v17, %v605_v18  ;;  %v8575_v30 = vrot.slane %v9474_v24, 9  ;;  %896 = vst [vmem:[#allocation2 + $0x24] sm:$0xf] %v895_v29  ;;  %v609_v32 = vshrl.u32 %v8944_v22, 16 }
  0x2b   : > { %v9478_v26 = vld [vmem:[#allocation2 + $0x18] sm:$0xf]  ;;  %897 = vst.msk [vmem:[#allocation2 + $0x28] sm:$0xf] %vm231_vm0, %v606_v28  ;;  %v612_v31 = vshll.u32 %v8944_v22, 16  ;;  %v617_v34 = vshrl.u32 %v8945_v23, 16  ;;  %v9507_v17 = vadd.f32 %v9380_v14, %v366_v46  ;;  %v9510_v18 = vadd.f32 %v9380_v14, %v367_v47 }
  0x2c   : > { %v9135_v27 = vld [vmem:[#allocation2 + $0x18] sm:$0xff]   ;;  %v620_v35 = vshll.u32 %v8945_v23, 16  ;;  %v8638_v40 = vrot.slane %v9476_v25, 9  ;;  %v2259_v41 = vshrl.u32 %v9478_v26, 16  ;;  %v611_v42 = vrot.slane %v609_v32, 7 }
  0x2d   : > { %2123 = vrot.lane.b32.xlu1 %v9135_v27, %s9292_s27  ;;  %v3776_v39 = vld [vmem:[#allocation2 + $0x1c] sm:$0xf]  ;;  %v9490_v44 = vrot.slane %v617_v34, 7  ;;  %v1688_v45 = vld [vmem:[#allocation2 + $0xc] sm:$0xe]  ;;  %v2836_v50 = vrot.slane %v2735_v38, 5  ;;  %v9516_v34 = vmul.f32 %v9350_v5, %v210_v62 }
  0x2e   : > { %v8511_v48 = vrot.slane %v1688_v45, 9  ;;  %v2731_v49 = vld [vmem:[#allocation2 + $0xc] sm:$0xe]  ;;  %v3873_v51 = vrot.slane %v3776_v39, 5  ;;  %v9494_v52 = vrot.slane %v2259_v41, 4  ;;  %v9138_v54 = vld [vmem:[#allocation2 + $0x18] sm:$0xff]   ;;  %v614_v55 = vor.u32 %v612_v31, %v611_v42 }
  0x2f   : > { %v9136_v53 = vld [vmem:[#allocation2 + $0xc] sm:$0xff]   ;;  %v615_v56 = vrot.slane %v611_v42, 4  ;;  %v622_v57 = vor.u32 %v620_v35, %v9490_v44  ;;  %v624_v58 = vrot.slane %v9490_v44, 4  ;;  %v1690_v60 = vld [vmem:[#allocation2 + $0x14] sm:$0x1]  ;;  %v8574_v12 = vrot.slane %v2731_v49, 9 }
  0x30   : > { %v1689_v59 = vld [vmem:[#allocation2 + $0x10] sm:$0xf]  ;;  %2121 = vrot.lane.b32.xlu0 %v9136_v53, %s9292_s27  ;;  %v902_v3 = vsel %vm9432_vm13, %v614_v55, %v901_v37  ;;  %v1796_v6 = vrot.slane %v1690_v60, 5  ;;  %v2733_v7 = vld [vmem:[#allocation2 + $0x14] sm:$0x1]  ;;  %v2838_v23 = vrot.slane %v2836_v50, 4  ;;  %v9519_v35 = vadd.f32 %v9380_v14, %v368_v63 }
  0x31   : > { %v2732_v61 = vld [vmem:[#allocation2 + $0x10] sm:$0xf]  ;;  %v623_v0 = vsel %vm9442_vm14, %v615_v56, %v622_v57  ;;  %v1793_v43 = vrot.slane %v1689_v59, 5  ;;  %v2736_v8 = vld [vmem:[#allocation2 + $0x20] sm:$0x1]  ;;  %v2832_v22 = vrot.slane %v2733_v7, 5  ;;  %v9531_v42 = vsel %vm9366_vm8, %v8575_v30, %v2836_v50 }
  0x32   : > { %v9137_v11 = vld [vmem:[#allocation2 + $0x24] sm:$0xff]   ;;  %903 = vst [vmem:[#allocation2 + $0x30] sm:$0xf] %v902_v3  ;;  %904 = vst.msk [vmem:[#allocation2 + $0x34] sm:$0xf] %vm231_vm0, %v623_v0  ;;  %v2829_v20 = vrot.slane %v2732_v61, 5  ;;  %v3874_v14 = vsel %vm9366_vm8, %v8638_v40, %v3873_v51  ;;  %v9544_v40 = vmul.f32 %v9350_v5, %v211_v19 }
  0x33   : > { %v9140_v15 = vld [vmem:[#allocation2 + $0x24] sm:$0xff]   ;;  %v1795_v16 = vrot.slane %v1793_v43, 4  ;;  %3167 = vrot.lane.b32.xlu1 %v9137_v11, %s9293_s28  ;;  %v2839_v25 = vrot.slane %v2736_v8, 5  ;;  %v3777_v27 = vld [vmem:[#allocation2 + $0x20] sm:$0x1]  ;;  %v3875_v28 = vrot.slane %v3873_v51, 4  ;;  %v1794_v36 = vsel %vm9366_vm8, %v8511_v48, %v1793_v43 }
  0x34   : > { %3165 = vrot.lane.b32.xlu0 %v9138_v54, %s9293_s28  ;;  %v3876_v29 = vrot.slane %v3777_v27, 5  ;;  %v898_v32 = vld [vmem:[#allocation2 + $0x2c] sm:$0x1]  ;;  %v1694_v31 = vld [vmem:[#allocation2 + $0x24] sm:$0xe]  ;;  %v2830_v38 = vsel %vm9366_vm8, %v8574_v12, %v2829_v20  ;;  %v2831_v39 = vrot.slane %v2829_v20, 4 }
  0x35   : > { %v1797_v37 = vsel %vm9366_vm8, %v1795_v16, %v1796_v6  ;;  %v1695_v41 = vld [vmem:[#allocation2 + $0x28] sm:$0xf]  ;;  %v899_v46 = vsel %vm9339_vm3, %v607_v2, %v898_v32  ;;  %v3778_v47 = vld [vmem:[#allocation2 + $0x24] sm:$0xe]  ;;  %v2190_v49 = vld [vmem:[#allocation2 + $0x1c] sm:$0xf]  ;;  %v2840_v2 = vsel %vm9366_vm8, %v2838_v23, %v2839_v25 }
  0x36   : > { %v3877_v45 = vsel %vm9366_vm8, %v3875_v28, %v3876_v29  ;;  %v3779_v48 = vld [vmem:[#allocation2 + $0x28] sm:$0xf]  ;;  %v2833_v24 = vsel %vm9366_vm8, %v2831_v39, %v2832_v22  ;;  %900 = vst [vmem:[#allocation2 + $0x2c] sm:$0x1] %v899_v46  ;;  %v8513_v30 = vrot.slane %v1694_v31, 9  ;;  %v1807_v50 = vrot.slane %v1695_v41, 5 }
  0x37   : > { %v2191_v53 = vld [vmem:[#allocation2 + $0x20] sm:$0x1]  ;;  %v1691_v54 = vld [vmem:[#allocation2 + $0x18] sm:$0xe]  ;;  %v8527_v4 = vcombine.low %v1794_v36, %v1797_v37  ;;  %v8590_v55 = vcombine.low %v2830_v38, %v2833_v24  ;;  %v3880_v56 = vrot.slane %v3779_v48, 5  ;;  %v8654_v57 = vcombine.low %v3874_v14, %v3877_v45 }
  0x38   : > { %2125 = vrot.lane.b32.xlu0 %v9140_v15, %s9292_s27  ;;  %v8639_v59 = vrot.slane %v3778_v47, 9  ;;  %v2262_v60 = vshll.u32 %v9478_v26, 16  ;;  %v2268_v61 = vshll.u32 %v2190_v49, 16  ;;  %v1692_v62 = vld [vmem:[#allocation2 + $0x1c] sm:$0xf]  ;;  %v1809_v63 = vrot.slane %v1807_v50, 4 }
  0x39   : > { %v9139_v51 = vld [vmem:[#allocation2 + $0x30] sm:$0xff]   ;;  %v3882_v5 = vrot.slane %v3880_v56, 4  ;;  %v2272_v0 = vshrl.u32 %v2190_v49, 16  ;;  %v2278_v3 = vshll.u32 %v2191_v53, 16  ;;  %v1693_v43 = vld [vmem:[#allocation2 + $0x20] sm:$0x1]  ;;  %v8591_v27 = vcombine.low %v9531_v42, %v2840_v2 }
  0x3a   : > { %2127 = vrot.lane.b32.xlu1 %v9139_v51, %s9292_s27  ;;  %v2264_v6 = vrot.slane %v2262_v60, 5  ;;  %v2270_v7 = vrot.slane %v2268_v61, 5  ;;  %v8512_v8 = vrot.slane %v1691_v54, 9  ;;  %v1800_v11 = vrot.slane %v1692_v62, 5  ;;  %v3233_v12 = vld [vmem:[#allocation2 + $0x24] sm:$0xf] }
  0x3b   : > { %v2274_v15 = vrot.slane %v2272_v0, 4  ;;  %v2280_v16 = vrot.slane %v2278_v3, 5  ;;  %v1803_v26 = vrot.slane %v1693_v43, 5  ;;  %v3303_v19 = vshrl.u32 %v3233_v12, 16  ;;  %v3234_v37 = vld [vmem:[#allocation2 + $0x28] sm:$0xf] }
  0x3c   : > { %2987 = vrot.lane.b32.xlu0 %v8590_v55, %s9294_s29  ;;  %v2265_v20 = vor.u32 %v2264_v6, %v9494_v52  ;;  %v1801_v22 = vsel %vm9366_vm8, %v8512_v8, %v1800_v11  ;;  %v1802_v23 = vrot.slane %v1800_v11, 4  ;;  %v3306_v25 = vshll.u32 %v3233_v12, 16  ;;  %v1141_v53 = vld [vmem:[#allocation2 + $0x10] sm:$0xf]  ;;  %v1142_v2 = vld [vmem:[#allocation2 + $0x14] sm:$0x1] }
  0x3d   : > { %v1696_v28 = vld [vmem:[#allocation2 + $0x2c] sm:$0x1]  ;;  %v1808_v29 = vsel %vm9366_vm8, %v8513_v30, %v1807_v50  ;;  %v3881_v31 = vsel %vm9366_vm8, %v8639_v59, %v3880_v56  ;;  %v2275_v36 = vor.u32 %v2274_v15, %v2270_v7  ;;  %v3305_v46 = vrot.slane %v3303_v19, 4  ;;  %v1143_v0 = vld [vmem:[#allocation2 + $0x18] sm:$0xf] }
  0x3e   : > { %1946 = vrot.lane.b32.xlu1 %v8527_v4, %s9290_s25  ;;  %v3780_v32 = vld [vmem:[#allocation2 + $0x2c] sm:$0x1]  ;;  %v1810_v52 = vrot.slane %v1696_v28, 5  ;;  %v2266_v39 = vrot.slane %v2265_v20, 4  ;;  %v1804_v41 = vsel %vm9366_vm8, %v1802_v23, %v1803_v26  ;;  %v3308_v47 = vrot.slane %v3306_v25, 5 }
  0x3f   : > { %v3883_v38 = vrot.slane %v3780_v32, 5  ;;  %v2276_v42 = vrot.slane %v2275_v36, 4  ;;  %v8528_v14 = vcombine.low %v1801_v22, %v1804_v41  ;;  %v3235_v45 = vld [vmem:[#allocation2 + $0x2c] sm:$0x1]  ;;  %v3312_v30 = vshll.u32 %v3234_v37, 16 }
  0x40   : > { %4031 = vrot.lane.b32.xlu0 %v8654_v57, %s9295_s30  ;;  %v1811_v48 = vsel %vm9366_vm8, %v1809_v63, %v1810_v52  ;;  %v2271_v24 = vsel %vm9424_vm12, %v2266_v39, %v2270_v7  ;;  %v1140_v50 = vld [vmem:[#allocation2 + $0xc] sm:$0xf]  ;;  %v3309_v55 = vor.u32 %v3308_v47, %v3305_v46  ;;  %v3316_v59 = vshrl.u32 %v3234_v37, 16  ;;  %v1144_v8 = vld [vmem:[#allocation2 + $0x1c] sm:$0xf] }
  0x41   : > { %v3884_v49 = vsel %vm9366_vm8, %v3882_v5, %v3883_v38  ;;  %v8529_v54 = vcombine.low %v1808_v29, %v1811_v48  ;;  %v2281_v4 = vsel %vm9424_vm12, %v2276_v42, %v2280_v16  ;;  %v3314_v57 = vrot.slane %v3312_v30, 5  ;;  %v1145_v26 = vld [vmem:[#allocation2 + $0x20] sm:$0x1]  ;;  %v2186_v32 = vld [vmem:[#allocation2 + $0xc] sm:$0xf] }
  0x42   : > { %2989 = vrot.lane.b32.xlu1 %v8591_v27, %s9294_s29  ;;  %v8655_v51 = vcombine.low %v3881_v31, %v3884_v49  ;;  %v8559_v56 = vcombine.low %v2271_v24, %v2281_v4  ;;  %v3322_v60 = vshll.u32 %v3235_v45, 16  ;;  %v3310_v61 = vrot.slane %v3309_v55, 4  ;;  %v2187_v45 = vld [vmem:[#allocation2 + $0x10] sm:$0xf] }
  0x43   : > { %v1213_v62 = vshrl.u32 %v1140_v50, 16  ;;  %v1216_v63 = vshll.u32 %v1140_v50, 16  ;;  %v1222_v5 = vshll.u32 %v1141_v53, 16  ;;  %v3318_v3 = vrot.slane %v3316_v59, 4 }
  0x44   : > { %4033 = vrot.lane.b32.xlu0 %v8655_v51, %s9295_s30  ;;  %v3324_v43 = vrot.slane %v3322_v60, 5  ;;  %v1226_v6 = vshrl.u32 %v1141_v53, 16  ;;  %v1232_v7 = vshll.u32 %v1142_v2, 16  ;;  %v3315_v11 = vsel %vm9424_vm12, %v3310_v61, %v3314_v57  ;;  %v2188_v53 = vld [vmem:[#allocation2 + $0x14] sm:$0x1] }
  0x45   : > { %v1215_v12 = vrot.slane %v1213_v62, 4  ;;  %v1218_v15 = vrot.slane %v1216_v63, 5  ;;  %v1224_v16 = vrot.slane %v1222_v5, 5  ;;  %v3319_v19 = vor.u32 %v3318_v3, %v3314_v57  ;;  %v1147_v61 = vld [vmem:[#allocation2 + $0x28] sm:$0xf] }
  0x46   : > { %1950 = vrot.lane.b32.xlu1 %v8529_v54, %s9290_s25  ;;  %v1228_v20 = vrot.slane %v1226_v6, 4  ;;  %v1234_v22 = vrot.slane %v1232_v7, 5  ;;  %v1237_v23 = vshrl.u32 %v1143_v0, 16  ;;  %v1240_v27 = vshll.u32 %v1143_v0, 16  ;;  %v1146_v54 = vld [vmem:[#allocation2 + $0x24] sm:$0xf] }
  0x47   : > { %v1219_v25 = vor.u32 %v1218_v15, %v1215_v12  ;;  %v1246_v28 = vshll.u32 %v1144_v8, 16  ;;  %v1250_v29 = vshrl.u32 %v1144_v8, 16  ;;  %v3320_v31 = vrot.slane %v3319_v19, 4  ;;  %v1148_v0 = vld [vmem:[#allocation2 + $0x2c] sm:$0x1] }
  0x48   : > { %1948 = vrot.lane.b32.xlu0 %v8528_v14, %s9290_s25  ;;  %v1229_v36 = vor.u32 %v1228_v20, %v1224_v16  ;;  %v1239_v37 = vrot.slane %v1237_v23, 4  ;;  %v1256_v52 = vshll.u32 %v1145_v26, 16  ;;  %v1242_v39 = vrot.slane %v1240_v27, 5 }
  0x49   : > { %v1220_v38 = vrot.slane %v1219_v25, 4  ;;  %v1248_v41 = vrot.slane %v1246_v28, 5  ;;  %v1252_v42 = vrot.slane %v1250_v29, 4  ;;  %v3325_v14 = vsel %vm9424_vm12, %v3320_v31, %v3324_v43  ;;  %v3231_v28 = vld [vmem:[#allocation2 + $0x1c] sm:$0xf] }
  0x4a   : > { %2668 = vrot.lane.b32.xlu1 %v8559_v56, %s9296_s5  ;;  %v1230_v46 = vrot.slane %v1229_v36, 4  ;;  %v1258_v47 = vrot.slane %v1256_v52, 5  ;;  %v2235_v48 = vshrl.u32 %v2186_v32, 16  ;;  %v8623_v49 = vcombine.low %v3315_v11, %v3325_v14  ;;  %v3230_v11 = vld [vmem:[#allocation2 + $0x18] sm:$0xf] }
  0x4b   : > { %v1225_v24 = vsel %vm9424_vm12, %v1220_v38, %v1224_v16  ;;  %v1243_v30 = vor.u32 %v1242_v39, %v1239_v37  ;;  %v1253_v50 = vor.u32 %v1252_v42, %v1248_v41  ;;  %v2238_v55 = vshll.u32 %v2186_v32, 16  ;;  %v3232_v38 = vld [vmem:[#allocation2 + $0x20] sm:$0x1]  ;;  %v2192_v14 = vld [vmem:[#allocation2 + $0x24] sm:$0xf] }
  0x4c   : > { %v1235_v51 = vsel %vm9424_vm12, %v1230_v46, %v1234_v22  ;;  %v2237_v4 = vrot.slane %v2235_v48, 4  ;;  %v2244_v2 = vshll.u32 %v2187_v45, 16  ;;  %v2248_v60 = vshrl.u32 %v2187_v45, 16 }
  0x4d   : > { %v8495_v56 = vcombine.low %v1225_v24, %v1235_v51  ;;  %v1244_v57 = vrot.slane %v1243_v30, 4  ;;  %v1254_v59 = vrot.slane %v1253_v50, 4  ;;  %v2240_v62 = vrot.slane %v2238_v55, 5 }
  0x4e   : > { %3712 = vrot.lane.b32.xlu1 %v8623_v49, %s9297_s6  ;;  %v2246_v63 = vrot.slane %v2244_v2, 5  ;;  %v2254_v5 = vshll.u32 %v2188_v53, 16  ;;  %v1261_v3 = vshrl.u32 %v1146_v54, 16  ;;  %v2250_v7 = vrot.slane %v2248_v60, 4 }
  0x4f   : > { %1622 = vrot.lane.b32.xlu0 %v8495_v56, %s9291_s26  ;;  %v1249_v43 = vsel %vm9424_vm12, %v1244_v57, %v1248_v41  ;;  %v1259_v6 = vsel %vm9424_vm12, %v1254_v59, %v1258_v47  ;;  %v1264_v8 = vshll.u32 %v1146_v54, 16  ;;  %v2241_v15 = vor.u32 %v2240_v62, %v2237_v4  ;;  %v2193_v54 = vld [vmem:[#allocation2 + $0x28] sm:$0xf]  ;;  %v311_v56 = vld [vmem:[#allocation2 + $0x38] sm:$0x1] }
  0x50   : > { %v8496_v12 = vcombine.low %v1249_v43, %v1259_v6  ;;  %v2256_v16 = vrot.slane %v2254_v5, 5  ;;  %v1263_v26 = vrot.slane %v1261_v3, 4  ;;  %v2251_v19 = vor.u32 %v2250_v7, %v2246_v63  ;;  %v2195_v43 = vld [vmem:[#allocation2 + $0x30] sm:$0xf] }
  0x51   : > { %v1266_v20 = vrot.slane %v1264_v8, 5  ;;  %v1270_v22 = vshll.u32 %v1147_v61, 16  ;;  %v1274_v23 = vshrl.u32 %v1147_v61, 16  ;;  %v2242_v25 = vrot.slane %v2241_v15, 4  ;;  %v2194_v61 = vld [vmem:[#allocation2 + $0x2c] sm:$0x1] }
  0x52   : > { %1624 = vrot.lane.b32.xlu1 %v8496_v12, %s9291_s26  ;;  %v1280_v27 = vshll.u32 %v1148_v0, 16  ;;  %v3279_v29 = vshrl.u32 %v3230_v11, 16  ;;  %v3282_v32 = vshll.u32 %v3230_v11, 16  ;;  %v2252_v31 = vrot.slane %v2251_v19, 4  ;;  %v2196_v12 = vld [vmem:[#allocation2 + $0x34] sm:$0xf] }
  0x53   : > { %v1267_v36 = vor.u32 %v1266_v20, %v1263_v26  ;;  %v1272_v37 = vrot.slane %v1270_v22, 5  ;;  %v1276_v52 = vrot.slane %v1274_v23, 4  ;;  %v2247_v39 = vsel %vm9424_vm12, %v2242_v25, %v2246_v63  ;;  %v2737_v20 = vld [vmem:[#allocation2 + $0x24] sm:$0xe]  ;;  %v2738_v22 = vld [vmem:[#allocation2 + $0x28] sm:$0xf] }
  0x54   : > { %v1282_v41 = vrot.slane %v1280_v27, 5  ;;  %v3281_v42 = vrot.slane %v3279_v29, 4  ;;  %v3284_v45 = vrot.slane %v3282_v32, 5  ;;  %v2257_v46 = vsel %vm9424_vm12, %v2252_v31, %v2256_v16  ;;  %v2739_v29 = vld [vmem:[#allocation2 + $0x2c] sm:$0x1] }
  0x55   : > { %v1268_v47 = vrot.slane %v1267_v36, 4  ;;  %v1277_v48 = vor.u32 %v1276_v52, %v1272_v37  ;;  %v3288_v49 = vshll.u32 %v3231_v28, 16  ;;  %v8558_v24 = vcombine.low %v2247_v39, %v2257_v46  ;;  %v212_v46 = vld [vmem:[%s9375_s22 + $0x68] sm:$0xff] }
  0x56   : > { %v3285_v30 = vor.u32 %v3284_v45, %v3281_v42  ;;  %v3292_v50 = vshrl.u32 %v3231_v28, 16  ;;  %v3298_v53 = vshll.u32 %v3232_v38, 16  ;;  %v2283_v2 = vshrl.u32 %v2192_v14, 16  ;;  %v9608_v42 = vld [vmem:[#allocation2 + $0x30] sm:$0xe] }
  0x57   : > { %v1273_v51 = vsel %vm9424_vm12, %v1268_v47, %v1272_v37  ;;  %v1278_v4 = vrot.slane %v1277_v48, 4  ;;  %v3290_v55 = vrot.slane %v3288_v49, 5  ;;  %2666 = vrot.lane.b32.xlu0 %v8558_v24, %s9296_s5  ;;  %v2286_v62 = vshll.u32 %v2192_v14, 16  ;;  %v9610_v45 = vld [vmem:[#allocation2 + $0x34] sm:$0xf] }
  0x58   : > { %v3286_v57 = vrot.slane %v3285_v30, 4  ;;  %v3294_v59 = vrot.slane %v3292_v50, 4  ;;  %v3300_v60 = vrot.slane %v3298_v53, 5  ;;  %v2285_v5 = vrot.slane %v2283_v2, 4  ;;  %v258_v14 = vld [vmem:[#allocation2 + $0x3c] sm:$0x1] }
  0x59   : > { %v1283_v63 = vsel %vm9424_vm12, %v1278_v4, %v1282_v41  ;;  %v2292_v0 = vshll.u32 %v2193_v54, 16  ;;  %v2296_v3 = vshrl.u32 %v2193_v54, 16  ;;  %v2288_v11 = vrot.slane %v2286_v62, 5  ;;  %v9624_v2 = vld [vmem:[%s11986_s3] ss:$0 sm:$0xff] }
  0x5a   : > { %v8497_v6 = vcombine.low %v1273_v51, %v1283_v63  ;;  %v3291_v7 = vsel %vm9424_vm12, %v3286_v57, %v3290_v55  ;;  %v3295_v8 = vor.u32 %v3294_v59, %v3290_v55  ;;  %v2302_v26 = vshll.u32 %v2194_v61, 16  ;;  %v3236_v62 = vld [vmem:[#allocation2 + $0x30] sm:$0xf]  ;;  %v3237_v63 = vld [vmem:[#allocation2 + $0x34] sm:$0xf] }
  0x5b   : > { %v2294_v15 = vrot.slane %v2292_v0, 5  ;;  %v2298_v16 = vrot.slane %v2296_v3, 4  ;;  %v312_v19 = vsel %vm9356_vm7, 0, %v311_v56  ;;  %v2289_v25 = vor.u32 %v2288_v11, %v2285_v5 }
  0x5c   : > { %1626 = vrot.lane.b32.xlu1 %v8497_v6, %s9291_s26  ;;  %v3296_v23 = vrot.slane %v3295_v8, 4  ;;  %313 = vst [vmem:[#allocation2 + $0x38] sm:$0x1] %v312_v19  ;;  %v2307_v27 = vshrl.u32 %v2195_v43, 16  ;;  %v2310_v28 = vshll.u32 %v2195_v43, 16  ;;  %v2304_v31 = vrot.slane %v2302_v26, 5 }
  0x5d   : > { %v2299_v32 = vor.u32 %v2298_v16, %v2294_v15  ;;  %v2316_v36 = vshll.u32 %v2196_v12, 16  ;;  %v2320_v37 = vshrl.u32 %v2196_v12, 16  ;;  %v2290_v38 = vrot.slane %v2289_v25, 4  ;;  %v3781_v26 = vld [vmem:[#allocation2 + $0x30] sm:$0xe] }
  0x5e   : > { %v3301_v52 = vsel %vm9424_vm12, %v3296_v23, %v3300_v60  ;;  %v2309_v39 = vrot.slane %v2307_v27, 4  ;;  %v2312_v41 = vrot.slane %v2310_v28, 5  ;;  %v8576_v53 = vrot.slane %v2737_v20, 9  ;;  %v3782_v25 = vld [vmem:[#allocation2 + $0x34] sm:$0xf] }
  0x5f   : > { %v8622_v47 = vcombine.low %v3291_v7, %v3301_v52  ;;  %v2300_v48 = vrot.slane %v2299_v32, 4  ;;  %v9613_v49 = vrot.slane %v2316_v36, 5  ;;  %v2322_v24 = vrot.slane %v2320_v37, 4  ;;  %v1149_v32 = vld [vmem:[#allocation2 + $0x30] sm:$0xf] }
  0x60   : > { %v2295_v30 = vsel %vm9424_vm12, %v2290_v38, %v2294_v15  ;;  %v2313_v50 = vor.u32 %v2312_v41, %v2309_v39  ;;  %v2843_v54 = vrot.slane %v2738_v22, 5  ;;  %v2846_v55 = vrot.slane %v2739_v29, 5  ;;  %v314_v15 = vld [vmem:[#allocation2 + $0x44] sm:$0x1]  ;;  %v9141_v38 = vld [vmem:[#allocation2 + $0x30] sm:$0xff]  }
  0x61   : > { %3710 = vrot.lane.b32.xlu0 %v8622_v47, %s9297_s6  ;;  %v2305_v51 = vsel %vm9424_vm12, %v2300_v48, %v2304_v31  ;;  %v2323_v4 = vor.u32 %v2322_v24, %v9613_v49  ;;  %v9627_v56 = vmul.f32 %v9624_v2, %v212_v46  ;;  %v8577_v0 = vrot.slane %v9608_v42, 9 }
  0x62   : > { %v8560_v57 = vcombine.low %v2295_v30, %v2305_v51  ;;  %v9629_v59 = vrot.slane %v2313_v50, 4  ;;  %v2844_v60 = vsel %vm9366_vm8, %v8576_v53, %v2843_v54  ;;  %v2845_v61 = vrot.slane %v2843_v54, 4 }
  0x63   : > { %v905_v5 = vld [vmem:[#allocation2 + $0x38] sm:$0x1]  ;;  %v2850_v3 = vrot.slane %v9610_v45, 5  ;;  %v259_v43 = vsel %vm9339_vm3, 0, %v258_v14  ;;  %v435_v6 = vmax.f32 %v9507_v17, 0.0  ;;  %v9642_v8 = vrot.slane %v2323_v4, 4 }
  0x64   : > { %v906_v7 = vsel %vm9339_vm3, %v624_v58, %v905_v5  ;;  %v2847_v11 = vsel %vm9366_vm8, %v2845_v61, %v2846_v55  ;;  %260 = vst [vmem:[#allocation2 + $0x3c] sm:$0x1] %v259_v43  ;;  %v436_v12 = vmax.f32 %v9510_v18, 0.0  ;;  %v2319_v44 = vsel %vm9424_vm12, %v9629_v59, %v9613_v49 }
  0x65   : > { %2670 = vrot.lane.b32.xlu0 %v8560_v57, %s9296_s5  ;;  %907 = vst [vmem:[#allocation2 + $0x38] sm:$0x1] %v906_v7  ;;  %v8592_v17 = vcombine.low %v2844_v60, %v2847_v11  ;;  %v2852_v16 = vrot.slane %v2850_v3, 4  ;;  %v8946_v58 = vpack.c.bf16 %v435_v6, %v435_v6  ;;  %v3327_v20 = vshrl.u32 %v3236_v62, 16  ;;  %v1150_v7 = vld [vmem:[#allocation2 + $0x34] sm:$0xf] }
  0x66   : > { %v8947_v19 = vpack.c.bf16 %v436_v12, %v436_v12  ;;  %v3330_v22 = vshll.u32 %v3236_v62, 16  ;;  %v3336_v23 = vshll.u32 %v3237_v63, 16  ;;  %v3340_v28 = vshrl.u32 %v3237_v63, 16 }
  0x67   : > { %v626_v27 = vshrl.u32 %v8946_v58, 16  ;;  %v629_v18 = vshll.u32 %v8946_v58, 16  ;;  %v315_v29 = vsel %vm9356_vm7, 0, %v314_v15  ;;  %v3329_v37 = vrot.slane %v3327_v20, 4 }
  0x68   : > { %v634_v31 = vshrl.u32 %v8947_v19, 16  ;;  %v637_v36 = vshll.u32 %v8947_v19, 16  ;;  %v3332_v52 = vrot.slane %v3330_v22, 5  ;;  %316 = vst [vmem:[#allocation2 + $0x44] sm:$0x1] %v315_v29  ;;  %v3338_v41 = vrot.slane %v3336_v23, 5 }
  0x69   : > { %2991 = vrot.lane.b32.xlu0 %v8592_v17, %s9294_s29  ;;  %v628_v39 = vrot.slane %v626_v27, 7  ;;  %v3342_v42 = vrot.slane %v3340_v28, 4  ;;  %v8640_v45 = vrot.slane %v3781_v26, 9  ;;  %v3887_v47 = vrot.slane %v3782_v25, 5  ;;  %v1697_v28 = vld [vmem:[#allocation2 + $0x30] sm:$0xe] }
  0x6a   : > { %v636_v14 = vrot.slane %v634_v31, 7  ;;  %v3333_v46 = vor.u32 %v3332_v52, %v3329_v37  ;;  %v1285_v48 = vshrl.u32 %v1149_v32, 16  ;;  %v1288_v54 = vshll.u32 %v1149_v32, 16 }
  0x6b   : > { %v631_v24 = vor.u32 %v629_v18, %v628_v39  ;;  %v632_v30 = vrot.slane %v628_v39, 4  ;;  %v908_v50 = vld [vmem:[#allocation2 + $0x3c] sm:$0xf]  ;;  %v3343_v53 = vor.u32 %v3342_v42, %v3338_v41  ;;  %v9657_v55 = vsel %vm9366_vm8, %v8577_v0, %v2850_v3 }
  0x6c   : > { %v2197_v51 = vld [vmem:[#allocation2 + $0x38] sm:$0x1]  ;;  %v639_v57 = vor.u32 %v637_v36, %v636_v14  ;;  %v641_v60 = vrot.slane %v636_v14, 4  ;;  %v3334_v61 = vrot.slane %v3333_v46, 4  ;;  %v9664_v6 = vsel %vm9366_vm8, %v8640_v45, %v3887_v47  ;;  %v9679_v36 = vld [vmem:[#allocation2 + $0x34] sm:$0xf] }
  0x6d   : > { %v2742_v4 = vld [vmem:[#allocation2 + $0x38] sm:$0x1]  ;;  %v2326_v62 = vshll.u32 %v2197_v51, 16  ;;  %3169 = vrot.lane.b32.xlu0 %v9141_v38, %s9293_s28  ;;  %v909_v5 = vsel %vm9432_vm13, %v631_v24, %v908_v50  ;;  %v3344_v3 = vrot.slane %v3343_v53, 4  ;;  %v3889_v15 = vrot.slane %v3887_v47, 4  ;;  %v213_v47 = vld [vmem:[%s9375_s22 + $0x70] sm:$0xff] }
  0x6e   : > { %v2853_v63 = vrot.slane %v2742_v4, 5  ;;  %v3238_v43 = vld [vmem:[#allocation2 + $0x38] sm:$0x1]  ;;  %v640_v0 = vsel %vm9442_vm14, %v632_v30, %v639_v57  ;;  %910 = vst [vmem:[#allocation2 + $0x3c] sm:$0xf] %v909_v5  ;;  %v1287_v20 = vrot.slane %v1285_v48, 4  ;;  %v3339_v22 = vsel %vm9424_vm12, %v3334_v61, %v3338_v41 }
  0x6f   : > { %v3346_v11 = vshll.u32 %v3238_v43, 16  ;;  %v3783_v12 = vld [vmem:[#allocation2 + $0x38] sm:$0x1]  ;;  %v2328_v17 = vrot.slane %v2326_v62, 5  ;;  %911 = vst.msk [vmem:[#allocation2 + $0x40] sm:$0xf] %vm231_vm0, %v640_v0  ;;  %v9714_v62 = vmul.f32 %v9624_v2, %v213_v47 }
  0x70   : > { %v2854_v58 = vsel %vm9366_vm8, %v2852_v16, %v2853_v63  ;;  %v912_v26 = vld [vmem:[#allocation2 + $0x44] sm:$0x1]  ;;  %v3890_v19 = vrot.slane %v3783_v12, 5  ;;  %v1151_v27 = vld [vmem:[#allocation2 + $0x38] sm:$0x1]  ;;  %v1290_v18 = vrot.slane %v1288_v54, 5 }
  0x71   : > { %v3348_v23 = vrot.slane %v3346_v11, 5  ;;  %v913_v25 = vsel %vm9339_vm3, %v641_v60, %v912_v26  ;;  %v2329_v29 = vsel %vm9424_vm12, %v9642_v8, %v2328_v17  ;;  %v8593_v16 = vcombine.low %v9657_v55, %v2854_v58  ;;  %v9681_v37 = vld [vmem:[#allocation2 + $0x38] sm:$0x1]  ;;  %v261_v41 = vld [vmem:[#allocation2 + $0x48] sm:$0x1] }
  0x72   : > { %914 = vst [vmem:[#allocation2 + $0x44] sm:$0x1] %v913_v25  ;;  %v1294_v32 = vshll.u32 %v1150_v7, 16  ;;  %v1298_v31 = vshrl.u32 %v1150_v7, 16  ;;  %v8561_v52 = vcombine.low %v2319_v44, %v2329_v29  ;;  %v3891_v8 = vsel %vm9366_vm8, %v3889_v15, %v3890_v19  ;;  %v9703_v57 = vld [vmem:[%s11986_s3 + $0x1] ss:$0 sm:$0xff] }
  0x73   : > { %v3349_v38 = vsel %vm9424_vm12, %v3344_v3, %v3348_v23  ;;  %v1291_v39 = vor.u32 %v1290_v18, %v1287_v20  ;;  %v1304_v46 = vshll.u32 %v1151_v27, 16  ;;  %v8514_v24 = vrot.slane %v1697_v28, 9 }
  0x74   : > { %v8624_v42 = vcombine.low %v3339_v22, %v3349_v38  ;;  %v1296_v45 = vrot.slane %v1294_v32, 5  ;;  %v1300_v14 = vrot.slane %v1298_v31, 4  ;;  %2672 = vrot.lane.b32.xlu1 %v8561_v52, %s9296_s5  ;;  %v1814_v49 = vrot.slane %v9679_v36, 5 }
  0x75   : > { %v1292_v48 = vrot.slane %v1291_v39, 4  ;;  %v1817_v59 = vrot.slane %v9681_v37, 5  ;;  %v3239_v44 = vld [vmem:[#allocation2 + $0x3c] sm:$0xf]  ;;  %v8656_v30 = vcombine.low %v9664_v6, %v3891_v8  ;;  %v1306_v53 = vrot.slane %v1304_v46, 5 }
  0x76   : > { %3714 = vrot.lane.b32.xlu0 %v8624_v42, %s9297_s6  ;;  %v1301_v50 = vor.u32 %v1300_v14, %v1296_v45  ;;  %v262_v54 = vsel %vm9339_vm3, 0, %v261_v41  ;;  %v9142_v51 = vld [vmem:[#allocation2 + $0x3c] sm:$0xff]   ;;  %v3351_v55 = vshrl.u32 %v3239_v44, 16  ;;  %v9707_v60 = vadd.f32 %v9703_v57, %v9516_v34 }
  0x77   : > { %v3240_v4 = vld [vmem:[#allocation2 + $0x40] sm:$0xf]  ;;  %263 = vst [vmem:[#allocation2 + $0x48] sm:$0x1] %v262_v54  ;;  %v9711_v61 = vadd.f32 %v9703_v57, %v9544_v40  ;;  %v3354_v63 = vshll.u32 %v3239_v44, 16  ;;  %v1297_v34 = vsel %vm9424_vm12, %v1292_v48, %v1296_v45  ;;  %v9721_v40 = vadd.f32 %v9703_v57, %v9627_v56 }
  0x78   : > { %v3360_v5 = vshll.u32 %v3240_v4, 16  ;;  %v3364_v43 = vshrl.u32 %v3240_v4, 16  ;;  %v1302_v6 = vrot.slane %v1301_v50, 4  ;;  %v3784_v7 = vld [vmem:[#allocation2 + $0x3c] sm:$0xe]  ;;  %2993 = vrot.lane.b32.xlu1 %v8593_v16, %s9294_s29  ;;  %v3353_v3 = vrot.slane %v3351_v55, 4 }
  0x79   : > { %v3241_v0 = vld [vmem:[#allocation2 + $0x44] sm:$0x1]  ;;  %v3785_v11 = vld [vmem:[#allocation2 + $0x40] sm:$0xf]  ;;  %v8641_v12 = vrot.slane %v3784_v7, 9  ;;  %v3356_v15 = vrot.slane %v3354_v63, 5  ;;  %v1815_v56 = vsel %vm9366_vm8, %v8514_v24, %v1814_v49  ;;  %v9751_v36 = vadd.f32 %v9703_v57, %v9714_v62 }
  0x7a   : > { %v3362_v17 = vrot.slane %v3360_v5, 5  ;;  %v3366_v58 = vrot.slane %v3364_v43, 4  ;;  %v3370_v26 = vshll.u32 %v3241_v0, 16  ;;  %4035 = vrot.lane.b32.xlu0 %v8656_v30, %s9295_s30  ;;  %v3786_v19 = vld [vmem:[#allocation2 + $0x44] sm:$0x1]  ;;  %v1307_v20 = vsel %vm9424_vm12, %v1302_v6, %v1306_v53 }
  0x7b   : > { %v3894_v22 = vrot.slane %v3785_v11, 5  ;;  %v3897_v23 = vrot.slane %v3786_v19, 5  ;;  %v1152_v25 = vld [vmem:[#allocation2 + $0x3c] sm:$0xf]  ;;  %v1153_v27 = vld [vmem:[#allocation2 + $0x40] sm:$0xf]  ;;  %v3357_v18 = vor.u32 %v3356_v15, %v3353_v3  ;;  %v8498_v16 = vcombine.low %v1297_v34, %v1307_v20 }
  0x7c   : > { %v3367_v28 = vor.u32 %v3366_v58, %v3362_v17  ;;  %v3372_v29 = vrot.slane %v3370_v26, 5  ;;  %v1154_v32 = vld [vmem:[#allocation2 + $0x44] sm:$0x1]  ;;  %3171 = vrot.lane.b32.xlu1 %v9142_v51, %s9293_s28  ;;  %v1309_v38 = vshrl.u32 %v1152_v25, 16  ;;  %v1312_v8 = vshll.u32 %v1152_v25, 16 }
  0x7d   : > { %v3895_v31 = vsel %vm9366_vm8, %v8641_v12, %v3894_v22  ;;  %v3896_v52 = vrot.slane %v3894_v22, 4  ;;  %v1700_v39 = vld [vmem:[#allocation2 + $0x3c] sm:$0xe]  ;;  %v1701_v41 = vld [vmem:[#allocation2 + $0x40] sm:$0xf]  ;;  %v3358_v42 = vrot.slane %v3357_v18, 4 }
  0x7e   : > { %v3368_v45 = vrot.slane %v3367_v28, 4  ;;  %v1318_v14 = vshll.u32 %v1153_v27, 16  ;;  %v1322_v46 = vshrl.u32 %v1153_v27, 16  ;;  %v1702_v47 = vld [vmem:[#allocation2 + $0x44] sm:$0x1]  ;;  %v1311_v24 = vrot.slane %v1309_v38, 4 }
  0x7f   : > { %v3898_v48 = vsel %vm9366_vm8, %v3896_v52, %v3897_v23  ;;  %v1314_v44 = vrot.slane %v1312_v8, 5  ;;  %v1328_v30 = vshll.u32 %v1154_v32, 16  ;;  %v3363_v50 = vsel %vm9424_vm12, %v3358_v42, %v3362_v17  ;;  %v2198_v43 = vld [vmem:[#allocation2 + $0x3c] sm:$0xf]  ;;  %v2200_v23 = vld [vmem:[#allocation2 + $0x44] sm:$0x1] }
  0x80   : > { %v3373_v53 = vsel %vm9424_vm12, %v3368_v45, %v3372_v29  ;;  %v8657_v54 = vcombine.low %v3895_v31, %v3898_v48  ;;  %v1320_v51 = vrot.slane %v1318_v14, 5  ;;  %v1324_v63 = vrot.slane %v1322_v46, 4  ;;  %v317_v29 = vld [vmem:[#allocation2 + $0x50] sm:$0x1]  ;;  %v915_v38 = vld [vmem:[#allocation2 + $0x48] sm:$0xf] }
  0x81   : > { %v8625_v4 = vcombine.low %v3363_v50, %v3373_v53  ;;  %v1315_v55 = vor.u32 %v1314_v44, %v1311_v24  ;;  %v1330_v5 = vrot.slane %v1328_v30, 5  ;;  %v1816_v6 = vrot.slane %v1814_v49, 4  ;;  %v2743_v45 = vld [vmem:[#allocation2 + $0x3c] sm:$0xe]  ;;  %v2744_v24 = vld [vmem:[#allocation2 + $0x40] sm:$0xf] }
  0x82   : > { %4037 = vrot.lane.b32.xlu0 %v8657_v54, %s9295_s30  ;;  %v8515_v7 = vrot.slane %v1700_v39, 9  ;;  %v1821_v0 = vrot.slane %v1701_v41, 5  ;;  %v1824_v3 = vrot.slane %v1702_v47, 5  ;;  %v1325_v11 = vor.u32 %v1324_v63, %v1320_v51  ;;  %v2745_v44 = vld [vmem:[#allocation2 + $0x44] sm:$0x1] }
  0x83   : > { %3716 = vrot.lane.b32.xlu1 %v8625_v4, %s9297_s6  ;;  %v1316_v34 = vrot.slane %v1315_v55, 4  ;;  %v437_v12 = vmax.f32 %v9519_v35, 0.0  ;;  %v438_v15 = vmax.f32 %v9707_v60, 0.0  ;;  %v1818_v17 = vsel %vm9366_vm8, %v1816_v6, %v1817_v59  ;;  %v2199_v35 = vld [vmem:[#allocation2 + $0x40] sm:$0xf] }
  0x84   : > { %v1823_v58 = vrot.slane %v1821_v0, 4  ;;  %v2331_v26 = vshrl.u32 %v2198_v43, 16  ;;  %v1326_v19 = vrot.slane %v1325_v11, 4  ;;  %v8530_v20 = vcombine.low %v1815_v56, %v1818_v17  ;;  %v9143_v56 = vld [vmem:[#allocation2 + $0x3c] sm:$0xff]  }
  0x85   : > { %v1321_v49 = vsel %vm9424_vm12, %v1316_v34, %v1320_v51  ;;  %v8948_v22 = vpack.c.bf16 %v437_v12, %v437_v12  ;;  %v1822_v60 = vsel %vm9366_vm8, %v8515_v7, %v1821_v0  ;;  %v8949_v37 = vpack.c.bf16 %v438_v15, %v438_v15  ;;  %v264_v51 = vld [vmem:[#allocation2 + $0x54] sm:$0x1]  ;;  %v267_v34 = vld [vmem:[#allocation2 + $0x60] sm:$0x1] }
  0x86   : > { %v2333_v25 = vrot.slane %v2331_v26, 4  ;;  %v2334_v59 = vshll.u32 %v2198_v43, 16  ;;  %v1331_v62 = vsel %vm9424_vm12, %v1326_v19, %v1330_v5  ;;  %1952 = vrot.lane.b32.xlu0 %v8530_v20, %s9290_s25  ;;  %v1825_v27 = vsel %vm9366_vm8, %v1823_v58, %v1824_v3  ;;  %v320_v43 = vld [vmem:[#allocation2 + $0x5c] sm:$0x1]  ;;  %v9158_v11 = vld [vmem:[%s11984_s1] sm:$0xff]  }
  0x87   : > { %1628 = vrot.lane.b32.xlu1 %v8498_v16, %s9291_s26  ;;  %v643_v18 = vshrl.u32 %v8948_v22, 16  ;;  %v646_v28 = vshll.u32 %v8948_v22, 16  ;;  %v8499_v32 = vcombine.low %v1321_v49, %v1331_v62  ;;  %v651_v31 = vshrl.u32 %v8949_v37, 16  ;;  %9040 = vmatprep.subr.bf16.mxu0 %v9158_v11  ;;  %v9154_v62 = vld [vmem:[#allocation2 + $0xc] sm:$0xff]  }
  0x88   : > { %v654_v52 = vshll.u32 %v8949_v37, 16  ;;  %v2336_v8 = vrot.slane %v2334_v59, 5  ;;  %v2340_v41 = vshll.u32 %v2199_v35, 16  ;;  %v2344_v16 = vshrl.u32 %v2199_v35, 16  ;;  %v9149_v37 = vld [vmem:[#allocation2] sm:$0xff]   ;;  %9041 = vmatpush3.bf16.msra.mxu0 %v9158_v11 }
  0x89   : > { %v645_v39 = vrot.slane %v643_v18, 7  ;;  %v2350_v42 = vshll.u32 %v2200_v23, 16  ;;  %v8531_v14 = vcombine.low %v1822_v60, %v1825_v27  ;;  %v653_v46 = vrot.slane %v651_v31, 7  ;;  %v323_v59 = vld [vmem:[#allocation2 + $0x68] sm:$0x1]  ;;  %v9157_v27 = vld [vmem:[#allocation2 + $0x18] sm:$0xff]  }
  0x8a   : > { %v2337_v47 = vor.u32 %v2336_v8, %v2333_v25  ;;  %v318_v48 = vsel %vm9356_vm7, 0, %v317_v29  ;;  %2129 = vrot.lane.b32.xlu0 %v9143_v56, %s9292_s27  ;;  %v2342_v53 = vrot.slane %v2340_v41, 5  ;;  %v2346_v54 = vrot.slane %v2344_v16, 4  ;;  %v216_v41 = vld [vmem:[%s9375_s22 + $0x88] sm:$0xff] }
  0x8b   : > { %1630 = vrot.lane.b32.xlu1 %v8499_v32, %s9291_s26  ;;  %v648_v30 = vor.u32 %v646_v28, %v645_v39  ;;  %v649_v50 = vrot.slane %v645_v39, 4  ;;  %319 = vst [vmem:[#allocation2 + $0x50] sm:$0x1] %v318_v48  ;;  %v656_v4 = vor.u32 %v654_v52, %v653_v46  ;;  %v2352_v63 = vrot.slane %v2350_v42, 5  ;;  %v214_v32 = vld [vmem:[%s9375_s22 + $0x78] sm:$0xff]  ;;  %v215_v39 = vld [vmem:[%s9375_s22 + $0x80] sm:$0xff] }
  0x8c   : > { %v2338_v55 = vrot.slane %v2337_v47, 4  ;;  %v8578_v5 = vrot.slane %v2743_v45, 9  ;;  %v2347_v7 = vor.u32 %v2346_v54, %v2342_v53  ;;  %v2857_v0 = vrot.slane %v2744_v24, 5 }
  0x8d   : > { %v916_v6 = vsel %vm9432_vm13, %v648_v30, %v915_v38  ;;  %v2860_v3 = vrot.slane %v2745_v44, 5  ;;  %v657_v12 = vsel %vm9442_vm14, %v649_v50, %v656_v4  ;;  %v658_v15 = vrot.slane %v653_v46, 4 }
  0x8e   : > { %917 = vst [vmem:[#allocation2 + $0x48] sm:$0xf] %v916_v6  ;;  %v265_v17 = vsel %vm9339_vm3, 0, %v264_v51  ;;  %v439_v58 = vmax.f32 %v9711_v61, 0.0  ;;  %918 = vst.msk [vmem:[#allocation2 + $0x4c] sm:$0xf] %vm231_vm0, %v657_v12  ;;  %v2343_v26 = vsel %vm9424_vm12, %v2338_v55, %v2342_v53  ;;  %v2858_v22 = vsel %vm9366_vm8, %v8578_v5, %v2857_v0 }
  0x8f   : > { %1954 = vrot.lane.b32.xlu1 %v8531_v14, %s9290_s25  ;;  %v2348_v49 = vrot.slane %v2347_v7, 4  ;;  %v2859_v19 = vrot.slane %v2857_v0, 4  ;;  %266 = vst [vmem:[#allocation2 + $0x54] sm:$0x1] %v265_v17  ;;  %v440_v20 = vmax.f32 %v9721_v40, 0.0  ;;  %v321_v61 = vsel %vm9356_vm7, 0, %v320_v43 }
  0x90   : > { %v8950_v35 = vpack.c.bf16 %v439_v58, %v439_v58  ;;  %v268_v60 = vsel %vm9339_vm3, 0, %v267_v34  ;;  %322 = vst [vmem:[#allocation2 + $0x5c] sm:$0x1] %v321_v61  ;;  %v441_v8 = vmax.f32 %v9751_v36, 0.0  ;;  %v324_v45 = vsel %vm9356_vm7, 0, %v323_v59  ;;  %v9159_v14 = vld [vmem:[#allocation2 + $0x24] sm:$0xff]  }
  0x91   : > { %v2353_v23 = vsel %vm9424_vm12, %v2348_v49, %v2352_v63  ;;  %v2861_v40 = vsel %vm9366_vm8, %v2859_v19, %v2860_v3  ;;  %v9792_v25 = vpack.c.bf16 %v440_v20, %v440_v20  ;;  %269 = vst [vmem:[#allocation2 + $0x60] sm:$0x1] %v268_v60  ;;  %vm11988_vm15 = vcmask 31744   ;;  %325 = vst [vmem:[#allocation2 + $0x68] sm:$0x1] %v324_v45  ;;  %v9160_v12 = vld [vmem:[%s11984_s1 + $0x8] sm:$0xff]   ;;  %v9824_v19 = vpop.permute.xlu1 %1944 }
  0x92   : > { %v8562_v56 = vcombine.low %v2343_v26, %v2353_v23  ;;  %v919_v18 = vld [vmem:[#allocation2 + $0x50] sm:$0x1]  ;;  %v660_v28 = vshrl.u32 %v8950_v35, 16  ;;  %v663_v29 = vshll.u32 %v8950_v35, 16  ;;  %v8594_v52 = vcombine.low %v2858_v22, %v2861_v40  ;;  %1121 = vst.msk [vmem:[#allocation3] sm:$0xff] %vm11988_vm15, %v9149_v37  ;;  %1122 = vst.msk [vmem:[#allocation3 + $0x8] sm:$0xff] %vm11988_vm15, %v9154_v62  ;;  %9042 = vmatprep.subr.bf16.mxu0 %v9160_v12 }
  0x93   : > { %v920_v31 = vsel %vm9339_vm3, %v658_v15, %v919_v18  ;;  %v668_v38 = vshrl.u32 %v9792_v25, 16  ;;  %v671_v42 = vshll.u32 %v9792_v25, 16  ;;  %v373_v48 = vmul.f32 %v9624_v2, %v214_v32  ;;  %1123 = vst.msk [vmem:[#allocation3 + $0x10] sm:$0xff] %vm11988_vm15, %v9157_v27  ;;  %1124 = vst.msk [vmem:[#allocation3 + $0x18] sm:$0xff] %vm11988_vm15, %v9159_v14  ;;  %9043 = vmatpush3.bf16.msra.mxu0 %v9160_v12 }
  0x94   : > { %2674 = vrot.lane.b32.xlu0 %v8562_v56, %s9296_s5  ;;  %921 = vst [vmem:[#allocation2 + $0x50] sm:$0x1] %v920_v31  ;;  %v9802_v16 = vrot.slane %v660_v28, 7  ;;  %v374_v53 = vmul.f32 %v9624_v2, %v215_v39  ;;  %v375_v54 = vmul.f32 %v9624_v2, %v216_v41  ;;  %vm1668_vm1 = vcmask 64544  }
  0x95   : > { %v2201_v46 = vld [vmem:[#allocation2 + $0x48] sm:$0xf]  ;;  %v2202_v44 = vld [vmem:[#allocation2 + $0x4c] sm:$0xf]  ;;  %v670_v17 = vrot.slane %v668_v38, 7  ;;  %v9822_v49 = vadd.f32 %v9703_v57, %v373_v48  ;;  %vm1992_vm2 = vcmask 97344  }
  0x96   : > { %v2746_v47 = vld [vmem:[#allocation2 + $0x48] sm:$0xe]  ;;  %v2355_v30 = vshrl.u32 %v2201_v46, 16  ;;  %v665_v50 = vor.u32 %v663_v29, %v9802_v16  ;;  %v2358_v51 = vshll.u32 %v2201_v46, 16  ;;  %v2364_v4 = vshll.u32 %v2202_v44, 16 }
  0x97   : > { %v9144_v24 = vld [vmem:[#allocation2 + $0x48] sm:$0xff]   ;;  %v2368_v55 = vshrl.u32 %v2202_v44, 16  ;;  %v8579_v5 = vrot.slane %v2746_v47, 9  ;;  %v666_v11 = vrot.slane %v9802_v16, 4  ;;  %v922_v58 = vld [vmem:[#allocation2 + $0x54] sm:$0xf]  ;;  %v9827_v20 = vadd.f32 %v9703_v57, %v374_v53 }
  0x98   : > { %v2747_v63 = vld [vmem:[#allocation2 + $0x4c] sm:$0xf]  ;;  %2131 = vrot.lane.b32.xlu1 %v9144_v24, %s9292_s27  ;;  %v2357_v43 = vrot.slane %v2355_v30, 4  ;;  %2995 = vrot.lane.b32.xlu0 %v8594_v52, %s9294_s29  ;;  %v2360_v7 = vrot.slane %v2358_v51, 5  ;;  %v2366_v0 = vrot.slane %v2364_v4, 5  ;;  %v923_v37 = vsel %vm9432_vm13, %v665_v50, %v922_v58  ;;  %v9835_v56 = vpop.permute.xlu0 %1620  ;;  %v217_v51 = vld [vmem:[%s9375_s22 + $0x90] sm:$0xff] }
  0x99   : > { %v2864_v6 = vrot.slane %v2747_v63, 5  ;;  %v2370_v3 = vrot.slane %v2368_v55, 4  ;;  %v9145_v34 = vld [vmem:[#allocation2 + $0x48] sm:$0xff]   ;;  %v9832_v40 = vadd.f32 %v9703_v57, %v375_v54  ;;  %v673_v62 = vor.u32 %v671_v42, %v670_v17  ;;  %924 = vst [vmem:[#allocation2 + $0x54] sm:$0xf] %v923_v37  ;;  %1669 = vst.msk [vmem:[#allocation3] sm:$0xff] %vm1668_vm1, %v9835_v56 }
  0x9a   : > { %v3242_v26 = vld [vmem:[#allocation2 + $0x48] sm:$0xf]  ;;  %v2361_v35 = vor.u32 %v2360_v7, %v2357_v43  ;;  %v3243_v23 = vld [vmem:[#allocation2 + $0x4c] sm:$0xf]  ;;  %v675_v27 = vrot.slane %v670_v17, 4  ;;  %v442_v43 = vmax.f32 %v9822_v49, 0.0  ;;  %v9858_v58 = vmul.f32 %v9624_v2, %v217_v51 }
  0x9b   : > { %v2866_v15 = vrot.slane %v2864_v6, 4  ;;  %v2203_v22 = vld [vmem:[#allocation2 + $0x50] sm:$0x1]  ;;  %v2371_v61 = vor.u32 %v2370_v3, %v2366_v0  ;;  %v3375_v32 = vshrl.u32 %v3242_v26, 16  ;;  %v3378_v31 = vshll.u32 %v3242_v26, 16  ;;  %1993 = vst.msk [vmem:[#allocation3] sm:$0xff] %vm1992_vm2, %v9824_v19 }
  0x9c   : > { %v2748_v60 = vld [vmem:[#allocation2 + $0x50] sm:$0x1]  ;;  %v2374_v25 = vshll.u32 %v2203_v22, 16  ;;  %3173 = vrot.lane.b32.xlu0 %v9145_v34, %s9293_s28  ;;  %v2362_v18 = vrot.slane %v2361_v35, 4  ;;  %v2865_v38 = vsel %vm9366_vm8, %v8579_v5, %v2864_v6  ;;  %v674_v39 = vsel %vm9442_vm14, %v666_v11, %v673_v62  ;;  %v926_v16 = vld [vmem:[#allocation2 + $0x5c] sm:$0x1] }
  0x9d   : > { %v2867_v59 = vrot.slane %v2748_v60, 5  ;;  %v2372_v28 = vrot.slane %v2371_v61, 4  ;;  %v3244_v29 = vld [vmem:[#allocation2 + $0x50] sm:$0x1]  ;;  %v3384_v41 = vshll.u32 %v3243_v23, 16  ;;  %v3377_v14 = vrot.slane %v3375_v32, 4 }
  0x9e   : > { %v2376_v52 = vrot.slane %v2374_v25, 5  ;;  %v2367_v42 = vsel %vm9424_vm12, %v2362_v18, %v2366_v0  ;;  %925 = vst.msk [vmem:[#allocation2 + $0x58] sm:$0xf] %vm231_vm0, %v674_v39  ;;  %v3380_v46 = vrot.slane %v3378_v31, 5  ;;  %v3787_v47 = vld [vmem:[#allocation2 + $0x48] sm:$0xe]  ;;  %v927_v63 = vsel %vm9339_vm3, %v675_v27, %v926_v16 }
  0x9f   : > { %v2868_v45 = vsel %vm9366_vm8, %v2866_v15, %v2867_v59  ;;  %v3788_v48 = vld [vmem:[#allocation2 + $0x4c] sm:$0xf]  ;;  %v3386_v44 = vrot.slane %v3384_v41, 5  ;;  %v3388_v30 = vshrl.u32 %v3243_v23, 16  ;;  %v3394_v50 = vshll.u32 %v3244_v29, 16  ;;  %v9848_v54 = vpop.permute.xlu1 %2123 }
  0xa0   : > { %v2377_v24 = vsel %vm9424_vm12, %v2372_v28, %v2376_v52  ;;  %v1155_v53 = vld [vmem:[#allocation2 + $0x48] sm:$0xf]  ;;  %v3381_v55 = vor.u32 %v3380_v46, %v3377_v14  ;;  %v3789_v5 = vld [vmem:[#allocation2 + $0x50] sm:$0x1]  ;;  %928 = vst [vmem:[#allocation2 + $0x5c] sm:$0x1] %v927_v63  ;;  %v8595_v11 = vcombine.low %v2865_v38, %v2868_v45  ;;  %v9863_v23 = vpack.c.bf16 %v441_v8, %v441_v8 }
  0xa1   : > { %v8563_v4 = vcombine.low %v2367_v42, %v2377_v24  ;;  %v3390_v6 = vrot.slane %v3388_v30, 4  ;;  %v3396_v7 = vrot.slane %v3394_v50, 5  ;;  %v8642_v0 = vrot.slane %v3787_v47, 9  ;;  %v3245_v15 = vld [vmem:[#allocation2 + $0x54] sm:$0xf] }
  0xa2   : > { %v3901_v3 = vrot.slane %v3788_v48, 5  ;;  %v9854_v34 = vpop.permute.xlu0 %2121  ;;  %v3382_v12 = vrot.slane %v3381_v55, 4  ;;  %v1333_v17 = vshrl.u32 %v1155_v53, 16  ;;  %v3399_v22 = vshrl.u32 %v3245_v15, 16  ;;  %v1156_v60 = vld [vmem:[#allocation2 + $0x4c] sm:$0xf] }
  0xa3   : > { %2676 = vrot.lane.b32.xlu1 %v8563_v4, %s9296_s5  ;;  %v3391_v26 = vor.u32 %v3390_v6, %v3386_v44  ;;  %v3402_v35 = vshll.u32 %v3245_v15, 16  ;;  %v3904_v49 = vrot.slane %v3789_v5, 5  ;;  %v1336_v37 = vshll.u32 %v1155_v53, 16  ;;  %v1157_v41 = vld [vmem:[#allocation2 + $0x50] sm:$0x1] }
  0xa4   : > { %v3903_v61 = vrot.slane %v3901_v3, 4  ;;  %v9865_v25 = vpack.c.bf16 %v442_v43, %v442_v43  ;;  %v3387_v59 = vsel %vm9424_vm12, %v3382_v12, %v3386_v44  ;;  %v3902_v27 = vsel %vm9366_vm8, %v8642_v0, %v3901_v3  ;;  %v3790_v45 = vld [vmem:[#allocation2 + $0x54] sm:$0xe] }
  0xa5   : > { %v3392_v62 = vrot.slane %v3391_v26, 4  ;;  %v3246_v2 = vld [vmem:[#allocation2 + $0x58] sm:$0xf]  ;;  %v1335_v18 = vrot.slane %v1333_v17, 4  ;;  %v9871_v28 = vpop.permute.xlu1 %3167  ;;  %v3401_v8 = vrot.slane %v3399_v22, 4  ;;  %v3404_v32 = vrot.slane %v3402_v35, 5 }
  0xa6   : > { %v9873_v29 = vpop.permute.xlu0 %3165  ;;  %v9146_v36 = vld [vmem:[#allocation2 + $0x54] sm:$0xff]   ;;  %v3408_v31 = vshll.u32 %v3246_v2, 16  ;;  %v3412_v52 = vshrl.u32 %v3246_v2, 16  ;;  %v3905_v39 = vsel %vm9366_vm8, %v3903_v61, %v3904_v49  ;;  %v1338_v16 = vrot.slane %v1336_v37, 5 }
  0xa7   : > { %2997 = vrot.lane.b32.xlu1 %v8595_v11, %s9294_s29  ;;  %v3397_v38 = vsel %vm9424_vm12, %v3392_v62, %v3396_v7  ;;  %v1342_v42 = vshll.u32 %v1156_v60, 16  ;;  %v3247_v46 = vld [vmem:[#allocation2 + $0x5c] sm:$0x1]  ;;  %v3405_v47 = vor.u32 %v3404_v32, %v3401_v8  ;;  %v3791_v44 = vld [vmem:[#allocation2 + $0x58] sm:$0xf]  ;;  %v8658_v50 = vcombine.low %v3902_v27, %v3905_v39 }
  0xa8   : > { %v8626_v14 = vcombine.low %v3387_v59, %v3397_v38  ;;  %v3410_v48 = vrot.slane %v3408_v31, 5  ;;  %v3414_v24 = vrot.slane %v3412_v52, 4  ;;  %v3418_v30 = vshll.u32 %v3247_v46, 16  ;;  %v1158_v4 = vld [vmem:[#allocation2 + $0x54] sm:$0xf] }
  0xa9   : > { %v1339_v53 = vor.u32 %v1338_v16, %v1335_v18  ;;  %v1344_v51 = vrot.slane %v1342_v42, 5  ;;  %v3406_v63 = vrot.slane %v3405_v47, 4  ;;  %v1346_v43 = vshrl.u32 %v1156_v60, 16  ;;  %v3792_v7 = vld [vmem:[#allocation2 + $0x5c] sm:$0x1] }
  0xaa   : > { %v9880_v55 = vpop.permute.xlu0 %2125  ;;  %3718 = vrot.lane.b32.xlu0 %v8626_v14, %s9297_s6  ;;  %v3415_v5 = vor.u32 %v3414_v24, %v3410_v48  ;;  %v1352_v6 = vshll.u32 %v1157_v41, 16  ;;  %v1159_v0 = vld [vmem:[#allocation2 + $0x58] sm:$0xf]  ;;  %v3420_v3 = vrot.slane %v3418_v30, 5  ;;  %v8643_v12 = vrot.slane %v3790_v45, 9 }
  0xab   : > { %3175 = vrot.lane.b32.xlu1 %v9146_v36, %s9293_s28  ;;  %v1340_v11 = vrot.slane %v1339_v53, 4  ;;  %v3908_v15 = vrot.slane %v3791_v44, 5  ;;  %v3411_v26 = vsel %vm9424_vm12, %v3406_v63, %v3410_v48  ;;  %v1348_v35 = vrot.slane %v1346_v43, 4  ;;  %v1160_v18 = vld [vmem:[#allocation2 + $0x5c] sm:$0x1] }
  0xac   : > { %v9884_v17 = vpop.permute.xlu1 %2127  ;;  %v3416_v22 = vrot.slane %v3415_v5, 4  ;;  %v1354_v49 = vrot.slane %v1352_v6, 5  ;;  %v3911_v59 = vrot.slane %v3792_v7, 5  ;;  %v1357_v36 = vshrl.u32 %v1158_v4, 16  ;;  %v1703_v32 = vld [vmem:[#allocation2 + $0x48] sm:$0xe] }
  0xad   : > { %v1345_v61 = vsel %vm9424_vm12, %v1340_v11, %v1344_v51  ;;  %v3909_v60 = vsel %vm9366_vm8, %v8643_v12, %v3908_v15  ;;  %v3910_v37 = vrot.slane %v3908_v15, 4  ;;  %v1349_v27 = vor.u32 %v1348_v35, %v1344_v51  ;;  %v1704_v41 = vld [vmem:[#allocation2 + $0x4c] sm:$0xf]  ;;  %v1705_v16 = vld [vmem:[#allocation2 + $0x50] sm:$0x1] }
  0xae   : > { %v9892_v62 = vpop.permute.xlu0 %2987  ;;  %v3421_v2 = vsel %vm9424_vm12, %v3416_v22, %v3420_v3  ;;  %4039 = vrot.lane.b32.xlu0 %v8658_v50, %s9295_s30  ;;  %v1360_v8 = vshll.u32 %v1158_v4, 16  ;;  %v1366_v38 = vshll.u32 %v1159_v0, 16  ;;  %v1370_v39 = vshrl.u32 %v1159_v0, 16  ;;  %v1706_v48 = vld [vmem:[#allocation2 + $0x54] sm:$0xe] }
  0xaf   : > { %v8627_v31 = vcombine.low %v3411_v26, %v3421_v2  ;;  %v3912_v52 = vsel %vm9366_vm8, %v3910_v37, %v3911_v59  ;;  %v1350_v45 = vrot.slane %v1349_v27, 4  ;;  %v1359_v46 = vrot.slane %v1357_v36, 4  ;;  %v1707_v53 = vld [vmem:[#allocation2 + $0x58] sm:$0xf]  ;;  %v1708_v6 = vld [vmem:[#allocation2 + $0x5c] sm:$0x1] }
  0xb0   : > { %v9899_v42 = vpop.permute.xlu1 %1946  ;;  %v8659_v14 = vcombine.low %v3909_v60, %v3912_v52  ;;  %v1362_v47 = vrot.slane %v1360_v8, 5  ;;  %v1368_v24 = vrot.slane %v1366_v38, 5  ;;  %v1372_v44 = vrot.slane %v1370_v39, 4  ;;  %v2204_v60 = vld [vmem:[#allocation2 + $0x54] sm:$0xf] }
  0xb1   : > { %3720 = vrot.lane.b32.xlu1 %v8627_v31, %s9297_s6  ;;  %v1376_v30 = vshll.u32 %v1160_v18, 16  ;;  %v8516_v50 = vrot.slane %v1703_v32, 9  ;;  %v1355_v4 = vsel %vm9424_vm12, %v1350_v45, %v1354_v49  ;;  %v1828_v5 = vrot.slane %v1704_v41, 5  ;;  %v929_v32 = vld [vmem:[#allocation2 + $0x60] sm:$0xf]  ;;  %v9164_v38 = vld [vmem:[#allocation2 + $0x30] sm:$0xff]  }
  0xb2   : > { %v9902_v51 = vpop.permute.xlu0 %4031  ;;  %4041 = vrot.lane.b32.xlu0 %v8659_v14, %s9295_s30  ;;  %v1363_v63 = vor.u32 %v1362_v47, %v1359_v46  ;;  %v1831_v43 = vrot.slane %v1705_v16, 5  ;;  %v8500_v7 = vcombine.low %v1345_v61, %v1355_v4  ;;  %v1373_v0 = vor.u32 %v1372_v44, %v1368_v24  ;;  %v2205_v31 = vld [vmem:[#allocation2 + $0x58] sm:$0xf]  ;;  %v2206_v52 = vld [vmem:[#allocation2 + $0x5c] sm:$0x1]  ;;  %1125 = vst.msk [vmem:[#allocation3 + $0x20] sm:$0xff] %vm11988_vm15, %v9164_v38 }
  0xb3   : > { %v1378_v3 = vrot.slane %v1376_v30, 5  ;;  %v8517_v11 = vrot.slane %v1706_v48, 9  ;;  %v1829_v26 = vsel %vm9366_vm8, %v8516_v50, %v1828_v5  ;;  %v1830_v22 = vrot.slane %v1828_v5, 4  ;;  %v9147_v41 = vld [vmem:[#allocation2 + $0x54] sm:$0xff]   ;;  %v933_v44 = vld [vmem:[#allocation2 + $0x68] sm:$0x1] }
  0xb4   : > { %v9907_v12 = vpop.permute.xlu1 %2989  ;;  %v1364_v15 = vrot.slane %v1363_v63, 4  ;;  %v1835_v35 = vrot.slane %v1707_v53, 5  ;;  %v1374_v49 = vrot.slane %v1373_v0, 4  ;;  %v1838_v37 = vrot.slane %v1708_v6, 5  ;;  %v2749_v63 = vld [vmem:[#allocation2 + $0x54] sm:$0xe] }
  0xb5   : > { %1632 = vrot.lane.b32.xlu1 %v8500_v7, %s9291_s26  ;;  %v677_v59 = vshrl.u32 %v9863_v23, 16  ;;  %v680_v61 = vshll.u32 %v9863_v23, 16  ;;  %v1832_v18 = vsel %vm9366_vm8, %v1830_v22, %v1831_v43  ;;  %v685_v45 = vshrl.u32 %v9865_v25, 16  ;;  %v2750_v5 = vld [vmem:[#allocation2 + $0x58] sm:$0xf] }
  0xb6   : > { %v9914_v2 = vpop.permute.xlu0 %4033  ;;  %v1369_v27 = vsel %vm9424_vm12, %v1364_v15, %v1368_v24  ;;  %v1836_v36 = vsel %vm9366_vm8, %v8517_v11, %v1835_v35  ;;  %v1837_v8 = vrot.slane %v1835_v35, 4  ;;  %v1379_v39 = vsel %vm9424_vm12, %v1374_v49, %v1378_v3  ;;  %v2751_v22 = vld [vmem:[#allocation2 + $0x5c] sm:$0x1]  ;;  %v270_v35 = vld [vmem:[#allocation2 + $0x6c] sm:$0x1] }
  0xb7   : > { %v8532_v23 = vcombine.low %v1829_v26, %v1832_v18  ;;  %v679_v16 = vrot.slane %v677_v59, 7  ;;  %v8501_v46 = vcombine.low %v1369_v27, %v1379_v39  ;;  %v688_v48 = vshll.u32 %v9865_v25, 16  ;;  %v9165_v25 = vld [vmem:[#allocation2 + $0x3c] sm:$0xff]  }
  0xb8   : > { %v9925_v14 = vpop.permute.xlu1 %1950  ;;  %v1839_v47 = vsel %vm9366_vm8, %v1837_v8, %v1838_v37  ;;  %v2379_v24 = vshrl.u32 %v2204_v60, 16  ;;  %v687_v4 = vrot.slane %v685_v45, 7  ;;  %v2382_v6 = vshll.u32 %v2204_v60, 16  ;;  %v218_v18 = vld [vmem:[%s9375_s22 + $0x98] sm:$0xff]  ;;  %1126 = vst.msk [vmem:[#allocation3 + $0x28] sm:$0xff] %vm11988_vm15, %v9165_v25 }
  0xb9   : > { %1956 = vrot.lane.b32.xlu0 %v8532_v23, %s9290_s25  ;;  %v8533_v30 = vcombine.low %v1836_v36, %v1839_v47  ;;  %v682_v50 = vor.u32 %v680_v61, %v679_v16  ;;  %v683_v53 = vrot.slane %v679_v16, 4  ;;  %1634 = vrot.lane.b32.xlu1 %v8501_v46, %s9291_s26  ;;  %v2388_v7 = vshll.u32 %v2205_v31, 16  ;;  %v326_v23 = vld [vmem:[#allocation2 + $0x74] sm:$0x1]  ;;  %v9956_v46 = vld [vmem:[%s11986_s3] ss:$0 sm:$0xff] }
  0xba   : > { %v2381_v43 = vrot.slane %v2379_v24, 4  ;;  %v2392_v0 = vshrl.u32 %v2205_v31, 16  ;;  %v690_v3 = vor.u32 %v688_v48, %v687_v4  ;;  %v692_v11 = vrot.slane %v687_v4, 4  ;;  %v9937_v37 = vpop.permute.xlu0 %1948 }
  0xbb   : > { %v930_v15 = vsel %vm9432_vm13, %v682_v50, %v929_v32  ;;  %v2398_v26 = vshll.u32 %v2206_v52, 16  ;;  %v2384_v59 = vrot.slane %v2382_v6, 5  ;;  %v2390_v61 = vrot.slane %v2388_v7, 5  ;;  %v221_v50 = vld [vmem:[%s9375_s22 + $0xb0] sm:$0xff] }
  0xbc   : > { %v9935_v49 = vpop.permute.xlu1 %2668  ;;  %931 = vst [vmem:[#allocation2 + $0x60] sm:$0xf] %v930_v15  ;;  %v2394_v60 = vrot.slane %v2392_v0, 4  ;;  %v8580_v27 = vrot.slane %v2749_v63, 9  ;;  %v691_v36 = vsel %vm9442_vm14, %v683_v53, %v690_v3  ;;  %v934_v32 = vsel %vm9339_vm3, %v692_v11, %v933_v44 }
  0xbd   : > { %2133 = vrot.lane.b32.xlu0 %v9147_v41, %s9292_s27  ;;  %v2400_v8 = vrot.slane %v2398_v26, 5  ;;  %v2871_v31 = vrot.slane %v2750_v5, 5  ;;  %1958 = vrot.lane.b32.xlu1 %v8533_v30, %s9290_s25  ;;  %932 = vst.msk [vmem:[#allocation2 + $0x64] sm:$0xf] %vm231_vm0, %v691_v36  ;;  %v2385_v52 = vor.u32 %v2384_v59, %v2381_v43  ;;  %935 = vst [vmem:[#allocation2 + $0x68] sm:$0x1] %v934_v32 }
  0xbe   : > { %v2395_v38 = vor.u32 %v2394_v60, %v2390_v61  ;;  %v2874_v39 = vrot.slane %v2751_v22, 5  ;;  %v271_v16 = vsel %vm9339_vm3, 0, %v270_v35  ;;  %v443_v45 = vmax.f32 %v9827_v20, 0.0  ;;  %v219_v30 = vld [vmem:[%s9375_s22 + $0xa0] sm:$0xff]  ;;  %v220_v20 = vld [vmem:[%s9375_s22 + $0xa8] sm:$0xff]  ;;  %v222_v43 = vld [vmem:[%s9375_s22 + $0xb8] sm:$0xff] }
  0xbf   : > { %v2873_v41 = vrot.slane %v2871_v31, 4  ;;  %v377_v47 = vmul.f32 %v9956_v46, %v218_v18  ;;  %v2386_v24 = vrot.slane %v2385_v52, 4  ;;  %272 = vst [vmem:[#allocation2 + $0x6c] sm:$0x1] %v271_v16  ;;  %v9963_v56 = vadd.f32 %v9703_v57, %v9858_v58 }
  0xc0   : > { %v9959_v48 = vpop.permute.xlu1 %3712  ;;  %v2396_v44 = vrot.slane %v2395_v38, 4  ;;  %v444_v53 = vmax.f32 %v9832_v40, 0.0  ;;  %v9969_v4 = vpack.c.bf16 %v443_v45, %v443_v45  ;;  %vm2169_vm4 = vcmask 130144  }
  0xc1   : > { %v327_v63 = vsel %vm9356_vm7, 0, %v326_v23  ;;  %v1623_v5 = vpop.permute.xlu0 %1622  ;;  %v2391_v58 = vsel %vm9424_vm12, %v2386_v24, %v2390_v61  ;;  %v2872_v40 = vsel %vm9366_vm8, %v8580_v27, %v2871_v31  ;;  %v2875_v7 = vsel %vm9366_vm8, %v2873_v41, %v2874_v39  ;;  %2170 = vst.msk [vmem:[#allocation3] sm:$0xff] %vm2169_vm4, %v9854_v34 }
  0xc2   : > { %v2401_v6 = vsel %vm9424_vm12, %v2396_v44, %v2400_v8  ;;  %328 = vst [vmem:[#allocation2 + $0x74] sm:$0x1] %v327_v63  ;;  %1670 = vst.msk [vmem:[#allocation3 + $0x8] sm:$0xff] %vm1668_vm1, %v1623_v5  ;;  %v378_v3 = vmul.f32 %v9956_v46, %v219_v30  ;;  %v379_v11 = vmul.f32 %v9956_v46, %v220_v20  ;;  %v694_v18 = vshrl.u32 %v9969_v4, 16 }
  0xc3   : > { %v8564_v19 = vcombine.low %v2391_v58, %v2401_v6  ;;  %v2207_v0 = vld [vmem:[#allocation2 + $0x60] sm:$0xf]  ;;  %1994 = vst.msk [vmem:[#allocation3 + $0x8] sm:$0xff] %vm1992_vm2, %v9899_v42  ;;  %v9992_v15 = vmul.f32 %v9956_v46, %v221_v50  ;;  %v9997_v59 = vmul.f32 %v9956_v46, %v222_v43  ;;  %v8596_v60 = vcombine.low %v2872_v40, %v2875_v7 }
  0xc4   : > { %v2752_v25 = vld [vmem:[#allocation2 + $0x60] sm:$0xe]  ;;  %v2403_v26 = vshrl.u32 %v2207_v0, 16  ;;  %v2406_v22 = vshll.u32 %v2207_v0, 16  ;;  %2171 = vst.msk [vmem:[#allocation3 + $0x8] sm:$0xff] %vm2169_vm4, %v9848_v54  ;;  %v1625_v34 = vpop.permute.xlu1 %1624  ;;  %v8955_v27 = vpack.c.bf16 %v444_v53, %v444_v53  ;;  %v10002_v36 = vadd.f32 %v9703_v57, %v377_v47 }
  0xc5   : > { %v8581_v35 = vrot.slane %v2752_v25, 9  ;;  %v9148_v61 = vld [vmem:[#allocation2 + $0x60] sm:$0xff]   ;;  %2678 = vrot.lane.b32.xlu0 %v8564_v19, %s9296_s5  ;;  %1671 = vst.msk [vmem:[#allocation3 + $0x10] sm:$0xff] %vm1668_vm1, %v1625_v34  ;;  %v2209_v8 = vld [vmem:[#allocation2 + $0x68] sm:$0x1]  ;;  %v697_v41 = vshll.u32 %v9969_v4, 16 }
  0xc6   : > { %v2208_v42 = vld [vmem:[#allocation2 + $0x64] sm:$0xf]  ;;  %v2405_v32 = vrot.slane %v2403_v26, 4  ;;  %v2408_v54 = vrot.slane %v2406_v22, 5  ;;  %1995 = vst.msk [vmem:[#allocation3 + $0x10] sm:$0xff] %vm1992_vm2, %v9937_v37  ;;  %2135 = vrot.lane.b32.xlu1 %v9148_v61, %s9292_s27  ;;  %v2422_v38 = vshll.u32 %v2209_v8, 16 }
  0xc7   : > { %v2412_v31 = vshll.u32 %v2208_v42, 16  ;;  %v2416_v52 = vshrl.u32 %v2208_v42, 16  ;;  %v2753_v39 = vld [vmem:[#allocation2 + $0x64] sm:$0xf]  ;;  %v2754_v23 = vld [vmem:[#allocation2 + $0x68] sm:$0x1] }
  0xc8   : > { %v10012_v57 = vld [vmem:[%s11986_s3 + $0x1] ss:$0 sm:$0xff]  ;;  %2172 = vst.msk [vmem:[#allocation3 + $0x10] sm:$0xff] %vm2169_vm4, %v9880_v55  ;;  %v2409_v37 = vor.u32 %v2408_v54, %v2405_v32  ;;  %v2878_v44 = vrot.slane %v2753_v39, 5  ;;  %v2424_v30 = vrot.slane %v2422_v38, 5  ;;  %v2881_v20 = vrot.slane %v2754_v23, 5 }
  0xc9   : > { %v10015_v16 = vadd.f32 %v10012_v57, %v378_v3  ;;  %v10018_v45 = vadd.f32 %v10012_v57, %v379_v11  ;;  %v2414_v47 = vrot.slane %v2412_v31, 5  ;;  %v2418_v24 = vrot.slane %v2416_v52, 4  ;;  %2999 = vrot.lane.b32.xlu0 %v8596_v60, %s9294_s29  ;;  %v9150_v50 = vld [vmem:[#allocation2 + $0x60] sm:$0xff]   ;;  %v936_v6 = vld [vmem:[#allocation2 + $0x6c] sm:$0xf]  ;;  %v10035_v32 = vpop.permute.xlu0 %2666 }
  0xca   : > { %v696_v53 = vrot.slane %v694_v18, 7  ;;  %v702_v4 = vshrl.u32 %v8955_v27, 16  ;;  %v2410_v63 = vrot.slane %v2409_v37, 4  ;;  %v10025_v43 = vsel %vm9366_vm8, %v8581_v35, %v2878_v44  ;;  %v3248_v55 = vld [vmem:[#allocation2 + $0x60] sm:$0xf] }
  0xcb   : > { %v2419_v5 = vor.u32 %v2418_v24, %v2414_v47  ;;  %v2880_v58 = vrot.slane %v2878_v44, 4  ;;  %v705_v0 = vshll.u32 %v8955_v27, 16  ;;  %v3249_v25 = vld [vmem:[#allocation2 + $0x64] sm:$0xf]  ;;  %v3250_v22 = vld [vmem:[#allocation2 + $0x68] sm:$0x1] }
  0xcc   : > { %v699_v40 = vor.u32 %v697_v41, %v696_v53  ;;  %v700_v7 = vrot.slane %v696_v53, 4  ;;  %v704_v19 = vrot.slane %v702_v4, 7  ;;  %v2415_v3 = vsel %vm9424_vm12, %v2410_v63, %v2414_v47  ;;  %v940_v61 = vld [vmem:[#allocation2 + $0x74] sm:$0x1]  ;;  %v3793_v18 = vld [vmem:[#allocation2 + $0x60] sm:$0xe] }
  0xcd   : > { %v2420_v11 = vrot.slane %v2419_v5, 4  ;;  %v2882_v26 = vsel %vm9366_vm8, %v2880_v58, %v2881_v20  ;;  %v3423_v34 = vshrl.u32 %v3248_v55, 16  ;;  %3177 = vrot.lane.b32.xlu0 %v9150_v50, %s9293_s28  ;;  %v3794_v8 = vld [vmem:[#allocation2 + $0x64] sm:$0xf]  ;;  %v3426_v52 = vshll.u32 %v3248_v55, 16 }
  0xce   : > { %v8597_v35 = vcombine.low %v10025_v43, %v2882_v26  ;;  %v707_v42 = vor.u32 %v705_v0, %v704_v19  ;;  %v709_v60 = vrot.slane %v704_v19, 4  ;;  %v937_v27 = vsel %vm9432_vm13, %v699_v40, %v936_v6  ;;  %v3795_v39 = vld [vmem:[#allocation2 + $0x68] sm:$0x1]  ;;  %v1627_v23 = vpop.permute.xlu1 %1626  ;;  %v1161_v44 = vld [vmem:[#allocation2 + $0x60] sm:$0xf] }
  0xcf   : > { %v2425_v54 = vsel %vm9424_vm12, %v2420_v11, %v2424_v30  ;;  %938 = vst [vmem:[#allocation2 + $0x6c] sm:$0xf] %v937_v27  ;;  %v3425_v31 = vrot.slane %v3423_v34, 4  ;;  %v3432_v38 = vshll.u32 %v3249_v25, 16  ;;  %v3436_v47 = vshrl.u32 %v3249_v25, 16  ;;  %1672 = vst.msk [vmem:[#allocation3 + $0x18] sm:$0xff] %vm1668_vm1, %v1627_v23 }
  0xd0   : > { %v8565_v41 = vcombine.low %v2415_v3, %v2425_v54  ;;  %v708_v37 = vsel %vm9442_vm14, %v700_v7, %v707_v42  ;;  %v3442_v24 = vshll.u32 %v3250_v22, 16  ;;  %v1162_v20 = vld [vmem:[#allocation2 + $0x64] sm:$0xf]  ;;  %v3428_v50 = vrot.slane %v3426_v52, 5  ;;  %1996 = vst.msk [vmem:[#allocation3 + $0x18] sm:$0xff] %vm1992_vm2, %v9925_v14 }
  0xd1   : > { %939 = vst.msk [vmem:[#allocation2 + $0x70] sm:$0xf] %vm231_vm0, %v708_v37  ;;  %v3434_v30 = vrot.slane %v3432_v38, 5  ;;  %v941_v53 = vsel %vm9339_vm3, %v709_v60, %v940_v61  ;;  %v8644_v4 = vrot.slane %v3793_v18, 9  ;;  %v3438_v63 = vrot.slane %v3436_v47, 4 }
  0xd2   : > { %2680 = vrot.lane.b32.xlu1 %v8565_v41, %s9296_s5  ;;  %v3444_v5 = vrot.slane %v3442_v24, 5  ;;  %942 = vst [vmem:[#allocation2 + $0x74] sm:$0x1] %v941_v53  ;;  %v3915_v43 = vrot.slane %v3794_v8, 5  ;;  %v3918_v58 = vrot.slane %v3795_v39, 5  ;;  %2173 = vst.msk [vmem:[#allocation3 + $0x18] sm:$0xff] %vm2169_vm4, %v9884_v17  ;;  %v3429_v6 = vor.u32 %v3428_v50, %v3425_v31 }
  0xd3   : > { %v1381_v55 = vshrl.u32 %v1161_v44, 16  ;;  %v1384_v40 = vshll.u32 %v1161_v44, 16  ;;  %v1390_v7 = vshll.u32 %v1162_v20, 16  ;;  %v3439_v19 = vor.u32 %v3438_v63, %v3434_v30  ;;  %v10054_v3 = vpop.permute.xlu0 %3710  ;;  %v1163_v26 = vld [vmem:[#allocation2 + $0x68] sm:$0x1] }
  0xd4   : > { %v10052_v0 = vsel %vm9366_vm8, %v8644_v4, %v3915_v43  ;;  %v3917_v14 = vrot.slane %v3915_v43, 4  ;;  %v1394_v25 = vshrl.u32 %v1162_v20, 16  ;;  %v3430_v11 = vrot.slane %v3429_v6, 4 }
  0xd5   : > { %v1383_v22 = vrot.slane %v1381_v55, 4  ;;  %v1386_v34 = vrot.slane %v1384_v40, 5  ;;  %v1392_v61 = vrot.slane %v1390_v7, 5  ;;  %v3440_v17 = vrot.slane %v3439_v19, 4 }
  0xd6   : > { %3001 = vrot.lane.b32.xlu1 %v8597_v35, %s9294_s29  ;;  %v3251_v42 = vld [vmem:[#allocation2 + $0x6c] sm:$0xf]  ;;  %v3919_v60 = vsel %vm9366_vm8, %v3917_v14, %v3918_v58  ;;  %v1396_v27 = vrot.slane %v1394_v25, 4  ;;  %v10061_v18 = vadd.f32 %v10012_v57, %v9992_v15  ;;  %v3435_v8 = vsel %vm9424_vm12, %v3430_v11, %v3434_v30 }
  0xd7   : > { %v3447_v54 = vshrl.u32 %v3251_v42, 16  ;;  %v3450_v31 = vshll.u32 %v3251_v42, 16  ;;  %v8660_v52 = vcombine.low %v10052_v0, %v3919_v60  ;;  %v3796_v38 = vld [vmem:[#allocation2 + $0x6c] sm:$0xe]  ;;  %v3445_v35 = vsel %vm9424_vm12, %v3440_v17, %v3444_v5  ;;  %v10068_v44 = vpop.permute.xlu0 %2670 }
  0xd8   : > { %v9151_v39 = vld [vmem:[#allocation2 + $0x6c] sm:$0xff]   ;;  %v1387_v41 = vor.u32 %v1386_v34, %v1383_v22  ;;  %v1397_v37 = vor.u32 %v1396_v27, %v1392_v61  ;;  %v1400_v47 = vshll.u32 %v1163_v26, 16  ;;  %v8628_v15 = vcombine.low %v3435_v8, %v3445_v35  ;;  %v1709_v22 = vld [vmem:[#allocation2 + $0x60] sm:$0xe] }
  0xd9   : > { %v3252_v23 = vld [vmem:[#allocation2 + $0x70] sm:$0xf]  ;;  %v1164_v24 = vld [vmem:[#allocation2 + $0x6c] sm:$0xf]  ;;  %v3253_v20 = vld [vmem:[#allocation2 + $0x74] sm:$0x1] }
  0xda   : > { %v3449_v50 = vrot.slane %v3447_v54, 4  ;;  %v3452_v30 = vrot.slane %v3450_v31, 5  ;;  %v3456_v53 = vshll.u32 %v3252_v23, 16  ;;  %3179 = vrot.lane.b32.xlu1 %v9151_v39, %s9293_s28  ;;  %v3460_v4 = vshrl.u32 %v3252_v23, 16  ;;  %v3797_v6 = vld [vmem:[#allocation2 + $0x70] sm:$0xf]  ;;  %3722 = vrot.lane.b32.xlu0 %v8628_v15, %s9297_s6 }
  0xdb   : > { %v3466_v63 = vshll.u32 %v3253_v20, 16  ;;  %v1388_v43 = vrot.slane %v1387_v41, 4  ;;  %v1398_v58 = vrot.slane %v1397_v37, 4  ;;  %v1402_v40 = vrot.slane %v1400_v47, 5  ;;  %v3798_v7 = vld [vmem:[#allocation2 + $0x74] sm:$0x1]  ;;  %v10074_v34 = vpop.permute.xlu0 %2991 }
  0xdc   : > { %v3453_v5 = vor.u32 %v3452_v30, %v3449_v50  ;;  %v3458_v55 = vrot.slane %v3456_v53, 5  ;;  %v8645_v19 = vrot.slane %v3796_v38, 9  ;;  %v3462_v0 = vrot.slane %v3460_v4, 4  ;;  %v1165_v26 = vld [vmem:[#allocation2 + $0x70] sm:$0xf] }
  0xdd   : > { %v3468_v14 = vrot.slane %v3466_v63, 5  ;;  %v1393_v25 = vsel %vm9424_vm12, %v1388_v43, %v1392_v61  ;;  %v3922_v11 = vrot.slane %v3797_v6, 5  ;;  %v1403_v42 = vsel %vm9424_vm12, %v1398_v58, %v1402_v40  ;;  %v1166_v27 = vld [vmem:[#allocation2 + $0x74] sm:$0x1]  ;;  %v1710_v54 = vld [vmem:[#allocation2 + $0x64] sm:$0xf] }
  0xde   : > { %v3454_v17 = vrot.slane %v3453_v5, 4  ;;  %v3925_v60 = vrot.slane %v3798_v7, 5  ;;  %v1405_v8 = vshrl.u32 %v1164_v24, 16  ;;  %v3463_v31 = vor.u32 %v3462_v0, %v3458_v55  ;;  %v1711_v61 = vld [vmem:[#allocation2 + $0x68] sm:$0x1]  ;;  %4043 = vrot.lane.b32.xlu0 %v8660_v52, %s9295_s30 }
  0xdf   : > { %v8502_v38 = vcombine.low %v1393_v25, %v1403_v42  ;;  %v3923_v39 = vsel %vm9366_vm8, %v8645_v19, %v3922_v11  ;;  %v3924_v35 = vrot.slane %v3922_v11, 4  ;;  %v1712_v23 = vld [vmem:[#allocation2 + $0x6c] sm:$0xe]  ;;  %v1408_v47 = vshll.u32 %v1164_v24, 16  ;;  %v1713_v20 = vld [vmem:[#allocation2 + $0x70] sm:$0xf]  ;;  %v10087_v19 = vpop.permute.xlu0 %3169 }
  0xe0   : > { %v3459_v41 = vsel %vm9424_vm12, %v3454_v17, %v3458_v55  ;;  %v1407_v37 = vrot.slane %v1405_v8, 4  ;;  %v1414_v15 = vshll.u32 %v1165_v26, 16  ;;  %v3464_v50 = vrot.slane %v3463_v31, 4  ;;  %v273_v63 = vld [vmem:[#allocation2 + $0x78] sm:$0x1] }
  0xe1   : > { %v3926_v30 = vsel %vm9366_vm8, %v3924_v35, %v3925_v60  ;;  %v1418_v53 = vshrl.u32 %v1165_v26, 16  ;;  %v1424_v4 = vshll.u32 %v1166_v27, 16  ;;  %v1410_v58 = vrot.slane %v1408_v47, 5  ;;  %v1714_v24 = vld [vmem:[#allocation2 + $0x74] sm:$0x1] }
  0xe2   : > { %v8661_v43 = vcombine.low %v3923_v39, %v3926_v30  ;;  %v1416_v6 = vrot.slane %v1414_v15, 5  ;;  %v8518_v5 = vrot.slane %v1709_v22, 9  ;;  %v3469_v55 = vsel %vm9424_vm12, %v3464_v50, %v3468_v14  ;;  %v2210_v31 = vld [vmem:[#allocation2 + $0x6c] sm:$0xf] }
  0xe3   : > { %v1420_v40 = vrot.slane %v1418_v53, 4  ;;  %v1426_v52 = vrot.slane %v1424_v4, 5  ;;  %v1842_v7 = vrot.slane %v1710_v54, 5  ;;  %v8629_v0 = vcombine.low %v3459_v41, %v3469_v55  ;;  %v9170_v30 = vld [vmem:[#allocation2 + $0x48] sm:$0xff]  }
  0xe4   : > { %4045 = vrot.lane.b32.xlu0 %v8661_v43, %s9295_s30  ;;  %v1411_v25 = vor.u32 %v1410_v58, %v1407_v37  ;;  %v1845_v11 = vrot.slane %v1711_v61, 5  ;;  %v8519_v26 = vrot.slane %v1712_v23, 9  ;;  %v1849_v60 = vrot.slane %v1713_v20, 5  ;;  %v2211_v20 = vld [vmem:[#allocation2 + $0x70] sm:$0xf]  ;;  %1127 = vst.msk [vmem:[#allocation3 + $0x30] sm:$0xff] %vm11988_vm15, %v9170_v30 }
  0xe5   : > { %v1421_v17 = vor.u32 %v1420_v40, %v1416_v6  ;;  %v1843_v42 = vsel %vm9366_vm8, %v8518_v5, %v1842_v7  ;;  %v1844_v22 = vrot.slane %v1842_v7, 4  ;;  %3724 = vrot.lane.b32.xlu1 %v8629_v0, %s9297_s6  ;;  %v1852_v27 = vrot.slane %v1714_v24, 5  ;;  %v9152_v5 = vld [vmem:[#allocation2 + $0x6c] sm:$0xff]   ;;  %v2212_v7 = vld [vmem:[#allocation2 + $0x74] sm:$0x1] }
  0xe6   : > { %v1412_v14 = vrot.slane %v1411_v25, 4  ;;  %v274_v8 = vsel %vm9339_vm3, 0, %v273_v63  ;;  %v445_v54 = vmax.f32 %v9963_v56, 0.0  ;;  %v10100_v61 = vsel %vm9366_vm8, %v8519_v26, %v1849_v60  ;;  %v329_v56 = vld [vmem:[#allocation2 + $0x80] sm:$0x1]  ;;  %v10105_v50 = vpop.permute.xlu1 %2672 }
  0xe7   : > { %v1422_v39 = vrot.slane %v1421_v17, 4  ;;  %v1846_v35 = vsel %vm9366_vm8, %v1844_v22, %v1845_v11  ;;  %v1851_v23 = vrot.slane %v1849_v60, 4  ;;  %275 = vst [vmem:[#allocation2 + $0x78] sm:$0x1] %v274_v8  ;;  %v446_v47 = vmax.f32 %v10002_v36, 0.0 }
  0xe8   : > { %v1417_v41 = vsel %vm9424_vm12, %v1412_v14, %v1416_v6  ;;  %v8534_v37 = vcombine.low %v1843_v42, %v1846_v35  ;;  %v8956_v15 = vpack.c.bf16 %v445_v54, %v445_v54  ;;  %v2427_v63 = vshrl.u32 %v2210_v31, 16  ;;  %v10111_v58 = vpop.permute.xlu0 %3714  ;;  %v2755_v24 = vld [vmem:[#allocation2 + $0x6c] sm:$0xe]  ;;  %v2756_v26 = vld [vmem:[#allocation2 + $0x70] sm:$0xf]  ;;  %v9171_v14 = vld [vmem:[#allocation2 + $0x54] sm:$0xff]  }
  0xe9   : > { %v1427_v53 = vsel %vm9424_vm12, %v1422_v39, %v1426_v52  ;;  %v1853_v4 = vsel %vm9366_vm8, %v1851_v23, %v1852_v27  ;;  %v2430_v43 = vshll.u32 %v2210_v31, 16  ;;  %1636 = vrot.lane.b32.xlu1 %v8502_v38, %s9291_s26  ;;  %v8957_v55 = vpack.c.bf16 %v446_v47, %v446_v47  ;;  %v2757_v39 = vld [vmem:[#allocation2 + $0x74] sm:$0x1]  ;;  %1128 = vst.msk [vmem:[#allocation3 + $0x38] sm:$0xff] %vm11988_vm15, %v9171_v14 }
  0xea   : > { %v8503_v6 = vcombine.low %v1417_v41, %v1427_v53  ;;  %1960 = vrot.lane.b32.xlu0 %v8534_v37, %s9290_s25  ;;  %v8535_v36 = vcombine.low %v10100_v61, %v1853_v4  ;;  %v711_v40 = vshrl.u32 %v8956_v15, 16  ;;  %v714_v52 = vshll.u32 %v8956_v15, 16  ;;  %v2994_v60 = vpop.permute.xlu1 %2993 }
  0xeb   : > { %v2429_v0 = vrot.slane %v2427_v63, 4  ;;  %v2432_v25 = vrot.slane %v2430_v43, 5  ;;  %v2436_v11 = vshll.u32 %v2211_v20, 16  ;;  %v719_v42 = vshrl.u32 %v8957_v55, 16 }
  0xec   : > { %v713_v17 = vrot.slane %v711_v40, 7  ;;  %v722_v38 = vshll.u32 %v8957_v55, 16  ;;  %v2440_v22 = vshrl.u32 %v2211_v20, 16  ;;  %v2446_v54 = vshll.u32 %v2212_v7, 16 }
  0xed   : > { %v2433_v27 = vor.u32 %v2432_v25, %v2429_v0  ;;  %v2438_v8 = vrot.slane %v2436_v11, 5  ;;  %v330_v31 = vsel %vm9356_vm7, 0, %v329_v56  ;;  %1638 = vrot.lane.b32.xlu1 %v8503_v6, %s9291_s26  ;;  %v721_v23 = vrot.slane %v719_v42, 7  ;;  %v10126_v56 = vpop.permute.xlu0 %4035  ;;  %v276_v6 = vld [vmem:[#allocation2 + $0x84] sm:$0x1] }
  0xee   : > { %2137 = vrot.lane.b32.xlu0 %v9152_v5, %s9292_s27  ;;  %v716_v35 = vor.u32 %v714_v52, %v713_v17  ;;  %v717_v61 = vrot.slane %v713_v17, 4  ;;  %v943_v41 = vld [vmem:[#allocation2 + $0x78] sm:$0xf]  ;;  %v2442_v37 = vrot.slane %v2440_v22, 4  ;;  %331 = vst [vmem:[#allocation2 + $0x80] sm:$0x1] %v330_v31  ;;  %v10124_v30 = vadd.f32 %v10012_v57, %v9997_v59  ;;  %v3172_v5 = vpop.permute.xlu1 %3171 }
  0xef   : > { %v2434_v47 = vrot.slane %v2433_v27, 4  ;;  %v8582_v15 = vrot.slane %v2755_v24, 9  ;;  %v2885_v20 = vrot.slane %v2756_v26, 5  ;;  %v724_v53 = vor.u32 %v722_v38, %v721_v23  ;;  %v332_v52 = vld [vmem:[#allocation2 + $0x8c] sm:$0x1] }
  0xf0   : > { %v944_v4 = vsel %vm9432_vm13, %v716_v35, %v943_v41  ;;  %v2443_v63 = vor.u32 %v2442_v37, %v2438_v8  ;;  %v2448_v43 = vrot.slane %v2446_v54, 5  ;;  %v726_v55 = vrot.slane %v721_v23, 4  ;;  %v9161_v25 = vld [vmem:[%s11984_s1 + $0x10] ss:$0 sps:$4 sm:$0x33]  }
  0xf1   : > { %945 = vst [vmem:[#allocation2 + $0x78] sm:$0xf] %v944_v4  ;;  %v2439_v40 = vsel %vm9424_vm12, %v2434_v47, %v2438_v8  ;;  %v2887_v7 = vrot.slane %v2885_v20, 4  ;;  %v2888_v24 = vrot.slane %v2757_v39, 5  ;;  %1962 = vrot.lane.b32.xlu1 %v8535_v36, %s9290_s25  ;;  %v725_v59 = vsel %vm9442_vm14, %v717_v61, %v724_v53 }
  0xf2   : > { %v2444_v0 = vrot.slane %v2443_v63, 4  ;;  %vm2714_vm5 = vcmask 162944   ;;  %vm11991_vm6 = vcmask 195744   ;;  %946 = vst.msk [vmem:[#allocation2 + $0x7c] sm:$0xf] %vm231_vm0, %v725_v59  ;;  %v10141_v11 = vsel %vm9366_vm8, %v8582_v15, %v2885_v20 }
  0xf3   : > { %v10145_v26 = vsel %vm9366_vm8, %v2887_v7, %v2888_v24  ;;  %vm11989_vm9 = vcmask 228544   ;;  %vm3758_vm10 = vcmask 261344   ;;  %2716 = vst.msk [vmem:[#allocation3 + $0x8] sm:$0xff] %vm2714_vm5, %v9935_v49  ;;  %2715 = vst.msk [vmem:[#allocation3] sm:$0xff] %vm2714_vm5, %v10035_v32  ;;  %vm4079_vm11 = vcmask 294144  }
  0xf4   : > { %2717 = vst.msk [vmem:[#allocation3 + $0x10] sm:$0xff] %vm2714_vm5, %v10068_v44  ;;  %2718 = vst.msk [vmem:[#allocation3 + $0x18] sm:$0xff] %vm2714_vm5, %v10105_v50  ;;  %v2449_v36 = vsel %vm9424_vm12, %v2444_v0, %v2448_v43  ;;  %v277_v17 = vsel %vm9339_vm3, 0, %v276_v6  ;;  %v447_v49 = vmax.f32 %v10015_v16, 0.0  ;;  %v279_v32 = vld [vmem:[#allocation2 + $0x90] sm:$0x1]  ;;  %v4038_v16 = vpop.permute.xlu0 %4037 }
  0xf5   : > { %3037 = vst.msk [vmem:[#allocation3 + $0x8] sm:$0xff] %vm11991_vm6, %v9907_v12  ;;  %3036 = vst.msk [vmem:[#allocation3] sm:$0xff] %vm11991_vm6, %v9892_v62  ;;  %v8566_v44 = vcombine.low %v2439_v40, %v2449_v36  ;;  %v947_v50 = vld [vmem:[#allocation2 + $0x80] sm:$0x1]  ;;  %v448_v12 = vmax.f32 %v10018_v45, 0.0  ;;  %v333_v62 = vsel %vm9356_vm7, 0, %v332_v52  ;;  %v8598_v45 = vcombine.low %v10141_v11, %v10145_v26  ;;  %v3717_v42 = vpop.permute.xlu1 %3716 }
  0xf6   : > { %3038 = vst.msk [vmem:[#allocation3 + $0x10] sm:$0xff] %vm11991_vm6, %v10074_v34  ;;  %3039 = vst.msk [vmem:[#allocation3 + $0x18] sm:$0xff] %vm11991_vm6, %v2994_v60  ;;  %vm11990_vm15 = vcmask 1041408   ;;  %v223_v34 = vld [vmem:[%s9375_s22 + $0xc0] sm:$0xff]  ;;  %v450_v38 = vmax.f32 %v10124_v30, 0.0 }
  0xf7   : > { %3215 = vst.msk [vmem:[#allocation3 + $0x8] sm:$0xff] %vm11989_vm9, %v9871_v28  ;;  %278 = vst [vmem:[#allocation2 + $0x84] sm:$0x1] %v277_v17  ;;  %v948_v28 = vsel %vm9339_vm3, %v726_v55, %v947_v50  ;;  %9116 = vmatprep.subr.msk.bf16.mxu0 %vm11990_vm15, %v9161_v25  ;;  %2682 = vrot.lane.b32.xlu0 %v8566_v44, %s9296_s5  ;;  %v10203_v60 = vpack.c.bf16 %v448_v12, %v448_v12 }
  0xf8   : > { %3214 = vst.msk [vmem:[#allocation3] sm:$0xff] %vm11989_vm9, %v9873_v29  ;;  %3216 = vst.msk [vmem:[#allocation3 + $0x10] sm:$0xff] %vm11989_vm9, %v10087_v19  ;;  %v8958_v29 = vpack.c.bf16 %v447_v49, %v447_v49  ;;  %v4183_v19 = vsel %vm11990_vm15, %v9161_v25, 0  ;;  %v2213_v22 = vld [vmem:[#allocation2 + $0x78] sm:$0xf]  ;;  %v1953_v41 = vpop.permute.xlu0 %1952  ;;  %vm12004_vm15 = vcmask 228544  }
  0xf9   : > { %3217 = vst.msk [vmem:[#allocation3 + $0x18] sm:$0xff] %vm11989_vm9, %v3172_v5  ;;  %334 = vst [vmem:[#allocation2 + $0x8c] sm:$0x1] %v333_v62  ;;  %9045 = vmatpush3.bf16.msra.mxu0 %v4183_v19  ;;  %vm4132_vm9 = vcmask 293888   ;;  %v2451_v14 = vshrl.u32 %v2213_v22, 16  ;;  %v2454_v27 = vshll.u32 %v2213_v22, 16  ;;  %v1629_v61 = vpop.permute.xlu1 %1628 }
  0xfa   : > { %3760 = vst.msk [vmem:[#allocation3 + $0x8] sm:$0xff] %vm3758_vm10, %v9959_v48  ;;  %3759 = vst.msk [vmem:[#allocation3] sm:$0xff] %vm3758_vm10, %v10054_v3  ;;  %v280_v48 = vsel %vm9339_vm3, 0, %v279_v32  ;;  %v449_v3 = vmax.f32 %v10061_v18, 0.0  ;;  %v728_v54 = vshrl.u32 %v8958_v29, 16  ;;  %v9153_v31 = vld [vmem:[#allocation2 + $0x78] sm:$0xff]  }
  0xfb   : > { %3761 = vst.msk [vmem:[#allocation3 + $0x10] sm:$0xff] %vm3758_vm10, %v10111_v58  ;;  %949 = vst [vmem:[#allocation2 + $0x80] sm:$0x1] %v948_v28  ;;  %v224_v58 = vld [vmem:[%s9375_s22 + $0xc8] sm:$0xff]  ;;  %v2214_v39 = vld [vmem:[#allocation2 + $0x7c] sm:$0xf]  ;;  %3003 = vrot.lane.b32.xlu0 %v8598_v45, %s9294_s29  ;;  %2139 = vrot.lane.b32.xlu1 %v9153_v31, %s9292_s27 }
  0xfc   : > { %4081 = vst.msk [vmem:[#allocation3 + $0x8] sm:$0xff] %vm4079_vm11, %v9914_v2  ;;  %4080 = vst.msk [vmem:[#allocation3] sm:$0xff] %vm4079_vm11, %v9902_v51  ;;  %v2758_v2 = vld [vmem:[#allocation2 + $0x78] sm:$0xe]  ;;  %v382_v51 = vmul.f32 %v9956_v46, %v223_v34  ;;  %v731_v35 = vshll.u32 %v8958_v29, 16  ;;  %v383_v23 = vmul.f32 %v9956_v46, %v224_v58  ;;  %v2453_v37 = vrot.slane %v2451_v14, 4  ;;  %v2130_v36 = vpop.permute.xlu0 %2129 }
  0xfd   : > { %3762 = vst.msk [vmem:[#allocation3 + $0x18] sm:$0xff] %vm3758_vm10, %v3717_v42  ;;  %281 = vst [vmem:[#allocation2 + $0x90] sm:$0x1] %v280_v48  ;;  %v8583_v8 = vrot.slane %v2758_v2, 9  ;;  %v2456_v47 = vrot.slane %v2454_v27, 5  ;;  %v2460_v15 = vshll.u32 %v2214_v39, 16  ;;  %v1631_v26 = vpop.permute.xlu1 %1630 }
  0xfe   : > { %4082 = vst.msk [vmem:[#allocation3 + $0x10] sm:$0xff] %vm4079_vm11, %v10126_v56  ;;  %4083 = vst.msk [vmem:[#allocation3 + $0x18] sm:$0xff] %vm4079_vm11, %v4038_v16  ;;  %v2464_v20 = vshrl.u32 %v2214_v39, 16  ;;  %v2759_v56 = vld [vmem:[#allocation2 + $0x7c] sm:$0xf]  ;;  %v730_v63 = vrot.slane %v728_v54, 7  ;;  %v10213_v6 = vadd.f32 %v10012_v57, %v382_v51  ;;  %v10228_v29 = vadd.f32 %v10012_v57, %v383_v23 }
  0xff   : > { %1673 = vst.msk [vmem:[#allocation3 + $0x20] sm:$0xff] %vm1668_vm1, %v1629_v61  ;;  %v2892_v53 = vrot.slane %v2759_v56, 5  ;;  %v9155_v4 = vld [vmem:[#allocation2 + $0x78] sm:$0xff]   ;;  %v736_v43 = vshrl.u32 %v10203_v60, 16  ;;  %v2457_v46 = vor.u32 %v2456_v47, %v2453_v37  ;;  %v2462_v5 = vrot.slane %v2460_v15, 5  ;;  %1674 = vst.msk [vmem:[#allocation3 + $0x28] sm:$0xff] %vm1668_vm1, %v1631_v26 }
 0x100   : > { %1997 = vst.msk [vmem:[#allocation3 + $0x20] sm:$0xff] %vm1992_vm2, %v1953_v41  ;;  %v2466_v55 = vrot.slane %v2464_v20, 4  ;;  %v739_v40 = vshll.u32 %v10203_v60, 16  ;;  %v950_v7 = vld [vmem:[#allocation2 + $0x84] sm:$0xf]  ;;  %v733_v25 = vor.u32 %v731_v35, %v730_v63  ;;  %v734_v11 = vrot.slane %v730_v63, 4  ;;  %3181 = vrot.lane.b32.xlu0 %v9155_v4, %s9293_s28 }
 0x101   : > { %v10219_v59 = vsel %vm9366_vm8, %v8583_v8, %v2892_v53  ;;  %v2894_v0 = vrot.slane %v2892_v53, 4  ;;  %v2458_v17 = vrot.slane %v2457_v46, 4  ;;  %v3254_v50 = vld [vmem:[#allocation2 + $0x78] sm:$0xf]  ;;  %2174 = vst.msk [vmem:[#allocation3 + $0x20] sm:$0xff] %vm2169_vm4, %v2130_v36  ;;  %v738_v62 = vrot.slane %v736_v43, 7  ;;  %v1955_v57 = vpop.permute.xlu1 %1954 }
 0x102   : > { %v2215_v24 = vld [vmem:[#allocation2 + $0x80] sm:$0x1]  ;;  %v2467_v49 = vor.u32 %v2466_v55, %v2462_v5  ;;  %v951_v16 = vsel %vm9432_vm13, %v733_v25, %v950_v7  ;;  %v3255_v34 = vld [vmem:[#allocation2 + $0x7c] sm:$0xf]  ;;  %v3471_v45 = vshrl.u32 %v3254_v50, 16  ;;  %v3474_v39 = vshll.u32 %v3254_v50, 16 }
 0x103   : > { %v2760_v52 = vld [vmem:[#allocation2 + $0x80] sm:$0x1]  ;;  %v2470_v32 = vshll.u32 %v2215_v24, 16  ;;  %v4096_v12 = vld [vmem:[#allocation3] sm:$0xff]  ;;  %v2463_v19 = vsel %vm9424_vm12, %v2458_v17, %v2462_v5  ;;  %952 = vst [vmem:[#allocation2 + $0x84] sm:$0xf] %v951_v16  ;;  %v741_v51 = vor.u32 %v739_v40, %v738_v62 }
 0x104   : > { %v2895_v44 = vrot.slane %v2760_v52, 5  ;;  %v3256_v28 = vld [vmem:[#allocation2 + $0x80] sm:$0x1]  ;;  %9046 = vmatprep.mubr.msk.bf16.mxu0 %vm4132_vm9, %v4096_v12  ;;  %v2468_v42 = vrot.slane %v2467_v49, 4  ;;  %v954_v22 = vld [vmem:[#allocation2 + $0x8c] sm:$0x1]  ;;  %v10253_v49 = vpack.c.bf16 %v449_v3, %v449_v3 }
 0x105   : > { %v2472_v48 = vrot.slane %v2470_v32, 5  ;;  %v3799_v2 = vld [vmem:[#allocation2 + $0x78] sm:$0xe]  ;;  %v743_v14 = vrot.slane %v738_v62, 4  ;;  %v3473_v27 = vrot.slane %v3471_v45, 4  ;;  %v3480_v35 = vshll.u32 %v3255_v34, 16 }
 0x106   : > { %v2896_v58 = vsel %vm9366_vm8, %v2894_v0, %v2895_v44  ;;  %v3800_v8 = vld [vmem:[#allocation2 + $0x7c] sm:$0xf]  ;;  %v3801_v54 = vld [vmem:[#allocation2 + $0x80] sm:$0x1]  ;;  %v3484_v61 = vshrl.u32 %v3255_v34, 16  ;;  %1998 = vst.msk [vmem:[#allocation3 + $0x28] sm:$0xff] %vm1992_vm2, %v1955_v57  ;;  %v742_v47 = vsel %vm9442_vm14, %v734_v11, %v741_v51  ;;  %v2675_v25 = vpop.permute.xlu0 %2674 }
 0x107   : > { %v8599_v60 = vcombine.low %v10219_v59, %v2896_v58  ;;  %v2473_v31 = vsel %vm9424_vm12, %v2468_v42, %v2472_v48  ;;  %v1167_v23 = vld [vmem:[#allocation2 + $0x78] sm:$0xf]  ;;  %v4097_v41 = vld [vmem:[#allocation3 + $0x8] sm:$0xff]  ;;  %v3490_v15 = vshll.u32 %v3256_v28, 16  ;;  %v955_v20 = vsel %vm9339_vm3, %v743_v14, %v954_v22  ;;  %v1168_v56 = vld [vmem:[#allocation2 + $0x7c] sm:$0xf] }
 0x108   : > { %v8567_v37 = vcombine.low %v2463_v19, %v2473_v31  ;;  %9047 = vmatmul.mubr.msk.bf16.vlgmr.msra.gmra.mrb[0].mxu0 %vm4132_vm9, %v4097_v41  ;;  %v4098_v53 = vld [vmem:[#allocation3 + $0x10] sm:$0xff]  ;;  %953 = vst.msk [vmem:[#allocation2 + $0x88] sm:$0xf] %vm231_vm0, %v742_v47  ;;  %v3476_v4 = vrot.slane %v3474_v39, 5  ;;  %v3482_v63 = vrot.slane %v3480_v35, 5  ;;  %v3486_v43 = vrot.slane %v3484_v61, 4 }
 0x109   : > { %956 = vst [vmem:[#allocation2 + $0x8c] sm:$0x1] %v955_v20  ;;  %v8646_v46 = vrot.slane %v3799_v2, 9  ;;  %9050 = vmatprep.mubr.msk.bf16.mxu0 %vm4132_vm9, %v4098_v53  ;;  %v3492_v5 = vrot.slane %v3490_v15, 5  ;;  %v3929_v55 = vrot.slane %v3800_v8, 5  ;;  %v3932_v40 = vrot.slane %v3801_v54, 5 }
 0x10a   : > { %2684 = vrot.lane.b32.xlu1 %v8567_v37, %s9296_s5  ;;  %v1429_v7 = vshrl.u32 %v1167_v23, 16  ;;  %v3477_v24 = vor.u32 %v3476_v4, %v3473_v27  ;;  %v3487_v52 = vor.u32 %v3486_v43, %v3482_v63  ;;  %v1432_v59 = vshll.u32 %v1167_v23, 16  ;;  %v3257_v11 = vld [vmem:[#allocation2 + $0x84] sm:$0xf]  ;;  %2719 = vst.msk [vmem:[#allocation3 + $0x20] sm:$0xff] %vm2714_vm5, %v2675_v25  ;;  %v4099_v19 = vld [vmem:[#allocation3 + $0x18] sm:$0xff]  ;;  %v2132_v22 = vpop.permute.xlu1 %2131  ;;  %v2996_v2 = vpop.permute.xlu0 %2995 }
 0x10b   : > { %v1438_v0 = vshll.u32 %v1168_v56, 16  ;;  %v10248_v26 = vsel %vm9366_vm8, %v8646_v46, %v3929_v55  ;;  %v3931_v36 = vrot.slane %v3929_v55, 4  ;;  %v3495_v50 = vshrl.u32 %v3257_v11, 16  ;;  %v1169_v16 = vld [vmem:[#allocation2 + $0x80] sm:$0x1]  ;;  %2175 = vst.msk [vmem:[#allocation3 + $0x28] sm:$0xff] %vm2169_vm4, %v2132_v22 }
 0x10c   : > { %v1431_v17 = vrot.slane %v1429_v7, 4  ;;  %v3478_v32 = vrot.slane %v3477_v24, 4  ;;  %v3488_v44 = vrot.slane %v3487_v52, 4  ;;  %v3498_v12 = vshll.u32 %v3257_v11, 16  ;;  %v3802_v58 = vld [vmem:[#allocation2 + $0x84] sm:$0xe] }
 0x10d   : > { %v3933_v62 = vsel %vm9366_vm8, %v3931_v36, %v3932_v40  ;;  %v1434_v34 = vrot.slane %v1432_v59, 5  ;;  %v1440_v28 = vrot.slane %v1438_v0, 5  ;;  %v1442_v45 = vshrl.u32 %v1168_v56, 16  ;;  %3040 = vst.msk [vmem:[#allocation3 + $0x20] sm:$0xff] %vm11991_vm6, %v2996_v2  ;;  %v1170_v23 = vld [vmem:[#allocation2 + $0x84] sm:$0xf] }
 0x10e   : > { %3005 = vrot.lane.b32.xlu1 %v8599_v60, %s9294_s29  ;;  %v3483_v18 = vsel %vm9424_vm12, %v3478_v32, %v3482_v63  ;;  %v3493_v3 = vsel %vm9424_vm12, %v3488_v44, %v3492_v5  ;;  %v3497_v42 = vrot.slane %v3495_v50, 4  ;;  %v3500_v48 = vrot.slane %v3498_v12, 5  ;;  %v3174_v43 = vpop.permute.xlu0 %3173  ;;  %v1715_v25 = vld [vmem:[#allocation2 + $0x78] sm:$0xe] }
 0x10f   : > { %v9156_v60 = vld [vmem:[#allocation2 + $0x84] sm:$0xff]   ;;  %v8630_v51 = vcombine.low %v3483_v18, %v3493_v3  ;;  %v1435_v27 = vor.u32 %v1434_v34, %v1431_v17  ;;  %v1444_v8 = vrot.slane %v1442_v45, 4  ;;  %v10266_v54 = vpack.c.bf16 %v450_v38, %v450_v38  ;;  %3218 = vst.msk [vmem:[#allocation3 + $0x20] sm:$0xff] %vm12004_vm15, %v3174_v43 }
 0x110   : > { %v3258_v14 = vld [vmem:[#allocation2 + $0x88] sm:$0xf]  ;;  %9051 = vmatmul.mubr.msk.bf16.gmra.mrb[4].mxu0 %vm4132_vm9, %v4099_v19  ;;  %v3259_v57 = vld [vmem:[#allocation2 + $0x8c] sm:$0x1]  ;;  %v3501_v31 = vor.u32 %v3500_v48, %v3497_v42  ;;  %v1448_v61 = vshll.u32 %v1169_v16, 16  ;;  %v8662_v38 = vcombine.low %v10248_v26, %v3933_v62  ;;  %v8647_v40 = vrot.slane %v3802_v58, 9 }
 0x111   : > { %v3504_v39 = vshll.u32 %v3258_v14, 16  ;;  %v3508_v35 = vshrl.u32 %v3258_v14, 16  ;;  %3726 = vrot.lane.b32.xlu0 %v8630_v51, %s9297_s6  ;;  %v3514_v30 = vshll.u32 %v3259_v57, 16  ;;  %v1436_v41 = vrot.slane %v1435_v27, 4  ;;  %v3803_v47 = vld [vmem:[#allocation2 + $0x88] sm:$0xf] }
 0x112   : > { %3183 = vrot.lane.b32.xlu1 %v9156_v60, %s9293_s28  ;;  %v1445_v37 = vor.u32 %v1444_v8, %v1440_v28  ;;  %v3804_v15 = vld [vmem:[#allocation2 + $0x8c] sm:$0x1]  ;;  %v3502_v20 = vrot.slane %v3501_v31, 4  ;;  %v1450_v4 = vrot.slane %v1448_v61, 5  ;;  %v1171_v63 = vld [vmem:[#allocation2 + $0x88] sm:$0xf] }
 0x113   : > { %v3506_v56 = vrot.slane %v3504_v39, 5  ;;  %v3510_v53 = vrot.slane %v3508_v35, 4  ;;  %v3516_v46 = vrot.slane %v3514_v30, 5  ;;  %v1441_v5 = vsel %vm9424_vm12, %v1436_v41, %v1440_v28  ;;  %v1172_v0 = vld [vmem:[#allocation2 + $0x8c] sm:$0x1]  ;;  %v225_v61 = vld [vmem:[%s9375_s22 + $0xd0] sm:$0xff] }
 0x114   : > { %v1446_v55 = vrot.slane %v1445_v37, 4  ;;  %v3936_v52 = vrot.slane %v3803_v47, 5  ;;  %v3939_v59 = vrot.slane %v3804_v15, 5  ;;  %v1453_v26 = vshrl.u32 %v1170_v23, 16  ;;  %v1716_v62 = vld [vmem:[#allocation2 + $0x7c] sm:$0xf] }
 0x115   : > { %v3507_v7 = vsel %vm9424_vm12, %v3502_v20, %v3506_v56  ;;  %v3511_v24 = vor.u32 %v3510_v53, %v3506_v56  ;;  %4047 = vrot.lane.b32.xlu0 %v8662_v38, %s9295_s30  ;;  %v1456_v36 = vshll.u32 %v1170_v23, 16  ;;  %v1462_v17 = vshll.u32 %v1171_v63, 16  ;;  %v1717_v16 = vld [vmem:[#allocation2 + $0x80] sm:$0x1]  ;;  %v1718_v18 = vld [vmem:[#allocation2 + $0x84] sm:$0xe]  ;;  %v2677_v8 = vpop.permute.xlu1 %2676 }
 0x116   : > { %v1451_v11 = vsel %vm9424_vm12, %v1446_v55, %v1450_v4  ;;  %v3937_v50 = vsel %vm9366_vm8, %v8647_v40, %v3936_v52  ;;  %v3938_v12 = vrot.slane %v3936_v52, 4  ;;  %v1455_v34 = vrot.slane %v1453_v26, 4  ;;  %v1719_v22 = vld [vmem:[#allocation2 + $0x88] sm:$0xf]  ;;  %v1720_v2 = vld [vmem:[#allocation2 + $0x8c] sm:$0x1] }
 0x117   : > { %v3512_v32 = vrot.slane %v3511_v24, 4  ;;  %v8504_v44 = vcombine.low %v1441_v5, %v1451_v11  ;;  %v1458_v28 = vrot.slane %v1456_v36, 5  ;;  %v1464_v45 = vrot.slane %v1462_v17, 5  ;;  %2720 = vst.msk [vmem:[#allocation3 + $0x28] sm:$0xff] %vm2714_vm5, %v2677_v8  ;;  %v2216_v37 = vld [vmem:[#allocation2 + $0x84] sm:$0xf] }
 0x118   : > { %v1466_v19 = vshrl.u32 %v1171_v63, 16  ;;  %v3940_v42 = vsel %vm9366_vm8, %v3938_v12, %v3939_v59  ;;  %v1472_v48 = vshll.u32 %v1172_v0, 16  ;;  %v8520_v58 = vrot.slane %v1715_v25, 9  ;;  %v9176_v47 = vld [vmem:[#allocation2 + $0x60] sm:$0xff]   ;;  %v2217_v4 = vld [vmem:[#allocation2 + $0x88] sm:$0xf] }
 0x119   : > { %v3517_v3 = vsel %vm9424_vm12, %v3512_v32, %v3516_v46  ;;  %v8663_v51 = vcombine.low %v3937_v50, %v3940_v42  ;;  %v1459_v14 = vor.u32 %v1458_v28, %v1455_v34  ;;  %v1856_v31 = vrot.slane %v1716_v62, 5  ;;  %v957_v5 = vld [vmem:[#allocation2 + $0x90] sm:$0xf]  ;;  %v335_v55 = vld [vmem:[#allocation2 + $0x98] sm:$0x1]  ;;  %v2998_v40 = vpop.permute.xlu1 %2997  ;;  %v9162_v62 = vld [vmem:[#allocation2 + $0x84] sm:$0xff]  }
 0x11a   : > { %v8631_v60 = vcombine.low %v3507_v7, %v3517_v3  ;;  %v1468_v27 = vrot.slane %v1466_v19, 4  ;;  %v1474_v57 = vrot.slane %v1472_v48, 5  ;;  %v1859_v39 = vrot.slane %v1717_v16, 5  ;;  %v10301_v7 = vld [vmem:[%s11986_s3] ss:$0 sm:$0xff]  ;;  %3041 = vst.msk [vmem:[#allocation3 + $0x28] sm:$0xff] %vm11991_vm6, %v2998_v40 }
 0x11b   : > { %v8521_v35 = vrot.slane %v1718_v18, 9  ;;  %4049 = vrot.lane.b32.xlu0 %v8663_v51, %s9295_s30  ;;  %v1460_v23 = vrot.slane %v1459_v14, 4  ;;  %v1863_v38 = vrot.slane %v1719_v22, 5  ;;  %v1866_v41 = vrot.slane %v1720_v2, 5  ;;  %v2218_v25 = vld [vmem:[#allocation2 + $0x8c] sm:$0x1] }
 0x11c   : > { %3728 = vrot.lane.b32.xlu1 %v8631_v60, %s9297_s6  ;;  %v1469_v30 = vor.u32 %v1468_v27, %v1464_v45  ;;  %v1857_v15 = vsel %vm9366_vm8, %v8520_v58, %v1856_v31  ;;  %v1858_v20 = vrot.slane %v1856_v31, 4  ;;  %v745_v56 = vshrl.u32 %v10253_v49, 16  ;;  %v9177_v32 = vld [vmem:[#allocation2 + $0x6c] sm:$0xff]   ;;  %v282_v28 = vld [vmem:[#allocation2 + $0x9c] sm:$0x1]  ;;  %v3719_v42 = vpop.permute.xlu0 %3718  ;;  %v227_v40 = vld [vmem:[%s9375_s22 + $0xe0] sm:$0xff] }
 0x11d   : > { %v748_v53 = vshll.u32 %v10253_v49, 16  ;;  %v1465_v63 = vsel %vm9424_vm12, %v1460_v23, %v1464_v45  ;;  %v1865_v46 = vrot.slane %v1863_v38, 4  ;;  %v10304_v24 = vmul.f32 %v10301_v7, %v225_v61  ;;  %v10322_v3 = vld [vmem:[#allocation2 + $0x88] sm:$0xf]  ;;  %v2761_v60 = vld [vmem:[#allocation2 + $0x84] sm:$0xe] }
 0x11e   : > { %v1470_v43 = vrot.slane %v1469_v30, 4  ;;  %vm12005_vm15 = vcmask 31744   ;;  %v1860_v49 = vsel %vm9366_vm8, %v1858_v20, %v1859_v39  ;;  %v1864_v52 = vsel %vm9366_vm8, %v8521_v35, %v1863_v38  ;;  %3763 = vst.msk [vmem:[#allocation3 + $0x20] sm:$0xff] %vm3758_vm10, %v3719_v42  ;;  %v338_v31 = vld [vmem:[#allocation2 + $0xa4] sm:$0x1] }
 0x11f   : > { %1129 = vst.msk [vmem:[#allocation3 + $0x40] sm:$0xff] %vm12005_vm15, %v9176_v47  ;;  %v747_v59 = vrot.slane %v745_v56, 7  ;;  %v753_v0 = vshrl.u32 %v10266_v54, 16  ;;  %v8536_v26 = vcombine.low %v1857_v15, %v1860_v49  ;;  %v756_v36 = vshll.u32 %v10266_v54, 16  ;;  %v3176_v54 = vpop.permute.xlu1 %3175  ;;  %1130 = vst.msk [vmem:[#allocation3 + $0x48] sm:$0xff] %vm12005_vm15, %v9177_v32 }
 0x120   : > { %1640 = vrot.lane.b32.xlu1 %v8504_v44, %s9291_s26  ;;  %v1475_v11 = vsel %vm9424_vm12, %v1470_v43, %v1474_v57  ;;  %v2475_v17 = vshrl.u32 %v2216_v37, 16  ;;  %v1867_v12 = vsel %vm9366_vm8, %v1865_v46, %v1866_v41  ;;  %v2478_v19 = vshll.u32 %v2216_v37, 16  ;;  %v2763_v57 = vld [vmem:[#allocation2 + $0x8c] sm:$0x1]  ;;  %v285_v30 = vld [vmem:[#allocation2 + $0xa8] sm:$0x1]  ;;  %v4040_v15 = vpop.permute.xlu0 %4039 }
 0x121   : > { %v8505_v50 = vcombine.low %v1465_v63, %v1475_v11  ;;  %v750_v16 = vor.u32 %v748_v53, %v747_v59  ;;  %v751_v34 = vrot.slane %v747_v59, 4  ;;  %1964 = vrot.lane.b32.xlu0 %v8536_v26, %s9290_s25  ;;  %v10320_v45 = vrot.slane %v753_v0, 7  ;;  %v226_v63 = vld [vmem:[%s9375_s22 + $0xd8] sm:$0xff]  ;;  %4084 = vst.msk [vmem:[#allocation3 + $0x20] sm:$0xff] %vm4079_vm11, %v4040_v15 }
 0x122   : > { %v2477_v44 = vrot.slane %v2475_v17, 4  ;;  %v2484_v18 = vshll.u32 %v2217_v4, 16  ;;  %v2488_v58 = vshrl.u32 %v2217_v4, 16  ;;  %v2494_v22 = vshll.u32 %v2218_v25, 16 }
 0x123   : > { %v958_v48 = vsel %vm9432_vm13, %v750_v16, %v957_v5  ;;  %v336_v2 = vsel %vm9356_vm7, 0, %v335_v55  ;;  %vm12006_vm6 = vcmask 228544   ;;  %v8537_v51 = vcombine.low %v1864_v52, %v1867_v12  ;;  %v3721_v59 = vpop.permute.xlu1 %3720 }
 0x124   : > { %3219 = vst.msk [vmem:[#allocation3 + $0x28] sm:$0xff] %vm12006_vm6, %v3176_v54  ;;  %1642 = vrot.lane.b32.xlu1 %v8505_v50, %s9291_s26  ;;  %v758_v14 = vor.u32 %v756_v36, %v10320_v45  ;;  %959 = vst [vmem:[#allocation2 + $0x90] sm:$0xf] %v958_v48  ;;  %v2480_v27 = vrot.slane %v2478_v19, 5  ;;  %v2486_v8 = vrot.slane %v2484_v18, 5  ;;  %v760_v39 = vrot.slane %v10320_v45, 4  ;;  %v4042_v26 = vpop.permute.xlu0 %4041 }
 0x125   : > { %337 = vst [vmem:[#allocation2 + $0x98] sm:$0x1] %v336_v2  ;;  %v2490_v35 = vrot.slane %v2488_v58, 4  ;;  %v2496_v61 = vrot.slane %v2494_v22, 5  ;;  %v2899_v23 = vrot.slane %v10322_v3, 5  ;;  %2141 = vrot.lane.b32.xlu0 %v9162_v62, %s9292_s27  ;;  %v8584_v37 = vrot.slane %v2761_v60, 9  ;;  %vm12007_vm6 = vmmov %vm12005_vm15 }
 0x126   : > { %v759_v38 = vsel %vm9442_vm14, %v751_v34, %v758_v14  ;;  %v2481_v41 = vor.u32 %v2480_v27, %v2477_v44  ;;  %v283_v47 = vsel %vm9339_vm3, 0, %v282_v28  ;;  %v2902_v53 = vrot.slane %v2763_v57, 5  ;;  %3764 = vst.msk [vmem:[#allocation3 + $0x28] sm:$0xff] %vm3758_vm10, %v3721_v59  ;;  %v228_v36 = vld [vmem:[%s9375_s22 + $0xe8] sm:$0xff]  ;;  %v229_v48 = vld [vmem:[%s9375_s22 + $0xf0] sm:$0xff]  ;;  %vm12008_vm15 = vmmov %vm12007_vm6 }
 0x127   : > { %960 = vst.msk [vmem:[#allocation2 + $0x94] sm:$0xf] %vm231_vm0, %v759_v38  ;;  %v2491_v20 = vor.u32 %v2490_v35, %v2486_v8  ;;  %v2901_v56 = vrot.slane %v2899_v23, 4  ;;  %284 = vst [vmem:[#allocation2 + $0x9c] sm:$0x1] %v283_v47  ;;  %v451_v4 = vmax.f32 %v10213_v6, 0.0  ;;  %v385_v11 = vmul.f32 %v10301_v7, %v226_v63  ;;  %v1633_v42 = vpop.permute.xlu1 %1632 }
 0x128   : > { %1966 = vrot.lane.b32.xlu1 %v8537_v51, %s9290_s25  ;;  %v2482_v43 = vrot.slane %v2481_v41, 4  ;;  %v452_v46 = vmax.f32 %v10228_v29, 0.0  ;;  %v339_v5 = vsel %vm9356_vm7, 0, %v338_v31  ;;  %v286_v55 = vsel %vm9339_vm3, 0, %v285_v30  ;;  %v10354_v6 = vld [vmem:[%s11986_s3 + $0x1] ss:$0 sm:$0xff] }
 0x129   : > { %v2492_v49 = vrot.slane %v2491_v20, 4  ;;  %v8962_v52 = vpack.c.bf16 %v451_v4, %v451_v4  ;;  %340 = vst [vmem:[#allocation2 + $0xa4] sm:$0x1] %v339_v5  ;;  %287 = vst [vmem:[#allocation2 + $0xa8] sm:$0x1] %v286_v55  ;;  %v10358_v29 = vadd.f32 %v10354_v6, %v10304_v24  ;;  %v2900_v24 = vsel %vm9366_vm8, %v8584_v37, %v2899_v23 }
 0x12a   : > { %v2487_v0 = vsel %vm9424_vm12, %v2482_v43, %v2486_v8  ;;  %v8963_v25 = vpack.c.bf16 %v452_v46, %v452_v46  ;;  %v2903_v12 = vsel %vm9366_vm8, %v2901_v56, %v2902_v53  ;;  %4085 = vst.msk [vmem:[#allocation3 + $0x28] sm:$0xff] %vm4079_vm11, %v4042_v26  ;;  %v386_v62 = vmul.f32 %v10301_v7, %v227_v40 }
 0x12b   : > { %v2497_v17 = vsel %vm9424_vm12, %v2492_v49, %v2496_v61  ;;  %v2219_v50 = vld [vmem:[#allocation2 + $0x90] sm:$0xf]  ;;  %v762_v19 = vshrl.u32 %v8962_v52, 16  ;;  %v765_v18 = vshll.u32 %v8962_v52, 16  ;;  %v453_v54 = vmax.f32 %v10358_v29, 0.0  ;;  %1675 = vst.msk [vmem:[#allocation3 + $0x30] sm:$0xff] %vm1668_vm1, %v1633_v42  ;;  %v1957_v20 = vpop.permute.xlu0 %1956  ;;  %v1635_v43 = vpop.permute.xlu1 %1634 }
 0x12c   : > { %v961_v32 = vld [vmem:[#allocation2 + $0x98] sm:$0x1]  ;;  %v8568_v16 = vcombine.low %v2487_v0, %v2497_v17  ;;  %v2499_v28 = vshrl.u32 %v2219_v50, 16  ;;  %v2502_v45 = vshll.u32 %v2219_v50, 16  ;;  %v2764_v44 = vld [vmem:[#allocation2 + $0x90] sm:$0xe]  ;;  %v8600_v60 = vcombine.low %v2900_v24, %v2903_v12 }
 0x12d   : > { %v962_v34 = vsel %vm9339_vm3, %v760_v39, %v961_v32  ;;  %v770_v3 = vshrl.u32 %v8963_v25, 16  ;;  %v10379_v51 = vadd.f32 %v10354_v6, %v385_v11  ;;  %v387_v14 = vmul.f32 %v10301_v7, %v228_v36  ;;  %1999 = vst.msk [vmem:[#allocation3 + $0x30] sm:$0xff] %vm1992_vm2, %v1957_v20  ;;  %v3260_v52 = vld [vmem:[#allocation2 + $0x90] sm:$0xf] }
 0x12e   : > { %963 = vst [vmem:[#allocation2 + $0x98] sm:$0x1] %v962_v34  ;;  %v9163_v58 = vld [vmem:[#allocation2 + $0x90] sm:$0xff]   ;;  %2686 = vrot.lane.b32.xlu0 %v8568_v16, %s9296_s5  ;;  %v2501_v2 = vrot.slane %v2499_v28, 4  ;;  %v2504_v27 = vrot.slane %v2502_v45, 5  ;;  %v8585_v39 = vrot.slane %v2764_v44, 9  ;;  %v10389_v15 = vadd.f32 %v10354_v6, %v386_v62 }
 0x12f   : > { %v2220_v22 = vld [vmem:[#allocation2 + $0x94] sm:$0xf]  ;;  %2143 = vrot.lane.b32.xlu1 %v9163_v58, %s9292_s27  ;;  %v764_v61 = vrot.slane %v762_v19, 7  ;;  %v10384_v23 = vrot.slane %v770_v3, 7  ;;  %v773_v30 = vshll.u32 %v8963_v25, 16  ;;  %v454_v63 = vmax.f32 %v10379_v51, 0.0  ;;  %v2134_v28 = vpop.permute.xlu0 %2133 }
 0x130   : > { %v2508_v8 = vshll.u32 %v2220_v22, 16  ;;  %v2512_v57 = vshrl.u32 %v2220_v22, 16  ;;  %v2765_v31 = vld [vmem:[#allocation2 + $0x94] sm:$0xf]  ;;  %v2505_v38 = vor.u32 %v2504_v27, %v2501_v2  ;;  %v964_v47 = vld [vmem:[#allocation2 + $0x9c] sm:$0xf]  ;;  %v10395_v46 = vmul.f32 %v10301_v7, %v229_v48 }
 0x131   : > { %v2906_v35 = vrot.slane %v2765_v31, 5  ;;  %v9166_v56 = vld [vmem:[#allocation2 + $0x90] sm:$0xff]   ;;  %v767_v53 = vor.u32 %v765_v18, %v764_v61  ;;  %v768_v4 = vrot.slane %v764_v61, 4  ;;  %v775_v49 = vor.u32 %v773_v30, %v10384_v23  ;;  %1676 = vst.msk [vmem:[#allocation3 + $0x38] sm:$0xff] %vm1668_vm1, %v1635_v43  ;;  %v968_v36 = vld [vmem:[#allocation2 + $0xa4] sm:$0x1] }
 0x132   : > { %v10386_v41 = vrot.slane %v2508_v8, 5  ;;  %v2514_v37 = vrot.slane %v2512_v57, 4  ;;  %3007 = vrot.lane.b32.xlu0 %v8600_v60, %s9294_s29  ;;  %v2506_v5 = vrot.slane %v2505_v38, 4  ;;  %v3261_v29 = vld [vmem:[#allocation2 + $0x94] sm:$0xf]  ;;  %v10406_v17 = vpack.c.bf16 %v453_v54, %v453_v54  ;;  %v4100_v34 = vld [vmem:[#allocation3 + $0x20] sm:$0xff]  ;;  %v1959_v54 = vpop.permute.xlu1 %1958 }
 0x133   : > { %v2908_v40 = vrot.slane %v2906_v35, 4  ;;  %v10402_v25 = vsel %vm9366_vm8, %v8585_v39, %v2906_v35  ;;  %v965_v11 = vsel %vm9432_vm13, %v767_v53, %v964_v47  ;;  %v10409_v32 = vadd.f32 %v10354_v6, %v387_v14  ;;  %v3805_v16 = vld [vmem:[#allocation2 + $0x90] sm:$0xe]  ;;  %v3806_v3 = vld [vmem:[#allocation2 + $0x94] sm:$0xf]  ;;  %9054 = vmatprep.mubr.msk.bf16.mxu0 %vm4132_vm9, %v4100_v34  ;;  %2176 = vst.msk [vmem:[#allocation3 + $0x30] sm:$0xff] %vm2169_vm4, %v2134_v28 }
 0x134   : > { %v2515_v55 = vor.u32 %v2514_v37, %v10386_v41  ;;  %v777_v62 = vrot.slane %v10384_v23, 4  ;;  %966 = vst [vmem:[#allocation2 + $0x9c] sm:$0xf] %v965_v11  ;;  %v776_v45 = vsel %vm9442_vm14, %v768_v4, %v775_v49  ;;  %v3519_v44 = vshrl.u32 %v3260_v52, 16  ;;  %v4101_v42 = vld [vmem:[#allocation3 + $0x28] sm:$0xff]  ;;  %2000 = vst.msk [vmem:[#allocation3 + $0x38] sm:$0xff] %vm1992_vm2, %v1959_v54 }
 0x135   : > { %v2221_v59 = vld [vmem:[#allocation2 + $0x98] sm:$0x1]  ;;  %v3522_v19 = vshll.u32 %v3260_v52, 16  ;;  %v3528_v18 = vshll.u32 %v3261_v29, 16  ;;  %v2511_v48 = vsel %vm9424_vm12, %v2506_v5, %v10386_v41  ;;  %967 = vst.msk [vmem:[#allocation2 + $0xa0] sm:$0xf] %vm231_vm0, %v776_v45  ;;  %9055 = vmatmul.mubr.msk.bf16.gmra.mrb[8].mxu0 %vm4132_vm9, %v4101_v42 }
 0x136   : > { %v2766_v0 = vld [vmem:[#allocation2 + $0x98] sm:$0x1]  ;;  %v2516_v50 = vrot.slane %v2515_v55, 4  ;;  %v2518_v24 = vshll.u32 %v2221_v59, 16  ;;  %3185 = vrot.lane.b32.xlu0 %v9166_v56, %s9293_s28  ;;  %v3532_v22 = vshrl.u32 %v3261_v29, 16  ;;  %v3521_v8 = vrot.slane %v3519_v44, 4 }
 0x137   : > { %v3262_v26 = vld [vmem:[#allocation2 + $0x98] sm:$0x1]  ;;  %v2909_v12 = vrot.slane %v2766_v0, 5  ;;  %v1173_v60 = vld [vmem:[#allocation2 + $0x90] sm:$0xf]  ;;  %v3524_v57 = vrot.slane %v3522_v19, 5  ;;  %v969_v38 = vsel %vm9339_vm3, %v777_v62, %v968_v36 }
 0x138   : > { %v2520_v58 = vrot.slane %v2518_v24, 5  ;;  %v3538_v2 = vshll.u32 %v3262_v26, 16  ;;  %v9180_v14 = vld [vmem:[#allocation2 + $0x78] sm:$0xff]   ;;  %v3530_v31 = vrot.slane %v3528_v18, 5  ;;  %v9181_v35 = vld [vmem:[#allocation2 + $0x84] sm:$0xff]   ;;  %v3534_v23 = vrot.slane %v3532_v22, 4  ;;  %v2136_v18 = vpop.permute.xlu1 %2135 }
 0x139   : > { %v2910_v27 = vsel %vm9366_vm8, %v2908_v40, %v2909_v12  ;;  %v3807_v39 = vld [vmem:[#allocation2 + $0x98] sm:$0x1]  ;;  %1131 = vst.msk [vmem:[#allocation3 + $0x50] sm:$0xff] %vm12007_vm6, %v9180_v14  ;;  %v3525_v37 = vor.u32 %v3524_v57, %v3521_v8  ;;  %970 = vst [vmem:[#allocation2 + $0xa4] sm:$0x1] %v969_v38  ;;  %v8648_v47 = vrot.slane %v3805_v16, 9  ;;  %v10444_v16 = vpack.c.bf16 %v454_v63, %v454_v63 }
 0x13a   : > { %v2521_v61 = vsel %vm9424_vm12, %v2516_v50, %v2520_v58  ;;  %v3540_v30 = vrot.slane %v3538_v2, 5  ;;  %v3943_v20 = vrot.slane %v3806_v3, 5  ;;  %1132 = vst.msk [vmem:[#allocation3 + $0x58] sm:$0xff] %vm12008_vm15, %v9181_v35  ;;  %v3535_v56 = vor.u32 %v3534_v23, %v3530_v31  ;;  %v1174_v29 = vld [vmem:[#allocation2 + $0x94] sm:$0xf]  ;;  %v2679_v50 = vpop.permute.xlu0 %2678 }
 0x13b   : > { %v8569_v41 = vcombine.low %v2511_v48, %v2521_v61  ;;  %v3946_v53 = vrot.slane %v3807_v39, 5  ;;  %v1477_v4 = vshrl.u32 %v1173_v60, 16  ;;  %v1480_v43 = vshll.u32 %v1173_v60, 16  ;;  %v3263_v40 = vld [vmem:[#allocation2 + $0x9c] sm:$0xf]  ;;  %2721 = vst.msk [vmem:[#allocation3 + $0x30] sm:$0xff] %vm2714_vm5, %v2679_v50 }
 0x13c   : > { %v8601_v5 = vcombine.low %v10402_v25, %v2910_v27  ;;  %v3526_v55 = vrot.slane %v3525_v37, 4  ;;  %v10435_v49 = vsel %vm9366_vm8, %v8648_v47, %v3943_v20  ;;  %v3945_v52 = vrot.slane %v3943_v20, 4  ;;  %v1175_v26 = vld [vmem:[#allocation2 + $0x98] sm:$0x1]  ;;  %v3264_v12 = vld [vmem:[#allocation2 + $0xa0] sm:$0xf] }
 0x13d   : > { %2688 = vrot.lane.b32.xlu1 %v8569_v41, %s9296_s5  ;;  %v3536_v59 = vrot.slane %v3535_v56, 4  ;;  %v3543_v0 = vshrl.u32 %v3263_v40, 16  ;;  %v3546_v11 = vshll.u32 %v3263_v40, 16  ;;  %v1479_v36 = vrot.slane %v1477_v4, 4  ;;  %v3808_v19 = vld [vmem:[#allocation2 + $0x9c] sm:$0xe] }
 0x13e   : > { %v3531_v24 = vsel %vm9424_vm12, %v3526_v55, %v3530_v31  ;;  %v3947_v25 = vsel %vm9366_vm8, %v3945_v52, %v3946_v53  ;;  %v1482_v62 = vrot.slane %v1480_v43, 5  ;;  %v3552_v44 = vshll.u32 %v3264_v12, 16  ;;  %v9167_v3 = vld [vmem:[#allocation2 + $0x9c] sm:$0xff]   ;;  %2177 = vst.msk [vmem:[#allocation3 + $0x38] sm:$0xff] %vm2169_vm4, %v2136_v18  ;;  %v9182_v58 = vld [vmem:[#allocation2 + $0x90] sm:$0xff]   ;;  %v3000_v8 = vpop.permute.xlu0 %2999 }
 0x13f   : > { %v3541_v34 = vsel %vm9424_vm12, %v3536_v59, %v3540_v30  ;;  %v3545_v28 = vrot.slane %v3543_v0, 4  ;;  %v3548_v45 = vrot.slane %v3546_v11, 5  ;;  %v3556_v42 = vshrl.u32 %v3264_v12, 16  ;;  %v3809_v63 = vld [vmem:[#allocation2 + $0xa0] sm:$0xf]  ;;  %1133 = vst.msk [vmem:[#allocation3 + $0x60] sm:$0xff] %vm12008_vm15, %v9182_v58 }
 0x140   : > { %v8632_v54 = vcombine.low %v3531_v24, %v3541_v34  ;;  %v8664_v51 = vcombine.low %v10435_v49, %v3947_v25  ;;  %v1483_v48 = vor.u32 %v1482_v62, %v1479_v36  ;;  %v3265_v22 = vld [vmem:[#allocation2 + $0xa4] sm:$0x1]  ;;  %v3554_v60 = vrot.slane %v3552_v44, 5  ;;  %v1176_v37 = vld [vmem:[#allocation2 + $0x9c] sm:$0xf] }
 0x141   : > { %3009 = vrot.lane.b32.xlu1 %v8601_v5, %s9294_s29  ;;  %v3549_v2 = vor.u32 %v3548_v45, %v3545_v28  ;;  %v1486_v14 = vshll.u32 %v1174_v29, 16  ;;  %v1490_v27 = vshrl.u32 %v1174_v29, 16  ;;  %v3558_v57 = vrot.slane %v3556_v42, 4  ;;  %v3810_v61 = vld [vmem:[#allocation2 + $0xa4] sm:$0x1]  ;;  %v9183_v43 = vld [vmem:[#allocation2 + $0x9c] sm:$0xff]  }
 0x142   : > { %3730 = vrot.lane.b32.xlu0 %v8632_v54, %s9297_s6  ;;  %v3562_v31 = vshll.u32 %v3265_v22, 16  ;;  %v1484_v39 = vrot.slane %v1483_v48, 4  ;;  %v1496_v35 = vshll.u32 %v1175_v26, 16  ;;  %vm12009_vm6 = vcmask 195744   ;;  %v1177_v4 = vld [vmem:[#allocation2 + $0xa0] sm:$0xf]  ;;  %v3178_v29 = vpop.permute.xlu0 %3177 }
 0x143   : > { %3042 = vst.msk [vmem:[#allocation3 + $0x30] sm:$0xff] %vm12009_vm6, %v3000_v8  ;;  %v3550_v23 = vrot.slane %v3549_v2, 4  ;;  %v1488_v30 = vrot.slane %v1486_v14, 5  ;;  %v1492_v38 = vrot.slane %v1490_v27, 4  ;;  %v8649_v41 = vrot.slane %v3808_v19, 9 }
 0x144   : > { %v3559_v47 = vor.u32 %v3558_v57, %v3554_v60  ;;  %v3564_v20 = vrot.slane %v3562_v31, 5  ;;  %v1498_v56 = vrot.slane %v1496_v35, 5  ;;  %v3950_v53 = vrot.slane %v3809_v63, 5  ;;  %v1178_v52 = vld [vmem:[#allocation2 + $0xa4] sm:$0x1]  ;;  %1134 = vst.msk [vmem:[#allocation3 + $0x68] sm:$0xff] %vm12008_vm15, %v9183_v43  ;;  %v2681_v58 = vpop.permute.xlu1 %2680 }
 0x145   : > { %3187 = vrot.lane.b32.xlu1 %v9167_v3, %s9293_s28  ;;  %v3555_v5 = vsel %vm9424_vm12, %v3550_v23, %v3554_v60  ;;  %v1489_v55 = vsel %vm9424_vm12, %v1484_v39, %v1488_v30  ;;  %v1493_v40 = vor.u32 %v1492_v38, %v1488_v30  ;;  %v3953_v49 = vrot.slane %v3810_v61, 5  ;;  %v1721_v36 = vld [vmem:[#allocation2 + $0x90] sm:$0xe]  ;;  %v1722_v50 = vld [vmem:[#allocation2 + $0x94] sm:$0xf]  ;;  %2722 = vst.msk [vmem:[#allocation3 + $0x38] sm:$0xff] %vm2714_vm5, %v2681_v58 }
 0x146   : > { %v3560_v59 = vrot.slane %v3559_v47, 4  ;;  %4051 = vrot.lane.b32.xlu0 %v8664_v51, %s9295_s30  ;;  %v3951_v0 = vsel %vm9366_vm8, %v8649_v41, %v3950_v53  ;;  %v3952_v11 = vrot.slane %v3950_v53, 4  ;;  %v1501_v26 = vshrl.u32 %v1176_v37, 16  ;;  %v1723_v19 = vld [vmem:[#allocation2 + $0x98] sm:$0x1] }
 0x147   : > { %vm12010_vm6 = vcmask 228544   ;;  %v1494_v24 = vrot.slane %v1493_v40, 4  ;;  %v1504_v12 = vshll.u32 %v1176_v37, 16  ;;  %v1510_v25 = vshll.u32 %v1177_v4, 16  ;;  %v1724_v18 = vld [vmem:[#allocation2 + $0x9c] sm:$0xe] }
 0x148   : > { %3220 = vst.msk [vmem:[#allocation3 + $0x30] sm:$0xff] %vm12010_vm6, %v3178_v29  ;;  %v1514_v62 = vshrl.u32 %v1177_v4, 16  ;;  %v3565_v34 = vsel %vm9424_vm12, %v3560_v59, %v3564_v20  ;;  %v3954_v28 = vsel %vm9366_vm8, %v3952_v11, %v3953_v49  ;;  %v1503_v45 = vrot.slane %v1501_v26, 4  ;;  %v1725_v48 = vld [vmem:[#allocation2 + $0xa0] sm:$0xf]  ;;  %v3002_v47 = vpop.permute.xlu1 %3001 }
 0x149   : > { %v1520_v44 = vshll.u32 %v1178_v52, 16  ;;  %v8633_v3 = vcombine.low %v3555_v5, %v3565_v34  ;;  %v1499_v54 = vsel %vm9424_vm12, %v1494_v24, %v1498_v56  ;;  %v8665_v42 = vcombine.low %v3951_v0, %v3954_v28  ;;  %v1726_v63 = vld [vmem:[#allocation2 + $0xa4] sm:$0x1]  ;;  %v341_v43 = vld [vmem:[#allocation2 + $0xb0] sm:$0x1] }
 0x14a   : > { %v1506_v51 = vrot.slane %v1504_v12, 5  ;;  %v8506_v22 = vcombine.low %v1489_v55, %v1499_v54  ;;  %v1512_v2 = vrot.slane %v1510_v25, 5  ;;  %v1516_v60 = vrot.slane %v1514_v62, 4  ;;  %v2222_v52 = vld [vmem:[#allocation2 + $0x9c] sm:$0xf] }
 0x14b   : > { %v1522_v14 = vrot.slane %v1520_v44, 5  ;;  %3732 = vrot.lane.b32.xlu1 %v8633_v3, %s9297_s6  ;;  %4053 = vrot.lane.b32.xlu0 %v8665_v42, %s9295_s30  ;;  %v8522_v8 = vrot.slane %v1721_v36, 9  ;;  %v1870_v57 = vrot.slane %v1722_v50, 5  ;;  %v1873_v31 = vrot.slane %v1723_v19, 5  ;;  %v2223_v29 = vld [vmem:[#allocation2 + $0xa0] sm:$0xf] }
 0x14c   : > { %v1507_v27 = vor.u32 %v1506_v51, %v1503_v45  ;;  %v1517_v39 = vor.u32 %v1516_v60, %v1512_v2  ;;  %v8523_v35 = vrot.slane %v1724_v18, 9  ;;  %v1877_v61 = vrot.slane %v1725_v48, 5  ;;  %v971_v26 = vld [vmem:[#allocation2 + $0xa8] sm:$0xf]  ;;  %v2224_v36 = vld [vmem:[#allocation2 + $0xa4] sm:$0x1]  ;;  %v3180_v28 = vpop.permute.xlu1 %3179 }
 0x14d   : > { %v1880_v23 = vrot.slane %v1726_v63, 5  ;;  %v1871_v38 = vsel %vm9366_vm8, %v8522_v8, %v1870_v57  ;;  %v1872_v41 = vrot.slane %v1870_v57, 4  ;;  %v779_v37 = vshrl.u32 %v10406_v17, 16  ;;  %v9168_v12 = vld [vmem:[#allocation2 + $0x9c] sm:$0xff]   ;;  %v2769_v63 = vld [vmem:[#allocation2 + $0xa4] sm:$0x1] }
 0x14e   : > { %v1508_v30 = vrot.slane %v1507_v27, 4  ;;  %v1518_v20 = vrot.slane %v1517_v39, 4  ;;  %v1878_v56 = vsel %vm9366_vm8, %v8523_v35, %v1877_v61  ;;  %v1879_v53 = vrot.slane %v1877_v61, 4  ;;  %v10492_v34 = vld [vmem:[#allocation2 + $0x9c] sm:$0xe] }
 0x14f   : > { %v782_v4 = vshll.u32 %v10406_v17, 16  ;;  %vm12011_vm6 = vcmask 195744   ;;  %1644 = vrot.lane.b32.xlu1 %v8506_v22, %s9291_s26  ;;  %v1874_v55 = vsel %vm9366_vm8, %v1872_v41, %v1873_v31  ;;  %v781_v40 = vrot.slane %v779_v37, 7  ;;  %v2768_v3 = vld [vmem:[#allocation2 + $0xa0] sm:$0xf] }
 0x150   : > { %3043 = vst.msk [vmem:[#allocation3 + $0x38] sm:$0xff] %vm12011_vm6, %v3002_v47  ;;  %v1513_v5 = vsel %vm9424_vm12, %v1508_v30, %v1512_v2  ;;  %v787_v49 = vshrl.u32 %v10444_v16, 16  ;;  %v1523_v59 = vsel %vm9424_vm12, %v1518_v20, %v1522_v14  ;;  %v8538_v17 = vcombine.low %v1871_v38, %v1874_v55  ;;  %v288_v60 = vld [vmem:[#allocation2 + $0xb4] sm:$0x1]  ;;  %v344_v39 = vld [vmem:[#allocation2 + $0xbc] sm:$0x1] }
 0x151   : > { %v1881_v0 = vsel %vm9366_vm8, %v1879_v53, %v1880_v23  ;;  %v790_v11 = vshll.u32 %v10444_v16, 16  ;;  %v8507_v50 = vcombine.low %v1513_v5, %v1523_v59  ;;  %v784_v25 = vor.u32 %v782_v4, %v781_v40  ;;  %v3723_v16 = vpop.permute.xlu0 %3722  ;;  %v291_v38 = vld [vmem:[#allocation2 + $0xc0] sm:$0x1] }
 0x152   : > { %v8539_v24 = vcombine.low %v1878_v56, %v1881_v0  ;;  %v785_v62 = vrot.slane %v781_v40, 4  ;;  %1968 = vrot.lane.b32.xlu0 %v8538_v17, %s9290_s25  ;;  %v10495_v45 = vrot.slane %v787_v49, 7  ;;  %v2523_v44 = vshrl.u32 %v2222_v52, 16  ;;  %3765 = vst.msk [vmem:[#allocation3 + $0x30] sm:$0xff] %vm3758_vm10, %v3723_v16  ;;  %v230_v56 = vld [vmem:[%s9375_s22 + $0xf8] sm:$0xff] }
 0x153   : > { %v2526_v19 = vshll.u32 %v2222_v52, 16  ;;  %v2532_v18 = vshll.u32 %v2223_v29, 16  ;;  %vm12012_vm15 = vcmask 228544   ;;  %1646 = vrot.lane.b32.xlu1 %v8507_v50, %s9291_s26  ;;  %v972_v54 = vsel %vm9432_vm13, %v784_v25, %v971_v26 }
 0x154   : > { %3221 = vst.msk [vmem:[#allocation3 + $0x38] sm:$0xff] %vm12012_vm15, %v3180_v28  ;;  %v2536_v42 = vshrl.u32 %v2223_v29, 16  ;;  %v2542_v51 = vshll.u32 %v2224_v36, 16  ;;  %v342_v48 = vsel %vm9356_vm7, 0, %v341_v43  ;;  %v792_v58 = vor.u32 %v790_v11, %v10495_v45  ;;  %973 = vst [vmem:[#allocation2 + $0xa8] sm:$0xf] %v972_v54 }
 0x155   : > { %v2525_v22 = vrot.slane %v2523_v44, 4  ;;  %v2528_v2 = vrot.slane %v2526_v19, 5  ;;  %343 = vst [vmem:[#allocation2 + $0xb0] sm:$0x1] %v342_v48  ;;  %v10507_v14 = vadd.f32 %v10354_v6, %v10395_v46  ;;  %v2534_v27 = vrot.slane %v2532_v18, 5  ;;  %v4044_v41 = vpop.permute.xlu0 %4043 }
 0x156   : > { %v2538_v8 = vrot.slane %v2536_v42, 4  ;;  %v2544_v57 = vrot.slane %v2542_v51, 5  ;;  %v8586_v31 = vrot.slane %v10492_v34, 9  ;;  %2145 = vrot.lane.b32.xlu0 %v9168_v12, %s9292_s27  ;;  %v793_v35 = vsel %vm9442_vm14, %v785_v62, %v792_v58  ;;  %4086 = vst.msk [vmem:[#allocation3 + $0x30] sm:$0xff] %vm4079_vm11, %v4044_v41 }
 0x157   : > { %v2529_v61 = vor.u32 %v2528_v2, %v2525_v22  ;;  %v2913_v23 = vrot.slane %v2768_v3, 5  ;;  %v2916_v30 = vrot.slane %v2769_v63, 5  ;;  %1970 = vrot.lane.b32.xlu1 %v8539_v24, %s9290_s25  ;;  %974 = vst.msk [vmem:[#allocation2 + $0xac] sm:$0xf] %vm231_vm0, %v793_v35  ;;  %v289_v37 = vsel %vm9339_vm3, 0, %v288_v60 }
 0x158   : > { %v2539_v46 = vor.u32 %v2538_v8, %v2534_v27  ;;  %v455_v47 = vmax.f32 %v10389_v15, 0.0  ;;  %v456_v20 = vmax.f32 %v10409_v32, 0.0  ;;  %v794_v53 = vrot.slane %v10495_v45, 4  ;;  %290 = vst [vmem:[#allocation2 + $0xb4] sm:$0x1] %v289_v37 }
 0x159   : > { %v2530_v4 = vrot.slane %v2529_v61, 4  ;;  %v2915_v43 = vrot.slane %v2913_v23, 4  ;;  %v345_v5 = vsel %vm9356_vm7, 0, %v344_v39  ;;  %v292_v15 = vsel %vm9339_vm3, 0, %v291_v38  ;;  %v4046_v29 = vpop.permute.xlu0 %4045 }
 0x15a   : > { %v2540_v55 = vrot.slane %v2539_v46, 4  ;;  %v8966_v40 = vpack.c.bf16 %v455_v47, %v455_v47  ;;  %v8967_v49 = vpack.c.bf16 %v456_v20, %v456_v20  ;;  %346 = vst [vmem:[#allocation2 + $0xbc] sm:$0x1] %v345_v5  ;;  %293 = vst [vmem:[#allocation2 + $0xc0] sm:$0x1] %v292_v15  ;;  %v389_v52 = vmul.f32 %v10301_v7, %v230_v56  ;;  %v3725_v7 = vpop.permute.xlu1 %3724 }
 0x15b   : > { %v2535_v32 = vsel %vm9424_vm12, %v2530_v4, %v2534_v27  ;;  %v2225_v0 = vld [vmem:[#allocation2 + $0xa8] sm:$0xf]  ;;  %v2914_v11 = vsel %vm9366_vm8, %v8586_v31, %v2913_v23  ;;  %v2917_v26 = vsel %vm9366_vm8, %v2915_v43, %v2916_v30  ;;  %v457_v45 = vmax.f32 %v10507_v14, 0.0  ;;  %3766 = vst.msk [vmem:[#allocation3 + $0x38] sm:$0xff] %vm3758_vm10, %v3725_v7 }
 0x15c   : > { %v2545_v59 = vsel %vm9424_vm12, %v2540_v55, %v2544_v57  ;;  %v975_v17 = vld [vmem:[#allocation2 + $0xb0] sm:$0x1]  ;;  %v2547_v24 = vshrl.u32 %v2225_v0, 16  ;;  %v2550_v12 = vshll.u32 %v2225_v0, 16  ;;  %v2770_v25 = vld [vmem:[#allocation2 + $0xa8] sm:$0xe]  ;;  %v8602_v3 = vcombine.low %v2914_v11, %v2917_v26 }
 0x15d   : > { %v8570_v36 = vcombine.low %v2535_v32, %v2545_v59  ;;  %v976_v50 = vsel %vm9339_vm3, %v794_v53, %v975_v17  ;;  %v796_v62 = vshrl.u32 %v8966_v40, 16  ;;  %v799_v34 = vshll.u32 %v8966_v40, 16  ;;  %4087 = vst.msk [vmem:[#allocation3 + $0x38] sm:$0xff] %vm4079_vm11, %v4046_v29  ;;  %v1961_v27 = vpop.permute.xlu0 %1960  ;;  %v3266_v37 = vld [vmem:[#allocation2 + $0xa8] sm:$0xf] }
 0x15e   : > { %977 = vst [vmem:[#allocation2 + $0xb0] sm:$0x1] %v976_v50  ;;  %v804_v28 = vshrl.u32 %v8967_v49, 16  ;;  %v9169_v44 = vld [vmem:[#allocation2 + $0xa8] sm:$0xff]   ;;  %v2549_v18 = vrot.slane %v2547_v24, 4  ;;  %v10541_v16 = vadd.f32 %v10354_v6, %v389_v52  ;;  %v2552_v54 = vrot.slane %v2550_v12, 5  ;;  %v1637_v14 = vpop.permute.xlu1 %1636 }
 0x15f   : > { %2690 = vrot.lane.b32.xlu0 %v8570_v36, %s9296_s5  ;;  %v2226_v19 = vld [vmem:[#allocation2 + $0xac] sm:$0xf]  ;;  %v8587_v63 = vrot.slane %v2770_v25, 9  ;;  %2147 = vrot.lane.b32.xlu1 %v9169_v44, %s9292_s27  ;;  %v798_v22 = vrot.slane %v796_v62, 7  ;;  %v807_v60 = vshll.u32 %v8967_v49, 16  ;;  %1677 = vst.msk [vmem:[#allocation3 + $0x40] sm:$0xff] %vm1668_vm1, %v1637_v14  ;;  %v10558_v55 = vpack.c.bf16 %v457_v45, %v457_v45 }
 0x160   : > { %v2556_v42 = vshll.u32 %v2226_v19, 16  ;;  %v2560_v51 = vshrl.u32 %v2226_v19, 16  ;;  %v2771_v48 = vld [vmem:[#allocation2 + $0xac] sm:$0xf]  ;;  %v10545_v2 = vrot.slane %v804_v28, 7  ;;  %v2553_v8 = vor.u32 %v2552_v54, %v2549_v18  ;;  %2001 = vst.msk [vmem:[#allocation3 + $0x40] sm:$0xff] %vm1992_vm2, %v1961_v27 }
 0x161   : > { %v2920_v58 = vrot.slane %v2771_v48, 5  ;;  %v978_v31 = vld [vmem:[#allocation2 + $0xb4] sm:$0xf]  ;;  %v9172_v39 = vld [vmem:[#allocation2 + $0xa8] sm:$0xff]   ;;  %v801_v35 = vor.u32 %v799_v34, %v798_v22  ;;  %v802_v61 = vrot.slane %v798_v22, 4  ;;  %v458_v23 = vmax.f32 %v10541_v16, 0.0  ;;  %v2138_v49 = vpop.permute.xlu0 %2137 }
 0x162   : > { %v2558_v57 = vrot.slane %v2556_v42, 5  ;;  %v2562_v6 = vrot.slane %v2560_v51, 4  ;;  %v2554_v30 = vrot.slane %v2553_v8, 4  ;;  %v809_v46 = vor.u32 %v807_v60, %v10545_v2  ;;  %v3267_v47 = vld [vmem:[#allocation2 + $0xac] sm:$0xf]  ;;  %v1639_v40 = vpop.permute.xlu1 %1638  ;;  %2178 = vst.msk [vmem:[#allocation3 + $0x40] sm:$0xff] %vm2169_vm4, %v2138_v49 }
 0x163   : > { %3011 = vrot.lane.b32.xlu0 %v8602_v3, %s9294_s29  ;;  %v2922_v41 = vrot.slane %v2920_v58, 4  ;;  %v10554_v53 = vsel %vm9366_vm8, %v8587_v63, %v2920_v58  ;;  %v979_v4 = vsel %vm9432_vm13, %v801_v35, %v978_v31  ;;  %v982_v5 = vld [vmem:[#allocation2 + $0xbc] sm:$0x1]  ;;  %v811_v29 = vrot.slane %v10545_v2, 4  ;;  %v3811_v59 = vld [vmem:[#allocation2 + $0xa8] sm:$0xe] }
 0x164   : > { %v2563_v38 = vor.u32 %v2562_v6, %v2558_v57  ;;  %980 = vst [vmem:[#allocation2 + $0xb4] sm:$0xf] %v979_v4  ;;  %1678 = vst.msk [vmem:[#allocation3 + $0x48] sm:$0xff] %vm1668_vm1, %v1639_v40  ;;  %v4102_v17 = vld [vmem:[#allocation3 + $0x30] sm:$0xff]  ;;  %v810_v0 = vsel %vm9442_vm14, %v802_v61, %v809_v46  ;;  %v3567_v11 = vshrl.u32 %v3266_v37, 16  ;;  %v3570_v26 = vshll.u32 %v3266_v37, 16 }
 0x165   : > { %v2227_v20 = vld [vmem:[#allocation2 + $0xb0] sm:$0x1]  ;;  %v3576_v36 = vshll.u32 %v3267_v47, 16  ;;  %v3812_v50 = vld [vmem:[#allocation2 + $0xac] sm:$0xf]  ;;  %9058 = vmatprep.mubr.msk.bf16.mxu0 %vm4132_vm9, %v4102_v17  ;;  %v2559_v12 = vsel %vm9424_vm12, %v2554_v30, %v2558_v57  ;;  %v3580_v7 = vshrl.u32 %v3267_v47, 16  ;;  %v983_v48 = vsel %vm9339_vm3, %v811_v29, %v982_v5 }
 0x166   : > { %v2772_v56 = vld [vmem:[#allocation2 + $0xb0] sm:$0x1]  ;;  %v2564_v15 = vrot.slane %v2563_v38, 4  ;;  %v2566_v32 = vshll.u32 %v2227_v20, 16  ;;  %981 = vst.msk [vmem:[#allocation2 + $0xb8] sm:$0xf] %vm231_vm0, %v810_v0  ;;  %v1963_v3 = vpop.permute.xlu1 %1962 }
 0x167   : > { %v3268_v43 = vld [vmem:[#allocation2 + $0xb0] sm:$0x1]  ;;  %v2923_v52 = vrot.slane %v2772_v56, 5  ;;  %3189 = vrot.lane.b32.xlu0 %v9172_v39, %s9293_s28  ;;  %v1179_v34 = vld [vmem:[#allocation2 + $0xa8] sm:$0xf]  ;;  %v3569_v45 = vrot.slane %v3567_v11, 4 }
 0x168   : > { %v4103_v24 = vld [vmem:[#allocation3 + $0x38] sm:$0xff]  ;;  %v2568_v25 = vrot.slane %v2566_v32, 5  ;;  %v3586_v62 = vshll.u32 %v3268_v43, 16  ;;  %v3572_v44 = vrot.slane %v3570_v26, 5  ;;  %v3578_v19 = vrot.slane %v3576_v36, 5  ;;  %2002 = vst.msk [vmem:[#allocation3 + $0x48] sm:$0xff] %vm1992_vm2, %v1963_v3 }
 0x169   : > { %9059 = vmatmul.mubr.msk.bf16.gmra.mrb[12].mxu0 %vm4132_vm9, %v4103_v24  ;;  %v2924_v28 = vsel %vm9366_vm8, %v2922_v41, %v2923_v52  ;;  %v3813_v18 = vld [vmem:[#allocation2 + $0xb0] sm:$0x1]  ;;  %v3582_v42 = vrot.slane %v3580_v7, 4  ;;  %984 = vst [vmem:[#allocation2 + $0xbc] sm:$0x1] %v983_v48  ;;  %v8650_v22 = vrot.slane %v3811_v59, 9  ;;  %v2683_v47 = vpop.permute.xlu0 %2682  ;;  %v10591_v43 = vpack.c.bf16 %v458_v23, %v458_v23 }
 0x16a   : > { %v2569_v54 = vsel %vm9424_vm12, %v2564_v15, %v2568_v25  ;;  %v3588_v51 = vrot.slane %v3586_v62, 5  ;;  %v3573_v58 = vor.u32 %v3572_v44, %v3569_v45  ;;  %v3957_v2 = vrot.slane %v3812_v50, 5  ;;  %v1180_v61 = vld [vmem:[#allocation2 + $0xac] sm:$0xf]  ;;  %v1181_v46 = vld [vmem:[#allocation2 + $0xb0] sm:$0x1] }
 0x16b   : > { %v8571_v63 = vcombine.low %v2559_v12, %v2569_v54  ;;  %v3583_v60 = vor.u32 %v3582_v42, %v3578_v19  ;;  %v3960_v14 = vrot.slane %v3813_v18, 5  ;;  %v1525_v27 = vshrl.u32 %v1179_v34, 16  ;;  %v3269_v31 = vld [vmem:[#allocation2 + $0xb4] sm:$0xf]  ;;  %2723 = vst.msk [vmem:[#allocation3 + $0x40] sm:$0xff] %vm2714_vm5, %v2683_v47  ;;  %v9184_v23 = vld [vmem:[#allocation2 + $0xa8] sm:$0xff]  }
 0x16c   : > { %v1528_v8 = vshll.u32 %v1179_v34, 16  ;;  %v8603_v57 = vcombine.low %v10554_v53, %v2924_v28  ;;  %v3574_v6 = vrot.slane %v3573_v58, 4  ;;  %v10582_v39 = vsel %vm9366_vm8, %v8650_v22, %v3957_v2  ;;  %v3814_v32 = vld [vmem:[#allocation2 + $0xb4] sm:$0xe] }
 0x16d   : > { %2692 = vrot.lane.b32.xlu1 %v8571_v63, %s9296_s5  ;;  %v3959_v35 = vrot.slane %v3957_v2, 4  ;;  %v3584_v30 = vrot.slane %v3583_v60, 4  ;;  %v3591_v38 = vshrl.u32 %v3269_v31, 16  ;;  %v3594_v41 = vshll.u32 %v3269_v31, 16  ;;  %v3270_v56 = vld [vmem:[#allocation2 + $0xb8] sm:$0xf]  ;;  %v3004_v12 = vpop.permute.xlu0 %3003  ;;  %v2140_v45 = vpop.permute.xlu1 %2139 }
 0x16e   : > { %v1527_v37 = vrot.slane %v1525_v27, 4  ;;  %v3579_v20 = vsel %vm9424_vm12, %v3574_v6, %v3578_v19  ;;  %v1530_v4 = vrot.slane %v1528_v8, 5  ;;  %v3600_v15 = vshll.u32 %v3270_v56, 16  ;;  %v9173_v52 = vld [vmem:[#allocation2 + $0xb4] sm:$0xff]   ;;  %3044 = vst.msk [vmem:[#allocation3 + $0x40] sm:$0xff] %vm12011_vm6, %v3004_v12 }
 0x16f   : > { %v3961_v53 = vsel %vm9366_vm8, %v3959_v35, %v3960_v14  ;;  %v3589_v5 = vsel %vm9424_vm12, %v3584_v30, %v3588_v51  ;;  %v3593_v40 = vrot.slane %v3591_v38, 4  ;;  %v3596_v49 = vrot.slane %v3594_v41, 5  ;;  %v3815_v0 = vld [vmem:[#allocation2 + $0xb8] sm:$0xf]  ;;  %v1182_v54 = vld [vmem:[#allocation2 + $0xb4] sm:$0xf] }
 0x170   : > { %v8634_v29 = vcombine.low %v3579_v20, %v3589_v5  ;;  %v3604_v59 = vshrl.u32 %v3270_v56, 16  ;;  %v8666_v17 = vcombine.low %v10582_v39, %v3961_v53  ;;  %v1531_v16 = vor.u32 %v1530_v4, %v1527_v37  ;;  %v3271_v11 = vld [vmem:[#allocation2 + $0xbc] sm:$0x1]  ;;  %2179 = vst.msk [vmem:[#allocation3 + $0x48] sm:$0xff] %vm2169_vm4, %v2140_v45  ;;  %v1183_v58 = vld [vmem:[#allocation2 + $0xb8] sm:$0xf] }
 0x171   : > { %3013 = vrot.lane.b32.xlu1 %v8603_v57, %s9294_s29  ;;  %v3597_v26 = vor.u32 %v3596_v49, %v3593_v40  ;;  %v3602_v36 = vrot.slane %v3600_v15, 5  ;;  %v1534_v50 = vshll.u32 %v1180_v61, 16  ;;  %v1538_v24 = vshrl.u32 %v1180_v61, 16  ;;  %v3816_v28 = vld [vmem:[#allocation2 + $0xbc] sm:$0x1]  ;;  %v9185_v22 = vld [vmem:[#allocation2 + $0xb4] sm:$0xff]  }
 0x172   : > { %3734 = vrot.lane.b32.xlu0 %v8634_v29, %s9297_s6  ;;  %v3606_v25 = vrot.slane %v3604_v59, 4  ;;  %v3610_v7 = vshll.u32 %v3271_v11, 16  ;;  %v1532_v62 = vrot.slane %v1531_v16, 4  ;;  %v1544_v34 = vshll.u32 %v1181_v46, 16  ;;  %v1184_v8 = vld [vmem:[#allocation2 + $0xbc] sm:$0x1]  ;;  %v3182_v57 = vpop.permute.xlu0 %3181 }
 0x173   : > { %vm12013_vm15 = vcmask 31744   ;;  %v3598_v44 = vrot.slane %v3597_v26, 4  ;;  %v1536_v19 = vrot.slane %v1534_v50, 5  ;;  %v1540_v18 = vrot.slane %v1538_v24, 4  ;;  %v1727_v61 = vld [vmem:[#allocation2 + $0xa8] sm:$0xe] }
 0x174   : > { %1135 = vst.msk [vmem:[#allocation3 + $0x70] sm:$0xff] %vm12013_vm15, %v9184_v23  ;;  %v8651_v3 = vrot.slane %v3814_v32, 9  ;;  %v3607_v42 = vor.u32 %v3606_v25, %v3602_v36  ;;  %v3612_v51 = vrot.slane %v3610_v7, 5  ;;  %v1546_v48 = vrot.slane %v1544_v34, 5  ;;  %v1728_v30 = vld [vmem:[#allocation2 + $0xac] sm:$0xf] }
 0x175   : > { %3191 = vrot.lane.b32.xlu1 %v9173_v52, %s9293_s28  ;;  %v3964_v63 = vrot.slane %v3815_v0, 5  ;;  %v3603_v2 = vsel %vm9424_vm12, %v3598_v44, %v3602_v36  ;;  %v1537_v60 = vsel %vm9424_vm12, %v1532_v62, %v1536_v19  ;;  %v1541_v14 = vor.u32 %v1540_v18, %v1536_v19  ;;  %1136 = vst.msk [vmem:[#allocation3 + $0x78] sm:$0xff] %vm12013_vm15, %v9185_v22  ;;  %v1729_v4 = vld [vmem:[#allocation2 + $0xb0] sm:$0x1]  ;;  %v1730_v5 = vld [vmem:[#allocation2 + $0xb4] sm:$0xe] }
 0x176   : > { %v3967_v27 = vrot.slane %v3816_v28, 5  ;;  %v3608_v6 = vrot.slane %v3607_v42, 4  ;;  %4055 = vrot.lane.b32.xlu0 %v8666_v17, %s9295_s30  ;;  %v1549_v35 = vshrl.u32 %v1182_v54, 16  ;;  %vm12014_vm6 = vcmask 228544   ;;  %v1731_v52 = vld [vmem:[#allocation2 + $0xb8] sm:$0xf] }
 0x177   : > { %v3965_v31 = vsel %vm9366_vm8, %v8651_v3, %v3964_v63  ;;  %v3966_v39 = vrot.slane %v3964_v63, 4  ;;  %3222 = vst.msk [vmem:[#allocation3 + $0x40] sm:$0xff] %vm12014_vm6, %v3182_v57  ;;  %v1542_v38 = vrot.slane %v1541_v14, 4  ;;  %v1552_v41 = vshll.u32 %v1182_v54, 16  ;;  %v1732_v29 = vld [vmem:[#allocation2 + $0xbc] sm:$0x1] }
 0x178   : > { %v1558_v46 = vshll.u32 %v1183_v58, 16  ;;  %v1562_v37 = vshrl.u32 %v1183_v58, 16  ;;  %v3613_v47 = vsel %vm9424_vm12, %v3608_v6, %v3612_v51  ;;  %v1551_v56 = vrot.slane %v1549_v35, 4  ;;  %v347_v54 = vld [vmem:[#allocation2 + $0xc8] sm:$0x1] }
 0x179   : > { %v3968_v20 = vsel %vm9366_vm8, %v3966_v39, %v3967_v27  ;;  %v1568_v53 = vshll.u32 %v1184_v8, 16  ;;  %v8635_v40 = vcombine.low %v3603_v2, %v3613_v47  ;;  %v1547_v49 = vsel %vm9424_vm12, %v1542_v38, %v1546_v48  ;;  %v2228_v58 = vld [vmem:[#allocation2 + $0xb4] sm:$0xf]  ;;  %v2229_v22 = vld [vmem:[#allocation2 + $0xb8] sm:$0xf] }
 0x17a   : > { %v8667_v15 = vcombine.low %v3965_v31, %v3968_v20  ;;  %v1554_v32 = vrot.slane %v1552_v41, 5  ;;  %v8508_v59 = vcombine.low %v1537_v60, %v1547_v49  ;;  %v1560_v17 = vrot.slane %v1558_v46, 5  ;;  %v985_v27 = vld [vmem:[#allocation2 + $0xc0] sm:$0xf]  ;;  %v2230_v8 = vld [vmem:[#allocation2 + $0xbc] sm:$0x1] }
 0x17b   : > { %v1564_v16 = vrot.slane %v1562_v37, 4  ;;  %v1570_v0 = vrot.slane %v1568_v53, 5  ;;  %3736 = vrot.lane.b32.xlu1 %v8635_v40, %s9297_s6  ;;  %v8524_v11 = vrot.slane %v1727_v61, 9  ;;  %v1884_v26 = vrot.slane %v1728_v30, 5  ;;  %v9174_v39 = vld [vmem:[#allocation2 + $0xb4] sm:$0xff]  }
 0x17c   : > { %4057 = vrot.lane.b32.xlu0 %v8667_v15, %s9295_s30  ;;  %v1555_v23 = vor.u32 %v1554_v32, %v1551_v56  ;;  %v1887_v36 = vrot.slane %v1729_v4, 5  ;;  %v8525_v24 = vrot.slane %v1730_v5, 9  ;;  %v1891_v12 = vrot.slane %v1731_v52, 5  ;;  %v2685_v7 = vpop.permute.xlu1 %2684  ;;  %v2773_v37 = vld [vmem:[#allocation2 + $0xb4] sm:$0xe] }
 0x17d   : > { %v1565_v50 = vor.u32 %v1564_v16, %v1560_v17  ;;  %v1894_v25 = vrot.slane %v1732_v29, 5  ;;  %v1885_v34 = vsel %vm9366_vm8, %v8524_v11, %v1884_v26  ;;  %v1886_v28 = vrot.slane %v1884_v26, 4  ;;  %2724 = vst.msk [vmem:[#allocation3 + $0x48] sm:$0xff] %vm2714_vm5, %v2685_v7  ;;  %v294_v47 = vld [vmem:[#allocation2 + $0xcc] sm:$0x1] }
 0x17e   : > { %v1556_v62 = vrot.slane %v1555_v23, 4  ;;  %v813_v45 = vshrl.u32 %v10558_v55, 16  ;;  %v1892_v19 = vsel %vm9366_vm8, %v8525_v24, %v1891_v12  ;;  %v1893_v18 = vrot.slane %v1891_v12, 4  ;;  %v2774_v4 = vld [vmem:[#allocation2 + $0xb8] sm:$0xf] }
 0x17f   : > { %v1566_v44 = vrot.slane %v1565_v50, 4  ;;  %v816_v3 = vshll.u32 %v10558_v55, 16  ;;  %1648 = vrot.lane.b32.xlu1 %v8508_v59, %s9291_s26  ;;  %v1888_v51 = vsel %vm9366_vm8, %v1886_v28, %v1887_v36  ;;  %v821_v63 = vshrl.u32 %v10591_v43, 16  ;;  %v2775_v15 = vld [vmem:[#allocation2 + $0xbc] sm:$0x1] }
 0x180   : > { %v1561_v42 = vsel %vm9424_vm12, %v1556_v62, %v1560_v17  ;;  %v815_v48 = vrot.slane %v813_v45, 7  ;;  %v8540_v60 = vcombine.low %v1885_v34, %v1888_v51  ;;  %v1895_v55 = vsel %vm9366_vm8, %v1893_v18, %v1894_v25  ;;  %v3006_v57 = vpop.permute.xlu1 %3005  ;;  %v350_v32 = vld [vmem:[#allocation2 + $0xd4] sm:$0x1]  ;;  %v3276_v36 = vld [vmem:[#allocation2 + $0xd0] sm:$0xf] }
 0x181   : > { %v1571_v2 = vsel %vm9424_vm12, %v1566_v44, %v1570_v0  ;;  %v824_v14 = vshll.u32 %v10591_v43, 16  ;;  %v8541_v31 = vcombine.low %v1892_v19, %v1895_v55  ;;  %vm12015_vm6 = vcmask 195744  }
 0x182   : > { %v8509_v6 = vcombine.low %v1561_v42, %v1571_v2  ;;  %v818_v35 = vor.u32 %v816_v3, %v815_v48  ;;  %v819_v61 = vrot.slane %v815_v48, 4  ;;  %3045 = vst.msk [vmem:[#allocation3 + $0x48] sm:$0xff] %vm12015_vm6, %v3006_v57  ;;  %1972 = vrot.lane.b32.xlu0 %v8540_v60, %s9290_s25  ;;  %v823_v30 = vrot.slane %v821_v63, 7 }
 0x183   : > { %v2571_v38 = vshrl.u32 %v2228_v58, 16  ;;  %v2574_v41 = vshll.u32 %v2228_v58, 16  ;;  %v2580_v46 = vshll.u32 %v2229_v22, 16  ;;  %v2584_v20 = vshrl.u32 %v2229_v22, 16  ;;  %v3727_v29 = vpop.permute.xlu0 %3726  ;;  %v10667_v22 = vld [vmem:[#allocation2 + $0xd0] sm:$0xf] }
 0x184   : > { %1650 = vrot.lane.b32.xlu1 %v8509_v6, %s9291_s26  ;;  %v986_v43 = vsel %vm9432_vm13, %v818_v35, %v985_v27  ;;  %v2590_v56 = vshll.u32 %v2230_v8, 16  ;;  %v348_v53 = vsel %vm9356_vm7, 0, %v347_v54  ;;  %v826_v5 = vor.u32 %v824_v14, %v823_v30  ;;  %v3184_v52 = vpop.permute.xlu1 %3183  ;;  %3767 = vst.msk [vmem:[#allocation3 + $0x40] sm:$0xff] %vm3758_vm10, %v3727_v29 }
 0x185   : > { %987 = vst [vmem:[#allocation2 + $0xc0] sm:$0xf] %v986_v43  ;;  %v2573_v40 = vrot.slane %v2571_v38, 4  ;;  %v2576_v49 = vrot.slane %v2574_v41, 5  ;;  %349 = vst [vmem:[#allocation2 + $0xc8] sm:$0x1] %v348_v53 }
 0x186   : > { %v2582_v59 = vrot.slane %v2580_v46, 5  ;;  %v2586_v17 = vrot.slane %v2584_v20, 4  ;;  %v2592_v16 = vrot.slane %v2590_v56, 5  ;;  %vm12016_vm15 = vcmask 228544   ;;  %2149 = vrot.lane.b32.xlu0 %v9174_v39, %s9292_s27 }
 0x187   : > { %3223 = vst.msk [vmem:[#allocation3 + $0x48] sm:$0xff] %vm12016_vm15, %v3184_v52  ;;  %v827_v0 = vsel %vm9442_vm14, %v819_v61, %v826_v5  ;;  %v2577_v23 = vor.u32 %v2576_v49, %v2573_v40  ;;  %v8588_v11 = vrot.slane %v2773_v37, 9  ;;  %v2927_v26 = vrot.slane %v2774_v4, 5  ;;  %v4048_v28 = vpop.permute.xlu0 %4047 }
 0x188   : > { %1974 = vrot.lane.b32.xlu1 %v8541_v31, %s9290_s25  ;;  %988 = vst.msk [vmem:[#allocation2 + $0xc4] sm:$0xf] %vm231_vm0, %v827_v0  ;;  %v2587_v50 = vor.u32 %v2586_v17, %v2582_v59  ;;  %v2930_v24 = vrot.slane %v2775_v15, 5  ;;  %v295_v12 = vsel %vm9339_vm3, 0, %v294_v47  ;;  %v351_v25 = vsel %vm9356_vm7, 0, %v350_v32  ;;  %vm12017_vm7 = vmmov %vm12015_vm6 }
 0x189   : > { %v828_v7 = vrot.slane %v823_v30, 4  ;;  %v2578_v62 = vrot.slane %v2577_v23, 4  ;;  %v2929_v34 = vrot.slane %v2927_v26, 4  ;;  %296 = vst [vmem:[#allocation2 + $0xcc] sm:$0x1] %v295_v12  ;;  %v3648_v44 = vshll.u32 %v3276_v36, 16  ;;  %vm12018_vm6 = vmmov %vm12016_vm15 }
 0x18a   : > { %352 = vst [vmem:[#allocation2 + $0xd4] sm:$0x1] %v351_v25  ;;  %v2588_v45 = vrot.slane %v2587_v50, 4  ;;  %4088 = vst.msk [vmem:[#allocation3 + $0x40] sm:$0xff] %vm4079_vm11, %v4048_v28  ;;  %v2928_v9 = vsel %vm9366_vm8, %v8588_v11, %v2927_v26  ;;  %v3652_v14 = vshrl.u32 %v3276_v36, 16  ;;  %v3978_v41 = vrot.slane %v10667_v22, 5 }
 0x18b   : > { %v2583_v19 = vsel %vm9424_vm12, %v2578_v62, %v2582_v59  ;;  %v2931_v42 = vsel %vm9366_vm8, %v2929_v34, %v2930_v24  ;;  %v10669_v55 = vrot.slane %v3648_v44, 5  ;;  %vm12019_vm15 = vmmov %vm12017_vm7 }
 0x18c   : > { %v2593_v18 = vsel %vm9424_vm12, %v2588_v45, %v2592_v16  ;;  %v989_v3 = vld [vmem:[#allocation2 + $0xc8] sm:$0x1]  ;;  %v2231_v54 = vld [vmem:[#allocation2 + $0xc0] sm:$0xf]  ;;  %v8604_v6 = vcombine.low %v2928_v9, %v2931_v42  ;;  %v3654_v32 = vrot.slane %v3652_v14, 4 }
 0x18d   : > { %v8572_v51 = vcombine.low %v2583_v19, %v2593_v18  ;;  %v990_v48 = vsel %vm9339_vm3, %v828_v7, %v989_v3  ;;  %v2595_v63 = vshrl.u32 %v2231_v54, 16  ;;  %v2598_v58 = vshll.u32 %v2231_v54, 16  ;;  %v2776_v2 = vld [vmem:[#allocation2 + $0xc0] sm:$0xe]  ;;  %v4050_v39 = vpop.permute.xlu0 %4049 }
 0x18e   : > { %991 = vst [vmem:[#allocation2 + $0xc8] sm:$0x1] %v990_v48  ;;  %v3272_v60 = vld [vmem:[#allocation2 + $0xc0] sm:$0xf]  ;;  %v3729_v31 = vpop.permute.xlu1 %3728  ;;  %v8589_v46 = vrot.slane %v2776_v2, 9 }
 0x18f   : > { %v9175_v27 = vld [vmem:[#allocation2 + $0xc0] sm:$0xff]   ;;  %2694 = vrot.lane.b32.xlu0 %v8572_v51, %s9296_s5  ;;  %v2597_v57 = vrot.slane %v2595_v63, 4  ;;  %v2600_v35 = vrot.slane %v2598_v58, 5  ;;  %3768 = vst.msk [vmem:[#allocation3 + $0x48] sm:$0xff] %vm3758_vm10, %v3729_v31  ;;  %v3615_v53 = vshrl.u32 %v3272_v60, 16  ;;  %v3618_v49 = vshll.u32 %v3272_v60, 16 }
 0x190   : > { %v2232_v8 = vld [vmem:[#allocation2 + $0xc4] sm:$0xf]  ;;  %2151 = vrot.lane.b32.xlu1 %v9175_v27, %s9292_s27  ;;  %4089 = vst.msk [vmem:[#allocation3 + $0x48] sm:$0xff] %vm4079_vm11, %v4050_v39  ;;  %v3275_v0 = vld [vmem:[#allocation2 + $0xcc] sm:$0xf]  ;;  %v3655_v60 = vor.u32 %v3654_v32, %v10669_v55 }
 0x191   : > { %v2604_v61 = vshll.u32 %v2232_v8, 16  ;;  %v2608_v30 = vshrl.u32 %v2232_v8, 16  ;;  %v2777_v38 = vld [vmem:[#allocation2 + $0xc4] sm:$0xf]  ;;  %v2601_v47 = vor.u32 %v2600_v35, %v2597_v57  ;;  %v4104_v4 = vld [vmem:[#allocation3 + $0x40] sm:$0xff]  ;;  %v3617_v17 = vrot.slane %v3615_v53, 4 }
 0x192   : > { %v2934_v37 = vrot.slane %v2777_v38, 5  ;;  %v3273_v56 = vld [vmem:[#allocation2 + $0xc4] sm:$0xf]  ;;  %v1641_v52 = vpop.permute.xlu1 %1640  ;;  %9062 = vmatprep.mubr.msk.bf16.mxu0 %vm4132_vm9, %v4104_v4  ;;  %v3620_v62 = vrot.slane %v3618_v49, 5  ;;  %v3277_v44 = vld [vmem:[#allocation2 + $0xd4] sm:$0x1] }
 0x193   : > { %v2606_v43 = vrot.slane %v2604_v61, 5  ;;  %v2610_v20 = vrot.slane %v2608_v30, 4  ;;  %3015 = vrot.lane.b32.xlu0 %v8604_v6, %s9294_s29  ;;  %v9178_v40 = vld [vmem:[#allocation2 + $0xc0] sm:$0xff]   ;;  %v3624_v15 = vshll.u32 %v3273_v56, 16  ;;  %v2602_v29 = vrot.slane %v2601_v47, 4  ;;  %1679 = vst.msk [vmem:[#allocation3 + $0x50] sm:$0xff] %vm1668_vm1, %v1641_v52  ;;  %v1965_v50 = vpop.permute.xlu0 %1964 }
 0x194   : > { %v2936_v5 = vrot.slane %v2934_v37, 4  ;;  %v3628_v16 = vshrl.u32 %v3273_v56, 16  ;;  %v2935_v26 = vsel %vm9366_vm8, %v8589_v46, %v2934_v37  ;;  %2003 = vst.msk [vmem:[#allocation3 + $0x50] sm:$0xff] %vm1992_vm2, %v1965_v50  ;;  %v3817_v19 = vld [vmem:[#allocation2 + $0xc0] sm:$0xe]  ;;  %v3639_v9 = vshrl.u32 %v3275_v0, 16 }
 0x195   : > { %v2611_v59 = vor.u32 %v2610_v20, %v2606_v43  ;;  %v2233_v23 = vld [vmem:[#allocation2 + $0xc8] sm:$0x1]  ;;  %v2607_v24 = vsel %vm9424_vm12, %v2602_v29, %v2606_v43  ;;  %v3626_v34 = vrot.slane %v3624_v15, 5  ;;  %v3642_v42 = vshll.u32 %v3275_v0, 16  ;;  %v3818_v51 = vld [vmem:[#allocation2 + $0xc4] sm:$0xf] }
 0x196   : > { %v2778_v11 = vld [vmem:[#allocation2 + $0xc8] sm:$0x1]  ;;  %v2614_v25 = vshll.u32 %v2233_v23, 16  ;;  %v3630_v28 = vrot.slane %v3628_v16, 4  ;;  %v1643_v18 = vpop.permute.xlu1 %1642  ;;  %v3621_v63 = vor.u32 %v3620_v62, %v3617_v17  ;;  %v3641_v6 = vrot.slane %v3639_v9, 4 }
 0x197   : > { %v3274_v36 = vld [vmem:[#allocation2 + $0xc8] sm:$0x1]  ;;  %v2612_v12 = vrot.slane %v2611_v59, 4  ;;  %v2937_v7 = vrot.slane %v2778_v11, 5  ;;  %3193 = vrot.lane.b32.xlu0 %v9178_v40, %s9293_s28  ;;  %1680 = vst.msk [vmem:[#allocation3 + $0x58] sm:$0xff] %vm1668_vm1, %v1643_v18  ;;  %v4105_v48 = vld [vmem:[#allocation3 + $0x48] sm:$0xff]  ;;  %v2142_v27 = vpop.permute.xlu0 %2141 }
 0x198   : > { %v3634_v45 = vshll.u32 %v3274_v36, 16  ;;  %v2616_v3 = vrot.slane %v2614_v25, 5  ;;  %v3631_v58 = vor.u32 %v3630_v28, %v3626_v34  ;;  %v3819_v14 = vld [vmem:[#allocation2 + $0xc8] sm:$0x1]  ;;  %9063 = vmatmul.mubr.msk.bf16.gmra.mrb[16].mxu0 %vm4132_vm9, %v4105_v48  ;;  %v3644_v31 = vrot.slane %v3642_v42, 5  ;;  %2180 = vst.msk [vmem:[#allocation3 + $0x50] sm:$0xff] %vm2169_vm4, %v2142_v27 }
 0x199   : > { %v2938_v54 = vsel %vm9366_vm8, %v2936_v5, %v2937_v7  ;;  %v3622_v35 = vrot.slane %v3621_v63, 4  ;;  %v3658_v30 = vshll.u32 %v3277_v44, 16  ;;  %v8652_v37 = vrot.slane %v3817_v19, 9  ;;  %v3820_v32 = vld [vmem:[#allocation2 + $0xcc] sm:$0xe] }
 0x19a   : > { %v3636_v2 = vrot.slane %v3634_v45, 5  ;;  %v2617_v8 = vsel %vm9424_vm12, %v2612_v12, %v2616_v3  ;;  %v8605_v57 = vcombine.low %v2935_v26, %v2938_v54  ;;  %v3632_v61 = vrot.slane %v3631_v58, 4  ;;  %v1967_v38 = vpop.permute.xlu1 %1966  ;;  %v3822_v52 = vld [vmem:[#allocation2 + $0xd4] sm:$0x1]  ;;  %v9179_v59 = vld [vmem:[#allocation2 + $0xcc] sm:$0xff]  }
 0x19b   : > { %v8573_v39 = vcombine.low %v2607_v24, %v2617_v8  ;;  %v3645_v46 = vor.u32 %v3644_v31, %v3641_v6  ;;  %v3971_v47 = vrot.slane %v3818_v51, 5  ;;  %v3974_v43 = vrot.slane %v3819_v14, 5  ;;  %2004 = vst.msk [vmem:[#allocation3 + $0x58] sm:$0xff] %vm1992_vm2, %v1967_v38  ;;  %v5125_v28 = vld [vmem:[#allocation2 + $0x4] sm:$0xf] }
 0x19c   : > { %v3627_v20 = vsel %vm9424_vm12, %v3622_v35, %v3626_v34  ;;  %v3637_v56 = vsel %vm9424_vm12, %v3632_v61, %v3636_v2  ;;  %v3656_v53 = vrot.slane %v3655_v60, 4  ;;  %v3660_v4 = vrot.slane %v3658_v30, 5  ;;  %v5124_v34 = vld [vmem:[#allocation2] sm:$0xf]  ;;  %v5126_v45 = vld [vmem:[#allocation2 + $0x8] sm:$0x1] }
 0x19d   : > { %2696 = vrot.lane.b32.xlu1 %v8573_v39, %s9296_s5  ;;  %v8636_v5 = vcombine.low %v3627_v20, %v3637_v56  ;;  %v3646_v40 = vrot.slane %v3645_v46, 4  ;;  %v3972_v49 = vsel %vm9366_vm8, %v8652_v37, %v3971_v47  ;;  %v3973_v15 = vrot.slane %v3971_v47, 4  ;;  %v5669_v48 = vld [vmem:[#allocation2 + $0x4] sm:$0xf]  ;;  %v5670_v58 = vld [vmem:[#allocation2 + $0x8] sm:$0x1] }
 0x19e   : > { %v8653_v16 = vrot.slane %v3820_v32, 9  ;;  %v3661_v11 = vsel %vm9424_vm12, %v3656_v53, %v3660_v4  ;;  %v3980_v26 = vrot.slane %v3978_v41, 4  ;;  %v3981_v36 = vrot.slane %v3822_v52, 5 }
 0x19f   : > { %3738 = vrot.lane.b32.xlu0 %v8636_v5, %s9297_s6  ;;  %v3975_v29 = vsel %vm9366_vm8, %v3973_v15, %v3974_v43  ;;  %v3651_v23 = vsel %vm9424_vm12, %v3646_v40, %v10669_v55  ;;  %v5173_v44 = vshrl.u32 %v5124_v34, 16  ;;  %v5176_v19 = vshll.u32 %v5124_v34, 16 }
 0x1a0   : > { %v8668_v17 = vcombine.low %v3972_v49, %v3975_v29  ;;  %v2687_v0 = vpop.permute.xlu0 %2686  ;;  %v8637_v24 = vcombine.low %v3651_v23, %v3661_v11  ;;  %v3979_v55 = vsel %vm9366_vm8, %v8653_v16, %v3978_v41  ;;  %v3982_v25 = vsel %vm9366_vm8, %v3980_v26, %v3981_v36  ;;  %v5668_v41 = vld [vmem:[#allocation2] sm:$0xe] }
 0x1a1   : > { %3017 = vrot.lane.b32.xlu1 %v8605_v57, %s9294_s29  ;;  %2725 = vst.msk [vmem:[#allocation3 + $0x50] sm:$0xff] %vm2714_vm5, %v2687_v0  ;;  %v2144_v50 = vpop.permute.xlu1 %2143  ;;  %v8669_v7 = vcombine.low %v3979_v55, %v3982_v25  ;;  %v5182_v22 = vshll.u32 %v5125_v28, 16  ;;  %v5186_v18 = vshrl.u32 %v5125_v28, 16  ;;  %v5192_v3 = vshll.u32 %v5126_v45, 16  ;;  %v10757_v23 = vld [vmem:[%s11986_s3 + $0x2] ss:$0 sm:$0xff] }
 0x1a2   : > { %2181 = vst.msk [vmem:[#allocation3 + $0x58] sm:$0xff] %vm2169_vm4, %v2144_v50  ;;  %v5175_v54 = vrot.slane %v5173_v44, 4  ;;  %v5178_v9 = vrot.slane %v5176_v19, 5  ;;  %v5766_v2 = vrot.slane %v5669_v48, 5  ;;  %v8755_v27 = vrot.slane %v5668_v41, 9 }
 0x1a3   : > { %4059 = vrot.lane.b32.xlu0 %v8668_v17, %s9295_s30  ;;  %v5184_v42 = vrot.slane %v5182_v22, 5  ;;  %v5188_v51 = vrot.slane %v5186_v18, 4  ;;  %v5194_v63 = vrot.slane %v5192_v3, 5  ;;  %v5769_v8 = vrot.slane %v5670_v58, 5  ;;  %v10762_v26 = vld [vmem:[%s11986_s3 + $0x3] ss:$0 sm:$0xff] }
 0x1a4   : > { %v3008_v12 = vpop.permute.xlu0 %3007  ;;  %v5179_v60 = vor.u32 %v5178_v9, %v5175_v54  ;;  %v5768_v6 = vrot.slane %v5766_v2, 4  ;;  %v5767_v30 = vsel %vm9366_vm8, %v8755_v27, %v5766_v2 }
 0x1a5   : > { %3195 = vrot.lane.b32.xlu1 %v9179_v59, %s9293_s28  ;;  %3046 = vst.msk [vmem:[#allocation3 + $0x50] sm:$0xff] %vm12017_vm7, %v3008_v12  ;;  %v5189_v14 = vor.u32 %v5188_v51, %v5184_v42  ;;  %vm12020_vm7 = vmmov %vm12018_vm6 }
 0x1a6   : > { %v5180_v31 = vrot.slane %v5179_v60, 4  ;;  %v5770_v38 = vsel %vm9366_vm8, %v5768_v6, %v5769_v8 }
 0x1a7   : > { %v5190_v39 = vrot.slane %v5189_v14, 4  ;;  %v8771_v43 = vcombine.low %v5767_v30, %v5770_v38 }
 0x1a8   : > { %v3186_v62 = vpop.permute.xlu0 %3185  ;;  %v5185_v35 = vsel %vm9424_vm12, %v5180_v31, %v5184_v42 }
 0x1a9   : > { %3740 = vrot.lane.b32.xlu1 %v8637_v24, %s9297_s6  ;;  %3224 = vst.msk [vmem:[#allocation3 + $0x50] sm:$0xff] %vm12018_vm6, %v3186_v62  ;;  %v5195_v61 = vsel %vm9424_vm12, %v5190_v39, %v5194_v63  ;;  %vm12021_vm6 = vmmov %vm12019_vm15 }
 0x1aa   : > { %v8739_v37 = vcombine.low %v5185_v35, %v5195_v61 }
 0x1ac   : > { %5604 = vrot.lane.b32.xlu0 %v8739_v37, %s9291_s26 }
 0x1ad   : > { %4061 = vrot.lane.b32.xlu1 %v8669_v7, %s9295_s30 }
 0x1af   : > { %v2689_v57 = vpop.permute.xlu1 %2688 }
 0x1b0   : > { %2726 = vst.msk [vmem:[#allocation3 + $0x58] sm:$0xff] %vm2714_vm5, %v2689_v57  ;;  %5924 = vrot.lane.b32.xlu0 %v8771_v43, %s9290_s25 }
 0x1b3   : > { %v3010_v46 = vpop.permute.xlu1 %3009 }
 0x1b4   : > { %3047 = vst.msk [vmem:[#allocation3 + $0x58] sm:$0xff] %vm12019_vm15, %v3010_v46  ;;  %v3731_v47 = vpop.permute.xlu0 %3730  ;;  %vm12022_vm15 = vmmov %vm12020_vm7  ;;  %v4875_v46 = vld [vmem:[#allocation2 + $0x18] sm:$0xf] }
 0x1b5   : > { %3769 = vst.msk [vmem:[#allocation3 + $0x50] sm:$0xff] %vm3758_vm10, %v3731_v47 }
 0x1b7   : > { %v3188_v20 = vpop.permute.xlu1 %3187 }
 0x1b8   : > { %3225 = vst.msk [vmem:[#allocation3 + $0x58] sm:$0xff] %vm12020_vm7, %v3188_v20  ;;  %v4052_v56 = vpop.permute.xlu0 %4051  ;;  %vm12023_vm7 = vmmov %vm12021_vm6 }
 0x1b9   : > { %4090 = vst.msk [vmem:[#allocation3 + $0x50] sm:$0xff] %vm4079_vm11, %v4052_v56 }
 0x1bd   : > { %v3733_v53 = vpop.permute.xlu1 %3732  ;;  %v4054_v4 = vpop.permute.xlu0 %4053 }
 0x1be   : > { %3770 = vst.msk [vmem:[#allocation3 + $0x58] sm:$0xff] %vm3758_vm10, %v3733_v53 }
 0x1bf   : > { %4091 = vst.msk [vmem:[#allocation3 + $0x58] sm:$0xff] %vm4079_vm11, %v4054_v4 }
 0x1c0   : > { %v4106_v5 = vld [vmem:[#allocation3 + $0x50] sm:$0xff] }
 0x1c1   : > { %v1645_v40 = vpop.permute.xlu1 %1644  ;;  %9066 = vmatprep.mubr.msk.bf16.mxu0 %vm4132_vm9, %v4106_v5  ;;  %v4868_v5 = vld [vmem:[#allocation2 + $0xc] sm:$0xf] }
 0x1c2   : > { %1681 = vst.msk [vmem:[#allocation3 + $0x60] sm:$0xff] %vm1668_vm1, %v1645_v40 }
 0x1c4   : > { %v1969_v49 = vpop.permute.xlu0 %1968 }
 0x1c5   : > { %v1647_v15 = vpop.permute.xlu1 %1646  ;;  %2005 = vst.msk [vmem:[#allocation3 + $0x60] sm:$0xff] %vm1992_vm2, %v1969_v49 }
 0x1c6   : > { %1682 = vst.msk [vmem:[#allocation3 + $0x68] sm:$0xff] %vm1668_vm1, %v1647_v15  ;;  %v4107_v32 = vld [vmem:[#allocation3 + $0x58] sm:$0xff] }
 0x1c7   : > { %9067 = vmatmul.mubr.msk.bf16.gmra.mrb[20].mxu0 %vm4132_vm9, %v4107_v32 }
 0x1c8   : > { %v2146_v52 = vpop.permute.xlu0 %2145 }
 0x1c9   : > { %v1971_v29 = vpop.permute.xlu1 %1970  ;;  %2182 = vst.msk [vmem:[#allocation3 + $0x60] sm:$0xff] %vm2169_vm4, %v2146_v52  ;;  %v4879_v52 = vld [vmem:[#allocation2 + $0x20] sm:$0x1] }
 0x1ca   : > { %2006 = vst.msk [vmem:[#allocation3 + $0x68] sm:$0xff] %vm1992_vm2, %v1971_v29 }
 0x1d1   : > { %v2691_v59 = vpop.permute.xlu0 %2690  ;;  %v2148_v17 = vpop.permute.xlu1 %2147 }
 0x1d2   : > { %2727 = vst.msk [vmem:[#allocation3 + $0x60] sm:$0xff] %vm2714_vm5, %v2691_v59 }
 0x1d3   : > { %2183 = vst.msk [vmem:[#allocation3 + $0x68] sm:$0xff] %vm2169_vm4, %v2148_v17 }
 0x1d5   : > { %v3012_v16 = vpop.permute.xlu0 %3011 }
 0x1d6   : > { %3048 = vst.msk [vmem:[#allocation3 + $0x60] sm:$0xff] %vm12021_vm6, %v3012_v16  ;;  %vm12024_vm6 = vmmov %vm12022_vm15 }
 0x1d9   : > { %v3190_v0 = vpop.permute.xlu0 %3189 }
 0x1da   : > { %3226 = vst.msk [vmem:[#allocation3 + $0x60] sm:$0xff] %vm12022_vm15, %v3190_v0  ;;  %vm12025_vm15 = vcmask 31744  }
 0x1db   : > { %v9048_v11 = vpop.f32.mrb[0].mxu0 }
 0x1dc   : > { %v4353_v36 = vmul.f32 %v9048_v11, %v10757_v23  ;;  %v4219_v50 = vpop.f32.mrb[1].mxu0  ;;  %v4872_v11 = vld [vmem:[#allocation2 + $0x14] sm:$0x1] }
 0x1dd   : > { %v4351_v24 = vmul.f32 %v10757_v23, %v4219_v50  ;;  %v9049_v12 = vpop.f32.mrb[2].mxu0 }
 0x1de   : > { %v4390_v25 = vadd.f32 %v10762_v26, %v4353_v36  ;;  %v4354_v7 = vmul.f32 %v9049_v12, %v10757_v23  ;;  %v4222_v62 = vpop.f32.mrb[3].mxu0 }
 0x1df   : > { %v2693_v55 = vpop.permute.xlu1 %2692  ;;  %v4388_v34 = vadd.f32 %v10762_v26, %v4351_v24  ;;  %v4352_v28 = vmul.f32 %v10757_v23, %v4222_v62 }
 0x1e0   : > { %2728 = vst.msk [vmem:[#allocation3 + $0x68] sm:$0xff] %vm2714_vm5, %v2693_v55  ;;  %v4422_v45 = vmax.f32 %v4390_v25, 0.0  ;;  %v4391_v44 = vadd.f32 %v10762_v26, %v4354_v7 }
 0x1e1   : > { %v4420_v19 = vmax.f32 %v4388_v34, 0.0  ;;  %v4389_v22 = vadd.f32 %v10762_v26, %v4352_v28 }
 0x1e2   : > { %v8972_v3 = vpack.c.bf16 %v4422_v45, %v4422_v45  ;;  %v4423_v41 = vmax.f32 %v4391_v44, 0.0 }
 0x1e3   : > { %v3014_v18 = vpop.permute.xlu1 %3013  ;;  %v8970_v54 = vpack.c.bf16 %v4420_v19, %v4420_v19  ;;  %v4421_v9 = vmax.f32 %v4389_v22, 0.0  ;;  %v9052_v42 = vpop.f32.mrb[4].mxu0 }
 0x1e4   : > { %3049 = vst.msk [vmem:[#allocation3 + $0x68] sm:$0xff] %vm12023_vm7, %v3014_v18  ;;  %v3735_v51 = vpop.permute.xlu0 %3734  ;;  %v4566_v48 = vshrl.u32 %v8972_v3, 16  ;;  %v4569_v63 = vshll.u32 %v8972_v3, 16  ;;  %v8973_v58 = vpack.c.bf16 %v4423_v41, %v4423_v41  ;;  %v4357_v2 = vmul.f32 %v9052_v42, %v10757_v23  ;;  %v4235_v60 = vpop.f32.mrb[5].mxu0  ;;  %vm12026_vm7 = vmmov %vm12025_vm15 }
 0x1e5   : > { %3771 = vst.msk [vmem:[#allocation3 + $0x60] sm:$0xff] %vm3758_vm10, %v3735_v51  ;;  %v4549_v14 = vshrl.u32 %v8970_v54, 16  ;;  %v4552_v27 = vshll.u32 %v8970_v54, 16  ;;  %v8971_v8 = vpack.c.bf16 %v4421_v9, %v4421_v9  ;;  %v4355_v57 = vmul.f32 %v10757_v23, %v4235_v60  ;;  %v9053_v6 = vpop.f32.mrb[6].mxu0  ;;  %v4889_v54 = vld [vmem:[#allocation2 + $0x30] sm:$0xf] }
 0x1e6   : > { %v4568_v39 = vrot.slane %v4566_v48, 7  ;;  %v4574_v35 = vshrl.u32 %v8973_v58, 16  ;;  %v4577_v61 = vshll.u32 %v8973_v58, 16  ;;  %v4394_v30 = vadd.f32 %v10762_v26, %v4357_v2  ;;  %v4238_v38 = vpop.f32.mrb[7].mxu0 }
 0x1e7   : > { %v3192_v31 = vpop.permute.xlu1 %3191  ;;  %v4551_v37 = vrot.slane %v4549_v14, 7  ;;  %v4557_v47 = vshrl.u32 %v8971_v8, 16  ;;  %v4560_v43 = vshll.u32 %v8971_v8, 16  ;;  %v4392_v20 = vadd.f32 %v10762_v26, %v4355_v57 }
 0x1e8   : > { %3227 = vst.msk [vmem:[#allocation3 + $0x68] sm:$0xff] %vm12024_vm6, %v3192_v31  ;;  %v4056_v56 = vpop.permute.xlu0 %4055  ;;  %v4571_v53 = vor.u32 %v4569_v63, %v4568_v39  ;;  %v4572_v4 = vrot.slane %v4568_v39, 4  ;;  %v4576_v40 = vrot.slane %v4574_v35, 7  ;;  %v4426_v49 = vmax.f32 %v4394_v30, 0.0  ;;  %v4882_v63 = vld [vmem:[#allocation2 + $0x24] sm:$0xf] }
 0x1e9   : > { %4092 = vst.msk [vmem:[#allocation3 + $0x60] sm:$0xff] %vm4079_vm11, %v4056_v56  ;;  %v4554_v15 = vor.u32 %v4552_v27, %v4551_v37  ;;  %v4555_v32 = vrot.slane %v4551_v37, 4  ;;  %v4559_v29 = vrot.slane %v4557_v47, 7  ;;  %v4424_v59 = vmax.f32 %v4392_v20, 0.0 }
 0x1ea   : > { %v4876_v17 = vsel %vm9432_vm13, %v4571_v53, %v4875_v46  ;;  %v4579_v16 = vor.u32 %v4577_v61, %v4576_v40  ;;  %v4581_v0 = vrot.slane %v4576_v40, 4  ;;  %v8976_v36 = vpack.c.bf16 %v4426_v49, %v4426_v49 }
 0x1eb   : > { %4877 = vst [vmem:[#allocation2 + $0x18] sm:$0xf] %v4876_v17  ;;  %v4869_v50 = vsel %vm9432_vm13, %v4554_v15, %v4868_v5  ;;  %v4562_v24 = vor.u32 %v4560_v43, %v4559_v29  ;;  %v4564_v12 = vrot.slane %v4559_v29, 4  ;;  %v8974_v55 = vpack.c.bf16 %v4424_v59, %v4424_v59  ;;  %v4886_v29 = vld [vmem:[#allocation2 + $0x2c] sm:$0x1] }
 0x1ec   : > { %4870 = vst [vmem:[#allocation2 + $0xc] sm:$0xf] %v4869_v50  ;;  %v4580_v25 = vsel %vm9442_vm14, %v4572_v4, %v4579_v16  ;;  %v4880_v7 = vsel %vm9339_vm3, %v4581_v0, %v4879_v52  ;;  %v4600_v62 = vshrl.u32 %v8976_v36, 16  ;;  %v4603_v18 = vshll.u32 %v8976_v36, 16  ;;  %v4893_v52 = vld [vmem:[#allocation2 + $0x38] sm:$0x1] }
 0x1ed   : > { %v3737_v34 = vpop.permute.xlu1 %3736  ;;  %4881 = vst [vmem:[#allocation2 + $0x20] sm:$0x1] %v4880_v7  ;;  %4878 = vst.msk [vmem:[#allocation2 + $0x1c] sm:$0xf] %vm231_vm0, %v4580_v25  ;;  %v4563_v45 = vsel %vm9442_vm14, %v4555_v32, %v4562_v24  ;;  %v4873_v44 = vsel %vm9339_vm3, %v4564_v12, %v4872_v11  ;;  %v4583_v19 = vshrl.u32 %v8974_v55, 16  ;;  %v4358_v3 = vmul.f32 %v9053_v6, %v10757_v23 }
 0x1ee   : > { %v4058_v28 = vpop.permute.xlu0 %4057  ;;  %3772 = vst.msk [vmem:[#allocation3 + $0x68] sm:$0xff] %vm3758_vm10, %v3737_v34  ;;  %4874 = vst [vmem:[#allocation2 + $0x14] sm:$0x1] %v4873_v44  ;;  %v10796_v22 = vrot.slane %v4600_v62, 7  ;;  %v4356_v41 = vmul.f32 %v10757_v23, %v4238_v38  ;;  %v4586_v42 = vshll.u32 %v8974_v55, 16  ;;  %vm12027_vm6 = vcmask 195744  }
 0x1ef   : > { %4871 = vst.msk [vmem:[#allocation2 + $0x10] sm:$0xf] %vm231_vm0, %v4563_v45  ;;  %v10801_v9 = vrot.slane %v4583_v19, 7  ;;  %v4395_v58 = vadd.f32 %v10762_v26, %v4358_v3 }
 0x1f0   : > { %4093 = vst.msk [vmem:[#allocation3 + $0x68] sm:$0xff] %vm4079_vm11, %v4058_v28  ;;  %v4108_v51 = vld [vmem:[#allocation3 + $0x60] sm:$0xff]  ;;  %v4605_v48 = vor.u32 %v4603_v18, %v10796_v22  ;;  %v4393_v2 = vadd.f32 %v10762_v26, %v4356_v41  ;;  %v4606_v61 = vrot.slane %v10796_v22, 4 }
 0x1f1   : > { %v1649_v60 = vpop.permute.xlu1 %1648  ;;  %9070 = vmatprep.mubr.msk.bf16.mxu0 %vm4132_vm9, %v4108_v51  ;;  %v4588_v14 = vor.u32 %v4586_v42, %v10801_v9  ;;  %v4427_v8 = vmax.f32 %v4395_v58, 0.0  ;;  %v4589_v47 = vrot.slane %v10801_v9, 4 }
 0x1f2   : > { %1683 = vst.msk [vmem:[#allocation3 + $0x70] sm:$0xff] %vm1668_vm1, %v1649_v60  ;;  %v4890_v27 = vsel %vm9432_vm13, %v4605_v48, %v4889_v54  ;;  %v4425_v57 = vmax.f32 %v4393_v2, 0.0  ;;  %v6711_v31 = vld [vmem:[#allocation2 + $0x18] sm:$0xe] }
 0x1f3   : > { %4891 = vst [vmem:[#allocation2 + $0x30] sm:$0xf] %v4890_v27  ;;  %v4883_v6 = vsel %vm9432_vm13, %v4588_v14, %v4882_v63  ;;  %v7748_v39 = vld [vmem:[#allocation2 + $0x18] sm:$0xe]  ;;  %v8977_v30 = vpack.c.bf16 %v4427_v8, %v4427_v8  ;;  %v8820_v20 = vrot.slane %v6711_v31, 9 }
 0x1f4   : > { %v1973_v35 = vpop.permute.xlu0 %1972  ;;  %4884 = vst [vmem:[#allocation2 + $0x24] sm:$0xf] %v4883_v6  ;;  %v8975_v38 = vpack.c.bf16 %v4425_v57, %v4425_v57  ;;  %v9186_v46 = vld [vmem:[#allocation2 + $0x18] sm:$0xff]   ;;  %v8883_v56 = vrot.slane %v7748_v39, 9  ;;  %v6713_v17 = vld [vmem:[#allocation2 + $0x20] sm:$0x1] }
 0x1f5   : > { %2007 = vst.msk [vmem:[#allocation3 + $0x70] sm:$0xff] %vm1992_vm2, %v1973_v35  ;;  %v9187_v43 = vld [vmem:[#allocation2 + $0x18] sm:$0xff]   ;;  %v4608_v4 = vshrl.u32 %v8977_v30, 16  ;;  %v4611_v5 = vshll.u32 %v8977_v30, 16  ;;  %7140 = vrot.lane.b32.xlu0 %v9186_v46, %s9293_s28  ;;  %v6816_v24 = vrot.slane %v6713_v17, 5 }
 0x1f6   : > { %v1651_v37 = vpop.permute.xlu1 %1650  ;;  %v4591_v40 = vshrl.u32 %v8975_v38, 16  ;;  %v4594_v49 = vshll.u32 %v8975_v38, 16  ;;  %v9188_v15 = vld [vmem:[#allocation2 + $0xc] sm:$0xff]   ;;  %v9206_v32 = vld [vmem:[#allocation2 + $0x18] sm:$0xff]   ;;  %6102 = vrot.lane.b32.xlu1 %v9187_v43, %s9292_s27  ;;  %v7750_v12 = vld [vmem:[#allocation2 + $0x20] sm:$0x1] }
 0x1f7   : > { %1684 = vst.msk [vmem:[#allocation3 + $0x78] sm:$0xff] %vm1668_vm1, %v1651_v37  ;;  %v4109_v53 = vld [vmem:[#allocation3 + $0x68] sm:$0xff]  ;;  %v6712_v59 = vld [vmem:[#allocation2 + $0x1c] sm:$0xf]  ;;  %v4610_v11 = vrot.slane %v4608_v4, 7  ;;  %v7849_v7 = vrot.slane %v7750_v12, 5 }
 0x1f8   : > { %9071 = vmatmul.mubr.msk.bf16.gmra.mrb[24].mxu0 %vm4132_vm9, %v4109_v53  ;;  %v7749_v16 = vld [vmem:[#allocation2 + $0x1c] sm:$0xf]  ;;  %v2150_v0 = vpop.permute.xlu0 %2149  ;;  %v4593_v36 = vrot.slane %v4591_v40, 7  ;;  %v6813_v50 = vrot.slane %v6712_v59, 5  ;;  %5110 = vst.msk [vmem:[#allocation3 + $0x10] sm:$0xff] %vm12025_vm15, %v9206_v32  ;;  %vm12028_vm15 = vmmov %vm12026_vm7 }
 0x1f9   : > { %2184 = vst.msk [vmem:[#allocation3 + $0x70] sm:$0xff] %vm2169_vm4, %v2150_v0  ;;  %v7846_v25 = vrot.slane %v7749_v16, 5  ;;  %v5671_v62 = vld [vmem:[#allocation2 + $0xc] sm:$0xe]  ;;  %v5672_v34 = vld [vmem:[#allocation2 + $0x10] sm:$0xf]  ;;  %v4613_v28 = vor.u32 %v4611_v5, %v4610_v11  ;;  %6100 = vrot.lane.b32.xlu0 %v9188_v15, %s9292_s27 }
 0x1fa   : > { %v1975_v55 = vpop.permute.xlu1 %1974  ;;  %v4615_v45 = vrot.slane %v4610_v11, 4  ;;  %v4596_v44 = vor.u32 %v4594_v49, %v4593_v36  ;;  %v4598_v19 = vrot.slane %v4593_v36, 4  ;;  %v5673_v22 = vld [vmem:[#allocation2 + $0x14] sm:$0x1]  ;;  %v5674_v18 = vld [vmem:[#allocation2 + $0x18] sm:$0xe]  ;;  %v6814_v3 = vsel %vm9366_vm8, %v8820_v20, %v6813_v50 }
 0x1fb   : > { %2008 = vst.msk [vmem:[#allocation3 + $0x78] sm:$0xff] %vm1992_vm2, %v1975_v55  ;;  %v6815_v41 = vrot.slane %v6813_v50, 4  ;;  %v7847_v54 = vsel %vm9366_vm8, %v8883_v56, %v7846_v25  ;;  %v7848_v9 = vrot.slane %v7846_v25, 4  ;;  %v5675_v42 = vld [vmem:[#allocation2 + $0x1c] sm:$0xf]  ;;  %v4614_v48 = vsel %vm9442_vm14, %v4606_v61, %v4613_v28  ;;  %v9209_v20 = vld [vmem:[#allocation2 + $0xc] sm:$0xff]  }
 0x1fc   : > { %v5676_v51 = vld [vmem:[#allocation2 + $0x20] sm:$0x1]  ;;  %v4894_v63 = vsel %vm9339_vm3, %v4615_v45, %v4893_v52  ;;  %v4597_v58 = vsel %vm9442_vm14, %v4589_v47, %v4596_v44  ;;  %v4887_v2 = vsel %vm9339_vm3, %v4598_v19, %v4886_v29  ;;  %v6708_v60 = vld [vmem:[#allocation2 + $0xc] sm:$0xe]  ;;  %v6709_v14 = vld [vmem:[#allocation2 + $0x10] sm:$0xf] }
 0x1fd   : > { %v6710_v27 = vld [vmem:[#allocation2 + $0x14] sm:$0x1]  ;;  %4895 = vst [vmem:[#allocation2 + $0x38] sm:$0x1] %v4894_v63  ;;  %4892 = vst.msk [vmem:[#allocation2 + $0x34] sm:$0xf] %vm231_vm0, %v4614_v48  ;;  %v6817_v8 = vsel %vm9366_vm8, %v6815_v41, %v6816_v24  ;;  %v7850_v57 = vsel %vm9366_vm8, %v7848_v9, %v7849_v7 }
 0x1fe   : > { %4888 = vst [vmem:[#allocation2 + $0x2c] sm:$0x1] %v4887_v2  ;;  %4885 = vst.msk [vmem:[#allocation2 + $0x28] sm:$0xf] %vm231_vm0, %v4597_v58  ;;  %v8756_v6 = vrot.slane %v5671_v62, 9  ;;  %v5773_v31 = vrot.slane %v5672_v34, 5  ;;  %v8836_v39 = vcombine.low %v6814_v3, %v6817_v8  ;;  %v8899_v35 = vcombine.low %v7847_v54, %v7850_v57 }
 0x1ff   : > { %v5776_v61 = vrot.slane %v5673_v22, 5  ;;  %v8757_v30 = vrot.slane %v5674_v18, 9  ;;  %v7204_v38 = vld [vmem:[#allocation2 + $0x18] sm:$0xf]  ;;  %v5780_v37 = vrot.slane %v5675_v42, 5  ;;  %v5783_v47 = vrot.slane %v5676_v51, 5 }
 0x200   : > { %v5775_v46 = vrot.slane %v5773_v31, 4  ;;  %v7205_v43 = vld [vmem:[#allocation2 + $0x1c] sm:$0xf]  ;;  %6966 = vrot.lane.b32.xlu1 %v8836_v39, %s9294_s29  ;;  %8004 = vrot.lane.b32.xlu0 %v8899_v35, %s9295_s30  ;;  %v8819_v53 = vrot.slane %v6708_v60, 9  ;;  %v6806_v4 = vrot.slane %v6709_v14, 5  ;;  %v6809_v5 = vrot.slane %v6710_v27, 5 }
 0x201   : > { %v2695_v56 = vpop.permute.xlu0 %2694  ;;  %v7206_v40 = vld [vmem:[#allocation2 + $0x20] sm:$0x1]  ;;  %v7253_v49 = vshrl.u32 %v7204_v38, 16  ;;  %v5774_v15 = vsel %vm9366_vm8, %v8756_v6, %v5773_v31  ;;  %v5782_v52 = vrot.slane %v5780_v37, 4  ;;  %v7256_v29 = vshll.u32 %v7204_v38, 16  ;;  %5109 = vst.msk [vmem:[#allocation3 + $0x8] sm:$0xff] %vm12026_vm7, %v9209_v20 }
 0x202   : > { %2729 = vst.msk [vmem:[#allocation3 + $0x70] sm:$0xff] %vm2714_vm5, %v2695_v56  ;;  %v5777_v32 = vsel %vm9366_vm8, %v5775_v46, %v5776_v61  ;;  %v6167_v59 = vld [vmem:[#allocation2 + $0x18] sm:$0xf]  ;;  %v6168_v17 = vld [vmem:[#allocation2 + $0x1c] sm:$0xf]  ;;  %v2152_v16 = vpop.permute.xlu1 %2151  ;;  %v5781_v11 = vsel %vm9366_vm8, %v8757_v30, %v5780_v37  ;;  %v6808_v36 = vrot.slane %v6806_v4, 4  ;;  %v6807_v44 = vsel %vm9366_vm8, %v8819_v53, %v6806_v4 }
 0x203   : > { %v8772_v0 = vcombine.low %v5774_v15, %v5777_v32  ;;  %v7255_v50 = vrot.slane %v7253_v49, 4  ;;  %v6169_v24 = vld [vmem:[#allocation2 + $0x20] sm:$0x1]  ;;  %2185 = vst.msk [vmem:[#allocation3 + $0x78] sm:$0xff] %vm2169_vm4, %v2152_v16  ;;  %v5784_v12 = vsel %vm9366_vm8, %v5782_v52, %v5783_v47  ;;  %v7258_v55 = vrot.slane %v7256_v29, 5 }
 0x204   : > { %v7262_v25 = vshll.u32 %v7205_v43, 16  ;;  %v7266_v7 = vshrl.u32 %v7205_v43, 16  ;;  %v5130_v62 = vld [vmem:[#allocation2 + $0x18] sm:$0xf]  ;;  %v9201_v34 = vld [vmem:[#allocation2] sm:$0xff]   ;;  %v8773_v45 = vcombine.low %v5781_v11, %v5784_v12  ;;  %v6810_v19 = vsel %vm9366_vm8, %v6808_v36, %v6809_v5  ;;  %v9190_v3 = vld [vmem:[#allocation2 + $0x30] sm:$0xff]  }
 0x205   : > { %v3016_v28 = vpop.permute.xlu0 %3015  ;;  %5926 = vrot.lane.b32.xlu1 %v8772_v0, %s9290_s25  ;;  %v7272_v22 = vshll.u32 %v7206_v40, 16  ;;  %v8835_v18 = vcombine.low %v6807_v44, %v6810_v19  ;;  %v7259_v41 = vor.u32 %v7258_v55, %v7255_v50  ;;  %5108 = vst.msk [vmem:[#allocation3] sm:$0xff] %vm12028_vm15, %v9201_v34  ;;  %v6237_v51 = vshrl.u32 %v6167_v59, 16  ;;  %v5131_v27 = vld [vmem:[#allocation2 + $0x1c] sm:$0xf]  ;;  %v9212_v46 = vld [vmem:[#allocation2 + $0x30] sm:$0xff]  }
 0x206   : > { %3050 = vst.msk [vmem:[#allocation3 + $0x70] sm:$0xff] %vm12027_vm6, %v3016_v28  ;;  %v7264_v54 = vrot.slane %v7262_v25, 5  ;;  %v7268_v9 = vrot.slane %v7266_v7, 4  ;;  %5928 = vrot.lane.b32.xlu0 %v8773_v45, %s9290_s25  ;;  %v6240_v48 = vshll.u32 %v6167_v59, 16  ;;  %v6246_v63 = vshll.u32 %v6168_v17, 16  ;;  %v9189_v37 = vld [vmem:[#allocation2 + $0x30] sm:$0xff]   ;;  %vm12030_vm6 = vmmov %vm12028_vm15 }
 0x207   : > { %v7274_v42 = vrot.slane %v7272_v22, 5  ;;  %v7260_v58 = vrot.slane %v7259_v41, 4  ;;  %v6250_v60 = vshrl.u32 %v6168_v17, 16  ;;  %v6256_v14 = vshll.u32 %v6169_v24, 16  ;;  %5112 = vst.msk [vmem:[#allocation3 + $0x20] sm:$0xff] %vm12030_vm6, %v9212_v46  ;;  %v9217_v16 = vld [vmem:[#allocation2 + $0x24] sm:$0xff]   ;;  %vm12031_vm15 = vmmov %vm12030_vm6 }
 0x208   : > { %v7269_v2 = vor.u32 %v7268_v9, %v7264_v54  ;;  %v6239_v57 = vrot.slane %v6237_v51, 4  ;;  %v6242_v6 = vrot.slane %v6240_v48, 5  ;;  %v6248_v31 = vrot.slane %v6246_v63, 5  ;;  %v9056_v43 = vpop.f32.mrb[8].mxu0  ;;  %5111 = vst.msk [vmem:[#allocation3 + $0x18] sm:$0xff] %vm12031_vm15, %v9217_v16 }
 0x209   : > { %v3194_v8 = vpop.permute.xlu0 %3193  ;;  %6106 = vrot.lane.b32.xlu1 %v9190_v3, %s9292_s27  ;;  %v5221_v39 = vshrl.u32 %v5130_v62, 16  ;;  %vm12029_vm7 = vcmask 228544   ;;  %v7265_v35 = vsel %vm9424_vm12, %v7260_v58, %v7264_v54  ;;  %v6252_v30 = vrot.slane %v6250_v60, 4  ;;  %v4251_v49 = vpop.f32.mrb[9].mxu0  ;;  %v10887_v22 = vld [vmem:[#allocation2 + $0xc] sm:$0xf] }
 0x20a   : > { %3228 = vst.msk [vmem:[#allocation3 + $0x70] sm:$0xff] %vm12029_vm7, %v3194_v8  ;;  %v7270_v61 = vrot.slane %v7269_v2, 4  ;;  %v6258_v38 = vrot.slane %v6256_v14, 5  ;;  %6964 = vrot.lane.b32.xlu0 %v8835_v18, %s9294_s29  ;;  %v6243_v47 = vor.u32 %v6242_v6, %v6239_v57  ;;  %v5224_v56 = vshll.u32 %v5130_v62, 16  ;;  %v9057_v59 = vpop.f32.mrb[10].mxu0 }
 0x20b   : > { %v5223_v20 = vrot.slane %v5221_v39, 4  ;;  %v5230_v53 = vshll.u32 %v5131_v27, 16  ;;  %v6253_v5 = vor.u32 %v6252_v30, %v6248_v31  ;;  %v4361_v40 = vmul.f32 %v9056_v43, %v10757_v23  ;;  %v4254_v50 = vpop.f32.mrb[11].mxu0  ;;  %v5132_v62 = vld [vmem:[#allocation2 + $0x20] sm:$0x1] }
 0x20c   : > { %v7275_v4 = vsel %vm9424_vm12, %v7270_v61, %v7274_v42  ;;  %v5234_v15 = vshrl.u32 %v5131_v27, 16  ;;  %v6244_v52 = vrot.slane %v6243_v47, 4  ;;  %v4359_v29 = vmul.f32 %v10757_v23, %v4251_v49  ;;  %v9192_v61 = vld [vmem:[#allocation2 + $0x24] sm:$0xff]   ;;  %v6165_v49 = vld [vmem:[#allocation2 + $0x10] sm:$0xf] }
 0x20d   : > { %v8867_v32 = vcombine.low %v7265_v35, %v7275_v4  ;;  %v5226_v17 = vrot.slane %v5224_v56, 5  ;;  %v6254_v0 = vrot.slane %v6253_v5, 4  ;;  %v4398_v11 = vadd.f32 %v10762_v26, %v4361_v40  ;;  %v9191_v35 = vld [vmem:[#allocation2 + $0x24] sm:$0xff]  }
 0x20e   : > { %v4362_v36 = vmul.f32 %v9057_v59, %v10757_v23  ;;  %v10875_v24 = vrot.slane %v5230_v53, 5  ;;  %7144 = vrot.lane.b32.xlu0 %v9189_v37, %s9293_s28  ;;  %v6249_v55 = vsel %vm9424_vm12, %v6244_v52, %v6248_v31  ;;  %v4396_v25 = vadd.f32 %v10762_v26, %v4359_v29  ;;  %v4903_v37 = vld [vmem:[#allocation2 + $0x48] sm:$0xf]  ;;  %v4896_v52 = vld [vmem:[#allocation2 + $0x3c] sm:$0xf] }
 0x20f   : > { %v2697_v12 = vpop.permute.xlu1 %2696  ;;  %v4360_v7 = vmul.f32 %v10757_v23, %v4254_v50  ;;  %v5227_v34 = vor.u32 %v5226_v17, %v5223_v20  ;;  %v6259_v28 = vsel %vm9424_vm12, %v6254_v0, %v6258_v38  ;;  %v4430_v45 = vmax.f32 %v4398_v11, 0.0  ;;  %v4907_v0 = vld [vmem:[#allocation2 + $0x50] sm:$0x1] }
 0x210   : > { %2730 = vst.msk [vmem:[#allocation3 + $0x78] sm:$0xff] %vm2714_vm5, %v2697_v12  ;;  %v4399_v44 = vadd.f32 %v10762_v26, %v4362_v36  ;;  %v5236_v19 = vrot.slane %v5234_v15, 4  ;;  %v8804_v18 = vcombine.low %v6249_v55, %v6259_v28  ;;  %v4428_v3 = vmax.f32 %v4396_v25, 0.0  ;;  %v4900_v55 = vld [vmem:[#allocation2 + $0x44] sm:$0x1] }
 0x211   : > { %v4397_v41 = vadd.f32 %v10762_v26, %v4360_v7  ;;  %v5228_v23 = vrot.slane %v5227_v34, 4  ;;  %v3739_v54 = vpop.permute.xlu0 %3738  ;;  %v8980_v9 = vpack.c.bf16 %v4430_v45, %v4430_v45  ;;  %v5240_v48 = vshll.u32 %v5132_v62, 16  ;;  %v6166_v25 = vld [vmem:[#allocation2 + $0x14] sm:$0x1] }
 0x212   : > { %v4431_v42 = vmax.f32 %v4399_v44, 0.0  ;;  %v5237_v51 = vor.u32 %v5236_v19, %v10875_v24  ;;  %3773 = vst.msk [vmem:[#allocation3 + $0x70] sm:$0xff] %vm3758_vm10, %v3739_v54  ;;  %7684 = vrot.lane.b32.xlu0 %v8867_v32, %s9297_s6  ;;  %6646 = vrot.lane.b32.xlu1 %v8804_v18, %s9296_s5  ;;  %v8978_v58 = vpack.c.bf16 %v4428_v3, %v4428_v3  ;;  %v6213_v60 = vshrl.u32 %v10887_v22, 16  ;;  %v5127_v19 = vld [vmem:[#allocation2 + $0xc] sm:$0xf] }
 0x213   : > { %v3018_v63 = vpop.permute.xlu1 %3017  ;;  %v4429_v2 = vmax.f32 %v4397_v41, 0.0  ;;  %v5233_v26 = vsel %vm9424_vm12, %v5228_v23, %v10875_v24  ;;  %vm12032_vm7 = vcmask 195744   ;;  %v4634_v14 = vshrl.u32 %v8980_v9, 16  ;;  %v5129_v54 = vld [vmem:[#allocation2 + $0x14] sm:$0x1] }
 0x214   : > { %3051 = vst.msk [vmem:[#allocation3 + $0x78] sm:$0xff] %vm12032_vm7, %v3018_v63  ;;  %v4637_v27 = vshll.u32 %v8980_v9, 16  ;;  %v8981_v8 = vpack.c.bf16 %v4431_v42, %v4431_v42  ;;  %v5238_v57 = vrot.slane %v5237_v51, 4  ;;  %v4617_v6 = vshrl.u32 %v8978_v58, 16  ;;  %v7754_v9 = vld [vmem:[#allocation2 + $0x30] sm:$0xe]  ;;  %vm12034_vm7 = vmmov %vm12031_vm15 }
 0x215   : > { %v4620_v31 = vshll.u32 %v8978_v58, 16  ;;  %v8979_v39 = vpack.c.bf16 %v4429_v2, %v4429_v2  ;;  %v5242_v30 = vrot.slane %v5240_v48, 5  ;;  %v4060_v38 = vpop.permute.xlu0 %4059  ;;  %v4636_v46 = vrot.slane %v4634_v14, 7  ;;  %v7755_v58 = vld [vmem:[#allocation2 + $0x34] sm:$0xf] }
 0x216   : > { %v4642_v47 = vshrl.u32 %v8981_v8, 16  ;;  %v4645_v43 = vshll.u32 %v8981_v8, 16  ;;  %v6215_v20 = vrot.slane %v6213_v60, 4  ;;  %4094 = vst.msk [vmem:[#allocation3 + $0x70] sm:$0xff] %vm4079_vm11, %v4060_v38  ;;  %v4619_v53 = vrot.slane %v4617_v6, 7  ;;  %7142 = vrot.lane.b32.xlu1 %v9191_v35, %s9293_s28  ;;  %6104 = vrot.lane.b32.xlu0 %v9192_v61, %s9292_s27 }
 0x217   : > { %v3196_v56 = vpop.permute.xlu1 %3195  ;;  %v4625_v4 = vshrl.u32 %v8979_v39, 16  ;;  %v4628_v5 = vshll.u32 %v8979_v39, 16  ;;  %v5243_v40 = vsel %vm9424_vm12, %v5238_v57, %v5242_v30  ;;  %vm12033_vm6 = vcmask 228544   ;;  %v7756_v2 = vld [vmem:[#allocation2 + $0x38] sm:$0x1] }
 0x218   : > { %3229 = vst.msk [vmem:[#allocation3 + $0x78] sm:$0xff] %vm12033_vm6, %v3196_v56  ;;  %v4639_v15 = vor.u32 %v4637_v27, %v4636_v46  ;;  %v4640_v32 = vrot.slane %v4636_v46, 4  ;;  %v4644_v29 = vrot.slane %v4642_v47, 7  ;;  %v8741_v59 = vcombine.low %v5233_v26, %v5243_v40  ;;  %v6717_v57 = vld [vmem:[#allocation2 + $0x30] sm:$0xe]  ;;  %vm12035_vm6 = vmmov %vm12034_vm7 }
 0x219   : > { %v4622_v17 = vor.u32 %v4620_v31, %v4619_v53  ;;  %v4623_v16 = vrot.slane %v4619_v53, 4  ;;  %v4627_v11 = vrot.slane %v4625_v4, 7  ;;  %v6216_v36 = vshll.u32 %v10887_v22, 16  ;;  %v5128_v22 = vld [vmem:[#allocation2 + $0x10] sm:$0xf] }
 0x21a   : > { %v4904_v50 = vsel %vm9432_vm13, %v4639_v15, %v4903_v37  ;;  %v4647_v24 = vor.u32 %v4645_v43, %v4644_v29  ;;  %v4649_v12 = vrot.slane %v4644_v29, 4  ;;  %v6222_v7 = vshll.u32 %v6165_v49, 16  ;;  %5608 = vrot.lane.b32.xlu1 %v8741_v59, %s9291_s26  ;;  %v6718_v30 = vld [vmem:[#allocation2 + $0x34] sm:$0xf]  ;;  %v6719_v43 = vld [vmem:[#allocation2 + $0x38] sm:$0x1] }
 0x21b   : > { %v3741_v62 = vpop.permute.xlu1 %3740  ;;  %4905 = vst [vmem:[#allocation2 + $0x48] sm:$0xf] %v4904_v50  ;;  %v4897_v34 = vsel %vm9432_vm13, %v4622_v17, %v4896_v52  ;;  %v4630_v28 = vor.u32 %v4628_v5, %v4627_v11  ;;  %v4632_v45 = vrot.slane %v4627_v11, 4  ;;  %v6218_v44 = vrot.slane %v6216_v36, 5  ;;  %v5680_v5 = vld [vmem:[#allocation2 + $0x30] sm:$0xe] }
 0x21c   : > { %3774 = vst.msk [vmem:[#allocation3 + $0x78] sm:$0xff] %vm3758_vm10, %v3741_v62  ;;  %4898 = vst [vmem:[#allocation2 + $0x3c] sm:$0xf] %v4897_v34  ;;  %v4648_v18 = vsel %vm9442_vm14, %v4640_v32, %v4647_v24  ;;  %v4908_v3 = vsel %vm9339_vm3, %v4649_v12, %v4907_v0  ;;  %v6224_v41 = vrot.slane %v6222_v7, 5  ;;  %v6226_v23 = vshrl.u32 %v6165_v49, 16 }
 0x21d   : > { %4909 = vst [vmem:[#allocation2 + $0x50] sm:$0x1] %v4908_v3  ;;  %4906 = vst.msk [vmem:[#allocation2 + $0x4c] sm:$0xf] %vm231_vm0, %v4648_v18  ;;  %v4631_v42 = vsel %vm9442_vm14, %v4623_v16, %v4630_v28  ;;  %v4901_v51 = vsel %vm9339_vm3, %v4632_v45, %v4900_v55  ;;  %v6219_v48 = vor.u32 %v6218_v44, %v6215_v20  ;;  %v6232_v63 = vshll.u32 %v6166_v25, 16  ;;  %v4110_v26 = vld [vmem:[#allocation3 + $0x70] sm:$0xff] }
 0x21e   : > { %4902 = vst [vmem:[#allocation2 + $0x44] sm:$0x1] %v4901_v51  ;;  %4899 = vst.msk [vmem:[#allocation2 + $0x40] sm:$0xf] %vm231_vm0, %v4631_v42  ;;  %v6228_v60 = vrot.slane %v6226_v23, 4  ;;  %v5197_v14 = vshrl.u32 %v5127_v19, 16  ;;  %9074 = vmatprep.mubr.msk.bf16.mxu0 %vm4132_vm9, %v4110_v26 }
 0x21f   : > { %v5200_v27 = vshll.u32 %v5127_v19, 16  ;;  %v5206_v8 = vshll.u32 %v5128_v22, 16  ;;  %v4062_v6 = vpop.permute.xlu1 %4061  ;;  %v6220_v31 = vrot.slane %v6219_v48, 4  ;;  %v6234_v39 = vrot.slane %v6232_v63, 5  ;;  %v5681_v40 = vld [vmem:[#allocation2 + $0x34] sm:$0xf]  ;;  %v5605_v63 = vpop.permute.xlu0 %5604 }
 0x220   : > { %v5210_v35 = vshrl.u32 %v5128_v22, 16  ;;  %v5216_v61 = vshll.u32 %v5129_v54, 16  ;;  %4095 = vst.msk [vmem:[#allocation3 + $0x78] sm:$0xff] %vm4079_vm11, %v4062_v6  ;;  %v6229_v38 = vor.u32 %v6228_v60, %v6224_v41  ;;  %v5199_v46 = vrot.slane %v5197_v14, 4  ;;  %v5682_v29 = vld [vmem:[#allocation2 + $0x38] sm:$0x1] }
 0x221   : > { %v5202_v37 = vrot.slane %v5200_v27, 5  ;;  %v5208_v47 = vrot.slane %v5206_v8, 5  ;;  %v6225_v20 = vsel %vm9424_vm12, %v6220_v31, %v6224_v41  ;;  %v8885_v4 = vrot.slane %v7754_v9, 9  ;;  %v7751_v12 = vld [vmem:[#allocation2 + $0x24] sm:$0xe]  ;;  %5652 = vst.msk [vmem:[#allocation3] sm:$0xff] %vm1668_vm1, %v5605_v63 }
 0x222   : > { %v5212_v56 = vrot.slane %v5210_v35, 4  ;;  %v5218_v53 = vrot.slane %v5216_v61, 5  ;;  %v6230_v49 = vrot.slane %v6229_v38, 4  ;;  %v7860_v32 = vrot.slane %v7755_v58, 5  ;;  %v7752_v55 = vld [vmem:[#allocation2 + $0x28] sm:$0xf] }
 0x223   : > { %v5203_v15 = vor.u32 %v5202_v37, %v5199_v46  ;;  %v7863_v52 = vrot.slane %v7756_v2, 5  ;;  %v8822_v17 = vrot.slane %v6717_v57, 9  ;;  %v6827_v16 = vrot.slane %v6718_v30, 5  ;;  %v7753_v25 = vld [vmem:[#allocation2 + $0x2c] sm:$0x1] }
 0x224   : > { %v5213_v59 = vor.u32 %v5212_v56, %v5208_v47  ;;  %v6830_v0 = vrot.slane %v6719_v43, 5  ;;  %v6235_v11 = vsel %vm9424_vm12, %v6230_v49, %v6234_v39  ;;  %v7861_v50 = vsel %vm9366_vm8, %v8885_v4, %v7860_v32  ;;  %v5677_v7 = vld [vmem:[#allocation2 + $0x24] sm:$0xe]  ;;  %v5678_v44 = vld [vmem:[#allocation2 + $0x28] sm:$0xf] }
 0x225   : > { %v5204_v36 = vrot.slane %v5203_v15, 4  ;;  %v7862_v24 = vrot.slane %v7860_v32, 4  ;;  %v8803_v62 = vcombine.low %v6225_v20, %v6235_v11  ;;  %v6828_v28 = vsel %vm9366_vm8, %v8822_v17, %v6827_v16  ;;  %v5679_v19 = vld [vmem:[#allocation2 + $0x2c] sm:$0x1]  ;;  %v6714_v23 = vld [vmem:[#allocation2 + $0x24] sm:$0xe] }
 0x226   : > { %v5214_v34 = vrot.slane %v5213_v59, 4  ;;  %v6829_v45 = vrot.slane %v6827_v16, 4  ;;  %v8759_v3 = vrot.slane %v5680_v5, 9  ;;  %v5794_v41 = vrot.slane %v5681_v40, 5  ;;  %v6715_v14 = vld [vmem:[#allocation2 + $0x28] sm:$0xf] }
 0x227   : > { %v5209_v22 = vsel %vm9424_vm12, %v5204_v36, %v5208_v47  ;;  %v7864_v18 = vsel %vm9366_vm8, %v7862_v24, %v7863_v52  ;;  %v4111_v54 = vld [vmem:[#allocation3 + $0x78] sm:$0xff]  ;;  %6644 = vrot.lane.b32.xlu0 %v8803_v62, %s9296_s5  ;;  %v5797_v48 = vrot.slane %v5682_v29, 5  ;;  %v6716_v27 = vld [vmem:[#allocation2 + $0x2c] sm:$0x1]  ;;  %v8884_v8 = vrot.slane %v7751_v12, 9  ;;  %v9223_v15 = vld [vmem:[#allocation2 + $0x3c] sm:$0xff]  }
 0x228   : > { %v5219_v9 = vsel %vm9424_vm12, %v5214_v34, %v5218_v53  ;;  %v8901_v42 = vcombine.low %v7861_v50, %v7864_v18  ;;  %v6831_v51 = vsel %vm9366_vm8, %v6829_v45, %v6830_v0  ;;  %9075 = vmatmul.mubr.msk.bf16.gmra.mrb[28].mxu0 %vm4132_vm9, %v4111_v54  ;;  %v5795_v26 = vsel %vm9366_vm8, %v8759_v3, %v5794_v41  ;;  %v7210_v39 = vld [vmem:[#allocation2 + $0x30] sm:$0xf]  ;;  %v9221_v46 = vld [vmem:[#allocation2 + $0x48] sm:$0xff]   ;;  %v7211_v56 = vld [vmem:[#allocation2 + $0x34] sm:$0xf]  ;;  %v5925_v53 = vpop.permute.xlu0 %5924 }
 0x229   : > { %v8740_v58 = vcombine.low %v5209_v22, %v5219_v9  ;;  %v8838_v2 = vcombine.low %v6828_v28, %v6831_v51  ;;  %v5796_v60 = vrot.slane %v5794_v41, 4  ;;  %v7853_v57 = vrot.slane %v7752_v55, 5  ;;  %5972 = vst.msk [vmem:[#allocation3] sm:$0xff] %vm1992_vm2, %v5925_v53  ;;  %v7212_v59 = vld [vmem:[#allocation2 + $0x38] sm:$0x1]  ;;  %v9194_v54 = vld [vmem:[#allocation2 + $0x48] sm:$0xff]  }
 0x22a   : > { %v7856_v6 = vrot.slane %v7753_v25, 5  ;;  %v8758_v31 = vrot.slane %v5677_v7, 9  ;;  %v5787_v61 = vrot.slane %v5678_v44, 5  ;;  %v5790_v30 = vrot.slane %v5679_v19, 5  ;;  %5114 = vst.msk [vmem:[#allocation3 + $0x30] sm:$0xff] %vm12031_vm15, %v9221_v46  ;;  %vm12036_vm15 = vmmov %vm12035_vm6 }
 0x22b   : > { %5606 = vrot.lane.b32.xlu1 %v8740_v58, %s9291_s26  ;;  %v5798_v35 = vsel %vm9366_vm8, %v5796_v60, %v5797_v48  ;;  %v8821_v38 = vrot.slane %v6714_v23, 9  ;;  %8008 = vrot.lane.b32.xlu0 %v8901_v42, %s9295_s30  ;;  %v7854_v47 = vsel %vm9366_vm8, %v8884_v8, %v7853_v57  ;;  %v7855_v43 = vrot.slane %v7853_v57, 4  ;;  %v6173_v16 = vld [vmem:[#allocation2 + $0x30] sm:$0xf]  ;;  %v6174_v24 = vld [vmem:[#allocation2 + $0x34] sm:$0xf] }
 0x22c   : > { %v8775_v37 = vcombine.low %v5795_v26, %v5798_v35  ;;  %v6820_v20 = vrot.slane %v6715_v14, 5  ;;  %v5788_v4 = vsel %vm9366_vm8, %v8758_v31, %v5787_v61  ;;  %v5789_v5 = vrot.slane %v5787_v61, 4  ;;  %5113 = vst.msk [vmem:[#allocation3 + $0x28] sm:$0xff] %vm12034_vm7, %v9223_v15  ;;  %v6175_v62 = vld [vmem:[#allocation2 + $0x38] sm:$0x1]  ;;  %vm12037_vm7 = vmmov %vm12035_vm6 }
 0x22d   : > { %v6823_v40 = vrot.slane %v6716_v27, 5  ;;  %v7301_v49 = vshrl.u32 %v7210_v39, 16  ;;  %v7857_v32 = vsel %vm9366_vm8, %v7855_v43, %v7856_v6  ;;  %v7304_v17 = vshll.u32 %v7210_v39, 16  ;;  %v5136_v19 = vld [vmem:[#allocation2 + $0x30] sm:$0xf] }
 0x22e   : > { %v6821_v52 = vsel %vm9366_vm8, %v8821_v38, %v6820_v20  ;;  %v6822_v29 = vrot.slane %v6820_v20, 4  ;;  %v8900_v0 = vcombine.low %v7854_v47, %v7857_v32  ;;  %v5791_v11 = vsel %vm9366_vm8, %v5789_v5, %v5790_v30  ;;  %v5137_v23 = vld [vmem:[#allocation2 + $0x34] sm:$0xf]  ;;  %v5138_v27 = vld [vmem:[#allocation2 + $0x38] sm:$0x1]  ;;  %v9193_v47 = vld [vmem:[#allocation2 + $0x48] sm:$0xff]  }
 0x22f   : > { %6970 = vrot.lane.b32.xlu1 %v8838_v2, %s9294_s29  ;;  %v7303_v36 = vrot.slane %v7301_v49, 4  ;;  %v7310_v50 = vshll.u32 %v7211_v56, 16  ;;  %5932 = vrot.lane.b32.xlu0 %v8775_v37, %s9290_s25  ;;  %v8774_v12 = vcombine.low %v5788_v4, %v5791_v11  ;;  %v7306_v25 = vrot.slane %v7304_v17, 5  ;;  %v6170_v37 = vld [vmem:[#allocation2 + $0x24] sm:$0xf] }
 0x230   : > { %v6824_v55 = vsel %vm9366_vm8, %v6822_v29, %v6823_v40  ;;  %v7314_v7 = vshrl.u32 %v7211_v56, 16  ;;  %v7320_v45 = vshll.u32 %v7212_v59, 16  ;;  %v6285_v44 = vshrl.u32 %v6173_v16, 16  ;;  %v6171_v4 = vld [vmem:[#allocation2 + $0x28] sm:$0xf] }
 0x231   : > { %v8837_v34 = vcombine.low %v6821_v52, %v6824_v55  ;;  %v7312_v28 = vrot.slane %v7310_v50, 5  ;;  %v7307_v22 = vor.u32 %v7306_v25, %v7303_v36  ;;  %v6288_v3 = vshll.u32 %v6173_v16, 16  ;;  %v6172_v11 = vld [vmem:[#allocation2 + $0x2c] sm:$0x1] }
 0x232   : > { %v7316_v18 = vrot.slane %v7314_v7, 4  ;;  %v6294_v41 = vshll.u32 %v6174_v24, 16  ;;  %v7322_v9 = vrot.slane %v7320_v45, 5  ;;  %v6287_v42 = vrot.slane %v6285_v44, 4  ;;  %v7207_v7 = vld [vmem:[#allocation2 + $0x24] sm:$0xf] }
 0x233   : > { %5930 = vrot.lane.b32.xlu1 %v8774_v12, %s9290_s25  ;;  %v6298_v51 = vshrl.u32 %v6174_v24, 16  ;;  %v6304_v48 = vshll.u32 %v6175_v62, 16  ;;  %8006 = vrot.lane.b32.xlu0 %v8900_v0, %s9295_s30  ;;  %v7308_v63 = vrot.slane %v7307_v22, 4  ;;  %v6290_v2 = vrot.slane %v6288_v3, 5  ;;  %v10982_v62 = vld [vmem:[%s11986_s3 + $0x2] ss:$0 sm:$0xff] }
 0x234   : > { %v7317_v58 = vor.u32 %v7316_v18, %v7312_v28  ;;  %v6296_v26 = vrot.slane %v6294_v41, 5  ;;  %v5269_v8 = vshrl.u32 %v5136_v19, 16  ;;  %v5272_v57 = vshll.u32 %v5136_v19, 16 }
 0x235   : > { %v6300_v60 = vrot.slane %v6298_v51, 4  ;;  %v6306_v14 = vrot.slane %v6304_v48, 5  ;;  %v7313_v6 = vsel %vm9424_vm12, %v7308_v63, %v7312_v28  ;;  %v6291_v39 = vor.u32 %v6290_v2, %v6287_v42 }
 0x236   : > { %v7318_v31 = vrot.slane %v7317_v58, 4  ;;  %v5278_v35 = vshll.u32 %v5137_v23, 16  ;;  %v5271_v30 = vrot.slane %v5269_v8, 4  ;;  %v5274_v38 = vrot.slane %v5272_v57, 5 }
 0x237   : > { %6110 = vrot.lane.b32.xlu1 %v9194_v54, %s9292_s27  ;;  %v6301_v61 = vor.u32 %v6300_v60, %v6296_v26  ;;  %v5282_v46 = vshrl.u32 %v5137_v23, 16  ;;  %6968 = vrot.lane.b32.xlu0 %v8837_v34, %s9294_s29  ;;  %v6292_v20 = vrot.slane %v6291_v39, 4  ;;  %v5288_v53 = vshll.u32 %v5138_v27, 16  ;;  %v10992_v54 = vld [vmem:[%s11986_s3 + $0x3] ss:$0 sm:$0xff] }
 0x238   : > { %v7323_v43 = vsel %vm9424_vm12, %v7318_v31, %v7322_v9  ;;  %v5280_v56 = vrot.slane %v5278_v35, 5  ;;  %v5275_v49 = vor.u32 %v5274_v38, %v5271_v30  ;;  %v6261_v29 = vshrl.u32 %v6170_v37, 16  ;;  %v7208_v31 = vld [vmem:[#allocation2 + $0x28] sm:$0xf] }
 0x239   : > { %v8869_v5 = vcombine.low %v7313_v6, %v7323_v43  ;;  %v6302_v40 = vrot.slane %v6301_v61, 4  ;;  %v5284_v15 = vrot.slane %v5282_v46, 4  ;;  %v6297_v32 = vsel %vm9424_vm12, %v6292_v20, %v6296_v26  ;;  %v9195_v26 = vld [vmem:[#allocation2 + $0x3c] sm:$0xff]  }
 0x23a   : > { %v5290_v52 = vrot.slane %v5288_v53, 5  ;;  %v6264_v59 = vshll.u32 %v6170_v37, 16  ;;  %v5276_v16 = vrot.slane %v5275_v49, 4  ;;  %v6270_v36 = vshll.u32 %v6171_v4, 16  ;;  %v9196_v61 = vld [vmem:[#allocation2 + $0x3c] sm:$0xff]  }
 0x23b   : > { %v6307_v17 = vsel %vm9424_vm12, %v6302_v40, %v6306_v14  ;;  %v5285_v0 = vor.u32 %v5284_v15, %v5280_v56  ;;  %7148 = vrot.lane.b32.xlu0 %v9193_v47, %s9293_s28  ;;  %v6263_v12 = vrot.slane %v6261_v29, 4  ;;  %v6274_v25 = vshrl.u32 %v6171_v4, 16 }
 0x23c   : > { %v8806_v50 = vcombine.low %v6297_v32, %v6307_v17  ;;  %v9060_v24 = vpop.f32.mrb[12].mxu0  ;;  %v6266_v55 = vrot.slane %v6264_v59, 5  ;;  %v5281_v45 = vsel %vm9424_vm12, %v5276_v16, %v5280_v56  ;;  %v6272_v19 = vrot.slane %v6270_v36, 5  ;;  %v4917_v32 = vld [vmem:[#allocation2 + $0x60] sm:$0xf] }
 0x23d   : > { %v4365_v34 = vmul.f32 %v10982_v62, %v9060_v24  ;;  %v4267_v28 = vpop.f32.mrb[13].mxu0  ;;  %v5286_v44 = vrot.slane %v5285_v0, 4  ;;  %v6276_v41 = vrot.slane %v6274_v25, 4  ;;  %v6280_v23 = vshll.u32 %v6172_v11, 16  ;;  %v4910_v0 = vld [vmem:[#allocation2 + $0x54] sm:$0xf] }
 0x23e   : > { %6650 = vrot.lane.b32.xlu1 %v8806_v50, %s9296_s5  ;;  %v4363_v22 = vmul.f32 %v10982_v62, %v4267_v28  ;;  %v9061_v18 = vpop.f32.mrb[14].mxu0  ;;  %v6267_v3 = vor.u32 %v6266_v55, %v6263_v12  ;;  %v7277_v63 = vshrl.u32 %v7207_v7, 16  ;;  %v7280_v43 = vshll.u32 %v7207_v7, 16  ;;  %v4921_v12 = vld [vmem:[#allocation2 + $0x68] sm:$0x1] }
 0x23f   : > { %v4402_v9 = vadd.f32 %v10992_v54, %v4365_v34  ;;  %v4366_v42 = vmul.f32 %v10982_v62, %v9061_v18  ;;  %v4270_v51 = vpop.f32.mrb[15].mxu0  ;;  %v5291_v48 = vsel %vm9424_vm12, %v5286_v44, %v5290_v52  ;;  %7688 = vrot.lane.b32.xlu0 %v8869_v5, %s9297_s6  ;;  %v6277_v57 = vor.u32 %v6276_v41, %v6272_v19  ;;  %v4914_v44 = vld [vmem:[#allocation2 + $0x5c] sm:$0x1]  ;;  %v7760_v18 = vld [vmem:[#allocation2 + $0x48] sm:$0xe] }
 0x240   : > { %v4400_v58 = vadd.f32 %v10992_v54, %v4363_v22  ;;  %v4364_v2 = vmul.f32 %v10982_v62, %v4270_v51  ;;  %v8743_v60 = vcombine.low %v5281_v45, %v5291_v48  ;;  %v6268_v14 = vrot.slane %v6267_v3, 4  ;;  %v7762_v51 = vld [vmem:[#allocation2 + $0x50] sm:$0x1]  ;;  %v5133_v48 = vld [vmem:[#allocation2 + $0x24] sm:$0xf] }
 0x241   : > { %v4434_v27 = vmax.f32 %v4402_v9, 0.0  ;;  %v4403_v8 = vadd.f32 %v10992_v54, %v4366_v42  ;;  %v6282_v6 = vrot.slane %v6280_v23, 5  ;;  %v7279_v38 = vrot.slane %v7277_v63, 4  ;;  %v7761_v42 = vld [vmem:[#allocation2 + $0x4c] sm:$0xf] }
 0x242   : > { %v4432_v39 = vmax.f32 %v4400_v58, 0.0  ;;  %v4401_v35 = vadd.f32 %v10992_v54, %v4364_v2  ;;  %7146 = vrot.lane.b32.xlu1 %v9195_v26, %s9293_s28  ;;  %v6273_v30 = vsel %vm9424_vm12, %v6268_v14, %v6272_v19  ;;  %v6278_v47 = vrot.slane %v6277_v57, 4  ;;  %v7209_v19 = vld [vmem:[#allocation2 + $0x2c] sm:$0x1] }
 0x243   : > { %v8984_v46 = vpack.c.bf16 %v4434_v27, %v4434_v27  ;;  %v4435_v37 = vmax.f32 %v4403_v8, 0.0  ;;  %6108 = vrot.lane.b32.xlu0 %v9196_v61, %s9292_s27  ;;  %v7286_v53 = vshll.u32 %v7208_v31, 16  ;;  %v7290_v4 = vshrl.u32 %v7208_v31, 16  ;;  %v5135_v14 = vld [vmem:[#allocation2 + $0x2c] sm:$0x1] }
 0x244   : > { %v8982_v20 = vpack.c.bf16 %v4432_v39, %v4432_v39  ;;  %v4433_v56 = vmax.f32 %v4401_v35, 0.0  ;;  %v6283_v15 = vsel %vm9424_vm12, %v6278_v47, %v6282_v6  ;;  %v7282_v50 = vrot.slane %v7280_v43, 5  ;;  %v5686_v47 = vld [vmem:[#allocation2 + $0x48] sm:$0xe]  ;;  %v5687_v43 = vld [vmem:[#allocation2 + $0x4c] sm:$0xf] }
 0x245   : > { %v4668_v5 = vshrl.u32 %v8984_v46, 16  ;;  %v4671_v40 = vshll.u32 %v8984_v46, 16  ;;  %v8985_v49 = vpack.c.bf16 %v4435_v37, %v4435_v37  ;;  %v8805_v17 = vcombine.low %v6273_v30, %v6283_v15 }
 0x246   : > { %v4651_v52 = vshrl.u32 %v8982_v20, 16  ;;  %v4654_v29 = vshll.u32 %v8982_v20, 16  ;;  %v8983_v59 = vpack.c.bf16 %v4433_v56, %v4433_v56  ;;  %5612 = vrot.lane.b32.xlu1 %v8743_v60, %s9291_s26  ;;  %v7288_v7 = vrot.slane %v7286_v53, 5  ;;  %v5134_v60 = vld [vmem:[#allocation2 + $0x28] sm:$0xf] }
 0x247   : > { %v4670_v16 = vrot.slane %v4668_v5, 7  ;;  %v4676_v11 = vshrl.u32 %v8985_v49, 16  ;;  %v4679_v36 = vshll.u32 %v8985_v49, 16  ;;  %6648 = vrot.lane.b32.xlu0 %v8805_v17, %s9296_s5  ;;  %v7283_v22 = vor.u32 %v7282_v50, %v7279_v38  ;;  %v5688_v5 = vld [vmem:[#allocation2 + $0x50] sm:$0x1] }
 0x248   : > { %v4653_v24 = vrot.slane %v4651_v52, 7  ;;  %v4659_v55 = vshrl.u32 %v8983_v59, 16  ;;  %v4662_v25 = vshll.u32 %v8983_v59, 16  ;;  %v7292_v9 = vrot.slane %v7290_v4, 4  ;;  %v6723_v52 = vld [vmem:[#allocation2 + $0x48] sm:$0xe] }
 0x249   : > { %v4673_v34 = vor.u32 %v4671_v40, %v4670_v16  ;;  %v4674_v28 = vrot.slane %v4670_v16, 4  ;;  %v4678_v45 = vrot.slane %v4676_v11, 7  ;;  %v7284_v26 = vrot.slane %v7283_v22, 4  ;;  %v6725_v11 = vld [vmem:[#allocation2 + $0x50] sm:$0x1] }
 0x24a   : > { %v4656_v3 = vor.u32 %v4654_v29, %v4653_v24  ;;  %v4657_v41 = vrot.slane %v4653_v24, 4  ;;  %v4661_v23 = vrot.slane %v4659_v55, 7  ;;  %v7293_v6 = vor.u32 %v7292_v9, %v7288_v7  ;;  %v6724_v29 = vld [vmem:[#allocation2 + $0x4c] sm:$0xf] }
 0x24b   : > { %v4918_v63 = vsel %vm9432_vm13, %v4673_v34, %v4917_v32  ;;  %v4681_v58 = vor.u32 %v4679_v36, %v4678_v45  ;;  %v4683_v2 = vrot.slane %v4678_v45, 4  ;;  %v7289_v35 = vsel %vm9424_vm12, %v7284_v26, %v7288_v7  ;;  %v7757_v36 = vld [vmem:[#allocation2 + $0x3c] sm:$0xe] }
 0x24c   : > { %4919 = vst [vmem:[#allocation2 + $0x60] sm:$0xf] %v4918_v63  ;;  %v4911_v27 = vsel %vm9432_vm13, %v4656_v3, %v4910_v0  ;;  %v4664_v8 = vor.u32 %v4662_v25, %v4661_v23  ;;  %v4666_v57 = vrot.slane %v4661_v23, 4  ;;  %v7296_v61 = vshll.u32 %v7209_v19, 16  ;;  %v7758_v25 = vld [vmem:[#allocation2 + $0x40] sm:$0xf] }
 0x24d   : > { %4912 = vst [vmem:[#allocation2 + $0x54] sm:$0xf] %v4911_v27  ;;  %v4682_v31 = vsel %vm9442_vm14, %v4674_v28, %v4681_v58  ;;  %v4922_v39 = vsel %vm9339_vm3, %v4683_v2, %v4921_v12  ;;  %v7294_v46 = vrot.slane %v7293_v6, 4  ;;  %v8887_v37 = vrot.slane %v7760_v18, 9  ;;  %v6722_v63 = vld [vmem:[#allocation2 + $0x44] sm:$0x1] }
 0x24e   : > { %4923 = vst [vmem:[#allocation2 + $0x68] sm:$0x1] %v4922_v39  ;;  %4920 = vst.msk [vmem:[#allocation2 + $0x64] sm:$0xf] %vm231_vm0, %v4682_v31  ;;  %v4665_v30 = vsel %vm9442_vm14, %v4657_v41, %v4664_v8  ;;  %v4915_v38 = vsel %vm9339_vm3, %v4666_v57, %v4914_v44  ;;  %v7298_v20 = vrot.slane %v7296_v61, 5  ;;  %v7874_v56 = vrot.slane %v7761_v42, 5 }
 0x24f   : > { %4916 = vst [vmem:[#allocation2 + $0x5c] sm:$0x1] %v4915_v38  ;;  %4913 = vst.msk [vmem:[#allocation2 + $0x58] sm:$0xf] %vm231_vm0, %v4665_v30  ;;  %v7877_v53 = vrot.slane %v7762_v51, 5  ;;  %v5245_v4 = vshrl.u32 %v5133_v48, 16 }
 0x250   : > { %v5248_v40 = vshll.u32 %v5133_v48, 16  ;;  %v5254_v49 = vshll.u32 %v5134_v60, 16  ;;  %v5258_v15 = vshrl.u32 %v5134_v60, 16  ;;  %v5264_v32 = vshll.u32 %v5135_v14, 16  ;;  %v7759_v44 = vld [vmem:[#allocation2 + $0x44] sm:$0x1] }
 0x251   : > { %v7299_v59 = vsel %vm9424_vm12, %v7294_v46, %v7298_v20  ;;  %v7875_v17 = vsel %vm9366_vm8, %v8887_v37, %v7874_v56  ;;  %v7876_v16 = vrot.slane %v7874_v56, 4  ;;  %v5247_v0 = vrot.slane %v5245_v4, 4  ;;  %v6720_v51 = vld [vmem:[#allocation2 + $0x3c] sm:$0xe]  ;;  %v6721_v48 = vld [vmem:[#allocation2 + $0x40] sm:$0xf] }
 0x252   : > { %v8868_v50 = vcombine.low %v7289_v35, %v7299_v59  ;;  %v5250_v24 = vrot.slane %v5248_v40, 5  ;;  %v5256_v12 = vrot.slane %v5254_v49, 5  ;;  %v5260_v55 = vrot.slane %v5258_v15, 4  ;;  %v5683_v14 = vld [vmem:[#allocation2 + $0x3c] sm:$0xe] }
 0x253   : > { %v7878_v7 = vsel %vm9366_vm8, %v7876_v16, %v7877_v53  ;;  %v5266_v34 = vrot.slane %v5264_v32, 5  ;;  %v8761_v28 = vrot.slane %v5686_v47, 9  ;;  %v5808_v45 = vrot.slane %v5687_v43, 5  ;;  %v5684_v27 = vld [vmem:[#allocation2 + $0x40] sm:$0xf] }
 0x254   : > { %7686 = vrot.lane.b32.xlu1 %v8868_v50, %s9297_s6  ;;  %v8903_v19 = vcombine.low %v7875_v17, %v7878_v7  ;;  %v5251_v22 = vor.u32 %v5250_v24, %v5247_v0  ;;  %v5261_v18 = vor.u32 %v5260_v55, %v5256_v12  ;;  %v5811_v3 = vrot.slane %v5688_v5, 5  ;;  %v5685_v39 = vld [vmem:[#allocation2 + $0x44] sm:$0x1]  ;;  %v7216_v20 = vld [vmem:[#allocation2 + $0x48] sm:$0xf] }
 0x255   : > { %v5809_v41 = vsel %vm9366_vm8, %v8761_v28, %v5808_v45  ;;  %v5810_v23 = vrot.slane %v5808_v45, 4  ;;  %v8824_v9 = vrot.slane %v6723_v52, 9  ;;  %v6841_v42 = vrot.slane %v6724_v29, 5  ;;  %v9226_v56 = vld [vmem:[#allocation2 + $0x60] sm:$0xff]   ;;  %v7217_v49 = vld [vmem:[#allocation2 + $0x4c] sm:$0xf] }
 0x256   : > { %8012 = vrot.lane.b32.xlu0 %v8903_v19, %s9295_s30  ;;  %v5252_v58 = vrot.slane %v5251_v22, 4  ;;  %v5262_v2 = vrot.slane %v5261_v18, 4  ;;  %v6844_v26 = vrot.slane %v6725_v11, 5  ;;  %v8886_v60 = vrot.slane %v7757_v36, 9  ;;  %v9228_v15 = vld [vmem:[#allocation2 + $0x54] sm:$0xff]   ;;  %5116 = vst.msk [vmem:[#allocation3 + $0x40] sm:$0xff] %vm12035_vm6, %v9226_v56 }
 0x257   : > { %v5812_v8 = vsel %vm9366_vm8, %v5810_v23, %v5811_v3  ;;  %v6842_v57 = vsel %vm9366_vm8, %v8824_v9, %v6841_v42  ;;  %v6843_v6 = vrot.slane %v6841_v42, 4  ;;  %v7867_v31 = vrot.slane %v7758_v25, 5  ;;  %v7218_v17 = vld [vmem:[#allocation2 + $0x50] sm:$0x1]  ;;  %5115 = vst.msk [vmem:[#allocation3 + $0x38] sm:$0xff] %vm12036_vm15, %v9228_v15 }
 0x258   : > { %v5257_v35 = vsel %vm9424_vm12, %v5252_v58, %v5256_v12  ;;  %v5267_v61 = vsel %vm9424_vm12, %v5262_v2, %v5266_v34  ;;  %v8777_v30 = vcombine.low %v5809_v41, %v5812_v8  ;;  %v7870_v38 = vrot.slane %v7759_v44, 5  ;;  %v6179_v25 = vld [vmem:[#allocation2 + $0x48] sm:$0xf]  ;;  %v6180_v44 = vld [vmem:[#allocation2 + $0x4c] sm:$0xf] }
 0x259   : > { %v8742_v46 = vcombine.low %v5257_v35, %v5267_v61  ;;  %v6845_v37 = vsel %vm9366_vm8, %v6843_v6, %v6844_v26  ;;  %v7868_v47 = vsel %vm9366_vm8, %v8886_v60, %v7867_v31  ;;  %v7869_v43 = vrot.slane %v7867_v31, 4  ;;  %v6181_v41 = vld [vmem:[#allocation2 + $0x50] sm:$0x1]  ;;  %v5142_v23 = vld [vmem:[#allocation2 + $0x48] sm:$0xf] }
 0x25a   : > { %5936 = vrot.lane.b32.xlu0 %v8777_v30, %s9290_s25  ;;  %v8840_v53 = vcombine.low %v6842_v57, %v6845_v37  ;;  %v8823_v4 = vrot.slane %v6720_v51, 9  ;;  %v6834_v5 = vrot.slane %v6721_v48, 5  ;;  %v6837_v40 = vrot.slane %v6722_v63, 5  ;;  %v5143_v60 = vld [vmem:[#allocation2 + $0x4c] sm:$0xf] }
 0x25b   : > { %5610 = vrot.lane.b32.xlu1 %v8742_v46, %s9291_s26  ;;  %v7871_v32 = vsel %vm9366_vm8, %v7869_v43, %v7870_v38  ;;  %v8760_v52 = vrot.slane %v5683_v14, 9  ;;  %v5801_v29 = vrot.slane %v5684_v27, 5  ;;  %v5804_v59 = vrot.slane %v5685_v39, 5  ;;  %v9197_v14 = vld [vmem:[#allocation2 + $0x60] sm:$0xff]   ;;  %v5144_v6 = vld [vmem:[#allocation2 + $0x50] sm:$0x1] }
 0x25c   : > { %v8902_v16 = vcombine.low %v7868_v47, %v7871_v32  ;;  %v6835_v0 = vsel %vm9366_vm8, %v8823_v4, %v6834_v5  ;;  %v6836_v11 = vrot.slane %v6834_v5, 4  ;;  %v7349_v36 = vshrl.u32 %v7216_v20, 16  ;;  %v9198_v39 = vld [vmem:[#allocation2 + $0x60] sm:$0xff]   ;;  %v6176_v5 = vld [vmem:[#allocation2 + $0x3c] sm:$0xf] }
 0x25d   : > { %v5802_v50 = vsel %vm9366_vm8, %v8760_v52, %v5801_v29  ;;  %v5803_v24 = vrot.slane %v5801_v29, 4  ;;  %v7352_v12 = vshll.u32 %v7216_v20, 16  ;;  %v7358_v55 = vshll.u32 %v7217_v49, 16  ;;  %v6177_v52 = vld [vmem:[#allocation2 + $0x40] sm:$0xf] }
 0x25e   : > { %8010 = vrot.lane.b32.xlu0 %v8902_v16, %s9295_s30  ;;  %v6838_v7 = vsel %vm9366_vm8, %v6836_v11, %v6837_v40  ;;  %v7351_v34 = vrot.slane %v7349_v36, 4  ;;  %v7362_v28 = vshrl.u32 %v7217_v49, 16  ;;  %v7368_v45 = vshll.u32 %v7218_v17, 16 }
 0x25f   : > { %6974 = vrot.lane.b32.xlu1 %v8840_v53, %s9294_s29  ;;  %v8839_v19 = vcombine.low %v6835_v0, %v6838_v7  ;;  %v5805_v22 = vsel %vm9366_vm8, %v5803_v24, %v5804_v59  ;;  %v7354_v18 = vrot.slane %v7352_v12, 5  ;;  %v7360_v3 = vrot.slane %v7358_v55, 5 }
 0x260   : > { %v8776_v9 = vcombine.low %v5802_v50, %v5805_v22  ;;  %v7364_v42 = vrot.slane %v7362_v28, 4  ;;  %v7370_v51 = vrot.slane %v7368_v45, 5  ;;  %v6333_v48 = vshrl.u32 %v6179_v25, 16  ;;  %v6178_v50 = vld [vmem:[#allocation2 + $0x44] sm:$0x1] }
 0x261   : > { %v7355_v63 = vor.u32 %v7354_v18, %v7351_v34  ;;  %v6336_v58 = vshll.u32 %v6179_v25, 16  ;;  %v6342_v2 = vshll.u32 %v6180_v44, 16  ;;  %v6346_v26 = vshrl.u32 %v6180_v44, 16  ;;  %v7213_v34 = vld [vmem:[#allocation2 + $0x3c] sm:$0xf] }
 0x262   : > { %6972 = vrot.lane.b32.xlu0 %v8839_v19, %s9294_s29  ;;  %v7365_v27 = vor.u32 %v7364_v42, %v7360_v3  ;;  %v6335_v8 = vrot.slane %v6333_v48, 4  ;;  %v6352_v57 = vshll.u32 %v6181_v41, 16  ;;  %v5317_v31 = vshrl.u32 %v5142_v23, 16  ;;  %v11078_v22 = vld [vmem:[#allocation2 + $0x40] sm:$0xf]  ;;  %v9200_v42 = vld [vmem:[#allocation2 + $0x54] sm:$0xff]  }
 0x263   : > { %5934 = vrot.lane.b32.xlu1 %v8776_v9, %s9290_s25  ;;  %v7356_v35 = vrot.slane %v7355_v63, 4  ;;  %v6338_v61 = vrot.slane %v6336_v58, 5  ;;  %v6344_v30 = vrot.slane %v6342_v2, 5  ;;  %v6348_v38 = vrot.slane %v6346_v26, 4 }
 0x264   : > { %v7366_v46 = vrot.slane %v7365_v27, 4  ;;  %v6354_v37 = vrot.slane %v6352_v57, 5  ;;  %v5319_v47 = vrot.slane %v5317_v31, 4  ;;  %v5320_v43 = vshll.u32 %v5142_v23, 16 }
 0x265   : > { %v7361_v20 = vsel %vm9424_vm12, %v7356_v35, %v7360_v3  ;;  %v6339_v56 = vor.u32 %v6338_v61, %v6335_v8  ;;  %v6349_v53 = vor.u32 %v6348_v38, %v6344_v30  ;;  %v5326_v4 = vshll.u32 %v5143_v60, 16 }
 0x266   : > { %7152 = vrot.lane.b32.xlu0 %v9197_v14, %s9293_s28  ;;  %v7371_v40 = vsel %vm9424_vm12, %v7366_v46, %v7370_v51  ;;  %v5322_v49 = vrot.slane %v5320_v43, 5  ;;  %v5330_v15 = vshrl.u32 %v5143_v60, 16  ;;  %v5336_v32 = vshll.u32 %v5144_v6, 16  ;;  %v9199_v6 = vld [vmem:[#allocation2 + $0x54] sm:$0xff]  }
 0x267   : > { %6114 = vrot.lane.b32.xlu1 %v9198_v39, %s9292_s27  ;;  %v8871_v29 = vcombine.low %v7361_v20, %v7371_v40  ;;  %v6340_v59 = vrot.slane %v6339_v56, 4  ;;  %v6350_v17 = vrot.slane %v6349_v53, 4  ;;  %v5328_v16 = vrot.slane %v5326_v4, 5  ;;  %v11080_v18 = vpop.permute.xlu0 %7140  ;;  %v7215_v53 = vld [vmem:[#allocation2 + $0x44] sm:$0x1] }
 0x268   : > { %v5323_v0 = vor.u32 %v5322_v49, %v5319_v47  ;;  %v5332_v11 = vrot.slane %v5330_v15, 4  ;;  %v5338_v36 = vrot.slane %v5336_v32, 5  ;;  %v6309_v24 = vshrl.u32 %v6176_v5, 16 }
 0x269   : > { %v6345_v12 = vsel %vm9424_vm12, %v6340_v59, %v6344_v30  ;;  %v6355_v55 = vsel %vm9424_vm12, %v6350_v17, %v6354_v37  ;;  %v6312_v25 = vshll.u32 %v6176_v5, 16  ;;  %v6318_v7 = vshll.u32 %v6177_v52, 16 }
 0x26a   : > { %7692 = vrot.lane.b32.xlu0 %v8871_v29, %s9297_s6  ;;  %v8808_v28 = vcombine.low %v6345_v12, %v6355_v55  ;;  %v5324_v45 = vrot.slane %v5323_v0, 4  ;;  %v5333_v44 = vor.u32 %v5332_v11, %v5328_v16  ;;  %v6311_v19 = vrot.slane %v6309_v24, 4  ;;  %v11106_v0 = vpop.permute.xlu1 %6102  ;;  %v7766_v24 = vld [vmem:[#allocation2 + $0x60] sm:$0xe] }
 0x26b   : > { %v6314_v3 = vrot.slane %v6312_v25, 5  ;;  %v6320_v41 = vrot.slane %v6318_v7, 5  ;;  %v6322_v23 = vshrl.u32 %v6177_v52, 16  ;;  %v6328_v9 = vshll.u32 %v6178_v50, 16  ;;  %v9064_v2 = vpop.f32.mrb[16].mxu0  ;;  %v6101_v61 = vpop.permute.xlu0 %6100  ;;  %v9213_v52 = vld [vmem:[%s11985_s2] sm:$0xff]  }
 0x26c   : > { %6654 = vrot.lane.b32.xlu1 %v8808_v28, %s9296_s5  ;;  %v5329_v51 = vsel %vm9424_vm12, %v5324_v45, %v5328_v16  ;;  %v5334_v48 = vrot.slane %v5333_v44, 4  ;;  %v7325_v63 = vshrl.u32 %v7213_v34, 16  ;;  %v7328_v58 = vshll.u32 %v7213_v34, 16  ;;  %v4283_v57 = vpop.f32.mrb[17].mxu0  ;;  %6148 = vst.msk [vmem:[#allocation3] sm:$0xff] %vm2169_vm4, %v6101_v61  ;;  %9078 = vmatprep.subr.bf16.mxu1 %v9213_v52 }
 0x26d   : > { %v6315_v26 = vor.u32 %v6314_v3, %v6311_v19  ;;  %v6324_v60 = vrot.slane %v6322_v23, 4  ;;  %v6330_v14 = vrot.slane %v6328_v9, 5  ;;  %v7334_v27 = vshll.u32 %v11078_v22, 16  ;;  %v9065_v38 = vpop.f32.mrb[18].mxu0  ;;  %9079 = vmatpush3.bf16.msra.mxu1 %v9213_v52  ;;  %v7767_v19 = vld [vmem:[#allocation2 + $0x64] sm:$0xf] }
 0x26e   : > { %v4369_v8 = vmul.f32 %v10982_v62, %v9064_v2  ;;  %6112 = vrot.lane.b32.xlu0 %v9200_v42, %s9292_s27  ;;  %v5339_v31 = vsel %vm9424_vm12, %v5334_v48, %v5338_v36  ;;  %v7327_v39 = vrot.slane %v7325_v63, 4  ;;  %v7330_v35 = vrot.slane %v7328_v58, 5  ;;  %v4286_v56 = vpop.f32.mrb[19].mxu0  ;;  %v4931_v42 = vld [vmem:[#allocation2 + $0x78] sm:$0xf] }
 0x26f   : > { %v4367_v30 = vmul.f32 %v10982_v62, %v4283_v57  ;;  %v8745_v46 = vcombine.low %v5329_v51, %v5339_v31  ;;  %v6316_v37 = vrot.slane %v6315_v26, 4  ;;  %v6325_v47 = vor.u32 %v6324_v60, %v6320_v41  ;;  %v4924_v26 = vld [vmem:[#allocation2 + $0x6c] sm:$0xf]  ;;  %v4935_v57 = vld [vmem:[#allocation2 + $0x80] sm:$0x1] }
 0x270   : > { %v4406_v43 = vadd.f32 %v10992_v54, %v4369_v8  ;;  %v4370_v20 = vmul.f32 %v10982_v62, %v9065_v38  ;;  %7150 = vrot.lane.b32.xlu1 %v9199_v6, %s9293_s28  ;;  %v7331_v4 = vor.u32 %v7330_v35, %v7327_v39  ;;  %v11095_v5 = vrot.slane %v7334_v27, 5  ;;  %v4928_v38 = vld [vmem:[#allocation2 + $0x74] sm:$0x1]  ;;  %v5141_v52 = vld [vmem:[#allocation2 + $0x44] sm:$0x1] }
 0x271   : > { %v4404_v40 = vadd.f32 %v10992_v54, %v4367_v30  ;;  %v4368_v49 = vmul.f32 %v10982_v62, %v4286_v56  ;;  %v6321_v15 = vsel %vm9424_vm12, %v6316_v37, %v6320_v41  ;;  %v6326_v32 = vrot.slane %v6325_v47, 4  ;;  %v5139_v37 = vld [vmem:[#allocation2 + $0x3c] sm:$0xf] }
 0x272   : > { %v4438_v29 = vmax.f32 %v4406_v43, 0.0  ;;  %v4407_v59 = vadd.f32 %v10992_v54, %v4370_v20  ;;  %v7332_v17 = vrot.slane %v7331_v4, 4  ;;  %v7338_v16 = vshrl.u32 %v11078_v22, 16  ;;  %v11115_v34 = vpop.permute.xlu0 %8004  ;;  %v11118_v9 = vpop.permute.xlu1 %6966  ;;  %v7768_v4 = vld [vmem:[#allocation2 + $0x68] sm:$0x1] }
 0x273   : > { %v4436_v11 = vmax.f32 %v4404_v40, 0.0  ;;  %v4405_v36 = vadd.f32 %v10992_v54, %v4368_v49  ;;  %v6331_v62 = vsel %vm9424_vm12, %v6326_v32, %v6330_v14  ;;  %v7344_v50 = vshll.u32 %v7215_v53, 16 }
 0x274   : > { %v8988_v12 = vpack.c.bf16 %v4438_v29, %v4438_v29  ;;  %v4439_v55 = vmax.f32 %v4407_v59, 0.0  ;;  %5616 = vrot.lane.b32.xlu1 %v8745_v46, %s9291_s26  ;;  %v8807_v25 = vcombine.low %v6321_v15, %v6331_v62  ;;  %v7337_v7 = vsel %vm9424_vm12, %v7332_v17, %v11095_v5  ;;  %v5692_v29 = vld [vmem:[#allocation2 + $0x60] sm:$0xe]  ;;  %v5693_v62 = vld [vmem:[#allocation2 + $0x64] sm:$0xf] }
 0x275   : > { %v8986_v28 = vpack.c.bf16 %v4436_v11, %v4436_v11  ;;  %v4437_v54 = vmax.f32 %v4405_v36, 0.0  ;;  %v7340_v45 = vrot.slane %v7338_v16, 4  ;;  %v7346_v44 = vrot.slane %v7344_v50, 5  ;;  %v5694_v50 = vld [vmem:[#allocation2 + $0x68] sm:$0x1] }
 0x276   : > { %v4702_v22 = vshrl.u32 %v8988_v12, 16  ;;  %v4705_v3 = vshll.u32 %v8988_v12, 16  ;;  %v8989_v41 = vpack.c.bf16 %v4439_v55, %v4439_v55  ;;  %6652 = vrot.lane.b32.xlu0 %v8807_v25, %s9296_s5  ;;  %v8889_v23 = vrot.slane %v7766_v24, 9 }
 0x277   : > { %v4685_v51 = vshrl.u32 %v8986_v28, 16  ;;  %v4688_v48 = vshll.u32 %v8986_v28, 16  ;;  %v8987_v63 = vpack.c.bf16 %v4437_v54, %v4437_v54  ;;  %v7341_v58 = vor.u32 %v7340_v45, %v11095_v5  ;;  %v5140_v5 = vld [vmem:[#allocation2 + $0x40] sm:$0xf]  ;;  %v11129_v59 = vpop.permute.xlu1 %5926  ;;  %v6730_v28 = vld [vmem:[#allocation2 + $0x64] sm:$0xf] }
 0x278   : > { %v4704_v2 = vrot.slane %v4702_v22, 7  ;;  %v4710_v60 = vshrl.u32 %v8989_v41, 16  ;;  %v4713_v14 = vshll.u32 %v8989_v41, 16  ;;  %v7888_v27 = vrot.slane %v7767_v19, 5  ;;  %v11123_v47 = vpop.permute.xlu0 %5928  ;;  %v6731_v22 = vld [vmem:[#allocation2 + $0x68] sm:$0x1] }
 0x279   : > { %v4687_v8 = vrot.slane %v4685_v51, 7  ;;  %v4693_v6 = vshrl.u32 %v8987_v63, 16  ;;  %v4696_v31 = vshll.u32 %v8987_v63, 16  ;;  %v7342_v39 = vrot.slane %v7341_v58, 4 }
 0x27a   : > { %v4707_v35 = vor.u32 %v4705_v3, %v4704_v2  ;;  %v4708_v61 = vrot.slane %v4704_v2, 4  ;;  %v4712_v30 = vrot.slane %v4710_v60, 7  ;;  %v7889_v46 = vsel %vm9366_vm8, %v8889_v23, %v7888_v27  ;;  %v7763_v3 = vld [vmem:[#allocation2 + $0x54] sm:$0xe] }
 0x27b   : > { %v4690_v43 = vor.u32 %v4688_v48, %v4687_v8  ;;  %v4691_v20 = vrot.slane %v4687_v8, 4  ;;  %v4695_v56 = vrot.slane %v4693_v6, 7  ;;  %v7347_v53 = vsel %vm9424_vm12, %v7342_v39, %v7346_v44  ;;  %v7764_v48 = vld [vmem:[#allocation2 + $0x58] sm:$0xf]  ;;  %v11148_v58 = vpop.permute.xlu1 %6106  ;;  %v6726_v39 = vld [vmem:[#allocation2 + $0x54] sm:$0xe] }
 0x27c   : > { %v4932_v40 = vsel %vm9432_vm13, %v4707_v35, %v4931_v42  ;;  %v4715_v49 = vor.u32 %v4713_v14, %v4712_v30  ;;  %v4717_v15 = vrot.slane %v4712_v30, 4  ;;  %v8870_v32 = vcombine.low %v7337_v7, %v7347_v53  ;;  %v6729_v7 = vld [vmem:[#allocation2 + $0x60] sm:$0xe]  ;;  %v11146_v63 = vpop.permute.xlu0 %6964  ;;  %v6728_v53 = vld [vmem:[#allocation2 + $0x5c] sm:$0x1] }
 0x27d   : > { %4933 = vst [vmem:[#allocation2 + $0x78] sm:$0xf] %v4932_v40  ;;  %v4925_v17 = vsel %vm9432_vm13, %v4690_v43, %v4924_v26  ;;  %v4698_v16 = vor.u32 %v4696_v31, %v4695_v56  ;;  %v4700_v11 = vrot.slane %v4695_v56, 4  ;;  %v7890_v36 = vrot.slane %v7888_v27, 4  ;;  %v7765_v27 = vld [vmem:[#allocation2 + $0x5c] sm:$0x1] }
 0x27e   : > { %4926 = vst [vmem:[#allocation2 + $0x6c] sm:$0xf] %v4925_v17  ;;  %v4716_v24 = vsel %vm9442_vm14, %v4708_v61, %v4715_v49  ;;  %v4936_v12 = vsel %vm9339_vm3, %v4717_v15, %v4935_v57  ;;  %7690 = vrot.lane.b32.xlu1 %v8870_v32, %s9297_s6  ;;  %v7891_v55 = vrot.slane %v7768_v4, 5  ;;  %v5293_v25 = vshrl.u32 %v5139_v37, 16  ;;  %v5689_v4 = vld [vmem:[#allocation2 + $0x54] sm:$0xe] }
 0x27f   : > { %4937 = vst [vmem:[#allocation2 + $0x80] sm:$0x1] %v4936_v12  ;;  %4934 = vst.msk [vmem:[#allocation2 + $0x7c] sm:$0xf] %vm231_vm0, %v4716_v24  ;;  %v4699_v54 = vsel %vm9442_vm14, %v4691_v20, %v4698_v16  ;;  %v4929_v45 = vsel %vm9339_vm3, %v4700_v11, %v4928_v38  ;;  %v5296_v44 = vshll.u32 %v5139_v37, 16  ;;  %v5302_v19 = vshll.u32 %v5140_v5, 16 }
 0x280   : > { %4930 = vst [vmem:[#allocation2 + $0x74] sm:$0x1] %v4929_v45  ;;  %4927 = vst.msk [vmem:[#allocation2 + $0x70] sm:$0xf] %vm231_vm0, %v4699_v54  ;;  %v7892_v41 = vsel %vm9366_vm8, %v7890_v36, %v7891_v55  ;;  %v5295_v23 = vrot.slane %v5293_v25, 4  ;;  %v5306_v42 = vshrl.u32 %v5140_v5, 16  ;;  %v11153_v40 = vpop.permute.xlu0 %7144 }
 0x281   : > { %v5312_v51 = vshll.u32 %v5141_v52, 16  ;;  %v8905_v2 = vcombine.low %v7889_v46, %v7892_v41  ;;  %v5298_v26 = vrot.slane %v5296_v44, 5  ;;  %v5304_v60 = vrot.slane %v5302_v19, 5  ;;  %v6727_v37 = vld [vmem:[#allocation2 + $0x58] sm:$0xf] }
 0x282   : > { %v8763_v14 = vrot.slane %v5692_v29, 9  ;;  %v5308_v8 = vrot.slane %v5306_v42, 4  ;;  %v5822_v6 = vrot.slane %v5693_v62, 5  ;;  %v5825_v31 = vrot.slane %v5694_v50, 5  ;;  %v5690_v5 = vld [vmem:[#allocation2 + $0x58] sm:$0xf] }
 0x283   : > { %v5314_v57 = vrot.slane %v5312_v51, 5  ;;  %8016 = vrot.lane.b32.xlu0 %v8905_v2, %s9295_s30  ;;  %v5299_v35 = vor.u32 %v5298_v26, %v5295_v23  ;;  %v8826_v61 = vrot.slane %v6729_v7, 9  ;;  %v6855_v30 = vrot.slane %v6730_v28, 5  ;;  %v5691_v29 = vld [vmem:[#allocation2 + $0x5c] sm:$0x1] }
 0x284   : > { %v6858_v38 = vrot.slane %v6731_v22, 5  ;;  %v5309_v43 = vor.u32 %v5308_v8, %v5304_v60  ;;  %v5823_v46 = vsel %vm9366_vm8, %v8763_v14, %v5822_v6  ;;  %v5824_v20 = vrot.slane %v5822_v6, 4  ;;  %v11159_v62 = vpop.permute.xlu1 %6646  ;;  %v7222_v25 = vld [vmem:[#allocation2 + $0x60] sm:$0xf]  ;;  %v7223_v44 = vld [vmem:[#allocation2 + $0x64] sm:$0xf] }
 0x285   : > { %v8888_v56 = vrot.slane %v7763_v3, 9  ;;  %v5300_v49 = vrot.slane %v5299_v35, 4  ;;  %v6856_v15 = vsel %vm9366_vm8, %v8826_v61, %v6855_v30  ;;  %v6857_v32 = vrot.slane %v6855_v30, 4  ;;  %v7224_v26 = vld [vmem:[#allocation2 + $0x68] sm:$0x1] }
 0x286   : > { %v7881_v52 = vrot.slane %v7764_v48, 5  ;;  %v5310_v17 = vrot.slane %v5309_v43, 4  ;;  %v5826_v16 = vsel %vm9366_vm8, %v5824_v20, %v5825_v31  ;;  %v7884_v11 = vrot.slane %v7765_v27, 5  ;;  %v9230_v23 = vld [vmem:[#allocation2 + $0x78] sm:$0xff]   ;;  %v6185_v31 = vld [vmem:[#allocation2 + $0x60] sm:$0xf] }
 0x287   : > { %v8825_v36 = vrot.slane %v6726_v39, 9  ;;  %v5305_v50 = vsel %vm9424_vm12, %v5300_v49, %v5304_v60  ;;  %v8779_v24 = vcombine.low %v5823_v46, %v5826_v16  ;;  %v6859_v12 = vsel %vm9366_vm8, %v6857_v32, %v6858_v38  ;;  %v11174_v60 = vpop.permute.xlu0 %7684  ;;  %5118 = vst.msk [vmem:[#allocation3 + $0x50] sm:$0xff] %vm12037_vm7, %v9230_v23  ;;  %v6186_v38 = vld [vmem:[#allocation2 + $0x64] sm:$0xf]  ;;  %v5148_v32 = vld [vmem:[#allocation2 + $0x60] sm:$0xf] }
 0x288   : > { %v7882_v55 = vsel %vm9366_vm8, %v8888_v56, %v7881_v52  ;;  %v5315_v7 = vsel %vm9424_vm12, %v5310_v17, %v5314_v57  ;;  %v8842_v28 = vcombine.low %v6856_v15, %v6859_v12  ;;  %v7883_v54 = vrot.slane %v7881_v52, 4  ;;  %v11176_v14 = vpop.permute.xlu1 %7142 }
 0x289   : > { %v6848_v45 = vrot.slane %v6727_v37, 5  ;;  %v8744_v19 = vcombine.low %v5305_v50, %v5315_v7  ;;  %5940 = vrot.lane.b32.xlu0 %v8779_v24, %s9290_s25  ;;  %v6851_v22 = vrot.slane %v6728_v53, 5  ;;  %v8762_v3 = vrot.slane %v5689_v4, 9  ;;  %v9231_v37 = vld [vmem:[#allocation2 + $0x6c] sm:$0xff]   ;;  %v6187_v53 = vld [vmem:[#allocation2 + $0x68] sm:$0x1] }
 0x28a   : > { %v5815_v41 = vrot.slane %v5690_v5, 5  ;;  %v7885_v42 = vsel %vm9366_vm8, %v7883_v54, %v7884_v11  ;;  %v5818_v2 = vrot.slane %v5691_v29, 5  ;;  %v7397_v6 = vshrl.u32 %v7222_v25, 16  ;;  %v9216_v29 = vld [vmem:[%s11985_s2 + $0x8] sm:$0xff]   ;;  %5117 = vst.msk [vmem:[#allocation3 + $0x48] sm:$0xff] %vm12035_vm6, %v9231_v37  ;;  %v9202_v54 = vld [vmem:[#allocation2 + $0x78] sm:$0xff]  }
 0x28b   : > { %v6849_v51 = vsel %vm9366_vm8, %v8825_v36, %v6848_v45  ;;  %v6850_v48 = vrot.slane %v6848_v45, 4  ;;  %5614 = vrot.lane.b32.xlu1 %v8744_v19, %s9291_s26  ;;  %v8904_v27 = vcombine.low %v7882_v55, %v7885_v42  ;;  %v7400_v35 = vshll.u32 %v7222_v25, 16  ;;  %v5149_v25 = vld [vmem:[#allocation2 + $0x64] sm:$0xf]  ;;  %v6105_v7 = vpop.permute.xlu0 %6104  ;;  %9080 = vmatprep.subr.bf16.mxu1 %v9216_v29  ;;  %v5150_v42 = vld [vmem:[#allocation2 + $0x68] sm:$0x1] }
 0x28c   : > { %v5816_v8 = vsel %vm9366_vm8, %v8762_v3, %v5815_v41  ;;  %v5817_v57 = vrot.slane %v5815_v41, 4  ;;  %v7406_v61 = vshll.u32 %v7223_v44, 16  ;;  %v7410_v30 = vshrl.u32 %v7223_v44, 16  ;;  %v5609_v52 = vpop.permute.xlu1 %5608  ;;  %9081 = vmatpush3.bf16.msra.mxu1 %v9216_v29 }
 0x28d   : > { %v6852_v39 = vsel %vm9366_vm8, %v6850_v48, %v6851_v22  ;;  %8014 = vrot.lane.b32.xlu0 %v8904_v27, %s9295_s30  ;;  %v7399_v20 = vrot.slane %v7397_v6, 4  ;;  %v7416_v56 = vshll.u32 %v7224_v26, 16  ;;  %v7402_v5 = vrot.slane %v7400_v35, 5  ;;  %5654 = vst.msk [vmem:[#allocation3 + $0x10] sm:$0xff] %vm1668_vm1, %v5609_v52  ;;  %v6182_v27 = vld [vmem:[#allocation2 + $0x54] sm:$0xf] }
 0x28e   : > { %v8841_v43 = vcombine.low %v6849_v51, %v6852_v39  ;;  %v5819_v46 = vsel %vm9366_vm8, %v5817_v57, %v5818_v2  ;;  %v7408_v49 = vrot.slane %v7406_v61, 5  ;;  %v7412_v15 = vrot.slane %v7410_v30, 4  ;;  %5974 = vst.msk [vmem:[#allocation3 + $0x10] sm:$0xff] %vm1992_vm2, %v11123_v47  ;;  %v9203_v51 = vld [vmem:[#allocation2 + $0x78] sm:$0xff]  }
 0x28f   : > { %v8778_v4 = vcombine.low %v5816_v8, %v5819_v46  ;;  %6978 = vrot.lane.b32.xlu1 %v8842_v28, %s9294_s29  ;;  %v7418_v17 = vrot.slane %v7416_v56, 5  ;;  %v6381_v16 = vshrl.u32 %v6185_v31, 16  ;;  %v6384_v11 = vshll.u32 %v6185_v31, 16  ;;  %6150 = vst.msk [vmem:[#allocation3 + $0x10] sm:$0xff] %vm2169_vm4, %v6105_v7  ;;  %v6183_v39 = vld [vmem:[#allocation2 + $0x58] sm:$0xf] }
 0x290   : > { %v6390_v36 = vshll.u32 %v6186_v38, 16  ;;  %v7403_v50 = vor.u32 %v7402_v5, %v7399_v20  ;;  %v7413_v24 = vor.u32 %v7412_v15, %v7408_v49  ;;  %v6394_v12 = vshrl.u32 %v6186_v38, 16  ;;  %v7219_v15 = vld [vmem:[#allocation2 + $0x54] sm:$0xf] }
 0x291   : > { %v6400_v55 = vshll.u32 %v6187_v53, 16  ;;  %6976 = vrot.lane.b32.xlu0 %v8841_v43, %s9294_s29  ;;  %v6383_v28 = vrot.slane %v6381_v16, 4  ;;  %v6386_v45 = vrot.slane %v6384_v11, 5  ;;  %v5365_v19 = vshrl.u32 %v5148_v32, 16  ;;  %v7220_v16 = vld [vmem:[#allocation2 + $0x58] sm:$0xf] }
 0x292   : > { %v6392_v44 = vrot.slane %v6390_v36, 5  ;;  %v7404_v22 = vrot.slane %v7403_v50, 4  ;;  %v7414_v3 = vrot.slane %v7413_v24, 4  ;;  %v6396_v41 = vrot.slane %v6394_v12, 4 }
 0x293   : > { %v6402_v23 = vrot.slane %v6400_v55, 5  ;;  %5938 = vrot.lane.b32.xlu1 %v8778_v4, %s9290_s25  ;;  %v6387_v47 = vor.u32 %v6386_v45, %v6383_v28  ;;  %v5367_v48 = vrot.slane %v5365_v19, 4  ;;  %v5368_v2 = vshll.u32 %v5148_v32, 16  ;;  %v6184_v4 = vld [vmem:[#allocation2 + $0x5c] sm:$0x1]  ;;  %v9205_v28 = vld [vmem:[#allocation2 + $0x6c] sm:$0xff]  }
 0x294   : > { %v5374_v26 = vshll.u32 %v5149_v25, 16  ;;  %v7409_v8 = vsel %vm9424_vm12, %v7404_v22, %v7408_v49  ;;  %v7419_v57 = vsel %vm9424_vm12, %v7414_v3, %v7418_v17  ;;  %v6397_v6 = vor.u32 %v6396_v41, %v6392_v44 }
 0x295   : > { %v5378_v31 = vshrl.u32 %v5149_v25, 16  ;;  %7156 = vrot.lane.b32.xlu0 %v9202_v54, %s9293_s28  ;;  %v8873_v35 = vcombine.low %v7409_v8, %v7419_v57  ;;  %v6388_v61 = vrot.slane %v6387_v47, 4  ;;  %v5370_v30 = vrot.slane %v5368_v2, 5  ;;  %v11222_v47 = vld [vmem:[%s11986_s3 + $0x2] ss:$0 sm:$0xff] }
 0x296   : > { %v5376_v38 = vrot.slane %v5374_v26, 5  ;;  %v6398_v37 = vrot.slane %v6397_v6, 4  ;;  %v5384_v46 = vshll.u32 %v5150_v42, 16  ;;  %v6357_v20 = vshrl.u32 %v6182_v27, 16  ;;  %v9204_v26 = vld [vmem:[#allocation2 + $0x6c] sm:$0xff]  }
 0x297   : > { %v5380_v43 = vrot.slane %v5378_v31, 4  ;;  %6118 = vrot.lane.b32.xlu1 %v9203_v51, %s9292_s27  ;;  %v6393_v56 = vsel %vm9424_vm12, %v6388_v61, %v6392_v44  ;;  %v5371_v53 = vor.u32 %v5370_v30, %v5367_v48  ;;  %v6360_v5 = vshll.u32 %v6182_v27, 16 }
 0x298   : > { %v6366_v49 = vshll.u32 %v6183_v39, 16  ;;  %v6403_v32 = vsel %vm9424_vm12, %v6398_v37, %v6402_v23  ;;  %v5386_v29 = vrot.slane %v5384_v46, 5  ;;  %v6359_v17 = vrot.slane %v6357_v20, 4 }
 0x299   : > { %v5381_v52 = vor.u32 %v5380_v43, %v5376_v38  ;;  %7696 = vrot.lane.b32.xlu0 %v8873_v35, %s9297_s6  ;;  %v8810_v11 = vcombine.low %v6393_v56, %v6403_v32  ;;  %v5372_v36 = vrot.slane %v5371_v53, 4  ;;  %v6362_v50 = vrot.slane %v6360_v5, 5  ;;  %v6645_v54 = vpop.permute.xlu0 %6644  ;;  %v7221_v35 = vld [vmem:[#allocation2 + $0x5c] sm:$0x1] }
 0x29a   : > { %v11209_v24 = vrot.slane %v6366_v49, 5  ;;  %v6370_v55 = vshrl.u32 %v6183_v39, 16  ;;  %v6376_v25 = vshll.u32 %v6184_v4, 16  ;;  %v7373_v7 = vshrl.u32 %v7219_v15, 16  ;;  %6692 = vst.msk [vmem:[#allocation3] sm:$0xff] %vm2714_vm5, %v6645_v54  ;;  %v9068_v3 = vpop.f32.mrb[20].mxu0 }
 0x29b   : > { %v5382_v12 = vrot.slane %v5381_v52, 4  ;;  %6658 = vrot.lane.b32.xlu1 %v8810_v11, %s9296_s5  ;;  %v5377_v45 = vsel %vm9424_vm12, %v5372_v36, %v5376_v38  ;;  %v6363_v44 = vor.u32 %v6362_v50, %v6359_v17  ;;  %v7376_v19 = vshll.u32 %v7219_v15, 16  ;;  %v4299_v2 = vpop.f32.mrb[21].mxu0  ;;  %v7772_v11 = vld [vmem:[#allocation2 + $0x78] sm:$0xe] }
 0x29c   : > { %v7382_v22 = vshll.u32 %v7220_v16, 16  ;;  %v6372_v23 = vrot.slane %v6370_v55, 4  ;;  %v6378_v42 = vrot.slane %v6376_v25, 5  ;;  %v7375_v51 = vrot.slane %v7373_v7, 4  ;;  %v9069_v31 = vpop.f32.mrb[22].mxu0 }
 0x29d   : > { %v5387_v41 = vsel %vm9424_vm12, %v5382_v12, %v5386_v29  ;;  %vm12038_vm15 = vcmask 195744   ;;  %v4373_v48 = vmul.f32 %v11222_v47, %v9068_v3  ;;  %6116 = vrot.lane.b32.xlu0 %v9205_v28, %s9292_s27  ;;  %v6364_v8 = vrot.slane %v6363_v44, 4  ;;  %v5607_v6 = vpop.permute.xlu1 %5606  ;;  %v11235_v38 = vpop.permute.xlu0 %8008  ;;  %v7773_v54 = vld [vmem:[#allocation2 + $0x7c] sm:$0xf]  ;;  %v7774_v44 = vld [vmem:[#allocation2 + $0x80] sm:$0x1] }
 0x29e   : > { %7012 = vst.msk [vmem:[#allocation3] sm:$0xff] %vm12038_vm15, %v11146_v63  ;;  %v8747_v27 = vcombine.low %v5377_v45, %v5387_v41  ;;  %v7378_v57 = vrot.slane %v7376_v19, 5  ;;  %vm12039_vm7 = vcmask 228544   ;;  %v4371_v63 = vmul.f32 %v11222_v47, %v4299_v2  ;;  %v4302_v46 = vpop.f32.mrb[23].mxu0  ;;  %vm12040_vm6 = vmmov %vm12038_vm15 }
 0x29f   : > { %7188 = vst.msk [vmem:[#allocation3] sm:$0xff] %vm12039_vm7, %v11080_v18  ;;  %v6373_v39 = vor.u32 %v6372_v23, %v11209_v24  ;;  %v11230_v61 = vrot.slane %v7382_v22, 5  ;;  %v7386_v30 = vshrl.u32 %v7220_v16, 16  ;;  %v11240_v18 = vld [vmem:[%s11986_s3 + $0x3] ss:$0 sm:$0xff]  ;;  %v4374_v43 = vmul.f32 %v11222_v47, %v9069_v31  ;;  %7154 = vrot.lane.b32.xlu1 %v9204_v26, %s9293_s28  ;;  %vm12041_vm15 = vmmov %vm12039_vm7 }
 0x2a0   : > { %7732 = vst.msk [vmem:[#allocation3] sm:$0xff] %vm3758_vm10, %v11174_v60  ;;  %v4410_v37 = vadd.f32 %v11240_v18, %v4373_v48  ;;  %v6369_v60 = vsel %vm9424_vm12, %v6364_v8, %v11209_v24  ;;  %v7379_v20 = vor.u32 %v7378_v57, %v7375_v51  ;;  %v4408_v56 = vadd.f32 %v11240_v18, %v4371_v63  ;;  %v4945_v22 = vld [vmem:[#allocation2 + $0x90] sm:$0xf]  ;;  %v5145_v63 = vld [vmem:[#allocation2 + $0x54] sm:$0xf] }
 0x2a1   : > { %5653 = vst.msk [vmem:[#allocation3 + $0x8] sm:$0xff] %vm1668_vm1, %v5607_v6  ;;  %v4372_v53 = vmul.f32 %v11222_v47, %v4302_v46  ;;  %v6374_v4 = vrot.slane %v6373_v39, 4  ;;  %v7388_v5 = vrot.slane %v7386_v30, 4  ;;  %v4411_v15 = vadd.f32 %v11240_v18, %v4374_v43  ;;  %v11285_v2 = vld [vmem:[%s11985_s2 + $0x10] ss:$0 sps:$4 sm:$0x33]  }
 0x2a2   : > { %8052 = vst.msk [vmem:[#allocation3] sm:$0xff] %vm4079_vm11, %v11115_v34  ;;  %v4442_v49 = vmax.f32 %v4410_v37, 0.0  ;;  %v7380_v32 = vrot.slane %v7379_v20, 4  ;;  %v7392_v52 = vshll.u32 %v7221_v35, 16  ;;  %v11259_v34 = vpop.permute.xlu1 %6970  ;;  %v8891_v19 = vrot.slane %v7772_v11, 9 }
 0x2a3   : > { %5973 = vst.msk [vmem:[#allocation3 + $0x8] sm:$0xff] %vm1992_vm2, %v11129_v59  ;;  %v4440_v59 = vmax.f32 %v4408_v56, 0.0  ;;  %v4409_v29 = vadd.f32 %v11240_v18, %v4372_v53  ;;  %v6379_v17 = vsel %vm9424_vm12, %v6374_v4, %v6378_v42  ;;  %v7389_v16 = vor.u32 %v7388_v5, %v11230_v61  ;;  %5620 = vrot.lane.b32.xlu1 %v8747_v27, %s9291_s26  ;;  %v4938_v27 = vld [vmem:[#allocation2 + $0x84] sm:$0xf]  ;;  %v4949_v39 = vld [vmem:[#allocation2 + $0x98] sm:$0x1] }
 0x2a4   : > { %6149 = vst.msk [vmem:[#allocation3 + $0x8] sm:$0xff] %vm2169_vm4, %v11106_v0  ;;  %v11267_v0 = vpop.permute.xlu0 %5932  ;;  %v8992_v36 = vpack.c.bf16 %v4442_v49, %v4442_v49  ;;  %v4443_v50 = vmax.f32 %v4411_v15, 0.0  ;;  %v7385_v24 = vsel %vm9424_vm12, %v7380_v32, %v11230_v61  ;;  %v7394_v7 = vrot.slane %v7392_v52, 5  ;;  %v5146_v49 = vld [vmem:[#allocation2 + $0x58] sm:$0xf] }
 0x2a5   : > { %6693 = vst.msk [vmem:[#allocation3 + $0x8] sm:$0xff] %vm2714_vm5, %v11159_v62  ;;  %v8809_v62 = vcombine.low %v6369_v60, %v6379_v17  ;;  %v8990_v12 = vpack.c.bf16 %v4440_v59, %v4440_v59  ;;  %v4441_v55 = vmax.f32 %v4409_v29, 0.0  ;;  %v7390_v25 = vrot.slane %v7389_v16, 4  ;;  %v4942_v60 = vld [vmem:[#allocation2 + $0x8c] sm:$0x1] }
 0x2a6   : > { %7013 = vst.msk [vmem:[#allocation3 + $0x8] sm:$0xff] %vm12040_vm6, %v11118_v9  ;;  %v4736_v9 = vshrl.u32 %v8992_v36, 16  ;;  %v4739_v28 = vshll.u32 %v8992_v36, 16  ;;  %v8993_v45 = vpack.c.bf16 %v4443_v50, %v4443_v50  ;;  %v11280_v51 = vpop.permute.xlu1 %5930  ;;  %v7902_v30 = vrot.slane %v7773_v54, 5  ;;  %v5147_v16 = vld [vmem:[#allocation2 + $0x5c] sm:$0x1] }
 0x2a7   : > { %7189 = vst.msk [vmem:[#allocation3 + $0x8] sm:$0xff] %vm12041_vm15, %v11176_v14  ;;  %6656 = vrot.lane.b32.xlu0 %v8809_v62, %s9296_s5  ;;  %v4719_v3 = vshrl.u32 %v8990_v12, 16  ;;  %v4722_v41 = vshll.u32 %v8990_v12, 16  ;;  %v8991_v23 = vpack.c.bf16 %v4441_v55, %v4441_v55  ;;  %v7395_v42 = vsel %vm9424_vm12, %v7390_v25, %v7394_v7  ;;  %v5698_v11 = vld [vmem:[#allocation2 + $0x78] sm:$0xe] }
 0x2a8   : > { %v11278_v14 = vpop.permute.xlu0 %8006  ;;  %v4738_v26 = vrot.slane %v4736_v9, 7  ;;  %v4744_v8 = vshrl.u32 %v8993_v45, 16  ;;  %v4747_v57 = vshll.u32 %v8993_v45, 16  ;;  %v8872_v6 = vcombine.low %v7385_v24, %v7395_v42  ;;  %v5699_v12 = vld [vmem:[#allocation2 + $0x7c] sm:$0xf] }
 0x2a9   : > { %v8068_v48 = vld [vmem:[#allocation3] sm:$0xff]  ;;  %v4721_v31 = vrot.slane %v4719_v3, 7  ;;  %v4727_v35 = vshrl.u32 %v8991_v23, 16  ;;  %v4730_v61 = vshll.u32 %v8991_v23, 16  ;;  %vm12042_vm7 = vcmask 1041408  }
 0x2aa   : > { %9084 = vmatprep.mubr.msk.bf16.mxu1 %vm4132_vm9, %v8068_v48  ;;  %9117 = vmatprep.subr.msk.bf16.mxu1 %vm12042_vm7, %v11285_v2  ;;  %v4741_v37 = vor.u32 %v4739_v28, %v4738_v26  ;;  %v4742_v43 = vrot.slane %v4738_v26, 4  ;;  %v4746_v46 = vrot.slane %v4744_v8, 7  ;;  %v7905_v20 = vrot.slane %v7774_v44, 5  ;;  %v11295_v32 = vpop.permute.xlu1 %6110  ;;  %v5700_v55 = vld [vmem:[#allocation2 + $0x80] sm:$0x1] }
 0x2ab   : > { %7694 = vrot.lane.b32.xlu1 %v8872_v6, %s9297_s6  ;;  %v4724_v56 = vor.u32 %v4722_v41, %v4721_v31  ;;  %v4725_v53 = vrot.slane %v4721_v31, 4  ;;  %v4729_v4 = vrot.slane %v4727_v35, 7  ;;  %v7903_v5 = vsel %vm9366_vm8, %v8891_v19, %v7902_v30  ;;  %v6735_v28 = vld [vmem:[#allocation2 + $0x78] sm:$0xe]  ;;  %v6736_v45 = vld [vmem:[#allocation2 + $0x7c] sm:$0xf] }
 0x2ac   : > { %v11293_v15 = vpop.permute.xlu0 %6968  ;;  %v4946_v52 = vsel %vm9432_vm13, %v4741_v37, %v4945_v22  ;;  %v4749_v59 = vor.u32 %v4747_v57, %v4746_v46  ;;  %v4751_v29 = vrot.slane %v4746_v46, 4  ;;  %v7904_v17 = vrot.slane %v7902_v30, 4  ;;  %v6737_v41 = vld [vmem:[#allocation2 + $0x80] sm:$0x1]  ;;  %v7769_v23 = vld [vmem:[#allocation2 + $0x6c] sm:$0xe] }
 0x2ad   : > { %4947 = vst [vmem:[#allocation2 + $0x90] sm:$0xf] %v4946_v52  ;;  %v4939_v36 = vsel %vm9432_vm13, %v4724_v56, %v4938_v27  ;;  %v4732_v50 = vor.u32 %v4730_v61, %v4729_v4  ;;  %v4734_v62 = vrot.slane %v4729_v4, 4  ;;  %v5341_v24 = vshrl.u32 %v5145_v63, 16  ;;  %v7770_v57 = vld [vmem:[#allocation2 + $0x70] sm:$0xf] }
 0x2ae   : > { %4940 = vst [vmem:[#allocation2 + $0x84] sm:$0xf] %v4939_v36  ;;  %v4750_v25 = vsel %vm9442_vm14, %v4742_v43, %v4749_v59  ;;  %v4950_v7 = vsel %vm9339_vm3, %v4751_v29, %v4949_v39  ;;  %v7906_v54 = vsel %vm9366_vm8, %v7904_v17, %v7905_v20  ;;  %v5344_v9 = vshll.u32 %v5145_v63, 16  ;;  %v7771_v35 = vld [vmem:[#allocation2 + $0x74] sm:$0x1] }
 0x2af   : > { %4951 = vst [vmem:[#allocation2 + $0x98] sm:$0x1] %v4950_v7  ;;  %4948 = vst.msk [vmem:[#allocation2 + $0x94] sm:$0xf] %vm231_vm0, %v4750_v25  ;;  %v4733_v44 = vsel %vm9442_vm14, %v4725_v53, %v4732_v50  ;;  %v4943_v19 = vsel %vm9339_vm3, %v4734_v62, %v4942_v60  ;;  %v8907_v22 = vcombine.low %v7903_v5, %v7906_v54  ;;  %v5343_v3 = vrot.slane %v5341_v24, 4 }
 0x2b0   : > { %v11312_v42 = vpop.permute.xlu0 %7148  ;;  %4944 = vst [vmem:[#allocation2 + $0x8c] sm:$0x1] %v4943_v19  ;;  %4941 = vst.msk [vmem:[#allocation2 + $0x88] sm:$0xf] %vm231_vm0, %v4733_v44  ;;  %v5346_v48 = vrot.slane %v5344_v9, 5  ;;  %v5350_v26 = vshll.u32 %v5146_v49, 16  ;;  %v11316_v61 = vpop.permute.xlu1 %6650 }
 0x2b1   : > { %v5354_v27 = vshrl.u32 %v5146_v49, 16  ;;  %v5360_v8 = vshll.u32 %v5147_v16, 16  ;;  %8020 = vrot.lane.b32.xlu0 %v8907_v22, %s9295_s30  ;;  %v8765_v6 = vrot.slane %v5698_v11, 9  ;;  %v5836_v63 = vrot.slane %v5699_v12, 5  ;;  %v6732_v60 = vld [vmem:[#allocation2 + $0x6c] sm:$0xe] }
 0x2b2   : > { %v5839_v31 = vrot.slane %v5700_v55, 5  ;;  %v8828_v39 = vrot.slane %v6735_v28, 9  ;;  %v5347_v30 = vor.u32 %v5346_v48, %v5343_v3  ;;  %v5352_v37 = vrot.slane %v5350_v26, 5  ;;  %v6733_v20 = vld [vmem:[#allocation2 + $0x70] sm:$0xf] }
 0x2b3   : > { %v5356_v43 = vrot.slane %v5354_v27, 4  ;;  %v5362_v46 = vrot.slane %v5360_v8, 5  ;;  %v5837_v56 = vsel %vm9366_vm8, %v8765_v6, %v5836_v63  ;;  %v5838_v53 = vrot.slane %v5836_v63, 4  ;;  %v6734_v49 = vld [vmem:[#allocation2 + $0x74] sm:$0x1] }
 0x2b4   : > { %v6869_v4 = vrot.slane %v6736_v45, 5  ;;  %v6872_v5 = vrot.slane %v6737_v41, 5  ;;  %v5695_v52 = vld [vmem:[#allocation2 + $0x6c] sm:$0xe]  ;;  %v11320_v59 = vpop.permute.xlu0 %7688  ;;  %v5348_v29 = vrot.slane %v5347_v30, 4  ;;  %v8890_v16 = vrot.slane %v7769_v23, 9  ;;  %v11328_v7 = vpop.permute.xlu1 %7146 }
 0x2b5   : > { %v5357_v17 = vor.u32 %v5356_v43, %v5352_v37  ;;  %v7895_v11 = vrot.slane %v7770_v57, 5  ;;  %v5840_v36 = vsel %vm9366_vm8, %v5838_v53, %v5839_v31  ;;  %v7898_v24 = vrot.slane %v7771_v35, 5  ;;  %v5696_v12 = vld [vmem:[#allocation2 + $0x70] sm:$0xf]  ;;  %v5697_v55 = vld [vmem:[#allocation2 + $0x74] sm:$0x1] }
 0x2b6   : > { %v11326_v50 = vsel %vm9366_vm8, %v8828_v39, %v6869_v4  ;;  %v6871_v62 = vrot.slane %v6869_v4, 4  ;;  %v7228_v25 = vld [vmem:[#allocation2 + $0x78] sm:$0xf]  ;;  %v5353_v54 = vsel %vm9424_vm12, %v5348_v29, %v5352_v37  ;;  %v8781_v28 = vcombine.low %v5837_v56, %v5840_v36  ;;  %v7229_v8 = vld [vmem:[#allocation2 + $0x7c] sm:$0xf]  ;;  %v9232_v30 = vld [vmem:[#allocation2 + $0x90] sm:$0xff]  }
 0x2b7   : > { %v5358_v9 = vrot.slane %v5357_v17, 4  ;;  %v7896_v45 = vsel %vm9366_vm8, %v8890_v16, %v7895_v11  ;;  %v7897_v19 = vrot.slane %v7895_v11, 4  ;;  %v8827_v22 = vrot.slane %v6732_v60, 9  ;;  %v7230_v39 = vld [vmem:[#allocation2 + $0x80] sm:$0x1]  ;;  %v9233_v56 = vld [vmem:[#allocation2 + $0x84] sm:$0xff]  }
 0x2b8   : > { %v6873_v44 = vsel %vm9366_vm8, %v6871_v62, %v6872_v5  ;;  %v6862_v3 = vrot.slane %v6733_v20, 5  ;;  %v6109_v41 = vpop.permute.xlu0 %6108  ;;  %5944 = vrot.lane.b32.xlu0 %v8781_v28, %s9290_s25  ;;  %v6865_v26 = vrot.slane %v6734_v49, 5  ;;  %v8764_v27 = vrot.slane %v5695_v52, 9  ;;  %v5613_v35 = vpop.permute.xlu1 %5612  ;;  %v6191_v20 = vld [vmem:[#allocation2 + $0x78] sm:$0xf] }
 0x2b9   : > { %v5363_v23 = vsel %vm9424_vm12, %v5358_v9, %v5362_v46  ;;  %v8844_v48 = vcombine.low %v11326_v50, %v6873_v44  ;;  %v7899_v6 = vsel %vm9366_vm8, %v7897_v19, %v7898_v24  ;;  %v5829_v43 = vrot.slane %v5696_v12, 5  ;;  %5656 = vst.msk [vmem:[#allocation3 + $0x20] sm:$0xff] %vm1668_vm1, %v5613_v35  ;;  %v6192_v52 = vld [vmem:[#allocation2 + $0x7c] sm:$0xf]  ;;  %v6193_v12 = vld [vmem:[#allocation2 + $0x80] sm:$0x1] }
 0x2ba   : > { %v8746_v57 = vcombine.low %v5353_v54, %v5363_v23  ;;  %v6863_v63 = vsel %vm9366_vm8, %v8827_v22, %v6862_v3  ;;  %v6864_v31 = vrot.slane %v6862_v3, 4  ;;  %v8906_v37 = vcombine.low %v7896_v45, %v7899_v6  ;;  %5976 = vst.msk [vmem:[#allocation3 + $0x20] sm:$0xff] %vm1992_vm2, %v11267_v0  ;;  %v5154_v28 = vld [vmem:[#allocation2 + $0x78] sm:$0xf]  ;;  %v5155_v3 = vld [vmem:[#allocation2 + $0x7c] sm:$0xf] }
 0x2bb   : > { %v5832_v46 = vrot.slane %v5697_v55, 5  ;;  %v7445_v60 = vshrl.u32 %v7228_v25, 16  ;;  %v7448_v4 = vshll.u32 %v7228_v25, 16  ;;  %v7454_v5 = vshll.u32 %v7229_v8, 16  ;;  %6152 = vst.msk [vmem:[#allocation3 + $0x20] sm:$0xff] %vm2169_vm4, %v6109_v41 }
 0x2bc   : > { %5618 = vrot.lane.b32.xlu1 %v8746_v57, %s9291_s26  ;;  %v6866_v53 = vsel %vm9366_vm8, %v6864_v31, %v6865_v26  ;;  %v7458_v49 = vshrl.u32 %v7229_v8, 16  ;;  %v6649_v29 = vpop.permute.xlu0 %6648  ;;  %vm12043_vm6 = vcmask 31744   ;;  %8018 = vrot.lane.b32.xlu0 %v8906_v37, %s9295_s30  ;;  %v5830_v16 = vsel %vm9366_vm8, %v8764_v27, %v5829_v43  ;;  %v5156_v57 = vld [vmem:[#allocation2 + $0x80] sm:$0x1] }
 0x2bd   : > { %5120 = vst.msk [vmem:[#allocation3 + $0x60] sm:$0xff] %vm12043_vm6, %v9232_v30  ;;  %v8843_v17 = vcombine.low %v6863_v63, %v6866_v53  ;;  %v5831_v11 = vrot.slane %v5829_v43, 4  ;;  %v7447_v36 = vrot.slane %v7445_v60, 4  ;;  %vm12044_vm15 = vmmov %vm12043_vm6  ;;  %v7450_v50 = vrot.slane %v7448_v4, 5  ;;  %v9208_v30 = vld [vmem:[#allocation2 + $0x90] sm:$0xff]  }
 0x2be   : > { %6694 = vst.msk [vmem:[#allocation3 + $0x10] sm:$0xff] %vm2714_vm5, %v6649_v29  ;;  %v7456_v62 = vrot.slane %v7454_v5, 5  ;;  %v7460_v0 = vrot.slane %v7458_v49, 4  ;;  %v7464_v24 = vshll.u32 %v7230_v39, 16  ;;  %vm12045_vm7 = vcmask 195744  }
 0x2bf   : > { %5119 = vst.msk [vmem:[#allocation3 + $0x58] sm:$0xff] %vm12044_vm15, %v9233_v56  ;;  %v5833_v55 = vsel %vm9366_vm8, %v5831_v11, %v5832_v46  ;;  %v6429_v25 = vshrl.u32 %v6191_v20, 16  ;;  %v6432_v54 = vshll.u32 %v6191_v20, 16  ;;  %v6438_v9 = vshll.u32 %v6192_v52, 16  ;;  %v6189_v4 = vld [vmem:[#allocation2 + $0x70] sm:$0xf]  ;;  %vm12047_vm15 = vmmov %vm12045_vm7 }
 0x2c0   : > { %7014 = vst.msk [vmem:[#allocation3 + $0x10] sm:$0xff] %vm12045_vm7, %v11293_v15  ;;  %vm12046_vm6 = vcmask 228544   ;;  %6982 = vrot.lane.b32.xlu1 %v8844_v48, %s9294_s29  ;;  %v8780_v45 = vcombine.low %v5830_v16, %v5833_v55  ;;  %v7451_v44 = vor.u32 %v7450_v50, %v7447_v36  ;;  %v7461_v19 = vor.u32 %v7460_v0, %v7456_v62  ;;  %v9207_v15 = vld [vmem:[#allocation2 + $0x90] sm:$0xff]   ;;  %v7225_v55 = vld [vmem:[#allocation2 + $0x6c] sm:$0xf] }
 0x2c1   : > { %7190 = vst.msk [vmem:[#allocation3 + $0x10] sm:$0xff] %vm12046_vm6, %v11153_v40  ;;  %v7466_v22 = vrot.slane %v7464_v24, 5  ;;  %6980 = vrot.lane.b32.xlu0 %v8843_v17, %s9294_s29  ;;  %v6431_v41 = vrot.slane %v6429_v25, 4  ;;  %v6434_v23 = vrot.slane %v6432_v54, 5  ;;  %v6440_v26 = vrot.slane %v6438_v9, 5  ;;  %vm12048_vm7 = vmmov %vm12046_vm6 }
 0x2c2   : > { %7734 = vst.msk [vmem:[#allocation3 + $0x10] sm:$0xff] %vm3758_vm10, %v11320_v59  ;;  %v6442_v27 = vshrl.u32 %v6192_v52, 16  ;;  %v7452_v40 = vrot.slane %v7451_v44, 4  ;;  %v7462_v48 = vrot.slane %v7461_v19, 4  ;;  %v6448_v8 = vshll.u32 %v6193_v12, 16  ;;  %vm12049_vm6 = vmmov %vm12047_vm15 }
 0x2c3   : > { %8054 = vst.msk [vmem:[#allocation3 + $0x10] sm:$0xff] %vm4079_vm11, %v11235_v38  ;;  %v5413_v6 = vshrl.u32 %v5154_v28, 16  ;;  %v6435_v63 = vor.u32 %v6434_v23, %v6431_v41  ;;  %v5416_v39 = vshll.u32 %v5154_v28, 16  ;;  %v5422_v35 = vshll.u32 %v5155_v3, 16  ;;  %v6188_v59 = vld [vmem:[#allocation2 + $0x6c] sm:$0xf] }
 0x2c4   : > { %v6444_v31 = vrot.slane %v6442_v27, 4  ;;  %5942 = vrot.lane.b32.xlu1 %v8780_v45, %s9290_s25  ;;  %v7457_v37 = vsel %vm9424_vm12, %v7452_v40, %v7456_v62  ;;  %v7467_v43 = vsel %vm9424_vm12, %v7462_v48, %v7466_v22  ;;  %v6450_v38 = vrot.slane %v6448_v8, 5  ;;  %v6190_v36 = vld [vmem:[#allocation2 + $0x74] sm:$0x1]  ;;  %v7226_v44 = vld [vmem:[#allocation2 + $0x70] sm:$0xf] }
 0x2c5   : > { %v5415_v46 = vrot.slane %v5413_v6, 4  ;;  %7160 = vrot.lane.b32.xlu0 %v9207_v15, %s9293_s28  ;;  %v8875_v60 = vcombine.low %v7457_v37, %v7467_v43  ;;  %v6436_v20 = vrot.slane %v6435_v63, 4  ;;  %v5418_v53 = vrot.slane %v5416_v39, 5  ;;  %v9211_v23 = vld [vmem:[#allocation2 + $0x84] sm:$0xff]   ;;  %v7227_v48 = vld [vmem:[#allocation2 + $0x74] sm:$0x1] }
 0x2c6   : > { %v6445_v56 = vor.u32 %v6444_v31, %v6440_v26  ;;  %v5424_v5 = vrot.slane %v5422_v35, 5  ;;  %v5426_v49 = vshrl.u32 %v5155_v3, 16  ;;  %v5432_v52 = vshll.u32 %v5156_v57, 16  ;;  %v7687_v25 = vpop.permute.xlu1 %7686  ;;  %v9210_v39 = vld [vmem:[#allocation2 + $0x84] sm:$0xff]  }
 0x2c7   : > { %v6405_v29 = vshrl.u32 %v6188_v59, 16  ;;  %v6441_v17 = vsel %vm9424_vm12, %v6436_v20, %v6440_v26  ;;  %v5419_v11 = vor.u32 %v5418_v53, %v5415_v46  ;;  %v6408_v50 = vshll.u32 %v6188_v59, 16  ;;  %7733 = vst.msk [vmem:[#allocation3 + $0x8] sm:$0xff] %vm3758_vm10, %v7687_v25  ;;  %v7778_v20 = vld [vmem:[#allocation2 + $0x90] sm:$0xe] }
 0x2c8   : > { %v6446_v16 = vrot.slane %v6445_v56, 4  ;;  %6122 = vrot.lane.b32.xlu1 %v9208_v30, %s9292_s27  ;;  %v5428_v62 = vrot.slane %v5426_v49, 4  ;;  %v5434_v0 = vrot.slane %v5432_v52, 5  ;;  %v6414_v12 = vshll.u32 %v6189_v4, 16  ;;  %8053 = vst.msk [vmem:[#allocation3 + $0x8] sm:$0xff] %vm4079_vm11, %v11278_v14  ;;  %v11384_v41 = vpop.permute.xlu0 %8012 }
 0x2c9   : > { %v6407_v24 = vrot.slane %v6405_v29, 4  ;;  %7700 = vrot.lane.b32.xlu0 %v8875_v60, %s9297_s6  ;;  %v5420_v9 = vrot.slane %v5419_v11, 4  ;;  %v6410_v28 = vrot.slane %v6408_v50, 5  ;;  %v6418_v45 = vshrl.u32 %v6189_v4, 16  ;;  %v7780_v25 = vld [vmem:[#allocation2 + $0x98] sm:$0x1] }
 0x2ca   : > { %v6451_v54 = vsel %vm9424_vm12, %v6446_v16, %v6450_v38  ;;  %v5429_v22 = vor.u32 %v5428_v62, %v5424_v5  ;;  %v6416_v3 = vrot.slane %v6414_v12, 5  ;;  %v6424_v15 = vshll.u32 %v6190_v36, 16  ;;  %v7779_v62 = vld [vmem:[#allocation2 + $0x94] sm:$0xf] }
 0x2cb   : > { %v8812_v19 = vcombine.low %v6441_v17, %v6451_v54  ;;  %v5425_v26 = vsel %vm9424_vm12, %v5420_v9, %v5424_v5  ;;  %v6411_v27 = vor.u32 %v6410_v28, %v6407_v24  ;;  %v6420_v40 = vrot.slane %v6418_v45, 4  ;;  %v9072_v37 = vpop.f32.mrb[24].mxu0 }
 0x2cc   : > { %v7421_v8 = vshrl.u32 %v7225_v55, 16  ;;  %v5430_v57 = vrot.slane %v5429_v22, 4  ;;  %v6426_v6 = vrot.slane %v6424_v15, 5  ;;  %v7424_v63 = vshll.u32 %v7225_v55, 16  ;;  %v11394_v56 = vpop.permute.xlu0 %5936  ;;  %v4315_v4 = vpop.f32.mrb[25].mxu0 }
 0x2cd   : > { %6662 = vrot.lane.b32.xlu1 %v8812_v19, %s9296_s5  ;;  %v7430_v31 = vshll.u32 %v7226_v44, 16  ;;  %6120 = vrot.lane.b32.xlu0 %v9211_v23, %s9292_s27  ;;  %v6412_v14 = vrot.slane %v6411_v27, 4  ;;  %v6421_v35 = vor.u32 %v6420_v40, %v6416_v3  ;;  %v7434_v30 = vshrl.u32 %v7226_v44, 16  ;;  %v5611_v29 = vpop.permute.xlu1 %5610  ;;  %v9073_v16 = vpop.f32.mrb[26].mxu0 }
 0x2ce   : > { %v7423_v59 = vrot.slane %v7421_v8, 4  ;;  %v5435_v43 = vsel %vm9424_vm12, %v5430_v57, %v5434_v0  ;;  %v7426_v38 = vrot.slane %v7424_v63, 5  ;;  %v7440_v60 = vshll.u32 %v7227_v48, 16  ;;  %5655 = vst.msk [vmem:[#allocation3 + $0x18] sm:$0xff] %vm1668_vm1, %v5611_v29  ;;  %v4318_v12 = vpop.f32.mrb[27].mxu0 }
 0x2cf   : > { %v11392_v46 = vrot.slane %v7430_v31, 5  ;;  %v4377_v53 = vmul.f32 %v11222_v47, %v9072_v37  ;;  %v8749_v5 = vcombine.low %v5425_v26, %v5435_v43  ;;  %v6417_v49 = vsel %vm9424_vm12, %v6412_v14, %v6416_v3  ;;  %5975 = vst.msk [vmem:[#allocation3 + $0x18] sm:$0xff] %vm1992_vm2, %v11280_v51  ;;  %v11416_v26 = vld [vmem:[#allocation2 + $0x6c] sm:$0xf]  ;;  %v4959_v37 = vld [vmem:[#allocation2 + $0xa8] sm:$0xf] }
 0x2d0   : > { %v6422_v52 = vrot.slane %v6421_v35, 4  ;;  %v4375_v17 = vmul.f32 %v11222_v47, %v4315_v4  ;;  %v7427_v11 = vor.u32 %v7426_v38, %v7423_v59  ;;  %v7436_v36 = vrot.slane %v7434_v30, 4  ;;  %6151 = vst.msk [vmem:[#allocation3 + $0x18] sm:$0xff] %vm2169_vm4, %v11148_v58  ;;  %v11412_v19 = vpop.permute.xlu0 %8010 }
 0x2d1   : > { %7158 = vrot.lane.b32.xlu1 %v9210_v39, %s9293_s28  ;;  %v7442_v50 = vrot.slane %v7440_v60, 5  ;;  %v4414_v0 = vadd.f32 %v11240_v18, %v4377_v53  ;;  %v4378_v24 = vmul.f32 %v11222_v47, %v9073_v16  ;;  %v8893_v54 = vrot.slane %v7778_v20, 9  ;;  %6695 = vst.msk [vmem:[#allocation3 + $0x18] sm:$0xff] %vm2714_vm5, %v11316_v61  ;;  %v11420_v51 = vpop.permute.xlu1 %6974  ;;  %v4952_v20 = vld [vmem:[#allocation2 + $0x9c] sm:$0xf] }
 0x2d2   : > { %v6427_v55 = vsel %vm9424_vm12, %v6422_v52, %v6426_v6  ;;  %v4412_v9 = vadd.f32 %v11240_v18, %v4375_v17  ;;  %v4376_v28 = vmul.f32 %v11222_v47, %v4318_v12  ;;  %v7428_v44 = vrot.slane %v7427_v11, 4  ;;  %7015 = vst.msk [vmem:[#allocation3 + $0x18] sm:$0xff] %vm12047_vm15, %v11259_v34  ;;  %v4963_v52 = vld [vmem:[#allocation2 + $0xb0] sm:$0x1]  ;;  %vm12050_vm15 = vmmov %vm12048_vm7 }
 0x2d3   : > { %v8811_v45 = vcombine.low %v6417_v49, %v6427_v55  ;;  %v4446_v22 = vmax.f32 %v4414_v0, 0.0  ;;  %v4415_v3 = vadd.f32 %v11240_v18, %v4378_v24  ;;  %v7437_v15 = vor.u32 %v7436_v36, %v11392_v46  ;;  %7191 = vst.msk [vmem:[#allocation3 + $0x18] sm:$0xff] %vm12048_vm7, %v11328_v7  ;;  %v5152_v11 = vld [vmem:[#allocation2 + $0x70] sm:$0xf]  ;;  %v4956_v24 = vld [vmem:[#allocation2 + $0xa4] sm:$0x1] }
 0x2d4   : > { %v7916_v23 = vrot.slane %v7779_v62, 5  ;;  %v4444_v47 = vmax.f32 %v4412_v9, 0.0  ;;  %v4413_v27 = vadd.f32 %v11240_v18, %v4376_v28  ;;  %v7433_v58 = vsel %vm9424_vm12, %v7428_v44, %v11392_v46  ;;  %v11435_v39 = vpop.permute.xlu0 %6972  ;;  %v5153_v28 = vld [vmem:[#allocation2 + $0x74] sm:$0x1] }
 0x2d5   : > { %5624 = vrot.lane.b32.xlu1 %v8749_v5, %s9291_s26  ;;  %6660 = vrot.lane.b32.xlu0 %v8811_v45, %s9296_s5  ;;  %v7919_v40 = vrot.slane %v7780_v25, 5  ;;  %v8996_v48 = vpack.c.bf16 %v4446_v22, %v4446_v22  ;;  %v4447_v8 = vmax.f32 %v4415_v3, 0.0  ;;  %v7438_v61 = vrot.slane %v7437_v15, 4  ;;  %v11439_v30 = vpop.permute.xlu1 %5934 }
 0x2d6   : > { %v7917_v57 = vsel %vm9366_vm8, %v8893_v54, %v7916_v23  ;;  %v8994_v18 = vpack.c.bf16 %v4444_v47, %v4444_v47  ;;  %v4445_v6 = vmax.f32 %v4413_v27, 0.0  ;;  %v7918_v63 = vrot.slane %v7916_v23, 4  ;;  %v5704_v23 = vld [vmem:[#allocation2 + $0x90] sm:$0xe]  ;;  %v5705_v47 = vld [vmem:[#allocation2 + $0x94] sm:$0xf] }
 0x2d7   : > { %v5389_v31 = vshrl.u32 %v11416_v26, 16  ;;  %v4770_v14 = vshrl.u32 %v8996_v48, 16  ;;  %v4773_v35 = vshll.u32 %v8996_v48, 16  ;;  %v8997_v59 = vpack.c.bf16 %v4447_v8, %v4447_v8  ;;  %v5706_v8 = vld [vmem:[#allocation2 + $0x98] sm:$0x1] }
 0x2d8   : > { %v7443_v34 = vsel %vm9424_vm12, %v7438_v61, %v7442_v50  ;;  %v4753_v43 = vshrl.u32 %v8994_v18, 16  ;;  %v4756_v38 = vshll.u32 %v8994_v18, 16  ;;  %v8995_v46 = vpack.c.bf16 %v4445_v6, %v4445_v6  ;;  %v11444_v36 = vpop.permute.xlu0 %7152  ;;  %v6741_v61 = vld [vmem:[#allocation2 + $0x90] sm:$0xe] }
 0x2d9   : > { %v8874_v7 = vcombine.low %v7433_v58, %v7443_v34  ;;  %v4772_v60 = vrot.slane %v4770_v14, 7  ;;  %v4778_v53 = vshrl.u32 %v8997_v59, 16  ;;  %v4781_v4 = vshll.u32 %v8997_v59, 16  ;;  %v11446_v55 = vpop.permute.xlu1 %6114  ;;  %v6743_v14 = vld [vmem:[#allocation2 + $0x98] sm:$0x1] }
 0x2da   : > { %v7920_v5 = vsel %vm9366_vm8, %v7918_v63, %v7919_v40  ;;  %v4755_v49 = vrot.slane %v4753_v43, 7  ;;  %v4761_v29 = vshrl.u32 %v8995_v46, 16  ;;  %v4764_v17 = vshll.u32 %v8995_v46, 16  ;;  %v7775_v43 = vld [vmem:[#allocation2 + $0x84] sm:$0xe] }
 0x2db   : > { %7698 = vrot.lane.b32.xlu1 %v8874_v7, %s9297_s6  ;;  %v8909_v16 = vcombine.low %v7917_v57, %v7920_v5  ;;  %v4775_v50 = vor.u32 %v4773_v35, %v4772_v60  ;;  %v4776_v62 = vrot.slane %v4772_v60, 4  ;;  %v4780_v0 = vrot.slane %v4778_v53, 7 }
 0x2dc   : > { %v5391_v12 = vrot.slane %v5389_v31, 4  ;;  %v4758_v25 = vor.u32 %v4756_v38, %v4755_v49  ;;  %v4759_v54 = vrot.slane %v4755_v49, 4  ;;  %v4763_v9 = vrot.slane %v4761_v29, 7  ;;  %v11454_v57 = vpop.permute.xlu0 %7692  ;;  %v6742_v31 = vld [vmem:[#allocation2 + $0x94] sm:$0xf] }
 0x2dd   : > { %8024 = vrot.lane.b32.xlu0 %v8909_v16, %s9295_s30  ;;  %v5392_v45 = vshll.u32 %v11416_v26, 16  ;;  %v4960_v44 = vsel %vm9432_vm13, %v4775_v50, %v4959_v37  ;;  %v4783_v22 = vor.u32 %v4781_v4, %v4780_v0  ;;  %v4785_v3 = vrot.slane %v4780_v0, 4  ;;  %v7776_v38 = vld [vmem:[#allocation2 + $0x88] sm:$0xf]  ;;  %v7777_v4 = vld [vmem:[#allocation2 + $0x8c] sm:$0x1] }
 0x2de   : > { %v5398_v15 = vshll.u32 %v5152_v11, 16  ;;  %4961 = vst [vmem:[#allocation2 + $0xa8] sm:$0xf] %v4960_v44  ;;  %v4953_v27 = vsel %vm9432_vm13, %v4758_v25, %v4952_v20  ;;  %v4766_v58 = vor.u32 %v4764_v17, %v4763_v9  ;;  %v4768_v40 = vrot.slane %v4763_v9, 4  ;;  %v11465_v46 = vpop.permute.xlu1 %6654  ;;  %v6738_v17 = vld [vmem:[#allocation2 + $0x84] sm:$0xe] }
 0x2df   : > { %v5394_v48 = vrot.slane %v5392_v45, 5  ;;  %4954 = vst [vmem:[#allocation2 + $0x9c] sm:$0xf] %v4953_v27  ;;  %v4784_v26 = vsel %vm9442_vm14, %v4776_v62, %v4783_v22  ;;  %v4964_v18 = vsel %vm9339_vm3, %v4785_v3, %v4963_v52  ;;  %v5402_v63 = vshrl.u32 %v5152_v11, 16  ;;  %v6739_v0 = vld [vmem:[#allocation2 + $0x88] sm:$0xf] }
 0x2e0   : > { %v5400_v6 = vrot.slane %v5398_v15, 5  ;;  %4965 = vst [vmem:[#allocation2 + $0xb0] sm:$0x1] %v4964_v18  ;;  %4962 = vst.msk [vmem:[#allocation2 + $0xac] sm:$0xf] %vm231_vm0, %v4784_v26  ;;  %v4767_v35 = vsel %vm9442_vm14, %v4759_v54, %v4766_v58  ;;  %v4957_v59 = vsel %vm9339_vm3, %v4768_v40, %v4956_v24  ;;  %v5408_v37 = vshll.u32 %v5153_v28, 16  ;;  %v6113_v3 = vpop.permute.xlu0 %6112 }
 0x2e1   : > { %v5395_v34 = vor.u32 %v5394_v48, %v5391_v12  ;;  %4958 = vst [vmem:[#allocation2 + $0xa4] sm:$0x1] %v4957_v59  ;;  %4955 = vst.msk [vmem:[#allocation2 + $0xa0] sm:$0xf] %vm231_vm0, %v4767_v35  ;;  %v5404_v7 = vrot.slane %v5402_v63, 4  ;;  %v8767_v60 = vrot.slane %v5704_v23, 9 }
 0x2e2   : > { %v5850_v20 = vrot.slane %v5705_v47, 5  ;;  %v5853_v53 = vrot.slane %v5706_v8, 5  ;;  %v5410_v49 = vrot.slane %v5408_v37, 5  ;;  %v8830_v52 = vrot.slane %v6741_v61, 9  ;;  %v6740_v24 = vld [vmem:[#allocation2 + $0x8c] sm:$0x1]  ;;  %v11474_v22 = vpop.permute.xlu1 %7150 }
 0x2e3   : > { %v5396_v5 = vrot.slane %v5395_v34, 4  ;;  %v6883_v29 = vrot.slane %v6742_v31, 5  ;;  %v5405_v16 = vor.u32 %v5404_v7, %v5400_v6  ;;  %v6886_v62 = vrot.slane %v6743_v14, 5  ;;  %v5701_v28 = vld [vmem:[#allocation2 + $0x84] sm:$0xe] }
 0x2e4   : > { %v5851_v11 = vsel %vm9366_vm8, %v8767_v60, %v5850_v20  ;;  %v5852_v50 = vrot.slane %v5850_v20, 4  ;;  %v8892_v9 = vrot.slane %v7775_v43, 9  ;;  %v5702_v45 = vld [vmem:[#allocation2 + $0x88] sm:$0xf]  ;;  %v5703_v44 = vld [vmem:[#allocation2 + $0x8c] sm:$0x1] }
 0x2e5   : > { %v5401_v12 = vsel %vm9424_vm12, %v5396_v5, %v5400_v6  ;;  %v6884_v25 = vsel %vm9366_vm8, %v8830_v52, %v6883_v29  ;;  %v6885_v54 = vrot.slane %v6883_v29, 4  ;;  %v5406_v15 = vrot.slane %v5405_v16, 4  ;;  %v7234_v58 = vld [vmem:[#allocation2 + $0x90] sm:$0xf]  ;;  %v7235_v26 = vld [vmem:[#allocation2 + $0x94] sm:$0xf] }
 0x2e6   : > { %v5854_v23 = vsel %vm9366_vm8, %v5852_v50, %v5853_v53  ;;  %v7909_v47 = vrot.slane %v7776_v38, 5  ;;  %v7912_v27 = vrot.slane %v7777_v4, 5  ;;  %v8829_v8 = vrot.slane %v6738_v17, 9  ;;  %v7236_v37 = vld [vmem:[#allocation2 + $0x98] sm:$0x1]  ;;  %v5617_v43 = vpop.permute.xlu1 %5616 }
 0x2e7   : > { %v8783_v40 = vcombine.low %v5851_v11, %v5854_v23  ;;  %v6887_v48 = vsel %vm9366_vm8, %v6885_v54, %v6886_v62  ;;  %v6876_v61 = vrot.slane %v6739_v0, 5  ;;  %v5411_v18 = vsel %vm9424_vm12, %v5406_v15, %v5410_v49  ;;  %5658 = vst.msk [vmem:[#allocation3 + $0x30] sm:$0xff] %vm1668_vm1, %v5617_v43  ;;  %v6197_v52 = vld [vmem:[#allocation2 + $0x90] sm:$0xf]  ;;  %v6200_v21 = vld [vmem:[#allocation2 + $0x9c] sm:$0xf] }
 0x2e8   : > { %v8846_v6 = vcombine.low %v6884_v25, %v6887_v48  ;;  %v7910_v63 = vsel %vm9366_vm8, %v8892_v9, %v7909_v47  ;;  %v7911_v31 = vrot.slane %v7909_v47, 4  ;;  %v8748_v14 = vcombine.low %v5401_v12, %v5411_v18  ;;  %5978 = vst.msk [vmem:[#allocation3 + $0x30] sm:$0xff] %vm1992_vm2, %v11394_v56  ;;  %v6653_v29 = vpop.permute.xlu0 %6652  ;;  %v6198_v25 = vld [vmem:[#allocation2 + $0x94] sm:$0xf]  ;;  %v6199_v9 = vld [vmem:[#allocation2 + $0x98] sm:$0x1] }
 0x2e9   : > { %5948 = vrot.lane.b32.xlu0 %v8783_v40, %s9290_s25  ;;  %v6877_v35 = vsel %vm9366_vm8, %v8829_v8, %v6876_v61  ;;  %v6878_v59 = vrot.slane %v6876_v61, 4  ;;  %v6879_v34 = vrot.slane %v6740_v24, 5  ;;  %v8766_v7 = vrot.slane %v5701_v28, 9  ;;  %6154 = vst.msk [vmem:[#allocation3 + $0x30] sm:$0xff] %vm2169_vm4, %v6113_v3  ;;  %v5161_v8 = vld [vmem:[#allocation2 + $0x94] sm:$0xf] }
 0x2ea   : > { %v7913_v38 = vsel %vm9366_vm8, %v7911_v31, %v7912_v27  ;;  %v5843_v60 = vrot.slane %v5702_v45, 5  ;;  %v5846_v20 = vrot.slane %v5703_v44, 5  ;;  %5622 = vrot.lane.b32.xlu1 %v8748_v14, %s9291_s26  ;;  %v7493_v5 = vshrl.u32 %v7234_v58, 16  ;;  %6696 = vst.msk [vmem:[#allocation3 + $0x20] sm:$0xff] %vm2714_vm5, %v6653_v29  ;;  %v9234_v44 = vld [vmem:[#allocation2 + $0x9c] sm:$0xff]  }
 0x2eb   : > { %v8908_v53 = vcombine.low %v7910_v63, %v7913_v38  ;;  %v6880_v4 = vsel %vm9366_vm8, %v6878_v59, %v6879_v34  ;;  %v7496_v49 = vshll.u32 %v7234_v58, 16  ;;  %v7502_v50 = vshll.u32 %v7235_v26, 16  ;;  %7016 = vst.msk [vmem:[#allocation3 + $0x20] sm:$0xff] %vm12049_vm6, %v11435_v39  ;;  %v5160_v27 = vld [vmem:[#allocation2 + $0x90] sm:$0xf] }
 0x2ec   : > { %v8845_v17 = vcombine.low %v6877_v35, %v6880_v4  ;;  %v5844_v16 = vsel %vm9366_vm8, %v8766_v7, %v5843_v60  ;;  %v5845_v11 = vrot.slane %v5843_v60, 4  ;;  %v7495_v62 = vrot.slane %v7493_v5, 4  ;;  %7192 = vst.msk [vmem:[#allocation3 + $0x20] sm:$0xff] %vm12050_vm15, %v11312_v42  ;;  %v9214_v42 = vld [vmem:[#allocation2 + $0xa8] sm:$0xff]   ;;  %v8069_v35 = vld [vmem:[#allocation3 + $0x8] sm:$0xff] }
 0x2ed   : > { %8022 = vrot.lane.b32.xlu0 %v8908_v53, %s9295_s30  ;;  %v7498_v0 = vrot.slane %v7496_v49, 5  ;;  %v7506_v24 = vshrl.u32 %v7235_v26, 16  ;;  %v7512_v12 = vshll.u32 %v7236_v37, 16  ;;  %v7504_v54 = vrot.slane %v7502_v50, 5  ;;  %7736 = vst.msk [vmem:[#allocation3 + $0x20] sm:$0xff] %vm3758_vm10, %v11454_v57  ;;  %v9235_v57 = vld [vmem:[#allocation2 + $0xa8] sm:$0xff]  }
 0x2ee   : > { %v5847_v56 = vsel %vm9366_vm8, %v5845_v11, %v5846_v20  ;;  %v6477_v28 = vshrl.u32 %v6197_v52, 16  ;;  %v6480_v45 = vshll.u32 %v6197_v52, 16  ;;  %6986 = vrot.lane.b32.xlu1 %v8846_v6, %s9294_s29  ;;  %v6486_v40 = vshll.u32 %v6198_v25, 16  ;;  %8056 = vst.msk [vmem:[#allocation3 + $0x20] sm:$0xff] %vm4079_vm11, %v11384_v41  ;;  %v5162_v59 = vld [vmem:[#allocation2 + $0x98] sm:$0x1] }
 0x2ef   : > { %v8782_v3 = vcombine.low %v5844_v16, %v5847_v56  ;;  %v7499_v15 = vor.u32 %v7498_v0, %v7495_v62  ;;  %v7508_v23 = vrot.slane %v7506_v24, 4  ;;  %v7514_v47 = vrot.slane %v7512_v12, 5  ;;  %v9215_v41 = vld [vmem:[#allocation2 + $0xa8] sm:$0xff]   ;;  %v6194_v5 = vld [vmem:[#allocation2 + $0x84] sm:$0xf] }
 0x2f0   : > { %v6479_v39 = vrot.slane %v6477_v28, 4  ;;  %v6482_v58 = vrot.slane %v6480_v45, 5  ;;  %v6490_v48 = vshrl.u32 %v6198_v25, 16  ;;  %vm12051_vm7 = vcmask 31744   ;;  %v7691_v60 = vpop.permute.xlu1 %7690  ;;  %v6195_v16 = vld [vmem:[#allocation2 + $0x88] sm:$0xf] }
 0x2f1   : > { %5121 = vst.msk [vmem:[#allocation3 + $0x68] sm:$0xff] %vm12051_vm7, %v9234_v44  ;;  %6984 = vrot.lane.b32.xlu0 %v8845_v17, %s9294_s29  ;;  %v7500_v61 = vrot.slane %v7499_v15, 4  ;;  %v7509_v26 = vor.u32 %v7508_v23, %v7504_v54  ;;  %v6496_v18 = vshll.u32 %v6199_v9, 16  ;;  %vm12052_vm6 = vcmask 1041408   ;;  %vm12053_vm15 = vmmov %vm12051_vm7  ;;  %v8070_v11 = vld [vmem:[#allocation3 + $0x10] sm:$0xff] }
 0x2f2   : > { %v8153_v6 = vsel %vm12052_vm6, %v11285_v2, 0  ;;  %v6483_v63 = vor.u32 %v6482_v58, %v6479_v39  ;;  %v6488_v31 = vrot.slane %v6486_v40, 5  ;;  %v6492_v14 = vrot.slane %v6490_v48, 4  ;;  %5946 = vrot.lane.b32.xlu1 %v8782_v3, %s9290_s25  ;;  %5122 = vst.msk [vmem:[#allocation3 + $0x70] sm:$0xff] %vm12053_vm15, %v9235_v57  ;;  %v7231_v3 = vld [vmem:[#allocation2 + $0x84] sm:$0xf] }
 0x2f3   : > { %9083 = vmatpush3.bf16.msra.mxu1 %v8153_v6  ;;  %v5461_v34 = vshrl.u32 %v5160_v27, 16  ;;  %v7505_v37 = vsel %vm9424_vm12, %v7500_v61, %v7504_v54  ;;  %v7510_v43 = vrot.slane %v7509_v26, 4  ;;  %v6498_v38 = vrot.slane %v6496_v18, 5  ;;  %7735 = vst.msk [vmem:[#allocation3 + $0x18] sm:$0xff] %vm3758_vm10, %v7691_v60  ;;  %v6196_v54 = vld [vmem:[#allocation2 + $0x8c] sm:$0x1] }
 0x2f4   : > { %v5464_v7 = vshll.u32 %v5160_v27, 16  ;;  %v6484_v2 = vrot.slane %v6483_v63, 4  ;;  %v6493_v20 = vor.u32 %v6492_v14, %v6488_v31  ;;  %v5470_v4 = vshll.u32 %v5161_v8, 16  ;;  %8055 = vst.msk [vmem:[#allocation3 + $0x18] sm:$0xff] %vm4079_vm11, %v11412_v19  ;;  %v7232_v58 = vld [vmem:[#allocation2 + $0x88] sm:$0xf] }
 0x2f5   : > { %v5463_v53 = vrot.slane %v5461_v34, 4  ;;  %7164 = vrot.lane.b32.xlu0 %v9214_v42, %s9293_s28  ;;  %v7515_v49 = vsel %vm9424_vm12, %v7510_v43, %v7514_v47  ;;  %v5474_v29 = vshrl.u32 %v5161_v8, 16  ;;  %v5480_v17 = vshll.u32 %v5162_v59, 16  ;;  %v11532_v15 = vpop.permute.xlu0 %8016  ;;  %v9220_v61 = vld [vmem:[#allocation2 + $0x9c] sm:$0xff]   ;;  %v7233_v6 = vld [vmem:[#allocation2 + $0x8c] sm:$0x1] }
 0x2f6   : > { %9085 = vmatmul.mubr.msk.bf16.vlgmr.msra.gmra.mrb[0].mxu1 %vm4132_vm9, %v8069_v35  ;;  %v5466_v52 = vrot.slane %v5464_v7, 5  ;;  %v8877_v50 = vcombine.low %v7505_v37, %v7515_v49  ;;  %v6489_v62 = vsel %vm9424_vm12, %v6484_v2, %v6488_v31  ;;  %v6494_v0 = vrot.slane %v6493_v20, 4  ;;  %6126 = vrot.lane.b32.xlu1 %v9215_v41, %s9292_s27  ;;  %v9219_v31 = vld [vmem:[#allocation2 + $0x9c] sm:$0xff]  }
 0x2f7   : > { %v5472_v24 = vrot.slane %v5470_v4, 5  ;;  %9088 = vmatprep.mubr.msk.bf16.mxu1 %vm4132_vm9, %v8070_v11  ;;  %v5476_v25 = vrot.slane %v5474_v29, 4  ;;  %v5482_v56 = vrot.slane %v5480_v17, 5  ;;  %v6453_v9 = vshrl.u32 %v6194_v5, 16  ;;  %v7781_v41 = vld [vmem:[#allocation2 + $0x9c] sm:$0xe] }
 0x2f8   : > { %v5467_v12 = vor.u32 %v5466_v52, %v5463_v53  ;;  %v6499_v28 = vsel %vm9424_vm12, %v6494_v0, %v6498_v38  ;;  %v6456_v45 = vshll.u32 %v6194_v5, 16  ;;  %v6462_v19 = vshll.u32 %v6195_v16, 16  ;;  %v7782_v60 = vld [vmem:[#allocation2 + $0xa0] sm:$0xf]  ;;  %v8072_v52 = vld [vmem:[#allocation3 + $0x20] sm:$0xff] }
 0x2f9   : > { %v6466_v44 = vshrl.u32 %v6195_v16, 16  ;;  %7704 = vrot.lane.b32.xlu0 %v8877_v50, %s9297_s6  ;;  %v8814_v23 = vcombine.low %v6489_v62, %v6499_v28  ;;  %v5477_v27 = vor.u32 %v5476_v25, %v5472_v24  ;;  %v6455_v39 = vrot.slane %v6453_v9, 4  ;;  %v9247_v62 = vld [vmem:[%s11986_s3 + $0x2] ss:$0 sm:$0xff] }
 0x2fa   : > { %v5468_v47 = vrot.slane %v5467_v12, 4  ;;  %v6458_v40 = vrot.slane %v6456_v45, 5  ;;  %v6464_v48 = vrot.slane %v6462_v19, 5  ;;  %v6472_v42 = vshll.u32 %v6196_v54, 16 }
 0x2fb   : > { %v6468_v8 = vrot.slane %v6466_v44, 4  ;;  %6666 = vrot.lane.b32.xlu1 %v8814_v23, %s9296_s5  ;;  %v5478_v18 = vrot.slane %v5477_v27, 4  ;;  %v7469_v57 = vshrl.u32 %v7231_v3, 16  ;;  %v7472_v63 = vshll.u32 %v7231_v3, 16  ;;  %v8071_v2 = vld [vmem:[#allocation3 + $0x18] sm:$0xff]  ;;  %v11541_v49 = vpop.permute.xlu0 %5940  ;;  %v9076_v29 = vpop.f32.mrb[28].mxu0 }
 0x2fc   : > { %v5473_v26 = vsel %vm9424_vm12, %v5468_v47, %v5472_v24  ;;  %v6459_v14 = vor.u32 %v6458_v40, %v6455_v39  ;;  %v6474_v59 = vrot.slane %v6472_v42, 5  ;;  %v7478_v34 = vshll.u32 %v7232_v58, 16  ;;  %v4331_v24 = vpop.f32.mrb[29].mxu0  ;;  %v7783_v3 = vld [vmem:[#allocation2 + $0xa4] sm:$0x1] }
 0x2fd   : > { %v6469_v35 = vor.u32 %v6468_v8, %v6464_v48  ;;  %6124 = vrot.lane.b32.xlu0 %v9220_v61, %s9292_s27  ;;  %v5483_v37 = vsel %vm9424_vm12, %v5478_v18, %v5482_v56  ;;  %v7471_v43 = vrot.slane %v7469_v57, 4  ;;  %v7474_v38 = vrot.slane %v7472_v63, 5  ;;  %v5615_v54 = vpop.permute.xlu1 %5614  ;;  %v9077_v28 = vpop.f32.mrb[30].mxu0  ;;  %v9248_v23 = vld [vmem:[%s11986_s3 + $0x3] ss:$0 sm:$0xff] }
 0x2fe   : > { %v7482_v7 = vshrl.u32 %v7232_v58, 16  ;;  %v8751_v20 = vcombine.low %v5473_v26, %v5483_v37  ;;  %v6460_v53 = vrot.slane %v6459_v14, 4  ;;  %v7480_v5 = vrot.slane %v7478_v34, 5  ;;  %9089 = vmatmul.mubr.msk.bf16.gmra.mrb[4].mxu1 %vm4132_vm9, %v8071_v2  ;;  %5657 = vst.msk [vmem:[#allocation3 + $0x28] sm:$0xff] %vm1668_vm1, %v5615_v54  ;;  %v4334_v39 = vpop.f32.mrb[31].mxu0 }
 0x2ff   : > { %v6470_v4 = vrot.slane %v6469_v35, 4  ;;  %7162 = vrot.lane.b32.xlu1 %v9219_v31, %s9293_s28  ;;  %v7475_v17 = vor.u32 %v7474_v38, %v7471_v43  ;;  %v7488_v11 = vshll.u32 %v7233_v6, 16  ;;  %v8894_v50 = vrot.slane %v7781_v41, 9  ;;  %9092 = vmatprep.mubr.msk.bf16.mxu1 %vm4132_vm9, %v8072_v52  ;;  %5977 = vst.msk [vmem:[#allocation3 + $0x28] sm:$0xff] %vm1992_vm2, %v11439_v30  ;;  %v11561_v8 = vpop.permute.xlu0 %8014  ;;  %v5158_v34 = vld [vmem:[#allocation2 + $0x88] sm:$0xf] }
 0x300   : > { %v7484_v16 = vrot.slane %v7482_v7, 4  ;;  %v4381_v0 = vmul.f32 %v9247_v62, %v9076_v29  ;;  %v6465_v12 = vsel %vm9424_vm12, %v6460_v53, %v6464_v48  ;;  %v7923_v56 = vrot.slane %v7782_v60, 5  ;;  %v5157_v48 = vld [vmem:[#allocation2 + $0x84] sm:$0xf]  ;;  %6153 = vst.msk [vmem:[#allocation3 + $0x28] sm:$0xff] %vm2169_vm4, %v11295_v32 }
 0x301   : > { %v6475_v25 = vsel %vm9424_vm12, %v6470_v4, %v6474_v59  ;;  %v4379_v9 = vmul.f32 %v9247_v62, %v4331_v24  ;;  %v7476_v19 = vrot.slane %v7475_v17, 4  ;;  %v4382_v27 = vmul.f32 %v9247_v62, %v9077_v28  ;;  %6697 = vst.msk [vmem:[#allocation3 + $0x28] sm:$0xff] %vm2714_vm5, %v11465_v46  ;;  %v11571_v30 = vpop.permute.xlu1 %6978  ;;  %v4973_v29 = vld [vmem:[#allocation2 + $0xc0] sm:$0xf]  ;;  %v4977_v54 = vld [vmem:[#allocation2 + $0xc8] sm:$0x1] }
 0x302   : > { %v8813_v45 = vcombine.low %v6465_v12, %v6475_v25  ;;  %v7485_v44 = vor.u32 %v7484_v16, %v7480_v5  ;;  %v4418_v47 = vadd.f32 %v9248_v23, %v4381_v0  ;;  %v7490_v58 = vrot.slane %v7488_v11, 5 }
 0x303   : > { %v7924_v40 = vsel %vm9366_vm8, %v8894_v50, %v7923_v56  ;;  %v4416_v42 = vadd.f32 %v9248_v23, %v4379_v9  ;;  %v4380_v61 = vmul.f32 %v9247_v62, %v4334_v39  ;;  %5628 = vrot.lane.b32.xlu1 %v8751_v20, %s9291_s26  ;;  %v7481_v26 = vsel %vm9424_vm12, %v7476_v19, %v7480_v5  ;;  %v11581_v46 = vpop.permute.xlu0 %6976  ;;  %v4966_v62 = vld [vmem:[#allocation2 + $0xb4] sm:$0xf] }
 0x304   : > { %6664 = vrot.lane.b32.xlu0 %v8813_v45, %s9296_s5  ;;  %v7486_v18 = vrot.slane %v7485_v44, 4  ;;  %v4450_v6 = vmax.f32 %v4418_v47, 0.0  ;;  %v4419_v57 = vadd.f32 %v9248_v23, %v4382_v27  ;;  %v7925_v63 = vrot.slane %v7923_v56, 4  ;;  %v5159_v47 = vld [vmem:[#allocation2 + $0x8c] sm:$0x1] }
 0x305   : > { %v7926_v31 = vrot.slane %v7783_v3, 5  ;;  %v4448_v14 = vmax.f32 %v4416_v42, 0.0  ;;  %v4417_v35 = vadd.f32 %v9248_v23, %v4380_v61  ;;  %v5437_v41 = vshrl.u32 %v5157_v48, 16  ;;  %v11584_v52 = vpop.permute.xlu1 %5938  ;;  %v4970_v23 = vld [vmem:[#allocation2 + $0xbc] sm:$0x1] }
 0x306   : > { %v7491_v59 = vsel %vm9424_vm12, %v7486_v18, %v7490_v58  ;;  %vm12054_vm7 = vcmask 195744   ;;  %v9000_v32 = vpack.c.bf16 %v4450_v6, %v4450_v6  ;;  %v4451_v37 = vmax.f32 %v4419_v57, 0.0  ;;  %v6744_v61 = vld [vmem:[#allocation2 + $0x9c] sm:$0xe] }
 0x307   : > { %7017 = vst.msk [vmem:[#allocation3 + $0x28] sm:$0xff] %vm12054_vm7, %v11420_v51  ;;  %v8876_v43 = vcombine.low %v7481_v26, %v7491_v59  ;;  %v7927_v38 = vsel %vm9366_vm8, %v7925_v63, %v7926_v31  ;;  %vm12055_vm6 = vcmask 228544   ;;  %v8998_v7 = vpack.c.bf16 %v4448_v14, %v4448_v14  ;;  %v11587_v25 = vpop.permute.xlu0 %7156  ;;  %v6745_v63 = vld [vmem:[#allocation2 + $0xa0] sm:$0xf]  ;;  %v6746_v31 = vld [vmem:[#allocation2 + $0xa4] sm:$0x1] }
 0x308   : > { %7193 = vst.msk [vmem:[#allocation3 + $0x28] sm:$0xff] %vm12055_vm6, %v11474_v22  ;;  %v4449_v60 = vmax.f32 %v4417_v35, 0.0  ;;  %v8910_v2 = vcombine.low %v7924_v40, %v7927_v38  ;;  %v5439_v20 = vrot.slane %v5437_v41, 4  ;;  %v4804_v53 = vshrl.u32 %v9000_v32, 16 }
 0x309   : > { %v4807_v4 = vshll.u32 %v9000_v32, 16  ;;  %v9001_v5 = vpack.c.bf16 %v4451_v37, %v4451_v37  ;;  %7702 = vrot.lane.b32.xlu1 %v8876_v43, %s9297_s6  ;;  %v5440_v51 = vshll.u32 %v5157_v48, 16  ;;  %v4787_v17 = vshrl.u32 %v8998_v7, 16  ;;  %v11591_v39 = vpop.permute.xlu1 %6118  ;;  %v6747_v37 = vld [vmem:[#allocation2 + $0xa8] sm:$0xe] }
 0x30a   : > { %v4790_v16 = vshll.u32 %v8998_v7, 16  ;;  %v8999_v11 = vpack.c.bf16 %v4449_v60, %v4449_v60  ;;  %8026 = vrot.lane.b32.xlu0 %v8910_v2, %s9295_s30  ;;  %v5446_v22 = vshll.u32 %v5158_v34, 16  ;;  %v4806_v50 = vrot.slane %v4804_v53, 7  ;;  %v6749_v2 = vld [vmem:[#allocation2 + $0xb0] sm:$0x1] }
 0x30b   : > { %v4812_v0 = vshrl.u32 %v9001_v5, 16  ;;  %v4815_v24 = vshll.u32 %v9001_v5, 16  ;;  %v5442_v12 = vrot.slane %v5440_v51, 5  ;;  %v4789_v56 = vrot.slane %v4787_v17, 7  ;;  %v11595_v14 = vpop.permute.xlu0 %7696 }
 0x30c   : > { %v4795_v9 = vshrl.u32 %v8999_v11, 16  ;;  %v4798_v28 = vshll.u32 %v8999_v11, 16  ;;  %v11589_v45 = vrot.slane %v5446_v22, 5  ;;  %v4809_v19 = vor.u32 %v4807_v4, %v4806_v50 }
 0x30d   : > { %v4810_v44 = vrot.slane %v4806_v50, 4  ;;  %v4814_v3 = vrot.slane %v4812_v0, 7  ;;  %v5443_v27 = vor.u32 %v5442_v12, %v5439_v20  ;;  %v4792_v58 = vor.u32 %v4790_v16, %v4789_v56  ;;  %v11606_v20 = vpop.permute.xlu1 %6658 }
 0x30e   : > { %v4793_v40 = vrot.slane %v4789_v56, 4  ;;  %v4797_v48 = vrot.slane %v4795_v9, 7  ;;  %v5450_v42 = vshrl.u32 %v5158_v34, 16  ;;  %v4974_v26 = vsel %vm9432_vm13, %v4809_v19, %v4973_v29  ;;  %v6748_v34 = vld [vmem:[#allocation2 + $0xac] sm:$0xf] }
 0x30f   : > { %v4817_v18 = vor.u32 %v4815_v24, %v4814_v3  ;;  %v4819_v6 = vrot.slane %v4814_v3, 4  ;;  %v5444_v57 = vrot.slane %v5443_v27, 4  ;;  %4975 = vst [vmem:[#allocation2 + $0xc0] sm:$0xf] %v4974_v26  ;;  %v4967_v35 = vsel %vm9432_vm13, %v4792_v58, %v4966_v62  ;;  %v6201_v29 = vld [vmem:[#allocation2 + $0xa0] sm:$0xf]  ;;  %vm12058_vm13 = vmmov %vm12053_vm15 }
 0x310   : > { %v4800_v59 = vor.u32 %v4798_v28, %v4797_v48  ;;  %v4802_v41 = vrot.slane %v4797_v48, 4  ;;  %v5452_v32 = vrot.slane %v5450_v42, 4  ;;  %4968 = vst [vmem:[#allocation2 + $0xb4] sm:$0xf] %v4967_v35  ;;  %v5456_v60 = vshll.u32 %v5159_v47, 16 }
 0x311   : > { %v4818_v43 = vsel %vm9442_vm14, %v4810_v44, %v4817_v18  ;;  %v4978_v38 = vsel %vm9339_vm3, %v4819_v6, %v4977_v54  ;;  %v5449_v7 = vsel %vm9424_vm12, %v5444_v57, %v11589_v45  ;;  %v8831_v51 = vrot.slane %v6744_v61, 9  ;;  %v6202_v24 = vld [vmem:[#allocation2 + $0xa4] sm:$0x1]  ;;  %v7240_v9 = vld [vmem:[#allocation2 + $0xa8] sm:$0xf]  ;;  %v11617_v28 = vpop.permute.xlu1 %7154 }
 0x312   : > { %4976 = vst.msk [vmem:[#allocation2 + $0xc4] sm:$0xf] %vm231_vm0, %v4818_v43  ;;  %4979 = vst [vmem:[#allocation2 + $0xc8] sm:$0x1] %v4978_v38  ;;  %v4801_v53 = vsel %vm9442_vm14, %v4793_v40, %v4800_v59  ;;  %v4971_v4 = vsel %vm9339_vm3, %v4802_v41, %v4970_v23  ;;  %v5453_v5 = vor.u32 %v5452_v32, %v11589_v45  ;;  %v5458_v17 = vrot.slane %v5456_v60, 5  ;;  %v6117_v45 = vpop.permute.xlu0 %6116 }
 0x313   : > { %4972 = vst [vmem:[#allocation2 + $0xbc] sm:$0x1] %v4971_v4  ;;  %4969 = vst.msk [vmem:[#allocation2 + $0xb8] sm:$0xf] %vm231_vm0, %v4801_v53  ;;  %v6890_v16 = vrot.slane %v6745_v63, 5  ;;  %v6893_v11 = vrot.slane %v6746_v31, 5 }
 0x314   : > { %v8832_v22 = vrot.slane %v6747_v37, 9  ;;  %v5454_v50 = vrot.slane %v5453_v5, 4  ;;  %v6897_v62 = vrot.slane %v6748_v34, 5  ;;  %v6900_v0 = vrot.slane %v6749_v2, 5  ;;  %v7241_v47 = vld [vmem:[#allocation2 + $0xac] sm:$0xf]  ;;  %vm12056_vm0 = vmmov %vm12054_vm7 }
 0x315   : > { %v6501_v33 = vshrl.u32 %v6200_v21, 16  ;;  %v6891_v1 = vsel %vm9366_vm8, %v8831_v51, %v6890_v16  ;;  %v6892_v12 = vrot.slane %v6890_v16, 4  ;;  %v6504_v56 = vshll.u32 %v6200_v21, 16  ;;  %v7242_v27 = vld [vmem:[#allocation2 + $0xb0] sm:$0x1]  ;;  %v5621_v34 = vpop.permute.xlu1 %5620  ;;  %vm12057_vm3 = vmmov %vm12055_vm6 }
 0x316   : > { %v6510_v54 = vshll.u32 %v6201_v29, 16  ;;  %v5459_v19 = vsel %vm9424_vm12, %v5454_v50, %v5458_v17  ;;  %v6898_v44 = vsel %vm9366_vm8, %v8832_v22, %v6897_v62  ;;  %v6899_v3 = vrot.slane %v6897_v62, 4  ;;  %v5707_v61 = vld [vmem:[#allocation2 + $0x9c] sm:$0xe]  ;;  %v5708_v63 = vld [vmem:[#allocation2 + $0xa0] sm:$0xf]  ;;  %vm12059_vm14 = vmmov %vm12056_vm0 }
 0x317   : > { %v6503_v23 = vrot.slane %v6501_v33, 4  ;;  %v8750_v58 = vcombine.low %v5449_v7, %v5459_v19  ;;  %v6894_v40 = vsel %vm9366_vm8, %v6892_v12, %v6893_v11  ;;  %v6506_v48 = vrot.slane %v6504_v56, 5  ;;  %v5709_v32 = vld [vmem:[#allocation2 + $0xa4] sm:$0x1]  ;;  %v7784_v37 = vld [vmem:[#allocation2 + $0xa8] sm:$0xe]  ;;  %vm12060_vm15 = vmmov %vm12057_vm3 }
 0x318   : > { %v6512_v42 = vrot.slane %v6510_v54, 5  ;;  %v8847_v26 = vcombine.low %v6891_v1, %v6894_v40  ;;  %v6901_v18 = vsel %vm9366_vm8, %v6899_v3, %v6900_v0  ;;  %v6514_v6 = vshrl.u32 %v6201_v29, 16  ;;  %v7785_v2 = vld [vmem:[#allocation2 + $0xac] sm:$0xf]  ;;  %5660 = vst.msk [vmem:[#allocation3 + $0x40] sm:$0xff] %vm1668_vm1, %v5621_v34  ;;  %vm12061_vm7 = vmmov %vm12056_vm0 }
 0x319   : > { %v6520_v57 = vshll.u32 %v6202_v24, 16  ;;  %5626 = vrot.lane.b32.xlu1 %v8750_v58, %s9291_s26  ;;  %v8848_v31 = vcombine.low %v6898_v44, %v6901_v18  ;;  %v6507_v35 = vor.u32 %v6506_v48, %v6503_v23  ;;  %v7541_v59 = vshrl.u32 %v7240_v9, 16  ;;  %v7786_v51 = vld [vmem:[#allocation2 + $0xb0] sm:$0x1]  ;;  %5980 = vst.msk [vmem:[#allocation3 + $0x40] sm:$0xff] %vm1992_vm2, %v11541_v49  ;;  %v6657_v29 = vpop.permute.xlu0 %6656  ;;  %vm12062_vm6 = vmmov %vm12057_vm3 }
 0x31a   : > { %v7544_v41 = vshll.u32 %v7240_v9, 16  ;;  %6988 = vrot.lane.b32.xlu0 %v8847_v26, %s9294_s29  ;;  %v6516_v43 = vrot.slane %v6514_v6, 4  ;;  %v7550_v7 = vshll.u32 %v7241_v47, 16  ;;  %v7554_v60 = vshrl.u32 %v7241_v47, 16  ;;  %6156 = vst.msk [vmem:[#allocation3 + $0x40] sm:$0xff] %vm2169_vm4, %v6117_v45  ;;  %v9236_v3 = vld [vmem:[#allocation2 + $0xb4] sm:$0xff]  }
 0x31b   : > { %v6522_v38 = vrot.slane %v6520_v57, 5  ;;  %v6508_v21 = vrot.slane %v6507_v35, 4  ;;  %v7543_v53 = vrot.slane %v7541_v59, 4  ;;  %v7560_v5 = vshll.u32 %v7242_v27, 16  ;;  %6698 = vst.msk [vmem:[#allocation3 + $0x30] sm:$0xff] %vm2714_vm5, %v6657_v29 }
 0x31c   : > { %v7546_v4 = vrot.slane %v7544_v41, 5  ;;  %v6517_v17 = vor.u32 %v6516_v43, %v6512_v42  ;;  %v7552_v16 = vrot.slane %v7550_v7, 5  ;;  %v7556_v11 = vrot.slane %v7554_v60, 4  ;;  %v6203_v33 = vld [vmem:[#allocation2 + $0xa8] sm:$0xf]  ;;  %7018 = vst.msk [vmem:[#allocation3 + $0x30] sm:$0xff] %vm12056_vm0, %v11581_v46 }
 0x31d   : > { %v8768_v22 = vrot.slane %v5707_v61, 9  ;;  %6990 = vrot.lane.b32.xlu1 %v8848_v31, %s9294_s29  ;;  %v6513_v50 = vsel %vm9424_vm12, %v6508_v21, %v6512_v42  ;;  %v7562_v0 = vrot.slane %v7560_v5, 5  ;;  %v5857_v24 = vrot.slane %v5708_v63, 5  ;;  %7194 = vst.msk [vmem:[#allocation3 + $0x30] sm:$0xff] %vm12057_vm3, %v11444_v36  ;;  %v7695_v44 = vpop.permute.xlu1 %7694  ;;  %v6204_v27 = vld [vmem:[#allocation2 + $0xac] sm:$0xf] }
 0x31e   : > { %v7547_v62 = vor.u32 %v7546_v4, %v7543_v53  ;;  %v6518_v49 = vrot.slane %v6517_v17, 4  ;;  %v7557_v1 = vor.u32 %v7556_v11, %v7552_v16  ;;  %v5860_v12 = vrot.slane %v5709_v32, 5  ;;  %7738 = vst.msk [vmem:[#allocation3 + $0x30] sm:$0xff] %vm3758_vm10, %v11595_v14  ;;  %7737 = vst.msk [vmem:[#allocation3 + $0x28] sm:$0xff] %vm3758_vm10, %v7695_v44  ;;  %v6205_v42 = vld [vmem:[#allocation2 + $0xb0] sm:$0x1] }
 0x31f   : > { %v8895_v56 = vrot.slane %v7784_v37, 9  ;;  %v5858_v9 = vsel %vm9366_vm8, %v8768_v22, %v5857_v24  ;;  %v5859_v45 = vrot.slane %v5857_v24, 4  ;;  %v7930_v19 = vrot.slane %v7785_v2, 5  ;;  %8058 = vst.msk [vmem:[#allocation3 + $0x30] sm:$0xff] %vm4079_vm11, %v11532_v15  ;;  %v7787_v61 = vld [vmem:[#allocation2 + $0xb4] sm:$0xe] }
 0x320   : > { %v7548_v54 = vrot.slane %v7547_v62, 4  ;;  %v6523_v46 = vsel %vm9424_vm12, %v6518_v49, %v6522_v38  ;;  %v7558_v23 = vrot.slane %v7557_v1, 4  ;;  %v7933_v47 = vrot.slane %v7786_v51, 5  ;;  %v7788_v26 = vld [vmem:[#allocation2 + $0xb8] sm:$0xf]  ;;  %8057 = vst.msk [vmem:[#allocation3 + $0x28] sm:$0xff] %vm4079_vm11, %v11561_v8 }
 0x321   : > { %v6525_v58 = vshrl.u32 %v6203_v33, 16  ;;  %v8815_v36 = vcombine.low %v6513_v50, %v6523_v46  ;;  %v5861_v14 = vsel %vm9366_vm8, %v5859_v45, %v5860_v12  ;;  %v7931_v48 = vsel %vm9366_vm8, %v8895_v56, %v7930_v19  ;;  %5123 = vst.msk [vmem:[#allocation3 + $0x78] sm:$0xff] %vm12058_vm13, %v9236_v3  ;;  %v7789_v63 = vld [vmem:[#allocation2 + $0xbc] sm:$0x1]  ;;  %v5710_v31 = vld [vmem:[#allocation2 + $0xa8] sm:$0xe]  ;;  %vm12067_vm13 = vmmov %vm12061_vm7 }
 0x322   : > { %v7553_v40 = vsel %vm9424_vm12, %v7548_v54, %v7552_v16  ;;  %v7563_v15 = vsel %vm9424_vm12, %v7558_v23, %v7562_v0  ;;  %v8784_v18 = vcombine.low %v5858_v9, %v5861_v14  ;;  %v7932_v6 = vrot.slane %v7930_v19, 4  ;;  %v5711_v35 = vld [vmem:[#allocation2 + $0xac] sm:$0xf]  ;;  %v5712_v7 = vld [vmem:[#allocation2 + $0xb0] sm:$0x1] }
 0x323   : > { %v6527_v57 = vrot.slane %v6525_v58, 4  ;;  %6668 = vrot.lane.b32.xlu0 %v8815_v36, %s9296_s5  ;;  %v8879_v59 = vcombine.low %v7553_v40, %v7563_v15  ;;  %v6528_v41 = vshll.u32 %v6203_v33, 16  ;;  %v6534_v32 = vshll.u32 %v6204_v27, 16  ;;  %v7237_v4 = vld [vmem:[#allocation2 + $0x9c] sm:$0xf]  ;;  %v11668_v0 = vpop.permute.xlu0 %8020 }
 0x324   : > { %v6538_v37 = vshrl.u32 %v6204_v27, 16  ;;  %5950 = vrot.lane.b32.xlu1 %v8784_v18, %s9290_s25  ;;  %v7934_v8 = vsel %vm9366_vm8, %v7932_v6, %v7933_v47  ;;  %v6544_v34 = vshll.u32 %v6205_v42, 16  ;;  %v8896_v43 = vrot.slane %v7787_v61, 9  ;;  %v7238_v62 = vld [vmem:[#allocation2 + $0xa0] sm:$0xf] }
 0x325   : > { %v7937_v38 = vrot.slane %v7788_v26, 5  ;;  %v8911_v60 = vcombine.low %v7931_v48, %v7934_v8  ;;  %v6530_v2 = vrot.slane %v6528_v41, 5  ;;  %v6536_v21 = vrot.slane %v6534_v32, 5  ;;  %v7239_v49 = vld [vmem:[#allocation2 + $0xa4] sm:$0x1] }
 0x326   : > { %v6540_v53 = vrot.slane %v6538_v37, 4  ;;  %v6546_v5 = vrot.slane %v6544_v34, 5  ;;  %v7940_v17 = vrot.slane %v7789_v63, 5  ;;  %v8769_v22 = vrot.slane %v5710_v31, 9  ;;  %v5163_v44 = vld [vmem:[#allocation2 + $0x9c] sm:$0xf] }
 0x327   : > { %v7938_v51 = vsel %vm9366_vm8, %v8896_v43, %v7937_v38  ;;  %v7939_v29 = vrot.slane %v7937_v38, 4  ;;  %7708 = vrot.lane.b32.xlu0 %v8879_v59, %s9297_s6  ;;  %v6531_v16 = vor.u32 %v6530_v2, %v6527_v57  ;;  %v5864_v50 = vrot.slane %v5711_v35, 5  ;;  %v8073_v56 = vld [vmem:[#allocation3 + $0x28] sm:$0xff]  ;;  %v5166_v42 = vld [vmem:[#allocation2 + $0xa8] sm:$0xf] }
 0x328   : > { %v6541_v11 = vor.u32 %v6540_v53, %v6536_v21  ;;  %v5867_v33 = vrot.slane %v5712_v7, 5  ;;  %v7517_v1 = vshrl.u32 %v7237_v4, 16  ;;  %v7520_v12 = vshll.u32 %v7237_v4, 16  ;;  %9093 = vmatmul.mubr.msk.bf16.gmra.mrb[8].mxu1 %vm4132_vm9, %v8073_v56  ;;  %v5164_v27 = vld [vmem:[#allocation2 + $0xa0] sm:$0xf]  ;;  %v8074_v6 = vld [vmem:[#allocation3 + $0x30] sm:$0xff] }
 0x329   : > { %v7941_v24 = vsel %vm9366_vm8, %v7939_v29, %v7940_v17  ;;  %v6532_v54 = vrot.slane %v6531_v16, 4  ;;  %v5865_v19 = vsel %vm9366_vm8, %v8769_v22, %v5864_v50  ;;  %v5866_v3 = vrot.slane %v5864_v50, 4  ;;  %v5165_v48 = vld [vmem:[#allocation2 + $0xa4] sm:$0x1]  ;;  %9096 = vmatprep.mubr.msk.bf16.mxu1 %vm4132_vm9, %v8074_v6  ;;  %v5167_v34 = vld [vmem:[#allocation2 + $0xac] sm:$0xf] }
 0x32a   : > { %v6542_v9 = vrot.slane %v6541_v11, 4  ;;  %v8912_v45 = vcombine.low %v7938_v51, %v7941_v24  ;;  %v7519_v46 = vrot.slane %v7517_v1, 4  ;;  %v7522_v23 = vrot.slane %v7520_v12, 5  ;;  %v11682_v59 = vpop.permute.xlu0 %5944  ;;  %v6206_v29 = vld [vmem:[#allocation2 + $0xb4] sm:$0xf] }
 0x32b   : > { %v7526_v47 = vshll.u32 %v7238_v62, 16  ;;  %8028 = vrot.lane.b32.xlu0 %v8911_v60, %s9295_s30  ;;  %v6537_v58 = vsel %vm9424_vm12, %v6532_v54, %v6536_v21  ;;  %v7530_v40 = vshrl.u32 %v7238_v62, 16  ;;  %v7536_v14 = vshll.u32 %v7239_v49, 16  ;;  %v5168_v60 = vld [vmem:[#allocation2 + $0xb0] sm:$0x1]  ;;  %v9222_v21 = vld [vmem:[#allocation2 + $0xb4] sm:$0xff]  }
 0x32c   : > { %v6547_v36 = vsel %vm9424_vm12, %v6542_v9, %v6546_v5  ;;  %v5868_v26 = vsel %vm9366_vm8, %v5866_v3, %v5867_v33  ;;  %v7523_v15 = vor.u32 %v7522_v23, %v7519_v46  ;;  %v5485_v35 = vshrl.u32 %v5163_v44, 16  ;;  %v6207_v12 = vld [vmem:[#allocation2 + $0xb8] sm:$0xf]  ;;  %v6208_v23 = vld [vmem:[#allocation2 + $0xbc] sm:$0x1] }
 0x32d   : > { %v8816_v61 = vcombine.low %v6537_v58, %v6547_v36  ;;  %v7528_v18 = vrot.slane %v7526_v47, 5  ;;  %v8785_v57 = vcombine.low %v5865_v19, %v5868_v26  ;;  %v7532_v63 = vrot.slane %v7530_v40, 4  ;;  %v9224_v47 = vld [vmem:[#allocation2 + $0xb4] sm:$0xff]  }
 0x32e   : > { %v7538_v31 = vrot.slane %v7536_v14, 5  ;;  %v7524_v41 = vrot.slane %v7523_v15, 4  ;;  %v5488_v32 = vshll.u32 %v5163_v44, 16  ;;  %v5494_v37 = vshll.u32 %v5164_v27, 16  ;;  %v5619_v17 = vpop.permute.xlu1 %5618  ;;  %v11690_v62 = vpop.permute.xlu0 %8018  ;;  %v7243_v14 = vld [vmem:[#allocation2 + $0xb4] sm:$0xf] }
 0x32f   : > { %6670 = vrot.lane.b32.xlu1 %v8816_v61, %s9296_s5  ;;  %v5498_v8 = vshrl.u32 %v5164_v27, 16  ;;  %8030 = vrot.lane.b32.xlu0 %v8912_v45, %s9295_s30  ;;  %v7533_v43 = vor.u32 %v7532_v63, %v7528_v18  ;;  %v5487_v38 = vrot.slane %v5485_v35, 4  ;;  %v5504_v7 = vshll.u32 %v5165_v48, 16  ;;  %5659 = vst.msk [vmem:[#allocation3 + $0x38] sm:$0xff] %vm1668_vm1, %v5619_v17  ;;  %v7244_v6 = vld [vmem:[#allocation2 + $0xb8] sm:$0xf] }
 0x330   : > { %v5509_v2 = vshrl.u32 %v5166_v42, 16  ;;  %v7529_v53 = vsel %vm9424_vm12, %v7524_v41, %v7528_v18  ;;  %v5490_v4 = vrot.slane %v5488_v32, 5  ;;  %v5496_v5 = vrot.slane %v5494_v37, 5  ;;  %5979 = vst.msk [vmem:[#allocation3 + $0x38] sm:$0xff] %vm1992_vm2, %v11584_v52  ;;  %v6752_v17 = vld [vmem:[#allocation2 + $0xbc] sm:$0x1] }
 0x331   : > { %v5500_v51 = vrot.slane %v5498_v8, 4  ;;  %v7534_v16 = vrot.slane %v7533_v43, 4  ;;  %v5506_v11 = vrot.slane %v5504_v7, 5  ;;  %v5512_v50 = vshll.u32 %v5166_v42, 16  ;;  %6155 = vst.msk [vmem:[#allocation3 + $0x38] sm:$0xff] %vm2169_vm4, %v11446_v55 }
 0x332   : > { %v5511_v22 = vrot.slane %v5509_v2, 4  ;;  %v5491_v24 = vor.u32 %v5490_v4, %v5487_v38  ;;  %v5518_v49 = vshll.u32 %v5167_v34, 16  ;;  %v5522_v1 = vshrl.u32 %v5167_v34, 16  ;;  %6699 = vst.msk [vmem:[#allocation3 + $0x38] sm:$0xff] %vm2714_vm5, %v11606_v20  ;;  %v11702_v52 = vpop.permute.xlu1 %6982  ;;  %v7245_v34 = vld [vmem:[#allocation2 + $0xbc] sm:$0x1] }
 0x333   : > { %7166 = vrot.lane.b32.xlu1 %v9222_v21, %s9293_s28  ;;  %v5501_v33 = vor.u32 %v5500_v51, %v5496_v5  ;;  %5952 = vrot.lane.b32.xlu0 %v8785_v57, %s9290_s25  ;;  %v7539_v56 = vsel %vm9424_vm12, %v7534_v16, %v7538_v31  ;;  %v5514_v54 = vrot.slane %v5512_v50, 5  ;;  %v5528_v9 = vshll.u32 %v5168_v60, 16  ;;  %7019 = vst.msk [vmem:[#allocation3 + $0x38] sm:$0xff] %vm12059_vm14, %v11571_v30  ;;  %v11706_v55 = vpop.permute.xlu0 %6980  ;;  %v6750_v21 = vld [vmem:[#allocation2 + $0xb4] sm:$0xe] }
 0x334   : > { %v6549_v45 = vshrl.u32 %v6206_v29, 16  ;;  %v8878_v19 = vcombine.low %v7529_v53, %v7539_v56  ;;  %v5492_v44 = vrot.slane %v5491_v24, 4  ;;  %v5520_v46 = vrot.slane %v5518_v49, 5  ;;  %7195 = vst.msk [vmem:[#allocation3 + $0x38] sm:$0xff] %vm12060_vm15, %v11617_v28  ;;  %v5169_v24 = vld [vmem:[#allocation2 + $0xb4] sm:$0xf]  ;;  %vm12069_vm15 = vmmov %vm12061_vm7 }
 0x335   : > { %v5502_v3 = vrot.slane %v5501_v33, 4  ;;  %v5515_v27 = vor.u32 %v5514_v54, %v5511_v22  ;;  %v5524_v58 = vrot.slane %v5522_v1, 4  ;;  %v5530_v36 = vrot.slane %v5528_v9, 5 }
 0x336   : > { %v6551_v40 = vrot.slane %v6549_v45, 4  ;;  %v5497_v48 = vsel %vm9424_vm12, %v5492_v44, %v5496_v5  ;;  %v6552_v42 = vshll.u32 %v6206_v29, 16  ;;  %v6558_v61 = vshll.u32 %v6207_v12, 16  ;;  %v11716_v41 = vpop.permute.xlu1 %5942  ;;  %v6751_v29 = vld [vmem:[#allocation2 + $0xb8] sm:$0xf] }
 0x337   : > { %7706 = vrot.lane.b32.xlu1 %v8878_v19, %s9297_s6  ;;  %v5507_v20 = vsel %vm9424_vm12, %v5502_v3, %v5506_v11  ;;  %6128 = vrot.lane.b32.xlu0 %v9224_v47, %s9292_s27  ;;  %v5516_v15 = vrot.slane %v5515_v27, 4  ;;  %v5525_v30 = vor.u32 %v5524_v58, %v5520_v46  ;;  %v6562_v18 = vshrl.u32 %v6207_v12, 16  ;;  %v11720_v43 = vpop.permute.xlu0 %7160  ;;  %v5170_v3 = vld [vmem:[#allocation2 + $0xb8] sm:$0xf]  ;;  %v5171_v27 = vld [vmem:[#allocation2 + $0xbc] sm:$0x1] }
 0x338   : > { %v8752_v26 = vcombine.low %v5497_v48, %v5507_v20  ;;  %v6554_v57 = vrot.slane %v6552_v42, 5  ;;  %v6560_v63 = vrot.slane %v6558_v61, 5  ;;  %v6568_v31 = vshll.u32 %v6208_v23, 16  ;;  %v7246_v20 = vld [vmem:[#allocation2 + $0xc0] sm:$0xf] }
 0x339   : > { %v7565_v35 = vshrl.u32 %v7243_v14, 16  ;;  %v5521_v32 = vsel %vm9424_vm12, %v5516_v15, %v5520_v46  ;;  %v5526_v37 = vrot.slane %v5525_v30, 4  ;;  %v6564_v8 = vrot.slane %v6562_v18, 4 }
 0x33a   : > { %v7568_v28 = vshll.u32 %v7243_v14, 16  ;;  %v6555_v38 = vor.u32 %v6554_v57, %v6551_v40  ;;  %v6570_v7 = vrot.slane %v6568_v31, 5  ;;  %v7574_v2 = vshll.u32 %v7244_v6, 16  ;;  %v11725_v33 = vpop.permute.xlu1 %6122  ;;  %v7247_v31 = vld [vmem:[#allocation2 + $0xc4] sm:$0xf] }
 0x33b   : > { %5630 = vrot.lane.b32.xlu1 %v8752_v26, %s9291_s26  ;;  %v7567_v60 = vrot.slane %v7565_v35, 4  ;;  %v5531_v53 = vsel %vm9424_vm12, %v5526_v37, %v5530_v36  ;;  %v6565_v4 = vor.u32 %v6564_v8, %v6560_v63  ;;  %v7578_v51 = vshrl.u32 %v7244_v6, 16  ;;  %v11727_v54 = vpop.permute.xlu0 %7700 }
 0x33c   : > { %v7570_v5 = vrot.slane %v7568_v28, 5  ;;  %v8753_v16 = vcombine.low %v5521_v32, %v5531_v53  ;;  %v6556_v11 = vrot.slane %v6555_v38, 4  ;;  %v7576_v22 = vrot.slane %v7574_v2, 5  ;;  %v5713_v38 = vld [vmem:[#allocation2 + $0xb4] sm:$0xe] }
 0x33d   : > { %v7584_v50 = vshll.u32 %v7245_v34, 16  ;;  %v6566_v49 = vrot.slane %v6565_v4, 4  ;;  %v7580_v12 = vrot.slane %v7578_v51, 4  ;;  %v8833_v56 = vrot.slane %v6750_v21, 9  ;;  %v7248_v34 = vld [vmem:[#allocation2 + $0xc8] sm:$0x1] }
 0x33e   : > { %v7571_v1 = vor.u32 %v7570_v5, %v7567_v60  ;;  %v6561_v9 = vsel %vm9424_vm12, %v6556_v11, %v6560_v63  ;;  %v6904_v19 = vrot.slane %v6751_v29, 5  ;;  %v6907_v44 = vrot.slane %v6752_v17, 5  ;;  %v5714_v53 = vld [vmem:[#allocation2 + $0xb8] sm:$0xf]  ;;  %v5715_v4 = vld [vmem:[#allocation2 + $0xbc] sm:$0x1] }
 0x33f   : > { %5632 = vrot.lane.b32.xlu1 %v8753_v16, %s9291_s26  ;;  %v7586_v45 = vrot.slane %v7584_v50, 5  ;;  %v6571_v46 = vsel %vm9424_vm12, %v6566_v49, %v6570_v7  ;;  %v7581_v47 = vor.u32 %v7580_v12, %v7576_v22  ;;  %v5533_v58 = vshrl.u32 %v5169_v24, 16  ;;  %v11736_v42 = vpop.permute.xlu1 %6662  ;;  %v6121_v35 = vpop.permute.xlu0 %6120  ;;  %v7790_v11 = vld [vmem:[#allocation2 + $0xc0] sm:$0xe] }
 0x340   : > { %v7572_v23 = vrot.slane %v7571_v1, 4  ;;  %v8817_v36 = vcombine.low %v6561_v9, %v6571_v46  ;;  %v6905_v40 = vsel %vm9366_vm8, %v8833_v56, %v6904_v19  ;;  %v6906_v14 = vrot.slane %v6904_v19, 4  ;;  %v7791_v1 = vld [vmem:[#allocation2 + $0xc4] sm:$0xf]  ;;  %v7792_v19 = vld [vmem:[#allocation2 + $0xc8] sm:$0x1] }
 0x341   : > { %v5536_v48 = vshll.u32 %v5169_v24, 16  ;;  %v7582_v26 = vrot.slane %v7581_v47, 4  ;;  %v5535_v15 = vrot.slane %v5533_v58, 4  ;;  %v5542_v30 = vshll.u32 %v5170_v3, 16 }
 0x342   : > { %v7577_v61 = vsel %vm9424_vm12, %v7572_v23, %v7576_v22  ;;  %6672 = vrot.lane.b32.xlu0 %v8817_v36, %s9296_s5  ;;  %v6908_v18 = vsel %vm9366_vm8, %v6906_v14, %v6907_v44  ;;  %v5546_v57 = vshrl.u32 %v5170_v3, 16  ;;  %v5552_v63 = vshll.u32 %v5171_v27, 16  ;;  %v9225_v44 = vld [vmem:[#allocation2 + $0xc0] sm:$0xff]  }
 0x343   : > { %v5538_v6 = vrot.slane %v5536_v48, 5  ;;  %v7587_v32 = vsel %vm9424_vm12, %v7582_v26, %v7586_v45  ;;  %v8849_v37 = vcombine.low %v6905_v40, %v6908_v18  ;;  %v5544_v8 = vrot.slane %v5542_v30, 5  ;;  %v11745_v5 = vpop.permute.xlu1 %7158  ;;  %v6209_v48 = vld [vmem:[#allocation2 + $0xc0] sm:$0xf]  ;;  %v6210_v30 = vld [vmem:[#allocation2 + $0xc4] sm:$0xf] }
 0x344   : > { %v7589_v28 = vshrl.u32 %v7246_v20, 16  ;;  %v8880_v7 = vcombine.low %v7577_v61, %v7587_v32  ;;  %v5548_v2 = vrot.slane %v5546_v57, 4  ;;  %v5554_v21 = vrot.slane %v5552_v63, 5 }
 0x345   : > { %v5539_v60 = vor.u32 %v5538_v6, %v5535_v15  ;;  %v7592_v29 = vshll.u32 %v7246_v20, 16  ;;  %v7598_v17 = vshll.u32 %v7247_v31, 16  ;;  %v7602_v16 = vshrl.u32 %v7247_v31, 16 }
 0x346   : > { %v7591_v51 = vrot.slane %v7589_v28, 4  ;;  %7710 = vrot.lane.b32.xlu1 %v8880_v7, %s9297_s6  ;;  %6992 = vrot.lane.b32.xlu0 %v8849_v37, %s9294_s29  ;;  %v5549_v50 = vor.u32 %v5548_v2, %v5544_v8  ;;  %v7608_v24 = vshll.u32 %v7248_v34, 16  ;;  %v8770_v49 = vrot.slane %v5713_v38, 9  ;;  %v6211_v37 = vld [vmem:[#allocation2 + $0xc8] sm:$0x1] }
 0x347   : > { %v5540_v22 = vrot.slane %v5539_v60, 4  ;;  %v7594_v12 = vrot.slane %v7592_v29, 5  ;;  %v7600_v56 = vrot.slane %v7598_v17, 5  ;;  %v7604_v9 = vrot.slane %v7602_v16, 4  ;;  %v5625_v47 = vpop.permute.xlu1 %5624  ;;  %v6661_v27 = vpop.permute.xlu0 %6660  ;;  %v6754_v28 = vld [vmem:[#allocation2 + $0xc4] sm:$0xf] }
 0x348   : > { %v5871_v45 = vrot.slane %v5714_v53, 5  ;;  %v5550_v46 = vrot.slane %v5549_v50, 4  ;;  %v5874_v23 = vrot.slane %v5715_v4, 5  ;;  %v7610_v40 = vrot.slane %v7608_v24, 5  ;;  %5662 = vst.msk [vmem:[#allocation3 + $0x50] sm:$0xff] %vm1668_vm1, %v5625_v47 }
 0x349   : > { %v5545_v3 = vsel %vm9424_vm12, %v5540_v22, %v5544_v8  ;;  %v7595_v58 = vor.u32 %v7594_v12, %v7591_v51  ;;  %v7605_v36 = vor.u32 %v7604_v9, %v7600_v56  ;;  %6700 = vst.msk [vmem:[#allocation3 + $0x40] sm:$0xff] %vm2714_vm5, %v6661_v27  ;;  %v8897_v61 = vrot.slane %v7790_v11, 9  ;;  %v7249_v2 = vld [vmem:[#allocation2 + $0xcc] sm:$0xf]  ;;  %v6753_v16 = vld [vmem:[#allocation2 + $0xc0] sm:$0xe] }
 0x34a   : > { %v5873_v14 = vrot.slane %v5871_v45, 4  ;;  %7168 = vrot.lane.b32.xlu0 %v9225_v44, %s9293_s28  ;;  %v5555_v20 = vsel %vm9424_vm12, %v5550_v46, %v5554_v21  ;;  %v7944_v26 = vrot.slane %v7791_v1, 5  ;;  %v7947_v15 = vrot.slane %v7792_v19, 5  ;;  %5982 = vst.msk [vmem:[#allocation3 + $0x50] sm:$0xff] %vm1992_vm2, %v11682_v59  ;;  %v7250_v21 = vld [vmem:[#allocation2 + $0xd0] sm:$0xf] }
 0x34b   : > { %7020 = vst.msk [vmem:[#allocation3 + $0x40] sm:$0xff] %vm12061_vm7, %v11706_v55  ;;  %v8754_v18 = vcombine.low %v5545_v3, %v5555_v20  ;;  %v7596_v6 = vrot.slane %v7595_v58, 4  ;;  %v7606_v57 = vrot.slane %v7605_v36, 4  ;;  %v5872_v63 = vsel %vm9366_vm8, %v8770_v49, %v5871_v45  ;;  %v6755_v24 = vld [vmem:[#allocation2 + $0xc8] sm:$0x1]  ;;  %v9227_v44 = vld [vmem:[#allocation2 + $0xc0] sm:$0xff]  }
 0x34c   : > { %6158 = vst.msk [vmem:[#allocation3 + $0x50] sm:$0xff] %vm2169_vm4, %v6121_v35  ;;  %v5875_v31 = vsel %vm9366_vm8, %v5873_v14, %v5874_v23  ;;  %v7945_v59 = vsel %vm9366_vm8, %v8897_v61, %v7944_v26  ;;  %v7946_v32 = vrot.slane %v7944_v26, 4  ;;  %v6573_v55 = vshrl.u32 %v6209_v48, 16  ;;  %v7251_v45 = vld [vmem:[#allocation2 + $0xd4] sm:$0x1] }
 0x34d   : > { %7196 = vst.msk [vmem:[#allocation3 + $0x40] sm:$0xff] %vm12062_vm6, %v11587_v25  ;;  %5634 = vrot.lane.b32.xlu1 %v8754_v18, %s9291_s26  ;;  %v7601_v35 = vsel %vm9424_vm12, %v7596_v6, %v7600_v56  ;;  %v7611_v25 = vsel %vm9424_vm12, %v7606_v57, %v7610_v40  ;;  %v6576_v8 = vshll.u32 %v6209_v48, 16  ;;  %v6582_v34 = vshll.u32 %v6210_v30, 16  ;;  %v7699_v53 = vpop.permute.xlu1 %7698  ;;  %v7794_v18 = vld [vmem:[#allocation2 + $0xd0] sm:$0xf] }
 0x34e   : > { %7740 = vst.msk [vmem:[#allocation3 + $0x40] sm:$0xff] %vm3758_vm10, %v11727_v54  ;;  %v8881_v38 = vcombine.low %v7601_v35, %v7611_v25  ;;  %v7948_v7 = vsel %vm9366_vm8, %v7946_v32, %v7947_v15  ;;  %v6575_v60 = vrot.slane %v6573_v55, 4  ;;  %v6586_v54 = vshrl.u32 %v6210_v30, 16  ;;  %7739 = vst.msk [vmem:[#allocation3 + $0x38] sm:$0xff] %vm3758_vm10, %v7699_v53  ;;  %v7793_v55 = vld [vmem:[#allocation2 + $0xcc] sm:$0xe] }
 0x34f   : > { %8060 = vst.msk [vmem:[#allocation3 + $0x40] sm:$0xff] %vm4079_vm11, %v11668_v0  ;;  %v8786_v4 = vcombine.low %v5872_v63, %v5875_v31  ;;  %v6578_v51 = vrot.slane %v6576_v8, 5  ;;  %v6584_v29 = vrot.slane %v6582_v34, 5  ;;  %v6592_v17 = vshll.u32 %v6211_v37, 16  ;;  %8059 = vst.msk [vmem:[#allocation3 + $0x38] sm:$0xff] %vm4079_vm11, %v11690_v62  ;;  %v8025_v26 = vpop.permute.xlu0 %8024 }
 0x350   : > { %7712 = vrot.lane.b32.xlu0 %v8881_v38, %s9297_s6  ;;  %v6588_v11 = vrot.slane %v6586_v54, 4  ;;  %v6911_v0 = vrot.slane %v6754_v28, 5  ;;  %v8913_v22 = vcombine.low %v7945_v59, %v7948_v7  ;;  %v7613_v49 = vshrl.u32 %v7249_v2, 16  ;;  %v7795_v8 = vld [vmem:[#allocation2 + $0xd4] sm:$0x1]  ;;  %v9229_v28 = vld [vmem:[#allocation2 + $0xcc] sm:$0xff]  }
 0x351   : > { %5954 = vrot.lane.b32.xlu1 %v8786_v4, %s9290_s25  ;;  %v6579_v50 = vor.u32 %v6578_v51, %v6575_v60  ;;  %v7616_v1 = vshll.u32 %v7249_v2, 16  ;;  %v6594_v56 = vrot.slane %v6592_v17, 5  ;;  %v8834_v9 = vrot.slane %v6753_v16, 9 }
 0x352   : > { %v6589_v12 = vor.u32 %v6588_v11, %v6584_v29  ;;  %v7622_v19 = vshll.u32 %v7250_v21, 16  ;;  %v7615_v46 = vrot.slane %v7613_v49, 4  ;;  %v7626_v47 = vshrl.u32 %v7250_v21, 16 }
 0x353   : > { %v6580_v3 = vrot.slane %v6579_v50, 4  ;;  %v7618_v23 = vrot.slane %v7616_v1, 5  ;;  %v6913_v27 = vrot.slane %v6911_v0, 4  ;;  %v6914_v58 = vrot.slane %v6755_v24, 5 }
 0x354   : > { %8032 = vrot.lane.b32.xlu0 %v8913_v22, %s9295_s30  ;;  %v6590_v62 = vrot.slane %v6589_v12, 4  ;;  %v7624_v36 = vrot.slane %v7622_v19, 5  ;;  %v7628_v40 = vrot.slane %v7626_v47, 4  ;;  %v7632_v61 = vshll.u32 %v7251_v45, 16 }
 0x355   : > { %6130 = vrot.lane.b32.xlu1 %v9227_v44, %s9292_s27  ;;  %v6585_v14 = vsel %vm9424_vm12, %v6580_v3, %v6584_v29  ;;  %v7619_v20 = vor.u32 %v7618_v23, %v7615_v46  ;;  %v6912_v57 = vsel %vm9366_vm8, %v8834_v9, %v6911_v0  ;;  %v6915_v63 = vsel %vm9366_vm8, %v6913_v27, %v6914_v58  ;;  %s11875_s27 = scalar_lea.vmem %s11987_s4, %s8936_s19 }
 0x356   : > { %v6595_v48 = vsel %vm9424_vm12, %v6590_v62, %v6594_v56  ;;  %v7629_v30 = vor.u32 %v7628_v40, %v7624_v36  ;;  %v8075_v6 = vld [vmem:[#allocation3 + $0x38] sm:$0xff]  ;;  %v8076_v31 = vld [vmem:[#allocation3 + $0x40] sm:$0xff]  ;;  %v7634_v37 = vrot.slane %v7632_v61, 5  ;;  %v7951_v35 = vrot.slane %v7794_v18, 5 }
 0x357   : > { %v8818_v15 = vcombine.low %v6585_v14, %v6595_v48  ;;  %9097 = vmatmul.mubr.msk.bf16.gmra.mrb[12].mxu1 %vm4132_vm9, %v8075_v6  ;;  %v7620_v59 = vrot.slane %v7619_v20, 4  ;;  %v8850_v25 = vcombine.low %v6912_v57, %v6915_v63  ;;  %v8898_v38 = vrot.slane %v7793_v55, 9  ;;  %v9250_v55 = vld [vmem:[%s9375_s22] sm:$0xff] }
 0x358   : > { %9100 = vmatprep.mubr.msk.bf16.mxu1 %vm4132_vm9, %v8076_v31  ;;  %v7630_v32 = vrot.slane %v7629_v30, 4  ;;  %v7953_v54 = vrot.slane %v7951_v35, 4  ;;  %v7954_v2 = vrot.slane %v7795_v8, 5  ;;  %v9249_v31 = vld [vmem:[%s9375_s22 + $0x10] sm:$0xff]  ;;  %v9251_v8 = vld [vmem:[%s9375_s22 + $0x18] sm:$0xff] }
 0x359   : > { %6674 = vrot.lane.b32.xlu1 %v8818_v15, %s9296_s5  ;;  %v7625_v7 = vsel %vm9424_vm12, %v7620_v59, %v7624_v36  ;;  %v7952_v51 = vsel %vm9366_vm8, %v8898_v38, %v7951_v35  ;;  %v9252_v38 = vld [vmem:[%s9375_s22 + $0x8] sm:$0xff] }
 0x35a   : > { %v7635_v60 = vsel %vm9424_vm12, %v7630_v32, %v7634_v37  ;;  %v7955_v10 = vsel %vm9366_vm8, %v7953_v54, %v7954_v2  ;;  %vm12063_vm12 = vmmov %vm12056_vm0 }
 0x35b   : > { %v5949_v34 = vpop.permute.xlu0 %5948  ;;  %v8882_v4 = vcombine.low %v7625_v7, %v7635_v60  ;;  %vm12064_vm0 = vmmov %vm12057_vm3 }
 0x35c   : > { %v5623_v21 = vpop.permute.xlu1 %5622  ;;  %vm12065_vm8 = vmmov %vm12061_vm7 }
 0x35d   : > { %6994 = vrot.lane.b32.xlu1 %v8850_v25, %s9294_s29  ;;  %5661 = vst.msk [vmem:[#allocation3 + $0x48] sm:$0xff] %vm1668_vm1, %v5623_v21  ;;  %vm12066_vm3 = vmmov %vm12064_vm0 }
 0x35e   : > { %5981 = vst.msk [vmem:[#allocation3 + $0x48] sm:$0xff] %vm1992_vm2, %v11716_v41  ;;  %vm12068_vm14 = vmmov %vm12064_vm0 }
 0x35f   : > { %v8023_v53 = vpop.permute.xlu0 %8022  ;;  %6157 = vst.msk [vmem:[#allocation3 + $0x48] sm:$0xff] %vm2169_vm4, %v11591_v39  ;;  %v8914_v39 = vcombine.low %v7952_v51, %v7955_v10  ;;  %vm12070_vm7 = vmmov %vm12064_vm0  ;;  %v9254_v10 = vld [vmem:[%s9375_s22 + $0x20] sm:$0xff] }
 0x360   : > { %6701 = vst.msk [vmem:[#allocation3 + $0x48] sm:$0xff] %vm2714_vm5, %v11736_v42  ;;  %v6987_v29 = vpop.permute.xlu1 %6986  ;;  %vm12071_vm6 = vmmov %vm12065_vm8 }
 0x361   : > { %7170 = vrot.lane.b32.xlu1 %v9229_v28, %s9293_s28  ;;  %7021 = vst.msk [vmem:[#allocation3 + $0x48] sm:$0xff] %vm12063_vm12, %v11702_v52  ;;  %vm12072_vm12 = vmmov %vm12064_vm0 }
 0x362   : > { %7197 = vst.msk [vmem:[#allocation3 + $0x48] sm:$0xff] %vm12064_vm0, %v11745_v5  ;;  %vm12073_vm0 = vmmov %vm12071_vm6 }
 0x363   : > { %v6985_v41 = vpop.permute.xlu0 %6984 }
 0x364   : > { %v5947_v17 = vpop.permute.xlu1 %5946 }
 0x365   : > { %7714 = vrot.lane.b32.xlu1 %v8882_v4, %s9297_s6 }
 0x367   : > { %v7165_v16 = vpop.permute.xlu0 %7164 }
 0x368   : > { %v6127_v13 = vpop.permute.xlu1 %6126 }
 0x369   : > { %8034 = vrot.lane.b32.xlu1 %v8914_v39, %s9295_s30  ;;  %v9255_v39 = vld [vmem:[%s9375_s22 + $0x38] sm:$0xff] }
 0x36b   : > { %v7705_v11 = vpop.permute.xlu0 %7704 }
 0x36d   : > { %v6667_v0 = vpop.permute.xlu1 %6666 }
 0x36f   : > { %v6125_v22 = vpop.permute.xlu0 %6124 }
 0x371   : > { %v7163_v42 = vpop.permute.xlu1 %7162 }
 0x375   : > { %v5629_v50 = vpop.permute.xlu1 %5628 }
 0x376   : > { %v6665_v24 = vpop.permute.xlu0 %6664  ;;  %5664 = vst.msk [vmem:[#allocation3 + $0x60] sm:$0xff] %vm1668_vm1, %v5629_v50 }
 0x377   : > { %6702 = vst.msk [vmem:[#allocation3 + $0x50] sm:$0xff] %vm2714_vm5, %v6665_v24  ;;  %v9257_v24 = vld [vmem:[%s9375_s22 + $0x50] sm:$0xff] }
 0x378   : > { %5984 = vst.msk [vmem:[#allocation3 + $0x60] sm:$0xff] %vm1992_vm2, %v5949_v34 }
 0x379   : > { %7022 = vst.msk [vmem:[#allocation3 + $0x50] sm:$0xff] %vm12065_vm8, %v6985_v41  ;;  %vm12074_vm8 = vmmov %vm12066_vm3 }
 0x37a   : > { %6160 = vst.msk [vmem:[#allocation3 + $0x60] sm:$0xff] %vm2169_vm4, %v6125_v22 }
 0x37b   : > { %7198 = vst.msk [vmem:[#allocation3 + $0x50] sm:$0xff] %vm12066_vm3, %v11720_v43  ;;  %v7703_v52 = vpop.permute.xlu1 %7702  ;;  %vm12079_vm3 = vmmov %vm12073_vm0 }
 0x37c   : > { %7742 = vst.msk [vmem:[#allocation3 + $0x50] sm:$0xff] %vm3758_vm10, %v7705_v11  ;;  %7741 = vst.msk [vmem:[#allocation3 + $0x48] sm:$0xff] %vm3758_vm10, %v7703_v52  ;;  %v8027_v1 = vpop.permute.xlu0 %8026 }
 0x37d   : > { %8062 = vst.msk [vmem:[#allocation3 + $0x50] sm:$0xff] %vm4079_vm11, %v8025_v26  ;;  %8061 = vst.msk [vmem:[#allocation3 + $0x48] sm:$0xff] %vm4079_vm11, %v8023_v53  ;;  %v9253_v53 = vld [vmem:[%s9375_s22 + $0x30] sm:$0xff] }
 0x384   : > { %v8077_v5 = vld [vmem:[#allocation3 + $0x48] sm:$0xff]  ;;  %v8078_v49 = vld [vmem:[#allocation3 + $0x50] sm:$0xff] }
 0x385   : > { %9101 = vmatmul.mubr.msk.bf16.gmra.mrb[16].mxu1 %vm4132_vm9, %v8077_v5 }
 0x386   : > { %9104 = vmatprep.mubr.msk.bf16.mxu1 %vm4132_vm9, %v8078_v49  ;;  %v9258_v49 = vld [vmem:[%s9375_s22 + $0x40] sm:$0xff] }
 0x38b   : > { %v5627_v12 = vpop.permute.xlu1 %5626 }
 0x38c   : > { %5663 = vst.msk [vmem:[#allocation3 + $0x58] sm:$0xff] %vm1668_vm1, %v5627_v12  ;;  %v6989_v43 = vpop.permute.xlu0 %6988 }
 0x38d   : > { %5983 = vst.msk [vmem:[#allocation3 + $0x58] sm:$0xff] %vm1992_vm2, %v5947_v17 }
 0x38e   : > { %6159 = vst.msk [vmem:[#allocation3 + $0x58] sm:$0xff] %vm2169_vm4, %v11725_v33 }
 0x38f   : > { %6703 = vst.msk [vmem:[#allocation3 + $0x58] sm:$0xff] %vm2714_vm5, %v6667_v0  ;;  %v6991_v56 = vpop.permute.xlu1 %6990 }
 0x390   : > { %7023 = vst.msk [vmem:[#allocation3 + $0x58] sm:$0xff] %vm12067_vm13, %v6987_v29  ;;  %vm12080_vm13 = vmmov %vm12070_vm7 }
 0x391   : > { %7199 = vst.msk [vmem:[#allocation3 + $0x58] sm:$0xff] %vm12068_vm14, %v7163_v42 }
 0x395   : > { %v6669_v9 = vpop.permute.xlu0 %6668 }
 0x396   : > { %6704 = vst.msk [vmem:[#allocation3 + $0x60] sm:$0xff] %vm2714_vm5, %v6669_v9  ;;  %v5951_v19 = vpop.permute.xlu1 %5950 }
 0x397   : > { %7024 = vst.msk [vmem:[#allocation3 + $0x60] sm:$0xff] %vm12069_vm15, %v6989_v43  ;;  %v9259_v43 = vld [vmem:[%s9375_s22 + $0x58] sm:$0xff] }
 0x398   : > { %7200 = vst.msk [vmem:[#allocation3 + $0x60] sm:$0xff] %vm12070_vm7, %v7165_v16 }
 0x399   : > { %v7709_v45 = vpop.permute.xlu0 %7708 }
 0x39a   : > { %7744 = vst.msk [vmem:[#allocation3 + $0x60] sm:$0xff] %vm3758_vm10, %v7709_v45  ;;  %v9260_v45 = vld [vmem:[%s9375_s22 + $0x48] sm:$0xff] }
 0x39d   : > { %v8029_v33 = vpop.permute.xlu0 %8028 }
 0x39e   : > { %8064 = vst.msk [vmem:[#allocation3 + $0x60] sm:$0xff] %vm4079_vm11, %v8029_v33 }
 0x3a1   : > { %v6671_v44 = vpop.permute.xlu1 %6670  ;;  %v8031_v3 = vpop.permute.xlu0 %8030 }
 0x3a5   : > { %v7167_v46 = vpop.permute.xlu1 %7166  ;;  %v5953_v23 = vpop.permute.xlu0 %5952  ;;  %v8080_v40 = vld [vmem:[#allocation3 + $0x60] sm:$0xff] }
 0x3a9   : > { %v7707_v47 = vpop.permute.xlu1 %7706  ;;  %v6129_v27 = vpop.permute.xlu0 %6128 }
 0x3aa   : > { %7743 = vst.msk [vmem:[#allocation3 + $0x58] sm:$0xff] %vm3758_vm10, %v7707_v47 }
 0x3ab   : > { %8063 = vst.msk [vmem:[#allocation3 + $0x58] sm:$0xff] %vm4079_vm11, %v8027_v1 }
 0x3ad   : > { %v5631_v62 = vpop.permute.xlu1 %5630 }
 0x3ae   : > { %5665 = vst.msk [vmem:[#allocation3 + $0x68] sm:$0xff] %vm1668_vm1, %v5631_v62 }
 0x3af   : > { %5985 = vst.msk [vmem:[#allocation3 + $0x68] sm:$0xff] %vm1992_vm2, %v5951_v19 }
 0x3b0   : > { %6161 = vst.msk [vmem:[#allocation3 + $0x68] sm:$0xff] %vm2169_vm4, %v6127_v13  ;;  %v9256_v13 = vld [vmem:[%s9375_s22 + $0x28] sm:$0xff] }
 0x3b1   : > { %6705 = vst.msk [vmem:[#allocation3 + $0x68] sm:$0xff] %vm2714_vm5, %v6671_v44  ;;  %v5633_v58 = vpop.permute.xlu1 %5632  ;;  %v9261_v44 = vld [vmem:[%s9375_s22 + $0x70] sm:$0xff] }
 0x3b2   : > { %7025 = vst.msk [vmem:[#allocation3 + $0x68] sm:$0xff] %vm12071_vm6, %v6991_v56  ;;  %v8079_v36 = vld [vmem:[#allocation3 + $0x58] sm:$0xff] }
 0x3b3   : > { %5666 = vst.msk [vmem:[#allocation3 + $0x70] sm:$0xff] %vm1668_vm1, %v5633_v58  ;;  %9105 = vmatmul.mubr.msk.bf16.gmra.mrb[20].mxu1 %vm4132_vm9, %v8079_v36 }
 0x3b4   : > { %5986 = vst.msk [vmem:[#allocation3 + $0x70] sm:$0xff] %vm1992_vm2, %v5953_v23  ;;  %9108 = vmatprep.mubr.msk.bf16.mxu1 %vm4132_vm9, %v8080_v40  ;;  %v6673_v14 = vpop.permute.xlu0 %6672  ;;  %v9262_v23 = vld [vmem:[%s9375_s22 + $0x60] sm:$0xff]  ;;  %v9264_v40 = vld [vmem:[%s9375_s22 + $0x68] sm:$0xff] }
 0x3b5   : > { %7201 = vst.msk [vmem:[#allocation3 + $0x68] sm:$0xff] %vm12072_vm12, %v7167_v46 }
 0x3b6   : > { %6162 = vst.msk [vmem:[#allocation3 + $0x70] sm:$0xff] %vm2169_vm4, %v6129_v27  ;;  %v9263_v27 = vld [vmem:[%s9375_s22 + $0x78] sm:$0xff] }
 0x3b7   : > { %6706 = vst.msk [vmem:[#allocation3 + $0x70] sm:$0xff] %vm2714_vm5, %v6673_v14 }
 0x3b8   : > { %v7711_v48 = vpop.permute.xlu1 %7710  ;;  %v6993_v20 = vpop.permute.xlu0 %6992 }
 0x3b9   : > { %7745 = vst.msk [vmem:[#allocation3 + $0x68] sm:$0xff] %vm3758_vm10, %v7711_v48 }
 0x3ba   : > { %7026 = vst.msk [vmem:[#allocation3 + $0x70] sm:$0xff] %vm12073_vm0, %v6993_v20  ;;  %v9265_v20 = vld [vmem:[%s9375_s22 + $0x90] sm:$0xff] }
 0x3bb   : > { %8065 = vst.msk [vmem:[#allocation3 + $0x68] sm:$0xff] %vm4079_vm11, %v8031_v3 }
 0x3bc   : > { %v7169_v61 = vpop.permute.xlu0 %7168 }
 0x3bd   : > { %7202 = vst.msk [vmem:[#allocation3 + $0x70] sm:$0xff] %vm12074_vm8, %v7169_v61 }
 0x3bf   : > { %v5635_v26 = vpop.permute.xlu1 %5634 }
 0x3c0   : > { %5667 = vst.msk [vmem:[#allocation3 + $0x78] sm:$0xff] %vm1668_vm1, %v5635_v26  ;;  %vm12075_vm1 = vcmask 31744  }
 0x3c1   : > { %vm12081_vm14 = vmmov %vm12075_vm1 }
 0x3c2   : > { %v8081_v15 = vld [vmem:[#allocation3 + $0x68] sm:$0xff]  ;;  %v7713_v30 = vpop.permute.xlu0 %7712  ;;  %vm12082_vm15 = vmmov %vm12075_vm1 }
 0x3c3   : > { %9109 = vmatmul.mubr.msk.bf16.gmra.mrb[24].mxu1 %vm4132_vm9, %v8081_v15  ;;  %7746 = vst.msk [vmem:[#allocation3 + $0x70] sm:$0xff] %vm3758_vm10, %v7713_v30  ;;  %v5955_v18 = vpop.permute.xlu1 %5954  ;;  %vm12083_vm7 = vmmov %vm12075_vm1  ;;  %v9266_v15 = vld [vmem:[%s9375_s22 + $0x80] sm:$0xff] }
 0x3c4   : > { %5987 = vst.msk [vmem:[#allocation3 + $0x78] sm:$0xff] %vm1992_vm2, %v5955_v18  ;;  %vm12076_vm2 = vmmov %vm12075_vm1 }
 0x3c5   : > { %vm12084_vm6 = vmmov %vm12075_vm1 }
 0x3c6   : > { %v8033_v6 = vpop.permute.xlu0 %8032  ;;  %vm12088_vm12 = vmmov %vm12075_vm1 }
 0x3c7   : > { %8066 = vst.msk [vmem:[#allocation3 + $0x70] sm:$0xff] %vm4079_vm11, %v8033_v6  ;;  %v6131_v57 = vpop.permute.xlu1 %6130  ;;  %vm12089_vm0 = vmmov %vm12075_vm1  ;;  %v9267_v6 = vld [vmem:[%s9375_s22 + $0x98] sm:$0xff] }
 0x3c8   : > { %6163 = vst.msk [vmem:[#allocation3 + $0x78] sm:$0xff] %vm2169_vm4, %v6131_v57  ;;  %vm12077_vm4 = vmmov %vm12075_vm1 }
 0x3c9   : > { %v9086_v63 = vpop.f32.mrb[0].mxu1  ;;  %vm12090_vm8 = vmmov %vm12089_vm0 }
 0x3ca   : > { %v8318_v59 = vadd.f32 %v9249_v31, %v9086_v63  ;;  %v8189_v32 = vpop.f32.mrb[1].mxu1  ;;  %v9268_v31 = vld [vmem:[%s9375_s22 + $0x88] sm:$0xff] }
 0x3cb   : > { %v6675_v37 = vpop.permute.xlu1 %6674  ;;  %v8316_v35 = vadd.f32 %v9250_v55, %v8189_v32  ;;  %v9087_v25 = vpop.f32.mrb[2].mxu1 }
 0x3cc   : > { %6707 = vst.msk [vmem:[#allocation3 + $0x78] sm:$0xff] %vm2714_vm5, %v6675_v37  ;;  %v8319_v34 = vadd.f32 %v9251_v8, %v9087_v25  ;;  %v8192_v28 = vpop.f32.mrb[3].mxu1  ;;  %vm12078_vm5 = vmmov %vm12075_vm1  ;;  %v9269_v37 = vld [vmem:[%s9375_s22 + $0xb0] sm:$0xff]  ;;  %v9270_v25 = vld [vmem:[%s9375_s22 + $0xa0] sm:$0xff] }
 0x3cd   : > { %8350 = vst.msk [vmem:[%s11875_s27 + $0x10] sm:$0xff] %vm12075_vm1, %v8318_v59  ;;  %v8317_v7 = vadd.f32 %v9252_v38, %v8192_v28  ;;  %v9271_v28 = vld [vmem:[%s9375_s22 + $0xb8] sm:$0xff] }
 0x3ce   : > { %8348 = vst.msk [vmem:[%s11875_s27] sm:$0xff] %vm12076_vm2, %v8316_v35  ;;  %v8082_v60 = vld [vmem:[#allocation3 + $0x70] sm:$0xff]  ;;  %vm12092_vm2 = vmmov %vm12089_vm0 }
 0x3cf   : > { %8351 = vst.msk [vmem:[%s11875_s27 + $0x18] sm:$0xff] %vm12077_vm4, %v8319_v34  ;;  %v6995_v54 = vpop.permute.xlu1 %6994  ;;  %9112 = vmatprep.mubr.msk.bf16.mxu1 %vm4132_vm9, %v8082_v60  ;;  %vm12093_vm4 = vmmov %vm12089_vm0  ;;  %v9272_v60 = vld [vmem:[%s9375_s22 + $0xa8] sm:$0xff] }
 0x3d0   : > { %8349 = vst.msk [vmem:[%s11875_s27 + $0x8] sm:$0xff] %vm12078_vm5, %v8317_v7  ;;  %vm12094_vm5 = vmmov %vm12089_vm0 }
 0x3d1   : > { %7027 = vst.msk [vmem:[#allocation3 + $0x78] sm:$0xff] %vm12079_vm3, %v6995_v54  ;;  %v9090_v2 = vpop.f32.mrb[4].mxu1  ;;  %vm12095_vm3 = vmmov %vm12089_vm0 }
 0x3d2   : > { %v8322_v4 = vadd.f32 %v9253_v53, %v9090_v2  ;;  %v8205_v51 = vpop.f32.mrb[5].mxu1 }
 0x3d3   : > { %v7171_v21 = vpop.permute.xlu1 %7170  ;;  %v8320_v29 = vadd.f32 %v9254_v10, %v8205_v51  ;;  %v9091_v41 = vpop.f32.mrb[6].mxu1  ;;  %v9274_v51 = vld [vmem:[%s9375_s22 + $0xc0] sm:$0xff] }
 0x3d4   : > { %7203 = vst.msk [vmem:[#allocation3 + $0x78] sm:$0xff] %vm12080_vm13, %v7171_v21  ;;  %v8323_v17 = vadd.f32 %v9255_v39, %v9091_v41  ;;  %v8208_v16 = vpop.f32.mrb[7].mxu1  ;;  %vm12096_vm13 = vmmov %vm12089_vm0  ;;  %v9273_v21 = vld [vmem:[%s9375_s22 + $0xd0] sm:$0xff]  ;;  %v9275_v41 = vld [vmem:[%s9375_s22 + $0xd8] sm:$0xff] }
 0x3d5   : > { %8354 = vst.msk [vmem:[%s11875_s27 + $0x30] sm:$0xff] %vm12081_vm14, %v8322_v4  ;;  %v8321_v11 = vadd.f32 %v9256_v13, %v8208_v16  ;;  %vm12097_vm14 = vmmov %vm12089_vm0  ;;  %v9276_v16 = vld [vmem:[%s9375_s22 + $0xc8] sm:$0xff] }
 0x3d6   : > { %8352 = vst.msk [vmem:[%s11875_s27 + $0x20] sm:$0xff] %vm12082_vm15, %v8320_v29  ;;  %vm12098_vm15 = vmmov %vm12089_vm0 }
 0x3d7   : > { %v7715_v0 = vpop.permute.xlu1 %7714  ;;  %8355 = vst.msk [vmem:[%s11875_s27 + $0x38] sm:$0xff] %vm12083_vm7, %v8323_v17  ;;  %vm12099_vm7 = vmmov %vm12089_vm0 }
 0x3d8   : > { %7747 = vst.msk [vmem:[#allocation3 + $0x78] sm:$0xff] %vm3758_vm10, %v7715_v0  ;;  %vm12085_vm10 = vmmov %vm12075_vm1  ;;  %v9277_v0 = vld [vmem:[%s9375_s22 + $0xf0] sm:$0xff] }
 0x3d9   : > { %8353 = vst.msk [vmem:[%s11875_s27 + $0x28] sm:$0xff] %vm12084_vm6, %v8321_v11  ;;  %vm12100_vm6 = vmmov %vm12089_vm0 }
 0x3db   : > { %v8035_v22 = vpop.permute.xlu1 %8034 }
 0x3dc   : > { %8067 = vst.msk [vmem:[#allocation3 + $0x78] sm:$0xff] %vm4079_vm11, %v8035_v22  ;;  %vm12086_vm11 = vmmov %vm12075_vm1 }
 0x3e3   : > { %v8083_v42 = vld [vmem:[#allocation3 + $0x78] sm:$0xff] }
 0x3e4   : > { %9113 = vmatmul.mubr.msk.bf16.gmra.mrb[28].mxu1 %vm4132_vm9, %v8083_v42  ;;  %vm12087_vm9 = vmmov %vm12075_vm1 }
 0x3e5   : > { %vm12091_vm1 = vmmov %vm12089_vm0 }
 0x3fb   : > { %v9094_v50 = vpop.f32.mrb[8].mxu1 }
 0x3fc   : > { %v8326_v52 = vadd.f32 %v9257_v24, %v9094_v50  ;;  %v8221_v5 = vpop.f32.mrb[9].mxu1  ;;  %v9278_v50 = vld [vmem:[%s9375_s22 + $0xe0] sm:$0xff] }
 0x3fd   : > { %v8324_v1 = vadd.f32 %v9258_v49, %v8221_v5  ;;  %v9095_v12 = vpop.f32.mrb[10].mxu1  ;;  %v9279_v5 = vld [vmem:[%s9375_s22 + $0xf8] sm:$0xff] }
 0x3fe   : > { %8358 = vst.msk [vmem:[%s11875_s27 + $0x50] sm:$0xff] %vm12085_vm10, %v8326_v52  ;;  %v8327_v56 = vadd.f32 %v9259_v43, %v9095_v12  ;;  %v8224_v9 = vpop.f32.mrb[11].mxu1  ;;  %vm12101_vm10 = vmmov %vm12089_vm0  ;;  %v9280_v12 = vld [vmem:[%s9375_s22 + $0xe8] sm:$0xff] }
 0x3ff   : > { %8356 = vst.msk [vmem:[%s11875_s27 + $0x40] sm:$0xff] %vm12086_vm11, %v8324_v1  ;;  %v8325_v19 = vadd.f32 %v9260_v45, %v8224_v9  ;;  %vm12102_vm11 = vmmov %vm12089_vm0 }
 0x400   : > { %8359 = vst.msk [vmem:[%s11875_s27 + $0x58] sm:$0xff] %vm12087_vm9, %v8327_v56  ;;  %vm12103_vm9 = vmmov %vm12089_vm0 }
 0x401   : > { %8357 = vst.msk [vmem:[%s11875_s27 + $0x48] sm:$0xff] %vm12088_vm12, %v8325_v19  ;;  %vm12104_vm12 = vmmov %vm12089_vm0 }
 0x42a   : > { %v9098_v33 = vpop.f32.mrb[12].mxu1 }
 0x42b   : > { %v8330_v3 = vadd.f32 %v9261_v44, %v9098_v33  ;;  %v8237_v46 = vpop.f32.mrb[13].mxu1 }
 0x42c   : > { %v8328_v47 = vadd.f32 %v9262_v23, %v8237_v46  ;;  %v9099_v62 = vpop.f32.mrb[14].mxu1 }
 0x42d   : > { %8362 = vst.msk [vmem:[%s11875_s27 + $0x70] sm:$0xff] %vm12089_vm0, %v8330_v3  ;;  %v8331_v58 = vadd.f32 %v9263_v27, %v9099_v62  ;;  %v8240_v36 = vpop.f32.mrb[15].mxu1 }
 0x42e   : > { %8360 = vst.msk [vmem:[%s11875_s27 + $0x60] sm:$0xff] %vm12090_vm8, %v8328_v47  ;;  %v8329_v14 = vadd.f32 %v9264_v40, %v8240_v36  ;;  %vm12105_vm8 = vmmov %vm12089_vm0 }
 0x42f   : > { %8363 = vst.msk [vmem:[%s11875_s27 + $0x78] sm:$0xff] %vm12091_vm1, %v8331_v58  ;;  %vm12106_vm1 = vmmov %vm12089_vm0 }
 0x430   : > { %8361 = vst.msk [vmem:[%s11875_s27 + $0x68] sm:$0xff] %vm12092_vm2, %v8329_v14  ;;  %vm12107_vm2 = vmmov %vm12089_vm0 }
 0x458   : > { %v9102_v48 = vpop.f32.mrb[16].mxu1 }
 0x459   : > { %v8334_v61 = vadd.f32 %v9265_v20, %v9102_v48  ;;  %v8253_v26 = vpop.f32.mrb[17].mxu1 }
 0x45a   : > { %v8332_v30 = vadd.f32 %v9266_v15, %v8253_v26  ;;  %v9103_v18 = vpop.f32.mrb[18].mxu1 }
 0x45b   : > { %8366 = vst.msk [vmem:[%s11875_s27 + $0x90] sm:$0xff] %vm12093_vm4, %v8334_v61  ;;  %v8335_v57 = vadd.f32 %v9267_v6, %v9103_v18  ;;  %v8256_v63 = vpop.f32.mrb[19].mxu1 }
 0x45c   : > { %8364 = vst.msk [vmem:[%s11875_s27 + $0x80] sm:$0xff] %vm12094_vm5, %v8332_v30  ;;  %v8333_v59 = vadd.f32 %v9268_v31, %v8256_v63 }
 0x45d   : > { %8367 = vst.msk [vmem:[%s11875_s27 + $0x98] sm:$0xff] %vm12095_vm3, %v8335_v57 }
 0x45e   : > { %8365 = vst.msk [vmem:[%s11875_s27 + $0x88] sm:$0xff] %vm12096_vm13, %v8333_v59 }
 0x486   : > { %v9106_v32 = vpop.f32.mrb[20].mxu1 }
 0x487   : > { %v8338_v55 = vadd.f32 %v9269_v37, %v9106_v32  ;;  %v8269_v35 = vpop.f32.mrb[21].mxu1 }
 0x488   : > { %v8336_v8 = vadd.f32 %v9270_v25, %v8269_v35  ;;  %v9107_v34 = vpop.f32.mrb[22].mxu1 }
 0x489   : > { %8370 = vst.msk [vmem:[%s11875_s27 + $0xb0] sm:$0xff] %vm12097_vm14, %v8338_v55  ;;  %v8339_v38 = vadd.f32 %v9271_v28, %v9107_v34  ;;  %v8272_v7 = vpop.f32.mrb[23].mxu1 }
 0x48a   : > { %8368 = vst.msk [vmem:[%s11875_s27 + $0xa0] sm:$0xff] %vm12098_vm15, %v8336_v8  ;;  %v8337_v54 = vadd.f32 %v9272_v60, %v8272_v7 }
 0x48b   : > { %8371 = vst.msk [vmem:[%s11875_s27 + $0xb8] sm:$0xff] %vm12099_vm7, %v8339_v38 }
 0x48c   : > { %8369 = vst.msk [vmem:[%s11875_s27 + $0xa8] sm:$0xff] %vm12100_vm6, %v8337_v54 }
 0x496   : > { %v9110_v2 = vpop.f32.mrb[24].mxu1 }
 0x497   : > { %v8342_v53 = vadd.f32 %v9273_v21, %v9110_v2  ;;  %v8285_v4 = vpop.f32.mrb[25].mxu1 }
 0x498   : > { %v8340_v10 = vadd.f32 %v9274_v51, %v8285_v4  ;;  %v9111_v29 = vpop.f32.mrb[26].mxu1 }
 0x499   : > { %8374 = vst.msk [vmem:[%s11875_s27 + $0xd0] sm:$0xff] %vm12101_vm10, %v8342_v53  ;;  %v8343_v39 = vadd.f32 %v9275_v41, %v9111_v29  ;;  %v8288_v17 = vpop.f32.mrb[27].mxu1 }
 0x49a   : > { %8372 = vst.msk [vmem:[%s11875_s27 + $0xc0] sm:$0xff] %vm12102_vm11, %v8340_v10  ;;  %v8341_v13 = vadd.f32 %v9276_v16, %v8288_v17 }
 0x49b   : > { %8375 = vst.msk [vmem:[%s11875_s27 + $0xd8] sm:$0xff] %vm12103_vm9, %v8343_v39 }
 0x49c   : > { %8373 = vst.msk [vmem:[%s11875_s27 + $0xc8] sm:$0xff] %vm12104_vm12, %v8341_v13 }
 0x4b7   : > { %v9114_v11 = vpop.f32.mrb[28].mxu1 }
 0x4b8   : > { %v8346_v22 = vadd.f32 %v9277_v0, %v9114_v11  ;;  %v8301_v42 = vpop.f32.mrb[29].mxu1 }
 0x4b9   : > { %v8344_v24 = vadd.f32 %v9278_v50, %v8301_v42  ;;  %v9115_v52 = vpop.f32.mrb[30].mxu1 }
 0x4ba   : > { %8378 = vst.msk [vmem:[%s11875_s27 + $0xf0] sm:$0xff] %vm12089_vm0, %v8346_v22  ;;  %v8347_v49 = vadd.f32 %v9279_v5, %v9115_v52  ;;  %v8304_v1 = vpop.f32.mrb[31].mxu1 }
 0x4bb   : > { %8376 = vst.msk [vmem:[%s11875_s27 + $0xe0] sm:$0xff] %vm12105_vm8, %v8344_v24  ;;  %v8345_v43 = vadd.f32 %v9280_v12, %v8304_v1 }
 0x4bc   : > { %8379 = vst.msk [vmem:[%s11875_s27 + $0xf8] sm:$0xff] %vm12106_vm1, %v8347_v49 }
 0x4bd   : > { %8377 = vst.msk [vmem:[%s11875_s27 + $0xe8] sm:$0xff] %vm12107_vm2, %v8345_v43 }
 0x4be PF: > { %s14_s15 = sadd.s32 1, %s9287_s15  }
 0x4bf   : > { %p11_p4 = scmp.ge.s32.totalorder %s14_s15, 4  }
 0x4c1   :  { %13 = sbr.rel (!%p11_p4) target bundleno = 1 (0x1), region = 69 }

</bundles_post_ra>
